<compile_context>
chip_gen: v5e
topology: v5e:2x2
jax: 0.10.0
libtpu: 0.0.40
codegen_flags: <defaults>
</compile_context>

<pallas_src>
import functools

import numpy as np

import jax
import jax.numpy as jnp
from jax.experimental import pallas as pl
from jax.experimental.pallas import tpu as pltpu

NUM_CLASSES = 200


def _round_up(a, b):
    return -(-a // b) * b


# ----------------------------- Pallas kernels ------------------------------

def _matmul_bias_kernel(x_ref, w_ref, b_ref, o_ref):
    acc = jnp.dot(x_ref[...], w_ref[...], preferred_element_type=jnp.float32)
    o_ref[...] = (acc + b_ref[...]).astype(o_ref.dtype)


def matmul_bias(x, w, b):
    """y = x @ w + b.  x:[M,KP] bf16 (K pre-padded), w:[KP,N] bf16, b:[N] f32 -> f32."""
    x = x.astype(jnp.bfloat16)
    M, KP = x.shape
    N = w.shape[1]
    # Big row tiles (review), VMEM-budgeted (single-buffered x block <= ~8 MiB),
    # and >= 2 grid steps whenever M allows (keeps both v7x TensorCores busy).
    bytes_per_row = KP * 2 + N * 4
    tm = max(8, min(4096,
                    (8 * 1024 * 1024) // bytes_per_row // 8 * 8,
                    _round_up(-(-M // 2), 8)))
    m_pad = _round_up(M, tm)
    if m_pad != M:
        x = jnp.pad(x, ((0, m_pad - M), (0, 0)))
    out = pl.pallas_call(
        _matmul_bias_kernel,
        out_shape=jax.ShapeDtypeStruct((m_pad, N), jnp.float32),
        grid=(m_pad // tm,),
        in_specs=[
            pl.BlockSpec((tm, KP), lambda i: (i, 0)),
            pl.BlockSpec((KP, N), lambda i: (0, 0)),
            pl.BlockSpec((1, N), lambda i: (0, 0)),
        ],
        out_specs=pl.BlockSpec((tm, N), lambda i: (i, 0)),
        compiler_params=pltpu.CompilerParams(dimension_semantics=("parallel",)),
    )(x, w, b.reshape(1, N))
    return out[:M]


def _conv_pool_kernel(cols_ref, w_ref, b_ref, o_ref, *, n_pool, op):
    """Fused deform-conv matmul (per pool tap) + BN-folded bias + ReLU + pooling.

    cols_ref: [n_pool, tm, KP] bf16 — tap t holds the im2col rows of the t-th pixel of
    each pooling window.  Pooling is a cheap VPU combine over taps; the MXU only does
    the bf16 conv matmuls.  Output is a single lane-dense 2-D store.
    """
    w = w_ref[...]
    b = b_ref[...]
    if op == "max":
        # max-pool commutes with (+bias, ReLU): combine raw accumulators, epilogue once.
        acc = jnp.dot(cols_ref[0], w, preferred_element_type=jnp.float32)
        for t in range(1, n_pool):
            acc = jnp.maximum(
                acc, jnp.dot(cols_ref[t], w, preferred_element_type=jnp.float32))
        o_ref[...] = jnp.maximum(acc + b, 0.0).astype(o_ref.dtype)
    else:  # mean: ReLU must be applied per tap before averaging
        acc = jnp.maximum(
            jnp.dot(cols_ref[0], w, preferred_element_type=jnp.float32) + b, 0.0)
        for t in range(1, n_pool):
            acc = acc + jnp.maximum(
                jnp.dot(cols_ref[t], w, preferred_element_type=jnp.float32) + b, 0.0)
        o_ref[...] = (acc * (1.0 / n_pool)).astype(o_ref.dtype)


def conv_pool(cols, w, b, op):
    """cols:[n_pool, M, KP] bf16; w:[KP,Cout] bf16; b:[Cout] f32 -> pooled [M, Cout] f32."""
    cols = cols.astype(jnp.bfloat16)
    n_pool, M, KP = cols.shape
    Cout = w.shape[1]
    # VMEM-budgeted row tile: single-buffered cols block <= ~12 MiB so the call stays
    # under the 32 MiB scoped default (and v7x's 64 MiB physical) with double buffering.
    bytes_per_row = n_pool * KP * 2 + Cout * 4
    tm = max(8, min(2048,
                    (12 * 1024 * 1024) // bytes_per_row // 8 * 8,
                    _round_up(-(-M // 2), 8)))
    m_pad = _round_up(M, tm)
    if m_pad != M:
        cols = jnp.pad(cols, ((0, 0), (0, m_pad - M), (0, 0)))
    out = pl.pallas_call(
        functools.partial(_conv_pool_kernel, n_pool=n_pool, op=op),
        out_shape=jax.ShapeDtypeStruct((m_pad, Cout), jnp.float32),
        grid=(m_pad // tm,),
        in_specs=[
            pl.BlockSpec((n_pool, tm, KP), lambda i: (0, i, 0)),
            pl.BlockSpec((KP, Cout), lambda i: (0, 0)),
            pl.BlockSpec((1, Cout), lambda i: (0, 0)),
        ],
        out_specs=pl.BlockSpec((tm, Cout), lambda i: (i, 0)),
        compiler_params=pltpu.CompilerParams(dimension_semantics=("parallel",)),
    )(cols, w, b.reshape(1, Cout))
    return out[:M]


def _fc_fused_kernel(x_ref, w1_ref, b1_ref, w2_ref, b2_ref, o_ref):
    h = jnp.dot(x_ref[...], w1_ref[...], preferred_element_type=jnp.float32)
    h = jnp.maximum(h + b1_ref[...], 0.0)
    # Dropout(p=0.5) is identity in eval mode; hidden h never leaves VMEM.
    o = jnp.dot(h.astype(w2_ref.dtype), w2_ref[...], preferred_element_type=jnp.float32)
    o_ref[...] = (o + b2_ref[...]).astype(o_ref.dtype)


def fc_fused(x, w1, b1, w2, b2):
    """logits = fc2(relu(fc1(x))), single pallas_call with a parallel row-block grid."""
    M, K = x.shape
    N1 = w1.shape[1]
    N2 = w2.shape[1]
    tm = max(8, min(1024, _round_up(-(-M // 2), 8)))   # ~2 blocks -> both v7x TCs
    m_pad = _round_up(M, tm)
    x = x.astype(jnp.bfloat16)
    if m_pad != M:
        x = jnp.pad(x, ((0, m_pad - M), (0, 0)))
    out = pl.pallas_call(
        _fc_fused_kernel,
        out_shape=jax.ShapeDtypeStruct((m_pad, N2), jnp.float32),
        grid=(m_pad // tm,),
        in_specs=[
            pl.BlockSpec((tm, K), lambda i: (i, 0)),
            pl.BlockSpec((K, N1), lambda i: (0, 0)),
            pl.BlockSpec((1, N1), lambda i: (0, 0)),
            pl.BlockSpec((N1, N2), lambda i: (0, 0)),
            pl.BlockSpec((1, N2), lambda i: (0, 0)),
        ],
        out_specs=pl.BlockSpec((tm, N2), lambda i: (i, 0)),
        compiler_params=pltpu.CompilerParams(dimension_semantics=("parallel",)),
    )(x, w1, b1.reshape(1, N1), w2, b2.reshape(1, N2))
    return out[:M]


# ------------------------------- JAX glue -----------------------------------

def im2col_3x3(x, kpad, pad=1):
    """Regular 3x3/stride1 im2col, tap-major, emitted directly in bf16 with K padded.

    x:[B,H,W,C] -> [B*H*W, kpad] bf16 (rows in (b,y,x) order).
    """
    B, H, W, C = x.shape
    xp = jnp.pad(x, ((0, 0), (pad, pad), (pad, pad), (0, 0)))
    patches = [xp[:, kh:kh + H, kw:kw + W, :] for kh in range(3) for kw in range(3)]
    p = jnp.concatenate(patches, axis=-1).astype(jnp.bfloat16)   # [B,H,W,9*C]
    if kpad > 9 * C:
        p = jnp.pad(p, ((0, 0), (0, 0), (0, 0), (0, kpad - 9 * C)))
    return p.reshape(B * H * W, kpad)


def deform_im2col_pooled(x, offsets, pool_h, pool_w, kpad, K=3, pad=1):
    """Deformable im2col (torchvision DeformConv2d semantics), pool-tap-major rows.

    x: [B,H,W,C]; offsets: [B,H,W,2*K*K] with (dy,dx) pairs per kernel tap (row-major).
    Returns cols [n_pool, B*H_out*W_out, kpad] bf16 where row (t, b*Nsp + yo*W_out + xo)
    is the tap-major (KK,C) im2col vector of input pixel (yo*pool_h + t//pool_w,
    xo*pool_w + t%pool_w).  The reordering is built into the gather indices (no extra
    HBM transpose of the big cols tensor).
    """
    B, H, W, C = x.shape
    KK = K * K
    H_out, W_out = H // pool_h, W // pool_w
    n_pool = pool_h * pool_w
    N_sp = H_out * W_out

    # Static source-pixel coordinates for each (pool-tap, spatial-output) row.
    t_np = np.arange(n_pool)
    j_np = np.arange(N_sp)
    y_src_np = (j_np[None, :] // W_out) * pool_h + (t_np[:, None] // pool_w)
    x_src_np = (j_np[None, :] % W_out) * pool_w + (t_np[:, None] % pool_w)
    y_src = jnp.asarray(y_src_np, jnp.int32)[:, None, :]          # [n_pool,1,N_sp]
    x_src = jnp.asarray(x_src_np, jnp.int32)[:, None, :]
    b_idx = jnp.arange(B, dtype=jnp.int32)[None, :, None]         # [1,B,1]

    off = offsets.reshape(B, H, W, KK, 2)
    off_sel = off[b_idx, y_src, x_src]                            # [n_pool,B,N_sp,KK,2]
    dy, dx = off_sel[..., 0], off_sel[..., 1]

    kh = jnp.arange(KK, dtype=jnp.float32) // K
    kw = jnp.arange(KK, dtype=jnp.float32) % K
    py = (y_src.astype(jnp.float32)[..., None] - pad) + kh + dy   # [n_pool,B,N_sp,KK]
    px = (x_src.astype(jnp.float32)[..., None] - pad) + kw + dx
    y0 = jnp.floor(py)
    x0 = jnp.floor(px)
    wy1 = py - y0
    wx1 = px - x0
    wy0 = 1.0 - wy1
    wx0 = 1.0 - wx1

    x_flat = x.reshape(B * H * W, C)
    base = (b_idx * (H * W))[..., None]                           # [1,B,1,1]

    def corner(yc, xc):
        valid = (yc >= 0) & (yc <= H - 1) & (xc >= 0) & (xc <= W - 1)
        yi = jnp.clip(yc, 0, H - 1).astype(jnp.int32)
        xi = jnp.clip(xc, 0, W - 1).astype(jnp.int32)
        idx = base + yi * W + xi                                  # [n_pool,B,N_sp,KK]
        vals = jnp.take(x_flat, idx, axis=0)                      # [n_pool,B,N_sp,KK,C]
        return vals * valid[..., None].astype(x.dtype)

    v00 = corner(y0, x0)
    v01 = corner(y0, x0 + 1.0)
    v10 = corner(y0 + 1.0, x0)
    v11 = corner(y0 + 1.0, x0 + 1.0)
    sampled = (v00 * (wy0 * wx0)[..., None] + v01 * (wy0 * wx1)[..., None]
               + v10 * (wy1 * wx0)[..., None] + v11 * (wy1 * wx1)[..., None])
    cols = sampled.astype(jnp.bfloat16).reshape(n_pool, B * N_sp, KK * C)
    if kpad > KK * C:
        cols = jnp.pad(cols, ((0, 0), (0, 0), (0, kpad - KK * C)))
    return cols


# ------------------------------- Model ---------------------------------------

def deform_conv_block(x, p, pool_h, pool_w, pool_op):
    """DeformConvBlock + following pool: offset_conv -> DeformConv2d -> BN(eval) -> ReLU -> pool."""
    B, H, W, _ = x.shape
    kp_off = p["offset_w"].shape[0]
    off = matmul_bias(im2col_3x3(x, kp_off), p["offset_w"], p["offset_b"])  # [B*H*W, 32] f32
    off = off[:, :2 * 9].reshape(B, H, W, 2 * 9)
    kp_def = p["deform_w"].shape[0]
    cols = deform_im2col_pooled(x, off, pool_h, pool_w, kp_def)   # [n_pool, B*Ho*Wo, KP]
    out = conv_pool(cols, p["deform_w"], p["deform_b"], pool_op)  # [B*Ho*Wo, Cout]
    return out.reshape(B, H // pool_h, W // pool_w, p["deform_w"].shape[1])


def tiny_imagenet_cnn_forward(x_nchw, p):
    x = jnp.transpose(x_nchw, (0, 2, 3, 1))                # NCHW -> NHWC (lane-dense C)
    x = deform_conv_block(x, p["conv1"], 2, 2, "max")      # conv1 + MaxPool2d(2)
    B, H2, W2, _ = x.shape
    assert H2 % 4 == 0 and W2 % 4 == 0
    x = deform_conv_block(x, p["conv2"], H2 // 4, W2 // 4, "mean")  # conv2 + AdaptiveAvgPool2d((4,4))
    feat = x.reshape(x.shape[0], -1)                       # NHWC flatten; fc1_w pre-permuted to match
    logits = fc_fused(feat, p["fc1_w"], p["fc1_b"], p["fc2_w"], p["fc2_b"])
    return logits[:, :NUM_CLASSES]                         # drop lane padding (256 -> 200)


# ----------------------- Weight preparation (one-time) ------------------------

def _fold_block(p):
    """PyTorch-layout block params -> matmul-ready bf16 weights (BN folded, tap-major rows)."""
    cin = p["offset_w"].shape[1]
    cout = p["deform_w"].shape[0]
    kdim = 9 * cin
    kpad = _round_up(kdim, 16)
    npad = 32                                              # offset output padded 18 -> 32 lanes only
    ow = p["offset_w"].transpose(2, 3, 1, 0).reshape(kdim, 2 * 9)
    ow = jnp.pad(ow, ((0, kpad - kdim), (0, npad - 2 * 9)))
    ob = jnp.pad(p["offset_b"], (0, npad - 2 * 9))
    scale = p["bn_gamma"] / jnp.sqrt(p["bn_var"] + 1e-5)   # eval-mode BN folding
    wf = p["deform_w"] * scale[:, None, None, None]
    bf = (p["deform_b"] - p["bn_mean"]) * scale + p["bn_beta"]
    dw = wf.transpose(2, 3, 1, 0).reshape(kdim, cout)
    dw = jnp.pad(dw, ((0, kpad - kdim), (0, 0)))
    return {
        "offset_w": ow.astype(jnp.bfloat16),
        "offset_b": ob.astype(jnp.float32),
        "deform_w": dw.astype(jnp.bfloat16),
        "deform_b": bf.astype(jnp.float32),
    }


def prepare_params(params):
    """One-time (outside jit) conversion of PyTorch-layout params to kernel layout."""
    # fc1: permute input columns from torch (C,H,W)-flatten to NHWC-flatten order so the
    # runtime activation needs no transpose; transpose to [K, N] matmul form.
    fc1_w = params["fc1_w"].reshape(512, 128, 4, 4).transpose(0, 2, 3, 1).reshape(512, 2048)
    n2 = _round_up(NUM_CLASSES, 128)                       # 256: lane-dense fc2 output
    fc2_w = jnp.pad(params["fc2_w"], ((0, n2 - NUM_CLASSES), (0, 0)))
    fc2_b = jnp.pad(params["fc2_b"], (0, n2 - NUM_CLASSES))
    return {
        "conv1": _fold_block(params["conv1"]),
        "conv2": _fold_block(params["conv2"]),
        "fc1_w": fc1_w.T.astype(jnp.bfloat16),             # [2048, 512]
        "fc1_b": params["fc1_b"].astype(jnp.float32),
        "fc2_w": fc2_w.T.astype(jnp.bfloat16),              # [512, 256]
        "fc2_b": fc2_b.astype(jnp.float32),
    }


# --------------------------- Deterministic init -------------------------------

def _normal(key, shape, scale=0.1):
    return (scale * jax.random.normal(key, shape)).astype(jnp.float32)


def _init_block(key, cin, cout):
    k = jax.random.split(key, 8)
    return {
        "offset_w": _normal(k[0], (2 * 9, cin, 3, 3), 0.05),
        "offset_b": _normal(k[1], (2 * 9,), 0.05),
        "deform_w": _normal(k[2], (cout, cin, 3, 3), 0.1),
        "deform_b": _normal(k[3], (cout,), 0.1),
        "bn_gamma": 1.0 + _normal(k[4], (cout,), 0.1),
        "bn_beta": _normal(k[5], (cout,), 0.1),
        "bn_mean": _normal(k[6], (cout,), 0.1),
        "bn_var": 0.5 + jnp.abs(_normal(k[7], (cout,), 0.2)),
    }


def init_params(key):
    k = jax.random.split(key, 6)
    return {
        "conv1": _init_block(k[0], 3, 64),
        "conv2": _init_block(k[1], 64, 128),
        "fc1_w": _normal(k[2], (512, 128 * 4 * 4), 0.02),
        "fc1_b": _normal(k[3], (512,), 0.02),
        "fc2_w": _normal(k[4], (NUM_CLASSES, 512), 0.02),
        "fc2_b": _normal(k[5], (512,), 0.02)[:NUM_CLASSES],
    }


if __name__ == "__main__":
    key = jax.random.PRNGKey(0)
    pkey, xkey = jax.random.split(key)
    params = init_params(pkey)
    prepared = prepare_params(params)                      # one-time weight folding/permutation
    # Small input consistent with the module: NCHW [batch=2, C=3, 16, 16]
    x = jax.random.normal(xkey, (2, 3, 16, 16), dtype=jnp.float32)
    fwd = jax.jit(tiny_imagenet_cnn_forward)
    out = fwd(x, prepared)
    jax.block_until_ready(out)
    assert out.shape == (2, NUM_CLASSES) and out.dtype == jnp.float32
    assert bool(jnp.all(jnp.isfinite(out)))
    print("KERNEL_OK")
</pallas_src>

<mosaic_0001>
module attributes {stable_mosaic.version = 11 : i64} {
  func.func @_matmul_bias_kernel(%arg0: i32, %arg1: memref<256x32xbf16, #tpu.memory_space<vmem>>, %arg2: memref<32x32xbf16, #tpu.memory_space<vmem>>, %arg3: memref<1x32xf32, #tpu.memory_space<vmem>>, %arg4: memref<256x32xf32, #tpu.memory_space<vmem>>) attributes {dimension_semantics = [#tpu.dimension_semantics<parallel>], iteration_bounds = array<i64: 2>, scalar_prefetch = 0 : i64, scratch_operands = 0 : i64, tpu.core_type = #tpu.core_type<tc>, window_params = [{transform_indices = @transform_0, window_bounds = array<i64: 256, 32>}, {pipeline_mode = #tpu.pipeline_mode<synchronous>, transform_indices = @transform_1, window_bounds = array<i64: 32, 32>}, {pipeline_mode = #tpu.pipeline_mode<synchronous>, transform_indices = @transform_2, window_bounds = array<i64: 1, 32>}, {transform_indices = @transform_3, window_bounds = array<i64: 256, 32>}]} {
    %c0 = arith.constant 0 : index
    %c0_0 = arith.constant 0 : index
    %0 = vector.load %arg1[%c0, %c0_0] : memref<256x32xbf16, #tpu.memory_space<vmem>>, vector<256x32xbf16>
    %c0_1 = arith.constant 0 : index
    %c0_2 = arith.constant 0 : index
    %1 = vector.load %arg2[%c0_1, %c0_2] : memref<32x32xbf16, #tpu.memory_space<vmem>>, vector<32x32xbf16>
    %cst = arith.constant dense<0.000000e+00> : vector<256x32xf32>
    %2 = tpu.matmul %0, %1, %cst {dimension_numbers = #tpu.dot_dimension_numbers<[1], [0], [0], [1], [0, 0, 1, 1], [], []>} : vector<256x32xbf16>, vector<32x32xbf16>, vector<256x32xf32> -> vector<256x32xf32>
    %c0_3 = arith.constant 0 : index
    %c0_4 = arith.constant 0 : index
    %3 = vector.load %arg3[%c0_3, %c0_4] : memref<1x32xf32, #tpu.memory_space<vmem>>, vector<1x32xf32>
    %4 = vector.broadcast %3 : vector<1x32xf32> to vector<256x32xf32>
    %5 = arith.addf %2, %4 : vector<256x32xf32>
    %c0_5 = arith.constant 0 : index
    %c0_6 = arith.constant 0 : index
    %6 = vector.load %arg4[%c0_5, %c0_6] : memref<256x32xf32, #tpu.memory_space<vmem>>, vector<256x32xf32>
    tpu.vector_store %arg4[%c0_5, %c0_6], %5 {strides = array<i32>} : memref<256x32xf32, #tpu.memory_space<vmem>>, vector<256x32xf32>,
    return
  }
  func.func @transform_0(%arg0: i32) -> (i32, i32) {
    %c0_i32 = arith.constant 0 : i32
    %c0_i32_0 = arith.constant 0 : i32
    return %arg0, %c0_i32 : i32, i32
  }
  func.func @transform_1(%arg0: i32) -> (i32, i32) {
    %c0_i32 = arith.constant 0 : i32
    %c0_i32_0 = arith.constant 0 : i32
    %c0_i32_1 = arith.constant 0 : i32
    return %c0_i32, %c0_i32_0 : i32, i32
  }
  func.func @transform_2(%arg0: i32) -> (i32, i32) {
    %c0_i32 = arith.constant 0 : i32
    %c0_i32_0 = arith.constant 0 : i32
    %c0_i32_1 = arith.constant 0 : i32
    return %c0_i32, %c0_i32_0 : i32, i32
  }
  func.func @transform_3(%arg0: i32) -> (i32, i32) {
    %c0_i32 = arith.constant 0 : i32
    %c0_i32_0 = arith.constant 0 : i32
    return %arg0, %c0_i32 : i32, i32
  }
}

module attributes {stable_mosaic.version = 11 : i64} {
  func.func @_conv_pool_kernel(%arg0: i32, %arg1: memref<4x64x32xbf16, #tpu.memory_space<vmem>>, %arg2: memref<32x64xbf16, #tpu.memory_space<vmem>>, %arg3: memref<1x64xf32, #tpu.memory_space<vmem>>, %arg4: memref<64x64xf32, #tpu.memory_space<vmem>>) attributes {dimension_semantics = [#tpu.dimension_semantics<parallel>], iteration_bounds = array<i64: 2>, scalar_prefetch = 0 : i64, scratch_operands = 0 : i64, tpu.core_type = #tpu.core_type<tc>, window_params = [{transform_indices = @transform_0, window_bounds = array<i64: 4, 64, 32>}, {pipeline_mode = #tpu.pipeline_mode<synchronous>, transform_indices = @transform_1, window_bounds = array<i64: 32, 64>}, {pipeline_mode = #tpu.pipeline_mode<synchronous>, transform_indices = @transform_2, window_bounds = array<i64: 1, 64>}, {transform_indices = @transform_3, window_bounds = array<i64: 64, 64>}]} {
    %c0 = arith.constant 0 : index
    %c0_0 = arith.constant 0 : index
    %0 = vector.load %arg2[%c0, %c0_0] : memref<32x64xbf16, #tpu.memory_space<vmem>>, vector<32x64xbf16>
    %c0_1 = arith.constant 0 : index
    %c0_2 = arith.constant 0 : index
    %1 = vector.load %arg3[%c0_1, %c0_2] : memref<1x64xf32, #tpu.memory_space<vmem>>, vector<1x64xf32>
    %c0_3 = arith.constant 0 : index
    %c0_4 = arith.constant 0 : index
    %c0_5 = arith.constant 0 : index
    %2 = vector.load %arg1[%c0_3, %c0_4, %c0_5] : memref<4x64x32xbf16, #tpu.memory_space<vmem>>, vector<1x64x32xbf16>
    %3 = vector.shape_cast %2 : vector<1x64x32xbf16> to vector<64x32xbf16>
    %cst = arith.constant dense<0.000000e+00> : vector<64x64xf32>
    %4 = tpu.matmul %3, %0, %cst {dimension_numbers = #tpu.dot_dimension_numbers<[1], [0], [0], [1], [0, 0, 1, 1], [], []>} : vector<64x32xbf16>, vector<32x64xbf16>, vector<64x64xf32> -> vector<64x64xf32>
    %c1 = arith.constant 1 : index
    %c0_6 = arith.constant 0 : index
    %c0_7 = arith.constant 0 : index
    %5 = vector.load %arg1[%c1, %c0_6, %c0_7] : memref<4x64x32xbf16, #tpu.memory_space<vmem>>, vector<1x64x32xbf16>
    %6 = vector.shape_cast %5 : vector<1x64x32xbf16> to vector<64x32xbf16>
    %cst_8 = arith.constant dense<0.000000e+00> : vector<64x64xf32>
    %7 = tpu.matmul %6, %0, %cst_8 {dimension_numbers = #tpu.dot_dimension_numbers<[1], [0], [0], [1], [0, 0, 1, 1], [], []>} : vector<64x32xbf16>, vector<32x64xbf16>, vector<64x64xf32> -> vector<64x64xf32>
    %8 = arith.maximumf %4, %7 : vector<64x64xf32>
    %c2 = arith.constant 2 : index
    %c0_9 = arith.constant 0 : index
    %c0_10 = arith.constant 0 : index
    %9 = vector.load %arg1[%c2, %c0_9, %c0_10] : memref<4x64x32xbf16, #tpu.memory_space<vmem>>, vector<1x64x32xbf16>
    %10 = vector.shape_cast %9 : vector<1x64x32xbf16> to vector<64x32xbf16>
    %cst_11 = arith.constant dense<0.000000e+00> : vector<64x64xf32>
    %11 = tpu.matmul %10, %0, %cst_11 {dimension_numbers = #tpu.dot_dimension_numbers<[1], [0], [0], [1], [0, 0, 1, 1], [], []>} : vector<64x32xbf16>, vector<32x64xbf16>, vector<64x64xf32> -> vector<64x64xf32>
    %12 = arith.maximumf %8, %11 : vector<64x64xf32>
    %c3 = arith.constant 3 : index
    %c0_12 = arith.constant 0 : index
    %c0_13 = arith.constant 0 : index
    %13 = vector.load %arg1[%c3, %c0_12, %c0_13] : memref<4x64x32xbf16, #tpu.memory_space<vmem>>, vector<1x64x32xbf16>
    %14 = vector.shape_cast %13 : vector<1x64x32xbf16> to vector<64x32xbf16>
    %cst_14 = arith.constant dense<0.000000e+00> : vector<64x64xf32>
    %15 = tpu.matmul %14, %0, %cst_14 {dimension_numbers = #tpu.dot_dimension_numbers<[1], [0], [0], [1], [0, 0, 1, 1], [], []>} : vector<64x32xbf16>, vector<32x64xbf16>, vector<64x64xf32> -> vector<64x64xf32>
    %16 = arith.maximumf %12, %15 : vector<64x64xf32>
    %17 = vector.broadcast %1 : vector<1x64xf32> to vector<64x64xf32>
    %18 = arith.addf %16, %17 : vector<64x64xf32>
    %cst_15 = arith.constant 0.000000e+00 : f32
    %19 = vector.broadcast %cst_15 : f32 to vector<64x64xf32>
    %20 = arith.maximumf %18, %19 : vector<64x64xf32>
    %c0_16 = arith.constant 0 : index
    %c0_17 = arith.constant 0 : index
    %21 = vector.load %arg4[%c0_16, %c0_17] : memref<64x64xf32, #tpu.memory_space<vmem>>, vector<64x64xf32>
    tpu.vector_store %arg4[%c0_16, %c0_17], %20 {strides = array<i32>} : memref<64x64xf32, #tpu.memory_space<vmem>>, vector<64x64xf32>,
    return
  }
  func.func @transform_0(%arg0: i32) -> (i32, i32, i32) {
    %c0_i32 = arith.constant 0 : i32
    %c0_i32_0 = arith.constant 0 : i32
    %c0_i32_1 = arith.constant 0 : i32
    return %c0_i32, %arg0, %c0_i32_0 : i32, i32, i32
  }
  func.func @transform_1(%arg0: i32) -> (i32, i32) {
    %c0_i32 = arith.constant 0 : i32
    %c0_i32_0 = arith.constant 0 : i32
    %c0_i32_1 = arith.constant 0 : i32
    return %c0_i32, %c0_i32_0 : i32, i32
  }
  func.func @transform_2(%arg0: i32) -> (i32, i32) {
    %c0_i32 = arith.constant 0 : i32
    %c0_i32_0 = arith.constant 0 : i32
    %c0_i32_1 = arith.constant 0 : i32
    return %c0_i32, %c0_i32_0 : i32, i32
  }
  func.func @transform_3(%arg0: i32) -> (i32, i32) {
    %c0_i32 = arith.constant 0 : i32
    %c0_i32_0 = arith.constant 0 : i32
    return %arg0, %c0_i32 : i32, i32
  }
}

module attributes {stable_mosaic.version = 11 : i64} {
  func.func @_matmul_bias_kernel(%arg0: i32, %arg1: memref<64x576xbf16, #tpu.memory_space<vmem>>, %arg2: memref<576x32xbf16, #tpu.memory_space<vmem>>, %arg3: memref<1x32xf32, #tpu.memory_space<vmem>>, %arg4: memref<64x32xf32, #tpu.memory_space<vmem>>) attributes {dimension_semantics = [#tpu.dimension_semantics<parallel>], iteration_bounds = array<i64: 2>, scalar_prefetch = 0 : i64, scratch_operands = 0 : i64, tpu.core_type = #tpu.core_type<tc>, window_params = [{transform_indices = @transform_0, window_bounds = array<i64: 64, 576>}, {pipeline_mode = #tpu.pipeline_mode<synchronous>, transform_indices = @transform_1, window_bounds = array<i64: 576, 32>}, {pipeline_mode = #tpu.pipeline_mode<synchronous>, transform_indices = @transform_2, window_bounds = array<i64: 1, 32>}, {transform_indices = @transform_3, window_bounds = array<i64: 64, 32>}]} {
    %c0 = arith.constant 0 : index
    %c0_0 = arith.constant 0 : index
    %0 = vector.load %arg1[%c0, %c0_0] : memref<64x576xbf16, #tpu.memory_space<vmem>>, vector<64x576xbf16>
    %c0_1 = arith.constant 0 : index
    %c0_2 = arith.constant 0 : index
    %1 = vector.load %arg2[%c0_1, %c0_2] : memref<576x32xbf16, #tpu.memory_space<vmem>>, vector<576x32xbf16>
    %cst = arith.constant dense<0.000000e+00> : vector<64x32xf32>
    %2 = tpu.matmul %0, %1, %cst {dimension_numbers = #tpu.dot_dimension_numbers<[1], [0], [0], [1], [0, 0, 1, 1], [], []>} : vector<64x576xbf16>, vector<576x32xbf16>, vector<64x32xf32> -> vector<64x32xf32>
    %c0_3 = arith.constant 0 : index
    %c0_4 = arith.constant 0 : index
    %3 = vector.load %arg3[%c0_3, %c0_4] : memref<1x32xf32, #tpu.memory_space<vmem>>, vector<1x32xf32>
    %4 = vector.broadcast %3 : vector<1x32xf32> to vector<64x32xf32>
    %5 = arith.addf %2, %4 : vector<64x32xf32>
    %c0_5 = arith.constant 0 : index
    %c0_6 = arith.constant 0 : index
    %6 = vector.load %arg4[%c0_5, %c0_6] : memref<64x32xf32, #tpu.memory_space<vmem>>, vector<64x32xf32>
    tpu.vector_store %arg4[%c0_5, %c0_6], %5 {strides = array<i32>} : memref<64x32xf32, #tpu.memory_space<vmem>>, vector<64x32xf32>,
    return
  }
  func.func @transform_0(%arg0: i32) -> (i32, i32) {
    %c0_i32 = arith.constant 0 : i32
    %c0_i32_0 = arith.constant 0 : i32
    return %arg0, %c0_i32 : i32, i32
  }
  func.func @transform_1(%arg0: i32) -> (i32, i32) {
    %c0_i32 = arith.constant 0 : i32
    %c0_i32_0 = arith.constant 0 : i32
    %c0_i32_1 = arith.constant 0 : i32
    return %c0_i32, %c0_i32_0 : i32, i32
  }
  func.func @transform_2(%arg0: i32) -> (i32, i32) {
    %c0_i32 = arith.constant 0 : i32
    %c0_i32_0 = arith.constant 0 : i32
    %c0_i32_1 = arith.constant 0 : i32
    return %c0_i32, %c0_i32_0 : i32, i32
  }
  func.func @transform_3(%arg0: i32) -> (i32, i32) {
    %c0_i32 = arith.constant 0 : i32
    %c0_i32_0 = arith.constant 0 : i32
    return %arg0, %c0_i32 : i32, i32
  }
}

module attributes {stable_mosaic.version = 11 : i64} {
  func.func @_conv_pool_kernel(%arg0: i32, %arg1: memref<4x16x576xbf16, #tpu.memory_space<vmem>>, %arg2: memref<576x128xbf16, #tpu.memory_space<vmem>>, %arg3: memref<1x128xf32, #tpu.memory_space<vmem>>, %arg4: memref<16x128xf32, #tpu.memory_space<vmem>>) attributes {dimension_semantics = [#tpu.dimension_semantics<parallel>], iteration_bounds = array<i64: 2>, scalar_prefetch = 0 : i64, scratch_operands = 0 : i64, tpu.core_type = #tpu.core_type<tc>, window_params = [{transform_indices = @transform_0, window_bounds = array<i64: 4, 16, 576>}, {pipeline_mode = #tpu.pipeline_mode<synchronous>, transform_indices = @transform_1, window_bounds = array<i64: 576, 128>}, {pipeline_mode = #tpu.pipeline_mode<synchronous>, transform_indices = @transform_2, window_bounds = array<i64: 1, 128>}, {transform_indices = @transform_3, window_bounds = array<i64: 16, 128>}]} {
    %c0 = arith.constant 0 : index
    %c0_0 = arith.constant 0 : index
    %0 = vector.load %arg2[%c0, %c0_0] : memref<576x128xbf16, #tpu.memory_space<vmem>>, vector<576x128xbf16>
    %c0_1 = arith.constant 0 : index
    %c0_2 = arith.constant 0 : index
    %1 = vector.load %arg3[%c0_1, %c0_2] : memref<1x128xf32, #tpu.memory_space<vmem>>, vector<1x128xf32>
    %c0_3 = arith.constant 0 : index
    %c0_4 = arith.constant 0 : index
    %c0_5 = arith.constant 0 : index
    %2 = vector.load %arg1[%c0_3, %c0_4, %c0_5] : memref<4x16x576xbf16, #tpu.memory_space<vmem>>, vector<1x16x576xbf16>
    %3 = vector.shape_cast %2 : vector<1x16x576xbf16> to vector<16x576xbf16>
    %cst = arith.constant dense<0.000000e+00> : vector<16x128xf32>
    %4 = tpu.matmul %3, %0, %cst {dimension_numbers = #tpu.dot_dimension_numbers<[1], [0], [0], [1], [0, 0, 1, 1], [], []>} : vector<16x576xbf16>, vector<576x128xbf16>, vector<16x128xf32> -> vector<16x128xf32>
    %5 = vector.broadcast %1 : vector<1x128xf32> to vector<16x128xf32>
    %6 = arith.addf %4, %5 : vector<16x128xf32>
    %cst_6 = arith.constant 0.000000e+00 : f32
    %7 = vector.broadcast %cst_6 : f32 to vector<16x128xf32>
    %8 = arith.maximumf %6, %7 : vector<16x128xf32>
    %c1 = arith.constant 1 : index
    %c0_7 = arith.constant 0 : index
    %c0_8 = arith.constant 0 : index
    %9 = vector.load %arg1[%c1, %c0_7, %c0_8] : memref<4x16x576xbf16, #tpu.memory_space<vmem>>, vector<1x16x576xbf16>
    %10 = vector.shape_cast %9 : vector<1x16x576xbf16> to vector<16x576xbf16>
    %cst_9 = arith.constant dense<0.000000e+00> : vector<16x128xf32>
    %11 = tpu.matmul %10, %0, %cst_9 {dimension_numbers = #tpu.dot_dimension_numbers<[1], [0], [0], [1], [0, 0, 1, 1], [], []>} : vector<16x576xbf16>, vector<576x128xbf16>, vector<16x128xf32> -> vector<16x128xf32>
    %12 = vector.broadcast %1 : vector<1x128xf32> to vector<16x128xf32>
    %13 = arith.addf %11, %12 : vector<16x128xf32>
    %cst_10 = arith.constant 0.000000e+00 : f32
    %14 = vector.broadcast %cst_10 : f32 to vector<16x128xf32>
    %15 = arith.maximumf %13, %14 : vector<16x128xf32>
    %16 = arith.addf %8, %15 : vector<16x128xf32>
    %c2 = arith.constant 2 : index
    %c0_11 = arith.constant 0 : index
    %c0_12 = arith.constant 0 : index
    %17 = vector.load %arg1[%c2, %c0_11, %c0_12] : memref<4x16x576xbf16, #tpu.memory_space<vmem>>, vector<1x16x576xbf16>
    %18 = vector.shape_cast %17 : vector<1x16x576xbf16> to vector<16x576xbf16>
    %cst_13 = arith.constant dense<0.000000e+00> : vector<16x128xf32>
    %19 = tpu.matmul %18, %0, %cst_13 {dimension_numbers = #tpu.dot_dimension_numbers<[1], [0], [0], [1], [0, 0, 1, 1], [], []>} : vector<16x576xbf16>, vector<576x128xbf16>, vector<16x128xf32> -> vector<16x128xf32>
    %20 = vector.broadcast %1 : vector<1x128xf32> to vector<16x128xf32>
    %21 = arith.addf %19, %20 : vector<16x128xf32>
    %cst_14 = arith.constant 0.000000e+00 : f32
    %22 = vector.broadcast %cst_14 : f32 to vector<16x128xf32>
    %23 = arith.maximumf %21, %22 : vector<16x128xf32>
    %24 = arith.addf %16, %23 : vector<16x128xf32>
    %c3 = arith.constant 3 : index
    %c0_15 = arith.constant 0 : index
    %c0_16 = arith.constant 0 : index
    %25 = vector.load %arg1[%c3, %c0_15, %c0_16] : memref<4x16x576xbf16, #tpu.memory_space<vmem>>, vector<1x16x576xbf16>
    %26 = vector.shape_cast %25 : vector<1x16x576xbf16> to vector<16x576xbf16>
    %cst_17 = arith.constant dense<0.000000e+00> : vector<16x128xf32>
    %27 = tpu.matmul %26, %0, %cst_17 {dimension_numbers = #tpu.dot_dimension_numbers<[1], [0], [0], [1], [0, 0, 1, 1], [], []>} : vector<16x576xbf16>, vector<576x128xbf16>, vector<16x128xf32> -> vector<16x128xf32>
    %28 = vector.broadcast %1 : vector<1x128xf32> to vector<16x128xf32>
    %29 = arith.addf %27, %28 : vector<16x128xf32>
    %cst_18 = arith.constant 0.000000e+00 : f32
    %30 = vector.broadcast %cst_18 : f32 to vector<16x128xf32>
    %31 = arith.maximumf %29, %30 : vector<16x128xf32>
    %32 = arith.addf %24, %31 : vector<16x128xf32>
    %cst_19 = arith.constant 2.500000e-01 : f32
    %33 = vector.broadcast %cst_19 : f32 to vector<16x128xf32>
    %34 = arith.mulf %32, %33 : vector<16x128xf32>
    %c0_20 = arith.constant 0 : index
    %c0_21 = arith.constant 0 : index
    %35 = vector.load %arg4[%c0_20, %c0_21] : memref<16x128xf32, #tpu.memory_space<vmem>>, vector<16x128xf32>
    tpu.vector_store %arg4[%c0_20, %c0_21], %34 {strides = array<i32>} : memref<16x128xf32, #tpu.memory_space<vmem>>, vector<16x128xf32>,
    return
  }
  func.func @transform_0(%arg0: i32) -> (i32, i32, i32) {
    %c0_i32 = arith.constant 0 : i32
    %c0_i32_0 = arith.constant 0 : i32
    %c0_i32_1 = arith.constant 0 : i32
    return %c0_i32, %arg0, %c0_i32_0 : i32, i32, i32
  }
  func.func @transform_1(%arg0: i32) -> (i32, i32) {
    %c0_i32 = arith.constant 0 : i32
    %c0_i32_0 = arith.constant 0 : i32
    %c0_i32_1 = arith.constant 0 : i32
    return %c0_i32, %c0_i32_0 : i32, i32
  }
  func.func @transform_2(%arg0: i32) -> (i32, i32) {
    %c0_i32 = arith.constant 0 : i32
    %c0_i32_0 = arith.constant 0 : i32
    %c0_i32_1 = arith.constant 0 : i32
    return %c0_i32, %c0_i32_0 : i32, i32
  }
  func.func @transform_3(%arg0: i32) -> (i32, i32) {
    %c0_i32 = arith.constant 0 : i32
    %c0_i32_0 = arith.constant 0 : i32
    return %arg0, %c0_i32 : i32, i32
  }
}

module attributes {stable_mosaic.version = 11 : i64} {
  func.func @_fc_fused_kernel(%arg0: i32, %arg1: memref<8x2048xbf16, #tpu.memory_space<vmem>>, %arg2: memref<2048x512xbf16, #tpu.memory_space<vmem>>, %arg3: memref<1x512xf32, #tpu.memory_space<vmem>>, %arg4: memref<512x256xbf16, #tpu.memory_space<vmem>>, %arg5: memref<1x256xf32, #tpu.memory_space<vmem>>, %arg6: memref<8x256xf32, #tpu.memory_space<vmem>>) attributes {dimension_semantics = [#tpu.dimension_semantics<parallel>], iteration_bounds = array<i64: 1>, scalar_prefetch = 0 : i64, scratch_operands = 0 : i64, tpu.core_type = #tpu.core_type<tc>, window_params = [{transform_indices = @transform_0, window_bounds = array<i64: 8, 2048>}, {pipeline_mode = #tpu.pipeline_mode<synchronous>, transform_indices = @transform_1, window_bounds = array<i64: 2048, 512>}, {pipeline_mode = #tpu.pipeline_mode<synchronous>, transform_indices = @transform_2, window_bounds = array<i64: 1, 512>}, {pipeline_mode = #tpu.pipeline_mode<synchronous>, transform_indices = @transform_3, window_bounds = array<i64: 512, 256>}, {pipeline_mode = #tpu.pipeline_mode<synchronous>, transform_indices = @transform_4, window_bounds = array<i64: 1, 256>}, {transform_indices = @transform_5, window_bounds = array<i64: 8, 256>}]} {
    %c0 = arith.constant 0 : index
    %c0_0 = arith.constant 0 : index
    %0 = vector.load %arg1[%c0, %c0_0] : memref<8x2048xbf16, #tpu.memory_space<vmem>>, vector<8x2048xbf16>
    %c0_1 = arith.constant 0 : index
    %c0_2 = arith.constant 0 : index
    %1 = vector.load %arg2[%c0_1, %c0_2] : memref<2048x512xbf16, #tpu.memory_space<vmem>>, vector<2048x512xbf16>
    %cst = arith.constant dense<0.000000e+00> : vector<8x512xf32>
    %2 = tpu.matmul %0, %1, %cst {dimension_numbers = #tpu.dot_dimension_numbers<[1], [0], [0], [1], [0, 0, 1, 1], [], []>} : vector<8x2048xbf16>, vector<2048x512xbf16>, vector<8x512xf32> -> vector<8x512xf32>
    %c0_3 = arith.constant 0 : index
    %c0_4 = arith.constant 0 : index
    %3 = vector.load %arg3[%c0_3, %c0_4] : memref<1x512xf32, #tpu.memory_space<vmem>>, vector<1x512xf32>
    %4 = vector.broadcast %3 : vector<1x512xf32> to vector<8x512xf32>
    %5 = arith.addf %2, %4 : vector<8x512xf32>
    %cst_5 = arith.constant 0.000000e+00 : f32
    %6 = vector.broadcast %cst_5 : f32 to vector<8x512xf32>
    %7 = arith.maximumf %5, %6 : vector<8x512xf32>
    %8 = arith.truncf %7 : vector<8x512xf32> to vector<8x512xbf16>
    %c0_6 = arith.constant 0 : index
    %c0_7 = arith.constant 0 : index
    %9 = vector.load %arg4[%c0_6, %c0_7] : memref<512x256xbf16, #tpu.memory_space<vmem>>, vector<512x256xbf16>
    %cst_8 = arith.constant dense<0.000000e+00> : vector<8x256xf32>
    %10 = tpu.matmul %8, %9, %cst_8 {dimension_numbers = #tpu.dot_dimension_numbers<[1], [0], [0], [1], [0, 0, 1, 1], [], []>} : vector<8x512xbf16>, vector<512x256xbf16>, vector<8x256xf32> -> vector<8x256xf32>
    %c0_9 = arith.constant 0 : index
    %c0_10 = arith.constant 0 : index
    %11 = vector.load %arg5[%c0_9, %c0_10] : memref<1x256xf32, #tpu.memory_space<vmem>>, vector<1x256xf32>
    %12 = vector.broadcast %11 : vector<1x256xf32> to vector<8x256xf32>
    %13 = arith.addf %10, %12 : vector<8x256xf32>
    %c0_11 = arith.constant 0 : index
    %c0_12 = arith.constant 0 : index
    %14 = vector.load %arg6[%c0_11, %c0_12] : memref<8x256xf32, #tpu.memory_space<vmem>>, vector<8x256xf32>
    tpu.vector_store %arg6[%c0_11, %c0_12], %13 {strides = array<i32>} : memref<8x256xf32, #tpu.memory_space<vmem>>, vector<8x256xf32>,
    return
  }
  func.func @transform_0(%arg0: i32) -> (i32, i32) {
    %c0_i32 = arith.constant 0 : i32
    %c0_i32_0 = arith.constant 0 : i32
    return %arg0, %c0_i32 : i32, i32
  }
  func.func @transform_1(%arg0: i32) -> (i32, i32) {
    %c0_i32 = arith.constant 0 : i32
    %c0_i32_0 = arith.constant 0 : i32
    %c0_i32_1 = arith.constant 0 : i32
    return %c0_i32, %c0_i32_0 : i32, i32
  }
  func.func @transform_2(%arg0: i32) -> (i32, i32) {
    %c0_i32 = arith.constant 0 : i32
    %c0_i32_0 = arith.constant 0 : i32
    %c0_i32_1 = arith.constant 0 : i32
    return %c0_i32, %c0_i32_0 : i32, i32
  }
  func.func @transform_3(%arg0: i32) -> (i32, i32) {
    %c0_i32 = arith.constant 0 : i32
    %c0_i32_0 = arith.constant 0 : i32
    %c0_i32_1 = arith.constant 0 : i32
    return %c0_i32, %c0_i32_0 : i32, i32
  }
  func.func @transform_4(%arg0: i32) -> (i32, i32) {
    %c0_i32 = arith.constant 0 : i32
    %c0_i32_0 = arith.constant 0 : i32
    %c0_i32_1 = arith.constant 0 : i32
    return %c0_i32, %c0_i32_0 : i32, i32
  }
  func.func @transform_5(%arg0: i32) -> (i32, i32) {
    %c0_i32 = arith.constant 0 : i32
    %c0_i32_0 = arith.constant 0 : i32
    return %arg0, %c0_i32 : i32, i32
  }
}

</mosaic_0001>

<bundles_post_ra>
// kernel: tiny_imagenet_cnn_forward.5
= control target key start
LH: loop header
LB: loop body
LE: loop exit
PB: predicated region body
PF: predicated region fallthrough
CT: control target
= control target key end

     0   :  { %8 = vsyncpa [#allocation3], 0  ;;  %s1029_s0 = inlined_call_operand.vmem [shape: bf16[512,32], index: 0, kind: input, shape index: {}]   ;;  %s1030_s1 = inlined_call_operand.hbm [shape: bf16[32,32], index: 1, kind: input, shape index: {}]   ;;  %s1031_s2 = inlined_call_operand.hbm [shape: f32[1,32], index: 2, kind: input, shape index: {}]   ;;  %s1032_s3 = inlined_call_operand.vmem [shape: f32[512,32], index: 3, kind: output, shape index: {}]  }
   0x1   :  { %9 = vsyncpa [#allocation5], 0  ;;  %s846_s12 = smov 0  }
   0x2 LB: > { %s125_s15 = sshll.u32 %s1030_s1, 4  ;;  %s587_s16 = sadd.s32 4294967295, %s820_s12   ;;  %s820_s12 = sphi %s846_s12, %s15_s12   ;;  %s126_s15 = int_to_ptr.hbm [resolvable:$true] %s125_s15 }
   0x3   : > { %p589_p0 = scmp.ge.s32.totalorder %s820_s12, 1  ;;  %p114_p1 = scmp.lt.s32.totalorder %s820_s12, 3 }
   0x4   : > { %p857_p2 = scmp.eq.s32.totalorder %s587_s16, 0  ;;  %s822_s19 = smov [#allocation2]  }
   0x5   : > { %p861_p3 = pnand %p589_p0, %p114_p1  ;;  %s127_s20 = sshll.u32 %s822_s19, 4  ;;  %s128_s20 = int_to_ptr.vmem [resolvable:$true] %s127_s20 }
   0x6   : > { %s140_s23 = sshll.u32 %s1031_s2, 4  ;;  %s823_s24 = smov [#allocation4]   ;;  %s141_s23 = int_to_ptr.hbm [resolvable:$true] %s140_s23 }
   0x7   : > { %p722_p4 = pneg %p861_p3  ;;  %s142_s25 = sshll.u32 %s823_s24, 4  ;;  %s143_s25 = int_to_ptr.vmem [resolvable:$true] %s142_s25 }
   0x8   : > { %s824_s26 = smov 64   ;;  %s825_s27 = smov 4  }
   0x9   : > { %p723_p5 = pnand %p857_p2, %p722_p4  ;;  %164 = sbr.rel (%p861_p3) target bundleno = 218 (0xda), region = 32 }
   0xb   : > { %725 = dma.hbm_to_vmem [thread:$0]  (!%p723_p5), %s126_s15, 256, %s128_s20, [#allocation3], %s824_s26, %s824_s26, %s825_s27  }
   0xc   : > { %728 = dma.hbm_to_vmem [thread:$0]  (!%p723_p5), %s141_s23, 16, %s143_s25, [#allocation5]  }
   0xe   : > { %811 = dma.done.wait (%p857_p2), [#allocation3], 256  }
   0xf   : > { %813 = vsyncadd (%p857_p2), [#allocation3], 4294967040 }
  0x10   : > { %815 = dma.done.wait (%p857_p2), [#allocation5], 16  }
  0x11   : > { %817 = vsyncadd (%p857_p2), [#allocation5], 4294967280  ;;  %s596_s28 = sshll.u32 %s587_s16, 5  ;;  %v707_v0 = vld [vmem:[#allocation2 + $0x8] sm:$0xff]  ;;  %v706_v1 = vld [vmem:[#allocation2] sm:$0xff]  ;;  %vm339_vm0 = vcmask 261120  }
  0x12   : > { %p195_p6 = scmp.lt.s32.totalorder %s596_s28, 63  ;;  %394 = vmatpush.bf16.msra.mxu0 %v707_v0  ;;  %708 = vmatpush.bf16.msra.mxu1 %v707_v0  ;;  %v923_v18 = vld [vmem:[#allocation4] ss:$0 sm:$0xff] }
  0x13   : > { %709 = vmatpush.bf16.msra.mxu2 %v707_v0  ;;  %710 = vmatpush.bf16.msra.mxu3 %v707_v0 }
  0x14   : > { %s1036_s28 = smov (!%p195_p6, %s596_s28), 63 }
  0x15   : > { %s597_s29 = sshll.u32 %s1036_s28, 2  ;;  %s599_s6 = sshll.u32 %s1036_s28, 3 }
  0x16   : > { %s888_s5 = scalar_lea.vmem %s1029_s0, %s597_s29  ;;  %395 = vmatpush.bf16.msra.mxu0 %v706_v1  ;;  %711 = vmatpush.bf16.msra.mxu1 %v706_v1  ;;  %s928_s9 = scalar_lea.vmem %s1032_s3, %s599_s6 }
  0x17   : > { %v690_v2 = vld [vmem:[%s888_s5] sm:$0xff]  ;;  %712 = vmatpush.bf16.msra.mxu2 %v706_v1  ;;  %713 = vmatpush.bf16.msra.mxu3 %v706_v1  ;;  %v691_v6 = vld [vmem:[%s888_s5 + $0x8] sm:$0xff]  ;;  %v692_v10 = vld [vmem:[%s888_s5 + $0x10] sm:$0xff] }
  0x18   : > { %v694_v3 = vld [vmem:[%s888_s5 + $0x20] sm:$0xff]  ;;  %v695_v7 = vld [vmem:[%s888_s5 + $0x28] sm:$0xff]  ;;  %v696_v11 = vld [vmem:[%s888_s5 + $0x30] sm:$0xff] }
  0x19   : > { %v698_v4 = vld [vmem:[%s888_s5 + $0x40] sm:$0xff]  ;;  %672 = vmatmul.msk.bf16.vlgmr.msra.gmra.mxu0 %vm339_vm0, %v690_v2  ;;  %676 = vmatmul.msk.bf16.vlgmr.msra.gmra.mxu1 %vm339_vm0, %v694_v3  ;;  %v699_v8 = vld [vmem:[%s888_s5 + $0x48] sm:$0xff]  ;;  %v700_v12 = vld [vmem:[%s888_s5 + $0x50] sm:$0xff] }
  0x1a   : > { %v702_v5 = vld [vmem:[%s888_s5 + $0x60] sm:$0xff]  ;;  %680 = vmatmul.msk.bf16.vlgmr.msra.gmra.mxu2 %vm339_vm0, %v698_v4  ;;  %v703_v9 = vld [vmem:[%s888_s5 + $0x68] sm:$0xff]  ;;  %v704_v13 = vld [vmem:[%s888_s5 + $0x70] sm:$0xff] }
  0x1b   : > { %684 = vmatmul.msk.bf16.vlgmr.msra.gmra.mxu3 %vm339_vm0, %v702_v5  ;;  %v693_v14 = vld [vmem:[%s888_s5 + $0x18] sm:$0xff] }
  0x1c   : > { %v697_v15 = vld [vmem:[%s888_s5 + $0x38] sm:$0xff] }
  0x1d   : > { %v701_v16 = vld [vmem:[%s888_s5 + $0x58] sm:$0xff] }
  0x1e   : > { %v705_v17 = vld [vmem:[%s888_s5 + $0x78] sm:$0xff] }
  0x29   : > { %673 = vmatmul.msk.bf16.gmra.mxu0 %vm339_vm0, %v691_v6  ;;  %677 = vmatmul.msk.bf16.gmra.mxu1 %vm339_vm0, %v695_v7 }
  0x2a   : > { %681 = vmatmul.msk.bf16.gmra.mxu2 %vm339_vm0, %v699_v8 }
  0x2b   : > { %685 = vmatmul.msk.bf16.gmra.mxu3 %vm339_vm0, %v703_v9 }
  0x39   : > { %674 = vmatmul.msk.bf16.gmra.mxu0 %vm339_vm0, %v692_v10  ;;  %678 = vmatmul.msk.bf16.gmra.mxu1 %vm339_vm0, %v696_v11 }
  0x3a   : > { %682 = vmatmul.msk.bf16.gmra.mxu2 %vm339_vm0, %v700_v12 }
  0x3b   : > { %686 = vmatmul.msk.bf16.gmra.mxu3 %vm339_vm0, %v704_v13 }
  0x49   : > { %675 = vmatmul.msk.bf16.gmra.mxu0 %vm339_vm0, %v693_v14  ;;  %679 = vmatmul.msk.bf16.gmra.mxu1 %vm339_vm0, %v697_v15 }
  0x4a   : > { %683 = vmatmul.msk.bf16.gmra.mxu2 %vm339_vm0, %v701_v16 }
  0x4b   : > { %687 = vmatmul.msk.bf16.gmra.mxu3 %vm339_vm0, %v705_v17 }
  0x96   : > { %v397_v19 = vpop.f32.mrf.mxu0  ;;  %v417_v20 = vpop.f32.mrf.mxu1 }
  0x97   : > { %v398_v21 = vadd.f32 %v923_v18, %v397_v19  ;;  %v418_v22 = vadd.f32 %v923_v18, %v417_v20 }
  0x99   : > { %477 = vst.msk [vmem:[%s928_s9] sm:$0xff] %vm339_vm0, %v398_v21 }
  0x9a   : > { %485 = vst.msk [vmem:[%s928_s9 + $0x40] sm:$0xff] %vm339_vm0, %v418_v22 }
  0x9d   : > { %v437_v23 = vpop.f32.mrf.mxu2 }
  0x9e   : > { %v457_v24 = vpop.f32.mrf.mxu3  ;;  %v438_v25 = vadd.f32 %v923_v18, %v437_v23  ;;  %v399_v27 = vpop.f32.mrf.mxu0 }
  0x9f   : > { %v458_v26 = vadd.f32 %v923_v18, %v457_v24  ;;  %v419_v28 = vpop.f32.mrf.mxu1  ;;  %v400_v29 = vadd.f32 %v923_v18, %v399_v27 }
  0xa0   : > { %v420_v30 = vadd.f32 %v923_v18, %v419_v28  ;;  %493 = vst.msk [vmem:[%s928_s9 + $0x80] sm:$0xff] %vm339_vm0, %v438_v25 }
  0xa1   : > { %501 = vst.msk [vmem:[%s928_s9 + $0xc0] sm:$0xff] %vm339_vm0, %v458_v26 }
  0xa2   : > { %478 = vst.msk [vmem:[%s928_s9 + $0x8] sm:$0xff] %vm339_vm0, %v400_v29 }
  0xa3   : > { %486 = vst.msk [vmem:[%s928_s9 + $0x48] sm:$0xff] %vm339_vm0, %v420_v30 }
  0xa5   : > { %v439_v31 = vpop.f32.mrf.mxu2 }
  0xa6   : > { %v459_v32 = vpop.f32.mrf.mxu3  ;;  %v440_v33 = vadd.f32 %v923_v18, %v439_v31  ;;  %v402_v35 = vpop.f32.mrf.mxu0 }
  0xa7   : > { %v460_v34 = vadd.f32 %v923_v18, %v459_v32  ;;  %v422_v36 = vpop.f32.mrf.mxu1  ;;  %v403_v37 = vadd.f32 %v923_v18, %v402_v35 }
  0xa8   : > { %v423_v38 = vadd.f32 %v923_v18, %v422_v36  ;;  %494 = vst.msk [vmem:[%s928_s9 + $0x88] sm:$0xff] %vm339_vm0, %v440_v33 }
  0xa9   : > { %502 = vst.msk [vmem:[%s928_s9 + $0xc8] sm:$0xff] %vm339_vm0, %v460_v34 }
  0xaa   : > { %479 = vst.msk [vmem:[%s928_s9 + $0x10] sm:$0xff] %vm339_vm0, %v403_v37 }
  0xab   : > { %487 = vst.msk [vmem:[%s928_s9 + $0x50] sm:$0xff] %vm339_vm0, %v423_v38 }
  0xad   : > { %v442_v39 = vpop.f32.mrf.mxu2 }
  0xae   : > { %v462_v40 = vpop.f32.mrf.mxu3  ;;  %v443_v41 = vadd.f32 %v923_v18, %v442_v39  ;;  %v404_v43 = vpop.f32.mrf.mxu0 }
  0xaf   : > { %v463_v42 = vadd.f32 %v923_v18, %v462_v40  ;;  %v424_v44 = vpop.f32.mrf.mxu1  ;;  %v405_v45 = vadd.f32 %v923_v18, %v404_v43 }
  0xb0   : > { %v425_v46 = vadd.f32 %v923_v18, %v424_v44  ;;  %495 = vst.msk [vmem:[%s928_s9 + $0x90] sm:$0xff] %vm339_vm0, %v443_v41 }
  0xb1   : > { %503 = vst.msk [vmem:[%s928_s9 + $0xd0] sm:$0xff] %vm339_vm0, %v463_v42 }
  0xb2   : > { %480 = vst.msk [vmem:[%s928_s9 + $0x18] sm:$0xff] %vm339_vm0, %v405_v45 }
  0xb3   : > { %488 = vst.msk [vmem:[%s928_s9 + $0x58] sm:$0xff] %vm339_vm0, %v425_v46 }
  0xb5   : > { %v444_v47 = vpop.f32.mrf.mxu2 }
  0xb6   : > { %v464_v48 = vpop.f32.mrf.mxu3  ;;  %v445_v49 = vadd.f32 %v923_v18, %v444_v47  ;;  %v407_v51 = vpop.f32.mrf.mxu0 }
  0xb7   : > { %v465_v50 = vadd.f32 %v923_v18, %v464_v48  ;;  %v427_v52 = vpop.f32.mrf.mxu1  ;;  %v408_v53 = vadd.f32 %v923_v18, %v407_v51 }
  0xb8   : > { %v428_v54 = vadd.f32 %v923_v18, %v427_v52  ;;  %496 = vst.msk [vmem:[%s928_s9 + $0x98] sm:$0xff] %vm339_vm0, %v445_v49 }
  0xb9   : > { %504 = vst.msk [vmem:[%s928_s9 + $0xd8] sm:$0xff] %vm339_vm0, %v465_v50 }
  0xba   : > { %481 = vst.msk [vmem:[%s928_s9 + $0x20] sm:$0xff] %vm339_vm0, %v408_v53 }
  0xbb   : > { %489 = vst.msk [vmem:[%s928_s9 + $0x60] sm:$0xff] %vm339_vm0, %v428_v54 }
  0xbd   : > { %v447_v55 = vpop.f32.mrf.mxu2 }
  0xbe   : > { %v467_v56 = vpop.f32.mrf.mxu3  ;;  %v448_v57 = vadd.f32 %v923_v18, %v447_v55  ;;  %v409_v59 = vpop.f32.mrf.mxu0 }
  0xbf   : > { %v468_v58 = vadd.f32 %v923_v18, %v467_v56  ;;  %v429_v60 = vpop.f32.mrf.mxu1  ;;  %v410_v61 = vadd.f32 %v923_v18, %v409_v59 }
  0xc0   : > { %v430_v62 = vadd.f32 %v923_v18, %v429_v60  ;;  %497 = vst.msk [vmem:[%s928_s9 + $0xa0] sm:$0xff] %vm339_vm0, %v448_v57 }
  0xc1   : > { %505 = vst.msk [vmem:[%s928_s9 + $0xe0] sm:$0xff] %vm339_vm0, %v468_v58 }
  0xc2   : > { %482 = vst.msk [vmem:[%s928_s9 + $0x28] sm:$0xff] %vm339_vm0, %v410_v61 }
  0xc3   : > { %490 = vst.msk [vmem:[%s928_s9 + $0x68] sm:$0xff] %vm339_vm0, %v430_v62 }
  0xc5   : > { %v449_v63 = vpop.f32.mrf.mxu2 }
  0xc6   : > { %v469_v0 = vpop.f32.mrf.mxu3  ;;  %v450_v1 = vadd.f32 %v923_v18, %v449_v63  ;;  %v412_v3 = vpop.f32.mrf.mxu0 }
  0xc7   : > { %v470_v2 = vadd.f32 %v923_v18, %v469_v0  ;;  %v432_v4 = vpop.f32.mrf.mxu1  ;;  %v413_v5 = vadd.f32 %v923_v18, %v412_v3 }
  0xc8   : > { %v433_v6 = vadd.f32 %v923_v18, %v432_v4  ;;  %498 = vst.msk [vmem:[%s928_s9 + $0xa8] sm:$0xff] %vm339_vm0, %v450_v1 }
  0xc9   : > { %506 = vst.msk [vmem:[%s928_s9 + $0xe8] sm:$0xff] %vm339_vm0, %v470_v2 }
  0xca   : > { %483 = vst.msk [vmem:[%s928_s9 + $0x30] sm:$0xff] %vm339_vm0, %v413_v5 }
  0xcb   : > { %491 = vst.msk [vmem:[%s928_s9 + $0x70] sm:$0xff] %vm339_vm0, %v433_v6 }
  0xcd   : > { %v452_v7 = vpop.f32.mrf.mxu2 }
  0xce   : > { %v472_v8 = vpop.f32.mrf.mxu3  ;;  %v453_v9 = vadd.f32 %v923_v18, %v452_v7  ;;  %v414_v11 = vpop.f32.mrf.mxu0 }
  0xcf   : > { %v473_v10 = vadd.f32 %v923_v18, %v472_v8  ;;  %v434_v12 = vpop.f32.mrf.mxu1  ;;  %v415_v13 = vadd.f32 %v923_v18, %v414_v11 }
  0xd0   : > { %v435_v14 = vadd.f32 %v923_v18, %v434_v12  ;;  %499 = vst.msk [vmem:[%s928_s9 + $0xb0] sm:$0xff] %vm339_vm0, %v453_v9 }
  0xd1   : > { %507 = vst.msk [vmem:[%s928_s9 + $0xf0] sm:$0xff] %vm339_vm0, %v473_v10 }
  0xd2   : > { %484 = vst.msk [vmem:[%s928_s9 + $0x38] sm:$0xff] %vm339_vm0, %v415_v13 }
  0xd3   : > { %492 = vst.msk [vmem:[%s928_s9 + $0x78] sm:$0xff] %vm339_vm0, %v435_v14 }
  0xd5   : > { %v454_v15 = vpop.f32.mrf.mxu2 }
  0xd6   : > { %v474_v16 = vpop.f32.mrf.mxu3  ;;  %v455_v17 = vadd.f32 %v923_v18, %v454_v15 }
  0xd7   : > { %v475_v19 = vadd.f32 %v923_v18, %v474_v16 }
  0xd8   : > { %500 = vst.msk [vmem:[%s928_s9 + $0xb8] sm:$0xff] %vm339_vm0, %v455_v17 }
  0xd9   : > { %508 = vst.msk [vmem:[%s928_s9 + $0xf8] sm:$0xff] %vm339_vm0, %v475_v19 }
  0xda PF: > { %s15_s12 = sadd.s32 1, %s820_s12  }
  0xdb   : > { %p12_p7 = scmp.ge.s32.totalorder %s15_s12, 4  }
  0xdd   :  { %14 = sbr.rel (!%p12_p7) target bundleno = 2 (0x2), region = 71 }
  0xe2   :  { %531 = vsyncpa [#allocation3], 1 }
  0xe3   :  { %533 = vsyncpa [#allocation3 + $0x1], 1 }
  0xe4   :  { %534 = vsyncpa [#allocation5], 1 }

// kernel: tiny_imagenet_cnn_forward.6
= control target key start
LH: loop header
LB: loop body
LE: loop exit
PB: predicated region body
PF: predicated region fallthrough
CT: control target
= control target key end

     0   :  { %s966_s12 = smov 0   ;;  %s968_s13 = smov 0   ;;  %s1107_s0 = inlined_call_operand.vmem [shape: bf16[4,128,32], index: 0, kind: input, shape index: {}]   ;;  %s1108_s1 = inlined_call_operand.vmem [shape: bf16[32,64], index: 1, kind: input, shape index: {}]   ;;  %s1109_s2 = inlined_call_operand.vmem [shape: f32[1,64], index: 2, kind: input, shape index: {}]   ;;  %s1110_s3 = inlined_call_operand.vmem [shape: f32[128,64], index: 3, kind: output, shape index: {}]  }
   0x1   :  { %s970_s14 = smov 0  }
   0x2 LB: > { %s753_s15 = sadd.s32 4294967295, %s944_s14   ;;  %s983_s16 = sadd.s32 1, %s944_s14   ;;  %s944_s14 = sphi %s970_s14, %s1113_s14   ;;  %s940_s13 = sphi %s968_s13, %s1112_s13   ;;  %s936_s12 = sphi %s966_s12, %s1111_s12  }
   0x3   : > { %s17_s17 = ssub.s32 %s944_s14, %s983_s16  ;;  %s20_s18 = sadd.s32 1, %s940_s13 }
   0x4   : > { %p18_p0 = scmp.eq.s32.totalorder %s17_s17, 0  ;;  %p27_p1 = scmp.ne.s32.totalorder %s940_s13, %s936_s12 }
   0x5   : > { %p28_p2 = scmp.eq.s32.totalorder %s944_s14, 0  ;;  %p756_p4 = scmp.ge.s32.totalorder %s944_s14, 2 }
   0x6   : > { %s992_s19 = scalar_select %p18_p0, %s940_s13, %s20_s18  }
   0x7   : > { %p29_p3 = por %p28_p2, %p27_p1  ;;  %127 = sbr.rel (%p756_p4) target bundleno = 32 (0x20), region = 24 }
   0xc   : > { %130 = sbr.rel (!%p29_p3) target bundleno = 32 (0x20), region = 28  ;;  %s132_s20 = sand.u32 (%p29_p3), 1, %s940_s13  }
   0xd   : > { %s878_s21 = sshll.u32 (%p29_p3), %s944_s14, 5  ;;  %s757_s22 = sshll.u32 (%p29_p3), %s132_s20, 7 }
   0xe   : > { %s1000_s25 = scalar_lea.vmem (%p29_p3), %s1107_s0, %s878_s21  ;;  %s134_s26 = scalar_lea.vmem (%p29_p3), [#allocation2], %s757_s22 }
   0xf   : > { %v154_v0 = vld [vmem:[%s1000_s25] sm:$0xff] (%p29_p3)   ;;  %v158_v1 = vld [vmem:[%s1000_s25 + $0x8] sm:$0xff] (%p29_p3)   ;;  %v162_v2 = vld [vmem:[%s1000_s25 + $0x10] sm:$0xff] (%p29_p3)  }
  0x10   : > { %155 = vst [vmem:[%s134_s26] sm:$0xff] (%p29_p3), %v154_v0   ;;  %v166_v3 = vld [vmem:[%s1000_s25 + $0x18] sm:$0xff] (%p29_p3)   ;;  %v170_v4 = vld [vmem:[%s1000_s25 + $0x40] sm:$0xff] (%p29_p3)   ;;  %v174_v5 = vld [vmem:[%s1000_s25 + $0x48] sm:$0xff] (%p29_p3)  }
  0x11   : > { %159 = vst [vmem:[%s134_s26 + $0x8] sm:$0xff] %v158_v1   ;;  %v178_v6 = vld [vmem:[%s1000_s25 + $0x50] sm:$0xff]   ;;  %v182_v7 = vld [vmem:[%s1000_s25 + $0x58] sm:$0xff]   ;;  %v186_v8 = vld [vmem:[%s1000_s25 + $0x80] sm:$0xff]  }
  0x12   : > { %163 = vst [vmem:[%s134_s26 + $0x10] sm:$0xff] %v162_v2   ;;  %v190_v9 = vld [vmem:[%s1000_s25 + $0x88] sm:$0xff]   ;;  %v194_v10 = vld [vmem:[%s1000_s25 + $0x90] sm:$0xff]   ;;  %v198_v11 = vld [vmem:[%s1000_s25 + $0x98] sm:$0xff]  }
  0x13   : > { %167 = vst [vmem:[%s134_s26 + $0x18] sm:$0xff] %v166_v3   ;;  %v202_v12 = vld [vmem:[%s1000_s25 + $0xc0] sm:$0xff]   ;;  %v206_v13 = vld [vmem:[%s1000_s25 + $0xc8] sm:$0xff]   ;;  %v210_v14 = vld [vmem:[%s1000_s25 + $0xd0] sm:$0xff]  }
  0x14   : > { %171 = vst [vmem:[%s134_s26 + $0x20] sm:$0xff] %v170_v4   ;;  %v214_v15 = vld [vmem:[%s1000_s25 + $0xd8] sm:$0xff]  }
  0x15   : > { %175 = vst [vmem:[%s134_s26 + $0x28] sm:$0xff] %v174_v5  }
  0x16   : > { %179 = vst [vmem:[%s134_s26 + $0x30] sm:$0xff] %v178_v6  }
  0x17   : > { %183 = vst [vmem:[%s134_s26 + $0x38] sm:$0xff] %v182_v7  }
  0x18   : > { %187 = vst [vmem:[%s134_s26 + $0x40] sm:$0xff] %v186_v8  }
  0x19   : > { %191 = vst [vmem:[%s134_s26 + $0x48] sm:$0xff] %v190_v9  }
  0x1a   : > { %195 = vst [vmem:[%s134_s26 + $0x50] sm:$0xff] %v194_v10  }
  0x1b   : > { %199 = vst [vmem:[%s134_s26 + $0x58] sm:$0xff] %v198_v11  }
  0x1c   : > { %203 = vst [vmem:[%s134_s26 + $0x60] sm:$0xff] %v202_v12  }
  0x1d   : > { %207 = vst [vmem:[%s134_s26 + $0x68] sm:$0xff] %v206_v13  }
  0x1e   : > { %211 = vst [vmem:[%s134_s26 + $0x70] sm:$0xff] %v210_v14  }
  0x1f   : > { %215 = vst [vmem:[%s134_s26 + $0x78] sm:$0xff] %v214_v15  }
  0x20 PF: > { %p760_p5 = scmp.ge.s32.totalorder %s944_s14, 1  ;;  %p304_p6 = scmp.lt.s32.totalorder %s944_s14, 3 }
  0x22   : > { %p305_p7 = pnand %p760_p5, %p304_p6 }
  0x23   : > { %s311_s29 = sand.u32 (!%p305_p7), 1, %s936_s12   ;;  %s762_s7 = sshll.u32 (!%p305_p7), %s753_s15, 3 }
  0x24   : > { %308 = sbr.rel (%p305_p7) target bundleno = 247 (0xf7), region = 69  ;;  %s761_s30 = sshll.u32 (!%p305_p7), %s311_s29, 7 }
  0x25   : > { %s1027_s6 = scalar_lea.vmem (!%p305_p7), [#allocation2], %s761_s30  ;;  %p336_p8 = scmp.lt.s32.totalorder (!%p305_p7), %s762_s7, 15 }
  0x29   : > { %v880_v16 = vld [vmem:[%s1108_s1 + $0x8] sm:$0xff]  ;;  %v879_v17 = vld [vmem:[%s1108_s1] sm:$0xff]  ;;  %vm387_vm0 = vcmask 261120   ;;  %v883_v26 = vld [vmem:[%s1027_s6 + $0x10] sm:$0xff]  ;;  %s1115_s7 = smov (!%p336_p8, %s762_s7), 15  ;;  %vm682_vm1 = vcmask 523264  }
  0x2a   : > { %406 = vmatpush.bf16.msra.mxu0 %v880_v16  ;;  %476 = vmatpush.bf16.msra.mxu1 %v880_v16  ;;  %v881_v18 = vld [vmem:[%s1027_s6] sm:$0xff]  ;;  %v882_v22 = vld [vmem:[%s1027_s6 + $0x8] sm:$0xff]  ;;  %v887_v27 = vld [vmem:[%s1027_s6 + $0x30] sm:$0xff]  ;;  %s763_s10 = sshll.u32 %s1115_s7, 3 }
  0x2b   : > { %554 = vmatpush.bf16.msra.mxu2 %v880_v16  ;;  %632 = vmatpush.bf16.msra.mxu3 %v880_v16  ;;  %v885_v19 = vld [vmem:[%s1027_s6 + $0x20] sm:$0xff]  ;;  %v886_v23 = vld [vmem:[%s1027_s6 + $0x28] sm:$0xff]  ;;  %v891_v28 = vld [vmem:[%s1027_s6 + $0x50] sm:$0xff]  ;;  %s1072_s14 = scalar_lea.vmem %s1110_s3, %s763_s10 }
  0x2c   : > { %v889_v20 = vld [vmem:[%s1027_s6 + $0x40] sm:$0xff]  ;;  %v890_v24 = vld [vmem:[%s1027_s6 + $0x48] sm:$0xff]  ;;  %v895_v29 = vld [vmem:[%s1027_s6 + $0x70] sm:$0xff] }
  0x2d   : > { %v893_v21 = vld [vmem:[%s1027_s6 + $0x60] sm:$0xff]  ;;  %v894_v25 = vld [vmem:[%s1027_s6 + $0x68] sm:$0xff]  ;;  %v884_v30 = vld [vmem:[%s1027_s6 + $0x18] sm:$0xff] }
  0x2e   : > { %407 = vmatpush.bf16.msra.mxu0 %v879_v17  ;;  %477 = vmatpush.bf16.msra.mxu1 %v879_v17  ;;  %v888_v31 = vld [vmem:[%s1027_s6 + $0x38] sm:$0xff]  ;;  %v1066_v40 = vld [vmem:[%s1109_s2] ss:$0 sm:$0xff] }
  0x2f   : > { %555 = vmatpush.bf16.msra.mxu2 %v879_v17  ;;  %633 = vmatpush.bf16.msra.mxu3 %v879_v17  ;;  %v892_v32 = vld [vmem:[%s1027_s6 + $0x58] sm:$0xff] }
  0x30   : > { %v896_v33 = vld [vmem:[%s1027_s6 + $0x78] sm:$0xff] }
  0x31   : > { %788 = vmatmul.msk.bf16.vlgmr.msra.gmra.mxu0 %vm387_vm0, %v881_v18  ;;  %816 = vmatmul.msk.bf16.vlgmr.msra.gmra.mxu1 %vm387_vm0, %v885_v19 }
  0x32   : > { %844 = vmatmul.msk.bf16.vlgmr.msra.gmra.mxu2 %vm387_vm0, %v889_v20  ;;  %872 = vmatmul.msk.bf16.vlgmr.msra.gmra.mxu3 %vm387_vm0, %v893_v21 }
  0x41   : > { %789 = vmatmul.msk.bf16.gmra.mxu0 %vm387_vm0, %v882_v22  ;;  %817 = vmatmul.msk.bf16.gmra.mxu1 %vm387_vm0, %v886_v23 }
  0x42   : > { %845 = vmatmul.msk.bf16.gmra.mxu2 %vm387_vm0, %v890_v24  ;;  %873 = vmatmul.msk.bf16.gmra.mxu3 %vm387_vm0, %v894_v25 }
  0x51   : > { %790 = vmatmul.msk.bf16.gmra.mxu0 %vm387_vm0, %v883_v26  ;;  %818 = vmatmul.msk.bf16.gmra.mxu1 %vm387_vm0, %v887_v27 }
  0x52   : > { %846 = vmatmul.msk.bf16.gmra.mxu2 %vm387_vm0, %v891_v28  ;;  %874 = vmatmul.msk.bf16.gmra.mxu3 %vm387_vm0, %v895_v29 }
  0x61   : > { %791 = vmatmul.msk.bf16.gmra.mxu0 %vm387_vm0, %v884_v30  ;;  %819 = vmatmul.msk.bf16.gmra.mxu1 %vm387_vm0, %v888_v31 }
  0x62   : > { %847 = vmatmul.msk.bf16.gmra.mxu2 %vm387_vm0, %v892_v32  ;;  %875 = vmatmul.msk.bf16.gmra.mxu3 %vm387_vm0, %v896_v33 }
  0xae   : > { %v409_v34 = vpop.f32.mrf.mxu0  ;;  %v479_v35 = vpop.f32.mrf.mxu1 }
  0xaf   : > { %v499_v36 = vmax.f32 %v409_v34, %v479_v35 }
  0xb5   : > { %v557_v37 = vpop.f32.mrf.mxu2  ;;  %v635_v38 = vpop.f32.mrf.mxu3 }
  0xb6   : > { %v577_v39 = vmax.f32 %v499_v36, %v557_v37  ;;  %v411_v41 = vpop.f32.mrf.mxu0  ;;  %v481_v42 = vpop.f32.mrf.mxu1 }
  0xb7   : > { %v500_v46 = vmax.f32 %v411_v41, %v481_v42 }
  0xb8   : > { %v655_v43 = vmax.f32 %v577_v39, %v635_v38 }
  0xba   : > { %v666_v44 = vadd.f32 %v1066_v40, %v655_v43 }
  0xbc   : > { %v674_v45 = vmax.f32 %v666_v44, 0.0 }
  0xbd   : > { %v559_v47 = vpop.f32.mrf.mxu2  ;;  %v637_v48 = vpop.f32.mrf.mxu3 }
  0xbe   : > { %683 = vst.msk [vmem:[%s1072_s14] sm:$0xff] %vm682_vm1, %v674_v45  ;;  %v578_v49 = vmax.f32 %v500_v46, %v559_v47  ;;  %v414_v50 = vpop.f32.mrf.mxu0  ;;  %v484_v51 = vpop.f32.mrf.mxu1 }
  0xbf   : > { %v501_v54 = vmax.f32 %v414_v50, %v484_v51 }
  0xc0   : > { %v656_v52 = vmax.f32 %v578_v49, %v637_v48 }
  0xc2   : > { %v667_v53 = vadd.f32 %v1066_v40, %v656_v52 }
  0xc4   : > { %v675_v55 = vmax.f32 %v667_v53, 0.0 }
  0xc5   : > { %v562_v56 = vpop.f32.mrf.mxu2  ;;  %v640_v57 = vpop.f32.mrf.mxu3 }
  0xc6   : > { %684 = vst.msk [vmem:[%s1072_s14 + $0x8] sm:$0xff] %vm682_vm1, %v675_v55  ;;  %v579_v58 = vmax.f32 %v501_v54, %v562_v56  ;;  %v416_v59 = vpop.f32.mrf.mxu0  ;;  %v486_v60 = vpop.f32.mrf.mxu1 }
  0xc7   : > { %v502_v0 = vmax.f32 %v416_v59, %v486_v60 }
  0xc8   : > { %v657_v61 = vmax.f32 %v579_v58, %v640_v57 }
  0xca   : > { %v668_v62 = vadd.f32 %v1066_v40, %v657_v61 }
  0xcc   : > { %v676_v63 = vmax.f32 %v668_v62, 0.0 }
  0xcd   : > { %v564_v1 = vpop.f32.mrf.mxu2  ;;  %v642_v2 = vpop.f32.mrf.mxu3 }
  0xce   : > { %685 = vst.msk [vmem:[%s1072_s14 + $0x10] sm:$0xff] %vm682_vm1, %v676_v63  ;;  %v580_v3 = vmax.f32 %v502_v0, %v564_v1  ;;  %v419_v4 = vpop.f32.mrf.mxu0  ;;  %v489_v5 = vpop.f32.mrf.mxu1 }
  0xcf   : > { %v503_v8 = vmax.f32 %v419_v4, %v489_v5 }
  0xd0   : > { %v658_v6 = vmax.f32 %v580_v3, %v642_v2 }
  0xd2   : > { %v669_v7 = vadd.f32 %v1066_v40, %v658_v6 }
  0xd4   : > { %v677_v9 = vmax.f32 %v669_v7, 0.0 }
  0xd5   : > { %v567_v10 = vpop.f32.mrf.mxu2  ;;  %v645_v11 = vpop.f32.mrf.mxu3 }
  0xd6   : > { %686 = vst.msk [vmem:[%s1072_s14 + $0x18] sm:$0xff] %vm682_vm1, %v677_v9  ;;  %v581_v12 = vmax.f32 %v503_v8, %v567_v10  ;;  %v421_v13 = vpop.f32.mrf.mxu0  ;;  %v491_v14 = vpop.f32.mrf.mxu1 }
  0xd7   : > { %v504_v18 = vmax.f32 %v421_v13, %v491_v14 }
  0xd8   : > { %v659_v15 = vmax.f32 %v581_v12, %v645_v11 }
  0xda   : > { %v670_v16 = vadd.f32 %v1066_v40, %v659_v15 }
  0xdc   : > { %v678_v17 = vmax.f32 %v670_v16, 0.0 }
  0xdd   : > { %v569_v19 = vpop.f32.mrf.mxu2  ;;  %v647_v20 = vpop.f32.mrf.mxu3 }
  0xde   : > { %687 = vst.msk [vmem:[%s1072_s14 + $0x20] sm:$0xff] %vm682_vm1, %v678_v17  ;;  %v582_v21 = vmax.f32 %v504_v18, %v569_v19  ;;  %v424_v22 = vpop.f32.mrf.mxu0  ;;  %v494_v23 = vpop.f32.mrf.mxu1 }
  0xdf   : > { %v505_v26 = vmax.f32 %v424_v22, %v494_v23 }
  0xe0   : > { %v660_v24 = vmax.f32 %v582_v21, %v647_v20 }
  0xe2   : > { %v671_v25 = vadd.f32 %v1066_v40, %v660_v24 }
  0xe4   : > { %v679_v27 = vmax.f32 %v671_v25, 0.0 }
  0xe5   : > { %v572_v28 = vpop.f32.mrf.mxu2  ;;  %v650_v29 = vpop.f32.mrf.mxu3 }
  0xe6   : > { %688 = vst.msk [vmem:[%s1072_s14 + $0x28] sm:$0xff] %vm682_vm1, %v679_v27  ;;  %v583_v30 = vmax.f32 %v505_v26, %v572_v28  ;;  %v426_v32 = vpop.f32.mrf.mxu0  ;;  %v496_v33 = vpop.f32.mrf.mxu1 }
  0xe7   : > { %v506_v36 = vmax.f32 %v426_v32, %v496_v33 }
  0xe8   : > { %v661_v31 = vmax.f32 %v583_v30, %v650_v29 }
  0xea   : > { %v672_v34 = vadd.f32 %v1066_v40, %v661_v31 }
  0xec   : > { %v680_v35 = vmax.f32 %v672_v34, 0.0 }
  0xed   : > { %v574_v37 = vpop.f32.mrf.mxu2  ;;  %v652_v39 = vpop.f32.mrf.mxu3 }
  0xee   : > { %689 = vst.msk [vmem:[%s1072_s14 + $0x30] sm:$0xff] %vm682_vm1, %v680_v35  ;;  %v584_v38 = vmax.f32 %v506_v36, %v574_v37 }
  0xf0   : > { %v662_v41 = vmax.f32 %v584_v38, %v652_v39 }
  0xf2   : > { %v673_v42 = vadd.f32 %v1066_v40, %v662_v41 }
  0xf4   : > { %v681_v43 = vmax.f32 %v673_v42, 0.0 }
  0xf6   : > { %690 = vst.msk [vmem:[%s1072_s14 + $0x38] sm:$0xff] %vm682_vm1, %v681_v43 }
  0xf7 PF: > { %p10_p9 = scmp.ge.s32.totalorder %s983_s16, 4   ;;  %s1111_s12 = smov %s940_s13 }
  0xf8   : > { %s1112_s13 = smov %s992_s19  ;;  %s1113_s14 = smov %s983_s16 }
  0xf9   :  { %12 = sbr.rel (!%p10_p9) target bundleno = 2 (0x2), region = 111 }

// kernel: tiny_imagenet_cnn_forward.7
= control target key start
LH: loop header
LB: loop body
LE: loop exit
PB: predicated region body
PF: predicated region fallthrough
CT: control target
= control target key end

     0   :  { %s1166_s12 = smov 0   ;;  %s1378_s0 = inlined_call_operand.vmem [shape: bf16[128,576], index: 0, kind: input, shape index: {}]   ;;  %s1379_s1 = inlined_call_operand.vmem [shape: bf16[576,32], index: 1, kind: input, shape index: {}]   ;;  %s1380_s2 = inlined_call_operand.vmem [shape: f32[1,32], index: 2, kind: input, shape index: {}]   ;;  %s1381_s3 = inlined_call_operand.vmem [shape: f32[128,32], index: 3, kind: output, shape index: {}]  }
   0x1 LB: > { %s817_s13 = sadd.s32 4294967295, %s1144_s12   ;;  %p821_p0 = scmp.ge.s32.totalorder %s1144_s12, 1  ;;  %s1144_s12 = sphi %s1166_s12, %s13_s12  }
   0x2   : > { %p139_p1 = scmp.lt.s32.totalorder %s1144_s12, 3 }
   0x4   : > { %p140_p2 = pnand %p821_p0, %p139_p1 }
   0x5   : > { %s822_s24 = sshll.u32 (!%p140_p2), %s817_s13, 3 }
   0x6   : > { %143 = sbr.rel (%p140_p2) target bundleno = 270 (0x10e), region = 32  ;;  %p165_p3 = scmp.lt.s32.totalorder (!%p140_p2), %s822_s24, 15 }
   0xb   : > { %v1083_v0 = vld [vmem:[%s1379_s1 + $0x38] sm:$0xff]  ;;  %v1082_v1 = vld [vmem:[%s1379_s1 + $0x30] sm:$0xff]  ;;  %v1081_v4 = vld [vmem:[%s1379_s1 + $0x28] sm:$0xff]  ;;  %s1383_s24 = smov (!%p165_p3, %s822_s24), 15  ;;  %vm594_vm0 = vcmask 523264   ;;  %vm752_vm1 = vcmask 261120  }
   0xc   : > { %1112 = vmatpush.bf16.msra.mxu1 %v1083_v0  ;;  %1113 = vmatpush.bf16.msra.mxu2 %v1083_v0  ;;  %v1107_v2 = vld [vmem:[%s1379_s1 + $0xf8] sm:$0xff]  ;;  %v1106_v3 = vld [vmem:[%s1379_s1 + $0xf0] sm:$0xff]  ;;  %v1105_v5 = vld [vmem:[%s1379_s1 + $0xe8] sm:$0xff]  ;;  %s1128_s10 = smul.u32 20, %s1383_s24 }
   0xd   : > { %607 = vmatpush.bf16.msra.mxu0 %v1083_v0  ;;  %694 = vmatpush.bf16.msra.mxu3 %v1107_v2  ;;  %v1080_v6 = vld [vmem:[%s1379_s1 + $0x20] sm:$0xff]  ;;  %v1079_v8 = vld [vmem:[%s1379_s1 + $0x18] sm:$0xff]  ;;  %v1078_v10 = vld [vmem:[%s1379_s1 + $0x10] sm:$0xff] }
   0xe   : > { %v1104_v7 = vld [vmem:[%s1379_s1 + $0xe0] sm:$0xff]  ;;  %v1103_v9 = vld [vmem:[%s1379_s1 + $0xd8] sm:$0xff]  ;;  %v1102_v11 = vld [vmem:[%s1379_s1 + $0xd0] sm:$0xff]  ;;  %s1219_s18 = scalar_lea.vmem %s1378_s0, %s1128_s10 }
   0xf   : > { %v1077_v12 = vld [vmem:[%s1379_s1 + $0x8] sm:$0xff]  ;;  %v1076_v14 = vld [vmem:[%s1379_s1] sm:$0xff]  ;;  %v1063_v16 = vld [vmem:[%s1219_s18 + $0x38] sm:$0xf0] }
  0x10   : > { %1114 = vmatpush.bf16.msra.mxu1 %v1082_v1  ;;  %1115 = vmatpush.bf16.msra.mxu2 %v1082_v1  ;;  %v1101_v13 = vld [vmem:[%s1379_s1 + $0xc8] sm:$0xff]  ;;  %v888_v17 = vld [vmem:[%s1219_s18 + $0x78] sm:$0xf]  ;;  %v828_v21 = vld [vmem:[%s1219_s18] sm:$0xf] }
  0x11   : > { %608 = vmatpush.bf16.msra.mxu0 %v1082_v1  ;;  %695 = vmatpush.bf16.msra.mxu3 %v1106_v3  ;;  %v848_v15 = vld [vmem:[%s1219_s18 + $0x28] sm:$0xf]  ;;  %v1073_v18 = vld [vmem:[%s1219_s18 + $0x88] sm:$0xf0]  ;;  %v1099_v19 = vld [vmem:[%s1379_s1 + $0xb8] sm:$0xff] }
  0x12   : > { %v1091_v20 = vld [vmem:[%s1379_s1 + $0x78] sm:$0xff]  ;;  %v1100_v22 = vld [vmem:[%s1379_s1 + $0xc0] sm:$0xff]  ;;  %v849_v23 = vor.u32 %v1063_v16, %v848_v15  ;;  %v889_v24 = vor.u32 %v1073_v18, %v888_v17  ;;  %v1058_v25 = vld [vmem:[%s1219_s18 + $0x10] sm:$0xf0] }
  0x13   : > { %v1057_v26 = vld [vmem:[%s1219_s18 + $0xc] sm:$0xf]  ;;  %v838_v27 = vld [vmem:[%s1219_s18 + $0x1c] sm:$0xf0]  ;;  %v1111_v28 = vld [vmem:[%s1379_s1 + $0x118] sm:$0xff]  ;;  %v829_v31 = vor.u32 %v1058_v25, %v828_v21 }
  0x14   : > { %1116 = vmatpush.bf16.msra.mxu1 %v1081_v4  ;;  %1117 = vmatpush.bf16.msra.mxu2 %v1081_v4  ;;  %v1098_v29 = vld [vmem:[%s1379_s1 + $0xb0] sm:$0xff]  ;;  %v841_v32 = vor.u32 %v1057_v26, %v838_v27  ;;  %v1097_v34 = vld [vmem:[%s1379_s1 + $0xa8] sm:$0xff]  ;;  %v1096_v37 = vld [vmem:[%s1379_s1 + $0xa0] sm:$0xff] }
  0x15   : > { %609 = vmatpush.bf16.msra.mxu0 %v1081_v4  ;;  %696 = vmatpush.bf16.msra.mxu3 %v1105_v5  ;;  %v1090_v30 = vld [vmem:[%s1379_s1 + $0x70] sm:$0xff]  ;;  %v1089_v35 = vld [vmem:[%s1379_s1 + $0x68] sm:$0xff]  ;;  %v1088_v38 = vld [vmem:[%s1379_s1 + $0x60] sm:$0xff] }
  0x16   : > { %v1110_v33 = vld [vmem:[%s1379_s1 + $0x110] sm:$0xff]  ;;  %v1109_v36 = vld [vmem:[%s1379_s1 + $0x108] sm:$0xff]  ;;  %v1068_v40 = vld [vmem:[%s1219_s18 + $0x60] sm:$0xf0] }
  0x17   : > { %v868_v39 = vld [vmem:[%s1219_s18 + $0x50] sm:$0xf]  ;;  %v1108_v41 = vld [vmem:[%s1379_s1 + $0x100] sm:$0xff]  ;;  %v1095_v42 = vld [vmem:[%s1379_s1 + $0x98] sm:$0xff] }
  0x18   : > { %1118 = vmatpush.bf16.msra.mxu1 %v1080_v6  ;;  %1119 = vmatpush.bf16.msra.mxu2 %v1080_v6  ;;  %v1087_v43 = vld [vmem:[%s1379_s1 + $0x58] sm:$0xff]  ;;  %v844_v44 = vld [vmem:[%s1219_s18 + $0x10] sm:$0xf]  ;;  %v869_v45 = vor.u32 %v1068_v40, %v868_v39  ;;  %v1060_v46 = vld [vmem:[%s1219_s18 + $0x20] sm:$0xf0] }
  0x19   : > { %610 = vmatpush.bf16.msra.mxu0 %v1080_v6  ;;  %697 = vmatpush.bf16.msra.mxu3 %v1104_v7  ;;  %v1062_v47 = vld [vmem:[%s1219_s18 + $0x34] sm:$0xf]  ;;  %v858_v48 = vld [vmem:[%s1219_s18 + $0x44] sm:$0xf0]  ;;  %v845_v51 = vor.u32 %v1060_v46, %v844_v44  ;;  %v1092_v55 = vld [vmem:[%s1379_s1 + $0x80] sm:$0xff] }
  0x1a   : > { %v1094_v49 = vld [vmem:[%s1379_s1 + $0x90] sm:$0xff]  ;;  %v861_v52 = vor.u32 %v1062_v47, %v858_v48  ;;  %v1093_v53 = vld [vmem:[%s1379_s1 + $0x88] sm:$0xff]  ;;  %v1084_v56 = vld [vmem:[%s1379_s1 + $0x40] sm:$0xff] }
  0x1b   : > { %v1086_v50 = vld [vmem:[%s1379_s1 + $0x50] sm:$0xff]  ;;  %v1085_v54 = vld [vmem:[%s1379_s1 + $0x48] sm:$0xff]  ;;  %v1059_v58 = vld [vmem:[%s1219_s18 + $0x18] sm:$0xf0] }
  0x1c   : > { %1120 = vmatpush.bf16.msra.mxu1 %v1079_v8  ;;  %1121 = vmatpush.bf16.msra.mxu2 %v1079_v8  ;;  %v836_v57 = vld [vmem:[%s1219_s18 + $0x8] sm:$0xf]  ;;  %v1056_v60 = vld [vmem:[%s1219_s18 + $0x4] sm:$0xf]  ;;  %v830_v61 = vld [vmem:[%s1219_s18 + $0x14] sm:$0xf0] }
  0x1d   : > { %611 = vmatpush.bf16.msra.mxu0 %v1079_v8  ;;  %698 = vmatpush.bf16.msra.mxu3 %v1103_v9  ;;  %v837_v59 = vor.u32 %v1059_v58, %v836_v57  ;;  %v864_v62 = vld [vmem:[%s1219_s18 + $0x38] sm:$0xf]  ;;  %v833_v63 = vor.u32 %v1056_v60, %v830_v61  ;;  %v1065_v0 = vld [vmem:[%s1219_s18 + $0x48] sm:$0xf0]  ;;  %v1067_v1 = vld [vmem:[%s1219_s18 + $0x5c] sm:$0xf] }
  0x1e   : > { %v878_v2 = vld [vmem:[%s1219_s18 + $0x6c] sm:$0xf0]  ;;  %v865_v3 = vor.u32 %v1065_v0, %v864_v62  ;;  %v1064_v6 = vld [vmem:[%s1219_s18 + $0x40] sm:$0xf0]  ;;  %v1061_v8 = vld [vmem:[%s1219_s18 + $0x2c] sm:$0xf] }
  0x1f   : > { %v881_v4 = vor.u32 %v1067_v1, %v878_v2  ;;  %v856_v5 = vld [vmem:[%s1219_s18 + $0x30] sm:$0xf]  ;;  %v850_v9 = vld [vmem:[%s1219_s18 + $0x3c] sm:$0xf0]  ;;  %v876_v17 = vld [vmem:[%s1219_s18 + $0x58] sm:$0xf] }
  0x20   : > { %1122 = vmatpush.bf16.msra.mxu1 %v1078_v10  ;;  %1123 = vmatpush.bf16.msra.mxu2 %v1078_v10  ;;  %v857_v7 = vor.u32 %v1064_v6, %v856_v5  ;;  %v1069_v18 = vld [vmem:[%s1219_s18 + $0x68] sm:$0xf0]  ;;  %v870_v21 = vld [vmem:[%s1219_s18 + $0x64] sm:$0xf0]  ;;  %v896_v26 = vld [vmem:[%s1219_s18 + $0x80] sm:$0xf] }
  0x21   : > { %612 = vmatpush.bf16.msra.mxu0 %v1078_v10  ;;  %699 = vmatpush.bf16.msra.mxu3 %v1102_v11  ;;  %v884_v10 = vld [vmem:[%s1219_s18 + $0x60] sm:$0xf]  ;;  %v853_v11 = vor.u32 %v1061_v8, %v850_v9  ;;  %v1074_v27 = vld [vmem:[%s1219_s18 + $0x90] sm:$0xf0] }
  0x24   : > { %1124 = vmatpush.bf16.msra.mxu1 %v1077_v12  ;;  %1125 = vmatpush.bf16.msra.mxu2 %v1077_v12 }
  0x25   : > { %613 = vmatpush.bf16.msra.mxu0 %v1077_v12  ;;  %700 = vmatpush.bf16.msra.mxu3 %v1101_v13  ;;  %v1070_v12 = vld [vmem:[%s1219_s18 + $0x70] sm:$0xf0]  ;;  %v1072_v13 = vld [vmem:[%s1219_s18 + $0x84] sm:$0xf] }
  0x26   : > { %v885_v15 = vor.u32 %v1070_v12, %v884_v10 }
  0x28   : > { %1126 = vmatpush.bf16.msra.mxu1 %v1076_v14  ;;  %1127 = vmatpush.bf16.msra.mxu2 %v1076_v14 }
  0x29   : > { %614 = vmatpush.bf16.msra.mxu0 %v1076_v14  ;;  %701 = vmatpush.bf16.msra.mxu3 %v1100_v22  ;;  %v898_v14 = vld [vmem:[%s1219_s18 + $0x94] sm:$0xf0] }
  0x2a   : > { %v901_v16 = vor.u32 %v1072_v13, %v898_v14 }
  0x2b   : > { %620 = vmatmul.bf16.vlgmr.msra.gmra.mxu1 %v849_v23  ;;  %630 = vmatmul.bf16.vlgmr.msra.gmra.mxu2 %v889_v24  ;;  %v904_v23 = vld [vmem:[%s1219_s18 + $0x88] sm:$0xf]  ;;  %v1075_v24 = vld [vmem:[%s1219_s18 + $0x98] sm:$0xf0] }
  0x2c   : > { %665 = vmatpush.bf16.msrb.mxu2 %v1099_v19  ;;  %636 = vmatpush.bf16.msrb.mxu1 %v1091_v20  ;;  %v877_v19 = vor.u32 %v1069_v18, %v876_v17  ;;  %v1066_v20 = vld [vmem:[%s1219_s18 + $0x54] sm:$0xf]  ;;  %v905_v25 = vor.u32 %v1075_v24, %v904_v23 }
  0x2d   : > { %727 = vmatpush.bf16.msrb.mxu0 %v1111_v28  ;;  %702 = vmatmul.bf16.vlgmr.msra.gmra.mxu3 %v841_v32  ;;  %v873_v22 = vor.u32 %v1066_v20, %v870_v21  ;;  %v897_v28 = vor.u32 %v1074_v27, %v896_v26 }
  0x2e   : > { %615 = vmatmul.bf16.vlgmr.msra.gmra.mxu0 %v829_v31 }
  0x30   : > { %666 = vmatpush.bf16.msrb.mxu2 %v1098_v29  ;;  %637 = vmatpush.bf16.msrb.mxu1 %v1090_v30  ;;  %v1071_v29 = vld [vmem:[%s1219_s18 + $0x7c] sm:$0xf]  ;;  %v890_v30 = vld [vmem:[%s1219_s18 + $0x8c] sm:$0xf0]  ;;  %s825_s18 = sshll.u32 %s1383_s24, 3 }
  0x31   : > { %728 = vmatpush.bf16.msrb.mxu0 %v1110_v33  ;;  %v893_v31 = vor.u32 %v1071_v29, %v890_v30  ;;  %s1349_s21 = scalar_lea.vmem %s1381_s3, %s825_s18 }
  0x34   : > { %667 = vmatpush.bf16.msrb.mxu2 %v1097_v34  ;;  %638 = vmatpush.bf16.msrb.mxu1 %v1089_v35 }
  0x35   : > { %729 = vmatpush.bf16.msrb.mxu0 %v1109_v36 }
  0x38   : > { %668 = vmatpush.bf16.msrb.mxu2 %v1096_v37  ;;  %639 = vmatpush.bf16.msrb.mxu1 %v1088_v38 }
  0x39   : > { %730 = vmatpush.bf16.msrb.mxu0 %v1108_v41 }
  0x3b   : > { %625 = vmatmul.bf16.gmra.mxu1 %v869_v45 }
  0x3c   : > { %669 = vmatpush.bf16.msrb.mxu2 %v1095_v42  ;;  %640 = vmatpush.bf16.msrb.mxu1 %v1087_v43  ;;  %v1341_v42 = vld [vmem:[%s1380_s2] ss:$0 sm:$0xff] }
  0x3d   : > { %707 = vmatmul.bf16.gmra.mxu3 %v861_v52 }
  0x3e   : > { %1050 = vmatmul.msk.bf16.vlgmr.msrb.gmra.mxu0 %vm594_vm0, %v845_v51 }
  0x40   : > { %670 = vmatpush.bf16.msrb.mxu2 %v1094_v49  ;;  %641 = vmatpush.bf16.msrb.mxu1 %v1086_v50 }
  0x44   : > { %671 = vmatpush.bf16.msrb.mxu2 %v1093_v53  ;;  %642 = vmatpush.bf16.msrb.mxu1 %v1085_v54 }
  0x48   : > { %672 = vmatpush.bf16.msrb.mxu2 %v1092_v55  ;;  %643 = vmatpush.bf16.msrb.mxu1 %v1084_v56 }
  0x4b   : > { %673 = vmatmul.bf16.vlgmr.msrb.gmra.mxu2 %v837_v59  ;;  %644 = vmatmul.bf16.vlgmr.msrb.gmra.mxu1 %v833_v63 }
  0x4d   : > { %712 = vmatmul.bf16.gmra.mxu3 %v881_v4 }
  0x4e   : > { %1051 = vmatmul.msk.bf16.gmra.mxu0 %vm594_vm0, %v865_v3 }
  0x5b   : > { %678 = vmatmul.bf16.gmra.mxu2 %v857_v7  ;;  %649 = vmatmul.bf16.gmra.mxu1 %v853_v11 }
  0x5d   : > { %717 = vmatmul.bf16.gmra.mxu3 %v901_v16 }
  0x5e   : > { %1052 = vmatmul.msk.bf16.gmra.mxu0 %vm594_vm0, %v885_v15 }
  0x6b   : > { %683 = vmatmul.bf16.gmra.mxu2 %v877_v19  ;;  %654 = vmatmul.bf16.gmra.mxu1 %v873_v22 }
  0x6e   : > { %1053 = vmatmul.msk.bf16.gmra.mxu0 %vm594_vm0, %v905_v25 }
  0x7b   : > { %688 = vmatmul.bf16.gmra.mxu2 %v897_v28  ;;  %659 = vmatmul.bf16.gmra.mxu1 %v893_v31 }
  0xa8   : > { %v621_v32 = vpop.f32.mrf.mxu1 }
  0xa9   : > { %v622_v60 = vadd.f32 %v1341_v42, %v621_v32 }
  0xab   : > { %v616_v33 = vpop.f32.mrf.mxu0 }
  0xac   : > { %v617_v43 = vadd.f32 %v1341_v42, %v616_v33 }
  0xae   : > { %v1334_v37 = vpop.f32.mrf.mxu2 }
  0xaf   : > { %v632_v30 = vadd.f32 %v1341_v42, %v1334_v37 }
  0xb0   : > { %v623_v34 = vpop.f32.mrf.mxu1  ;;  %v703_v38 = vpop.f32.mrf.mxu3 }
  0xb1   : > { %v624_v4 = vadd.f32 %v1341_v42, %v623_v34 }
  0xb3   : > { %v618_v35 = vpop.f32.mrf.mxu0 }
  0xb4   : > { %v619_v51 = vadd.f32 %v1341_v42, %v618_v35 }
  0xb6   : > { %v1336_v41 = vpop.f32.mrf.mxu2 }
  0xb8   : > { %v626_v36 = vpop.f32.mrf.mxu1  ;;  %v705_v46 = vpop.f32.mrf.mxu3 }
  0xb9   : > { %v627_v12 = vadd.f32 %v1341_v42, %v626_v36 }
  0xbb   : > { %v732_v40 = vpop.f32.mrf.mxu0 }
  0xc0   : > { %v628_v39 = vpop.f32.mrf.mxu1  ;;  %v708_v56 = vpop.f32.mrf.mxu3 }
  0xc1   : > { %v629_v21 = vadd.f32 %v1341_v42, %v628_v39 }
  0xc3   : > { %v734_v48 = vpop.f32.mrf.mxu0 }
  0xc8   : > { %v645_v44 = vpop.f32.mrf.mxu1  ;;  %v710_v2 = vpop.f32.mrf.mxu3 }
  0xc9   : > { %v646_v45 = vadd.f32 %v645_v44, %v617_v43 }
  0xcb   : > { %v737_v58 = vpop.f32.mrf.mxu0 }
  0xce   : > { %v674_v47 = vpop.f32.mrf.mxu2 }
  0xcf   : > { %v675_v49 = vadd.f32 %v674_v47, %v646_v45 }
  0xd0   : > { %v647_v53 = vpop.f32.mrf.mxu1  ;;  %v713_v13 = vpop.f32.mrf.mxu3 }
  0xd1   : > { %v704_v50 = vadd.f32 %v703_v38, %v675_v49  ;;  %v648_v54 = vadd.f32 %v647_v53, %v619_v51 }
  0xd3   : > { %v733_v52 = vadd.f32 %v732_v40, %v704_v50  ;;  %v739_v5 = vpop.f32.mrf.mxu0  ;;  %v634_v40 = vadd.f32 %v1341_v42, %v1336_v41 }
  0xd5   : > { %753 = vst.msk [vmem:[%s1349_s21] sm:$0xff] %vm752_vm1, %v733_v52 }
  0xd6   : > { %v676_v55 = vpop.f32.mrf.mxu2 }
  0xd7   : > { %v677_v57 = vadd.f32 %v676_v55, %v648_v54 }
  0xd8   : > { %v650_v62 = vpop.f32.mrf.mxu1  ;;  %v715_v24 = vpop.f32.mrf.mxu3 }
  0xd9   : > { %v706_v59 = vadd.f32 %v705_v46, %v677_v57  ;;  %v651_v63 = vadd.f32 %v650_v62, %v622_v60 }
  0xdb   : > { %v735_v61 = vadd.f32 %v734_v48, %v706_v59  ;;  %v742_v16 = vpop.f32.mrf.mxu0 }
  0xdd   : > { %754 = vst.msk [vmem:[%s1349_s21 + $0x8] sm:$0xff] %vm752_vm1, %v735_v61 }
  0xde   : > { %v679_v0 = vpop.f32.mrf.mxu2 }
  0xdf   : > { %v680_v1 = vadd.f32 %v679_v0, %v651_v63 }
  0xe0   : > { %v652_v7 = vpop.f32.mrf.mxu1  ;;  %v718_v34 = vpop.f32.mrf.mxu3 }
  0xe1   : > { %v709_v3 = vadd.f32 %v708_v56, %v680_v1  ;;  %v653_v8 = vadd.f32 %v652_v7, %v624_v4 }
  0xe3   : > { %v738_v6 = vadd.f32 %v737_v58, %v709_v3  ;;  %v744_v26 = vpop.f32.mrf.mxu0 }
  0xe5   : > { %755 = vst.msk [vmem:[%s1349_s21 + $0x10] sm:$0xff] %vm752_vm1, %v738_v6 }
  0xe6   : > { %v681_v9 = vpop.f32.mrf.mxu2 }
  0xe7   : > { %v682_v10 = vadd.f32 %v681_v9, %v653_v8 }
  0xe8   : > { %v655_v15 = vpop.f32.mrf.mxu1  ;;  %v720_v47 = vpop.f32.mrf.mxu3 }
  0xe9   : > { %v711_v11 = vadd.f32 %v710_v2, %v682_v10  ;;  %v656_v17 = vadd.f32 %v655_v15, %v627_v12 }
  0xeb   : > { %v740_v14 = vadd.f32 %v739_v5, %v711_v11  ;;  %v747_v38 = vpop.f32.mrf.mxu0 }
  0xed   : > { %756 = vst.msk [vmem:[%s1349_s21 + $0x18] sm:$0xff] %vm752_vm1, %v740_v14 }
  0xee   : > { %v684_v18 = vpop.f32.mrf.mxu2 }
  0xef   : > { %v685_v19 = vadd.f32 %v684_v18, %v656_v17 }
  0xf0   : > { %v657_v23 = vpop.f32.mrf.mxu1 }
  0xf1   : > { %v714_v20 = vadd.f32 %v713_v13, %v685_v19  ;;  %v658_v25 = vadd.f32 %v657_v23, %v629_v21 }
  0xf3   : > { %v743_v22 = vadd.f32 %v742_v16, %v714_v20  ;;  %v749_v49 = vpop.f32.mrf.mxu0 }
  0xf5   : > { %757 = vst.msk [vmem:[%s1349_s21 + $0x20] sm:$0xff] %vm752_vm1, %v743_v22 }
  0xf6   : > { %v686_v27 = vpop.f32.mrf.mxu2 }
  0xf7   : > { %v687_v28 = vadd.f32 %v686_v27, %v658_v25 }
  0xf8   : > { %v660_v32 = vpop.f32.mrf.mxu1 }
  0xf9   : > { %v716_v29 = vadd.f32 %v715_v24, %v687_v28  ;;  %v661_v33 = vadd.f32 %v660_v32, %v632_v30 }
  0xfb   : > { %v745_v31 = vadd.f32 %v744_v26, %v716_v29 }
  0xfd   : > { %758 = vst.msk [vmem:[%s1349_s21 + $0x28] sm:$0xff] %vm752_vm1, %v745_v31 }
  0xfe   : > { %v689_v35 = vpop.f32.mrf.mxu2 }
  0xff   : > { %v690_v36 = vadd.f32 %v689_v35, %v661_v33 }
 0x100   : > { %v662_v44 = vpop.f32.mrf.mxu1 }
 0x101   : > { %v719_v39 = vadd.f32 %v718_v34, %v690_v36  ;;  %v663_v45 = vadd.f32 %v662_v44, %v634_v40 }
 0x103   : > { %v748_v43 = vadd.f32 %v747_v38, %v719_v39 }
 0x105   : > { %759 = vst.msk [vmem:[%s1349_s21 + $0x30] sm:$0xff] %vm752_vm1, %v748_v43 }
 0x106   : > { %v691_v37 = vpop.f32.mrf.mxu2 }
 0x107   : > { %v692_v46 = vadd.f32 %v691_v37, %v663_v45 }
 0x109   : > { %v721_v48 = vadd.f32 %v720_v47, %v692_v46 }
 0x10b   : > { %v750_v50 = vadd.f32 %v749_v49, %v721_v48 }
 0x10d   : > { %760 = vst.msk [vmem:[%s1349_s21 + $0x38] sm:$0xff] %vm752_vm1, %v750_v50 }
 0x10e PF: > { %s13_s12 = sadd.s32 1, %s1144_s12  }
 0x10f   : > { %p10_p4 = scmp.ge.s32.totalorder %s13_s12, 4  }
 0x111   :  { %12 = sbr.rel (!%p10_p4) target bundleno = 1 (0x1), region = 62 }

// kernel: tiny_imagenet_cnn_forward.8
= control target key start
LH: loop header
LB: loop body
LE: loop exit
PB: predicated region body
PF: predicated region fallthrough
CT: control target
= control target key end

     0   :  { %s1449_s12 = smov 0   ;;  %s1451_s13 = smov 0   ;;  %s1932_s0 = inlined_call_operand.vmem [shape: bf16[4,32,576], index: 0, kind: input, shape index: {}]   ;;  %s1933_s1 = inlined_call_operand.vmem [shape: bf16[576,128], index: 1, kind: input, shape index: {}]   ;;  %s1934_s2 = inlined_call_operand.vmem [shape: f32[1,128], index: 2, kind: input, shape index: {}]   ;;  %s1935_s3 = inlined_call_operand.vmem [shape: f32[32,128], index: 3, kind: output, shape index: {}]  }
   0x1   :  { %s1453_s14 = smov 0  }
   0x2 LB: > { %s1047_s15 = sadd.s32 4294967295, %s1427_s14   ;;  %s1466_s16 = sadd.s32 1, %s1427_s14   ;;  %s1427_s14 = sphi %s1453_s14, %s1938_s14   ;;  %s1423_s13 = sphi %s1451_s13, %s1937_s13   ;;  %s1419_s12 = sphi %s1449_s12, %s1936_s12  }
   0x3   : > { %s17_s17 = ssub.s32 %s1427_s14, %s1466_s16  ;;  %s20_s18 = sadd.s32 1, %s1423_s13 }
   0x4   : > { %p18_p0 = scmp.eq.s32.totalorder %s17_s17, 0  ;;  %p27_p1 = scmp.ne.s32.totalorder %s1423_s13, %s1419_s12 }
   0x5   : > { %p28_p2 = scmp.eq.s32.totalorder %s1427_s14, 0  ;;  %p1050_p4 = scmp.ge.s32.totalorder %s1427_s14, 2 }
   0x6   : > { %s1475_s19 = scalar_select %p18_p0, %s1423_s13, %s20_s18  }
   0x7   : > { %p29_p3 = por %p28_p2, %p27_p1  ;;  %127 = sbr.rel (%p1050_p4) target bundleno = 41 (0x29), region = 24 }
   0xc   : > { %130 = sbr.rel (!%p29_p3) target bundleno = 41 (0x29), region = 28  ;;  %s132_s20 = sand.u32 (%p29_p3), 1, %s1423_s13  }
   0xd   : > { %s1378_s21 = smul.u32 (%p29_p3), 40, %s1427_s14 }
   0xe   : > { %s1377_s22 = smul.u32 (%p29_p3), 160, %s132_s20 }
   0xf   : > { %s1483_s25 = scalar_lea.vmem (%p29_p3), %s1932_s0, %s1378_s21 }
  0x10   : > { %v153_v0 = vld [vmem:[%s1483_s25] sm:$0xff] (%p29_p3)  ;;  %v155_v1 = vld [vmem:[%s1483_s25 + $0x8] sm:$0xff] (%p29_p3)  ;;  %v157_v2 = vld [vmem:[%s1483_s25 + $0x14] sm:$0xff] (%p29_p3)  ;;  %s1488_s26 = scalar_lea.vmem (%p29_p3), [#allocation2], %s1377_s22 }
  0x11   : > { %154 = vst [vmem:[%s1488_s26] sm:$0xff] %v153_v0  ;;  %v159_v3 = vld [vmem:[%s1483_s25 + $0x1c] sm:$0xff]  ;;  %v161_v4 = vld [vmem:[%s1483_s25 + $0x50] sm:$0xff]  ;;  %v165_v6 = vld [vmem:[%s1483_s25 + $0x64] sm:$0xff] }
  0x12   : > { %156 = vst [vmem:[%s1488_s26 + $0x8] sm:$0xff] %v155_v1  ;;  %v163_v5 = vld [vmem:[%s1483_s25 + $0x58] sm:$0xff]  ;;  %v167_v7 = vld [vmem:[%s1483_s25 + $0x6c] sm:$0xff]  ;;  %v169_v8 = vld [vmem:[%s1483_s25 + $0xa0] sm:$0xff] }
  0x13   : > { %158 = vst [vmem:[%s1488_s26 + $0x14] sm:$0xff] %v157_v2  ;;  %v171_v9 = vld [vmem:[%s1483_s25 + $0xa8] sm:$0xff]  ;;  %v173_v10 = vld [vmem:[%s1483_s25 + $0xb4] sm:$0xff]  ;;  %v175_v11 = vld [vmem:[%s1483_s25 + $0xbc] sm:$0xff] }
  0x14   : > { %160 = vst [vmem:[%s1488_s26 + $0x1c] sm:$0xff] %v159_v3  ;;  %v177_v12 = vld [vmem:[%s1483_s25 + $0xf0] sm:$0xff]  ;;  %v179_v13 = vld [vmem:[%s1483_s25 + $0xf8] sm:$0xff]  ;;  %v181_v14 = vld [vmem:[%s1483_s25 + $0x104] sm:$0xff] }
  0x15   : > { %162 = vst [vmem:[%s1488_s26 + $0x28] sm:$0xff] %v161_v4  ;;  %v183_v15 = vld [vmem:[%s1483_s25 + $0x10c] sm:$0xff]  ;;  %v1056_v17 = vld [vmem:[%s1483_s25 + $0x24] sm:$0xf]  ;;  %v1058_v18 = vld [vmem:[%s1483_s25 + $0x60] sm:$0xf] }
  0x16   : > { %164 = vst [vmem:[%s1488_s26 + $0x30] sm:$0xff] %v163_v5  ;;  %v1054_v16 = vld [vmem:[%s1483_s25 + $0x10] sm:$0xf]  ;;  %v1060_v19 = vld [vmem:[%s1483_s25 + $0x74] sm:$0xf] }
  0x17   : > { %166 = vst [vmem:[%s1488_s26 + $0x3c] sm:$0xff] %v165_v6  ;;  %v1062_v20 = vld [vmem:[%s1483_s25 + $0xb0] sm:$0xf]  ;;  %v1064_v21 = vld [vmem:[%s1483_s25 + $0xc4] sm:$0xf] }
  0x18   : > { %168 = vst [vmem:[%s1488_s26 + $0x44] sm:$0xff] %v167_v7  ;;  %v1066_v22 = vld [vmem:[%s1483_s25 + $0x100] sm:$0xf]  ;;  %v1068_v23 = vld [vmem:[%s1483_s25 + $0x114] sm:$0xf] }
  0x19   : > { %170 = vst [vmem:[%s1488_s26 + $0x50] sm:$0xff] %v169_v8 }
  0x1a   : > { %172 = vst [vmem:[%s1488_s26 + $0x58] sm:$0xff] %v171_v9 }
  0x1b   : > { %174 = vst [vmem:[%s1488_s26 + $0x64] sm:$0xff] %v173_v10 }
  0x1c   : > { %176 = vst [vmem:[%s1488_s26 + $0x6c] sm:$0xff] %v175_v11 }
  0x1d   : > { %178 = vst [vmem:[%s1488_s26 + $0x78] sm:$0xff] %v177_v12 }
  0x1e   : > { %180 = vst [vmem:[%s1488_s26 + $0x80] sm:$0xff] %v179_v13 }
  0x1f   : > { %182 = vst [vmem:[%s1488_s26 + $0x8c] sm:$0xff] %v181_v14 }
  0x20   : > { %184 = vst [vmem:[%s1488_s26 + $0x94] sm:$0xff] %v183_v15 }
  0x21   : > { %1055 = vst [vmem:[%s1488_s26 + $0x10] sm:$0xf] %v1054_v16 }
  0x22   : > { %1057 = vst [vmem:[%s1488_s26 + $0x24] sm:$0xf] %v1056_v17 }
  0x23   : > { %1059 = vst [vmem:[%s1488_s26 + $0x38] sm:$0xf] %v1058_v18 }
  0x24   : > { %1061 = vst [vmem:[%s1488_s26 + $0x4c] sm:$0xf] %v1060_v19 }
  0x25   : > { %1063 = vst [vmem:[%s1488_s26 + $0x60] sm:$0xf] %v1062_v20 }
  0x26   : > { %1065 = vst [vmem:[%s1488_s26 + $0x74] sm:$0xf] %v1064_v21 }
  0x27   : > { %1067 = vst [vmem:[%s1488_s26 + $0x88] sm:$0xf] %v1066_v22 }
  0x28   : > { %1069 = vst [vmem:[%s1488_s26 + $0x9c] sm:$0xf] %v1068_v23 }
  0x29 PF: > { %p1070_p5 = scmp.ge.s32.totalorder %s1427_s14, 1  ;;  %p213_p6 = scmp.lt.s32.totalorder %s1427_s14, 3 }
  0x2b   : > { %p214_p7 = pnand %p1070_p5, %p213_p6 }
  0x2c   : > { %s220_s25 = sand.u32 (!%p214_p7), 1, %s1419_s12   ;;  %s1071_s17 = sshll.u32 (!%p214_p7), %s1047_s15, 1 }
  0x2d   : > { %217 = sbr.rel (%p214_p7) target bundleno = 347 (0x15b), region = 54  ;;  %p245_p8 = scmp.lt.s32.totalorder (!%p214_p7), %s1071_s17, 3 }
  0x2e   : > { %s1379_s6 = smul.u32 (!%p214_p7), 160, %s220_s25 }
  0x30   : > { %s1729_s12 = scalar_lea.vmem (!%p214_p7), [#allocation2], %s1379_s6 }
  0x32   : > { %v1540_v24 = vld [vmem:[%s1933_s1 + $0x38] sm:$0xff]  ;;  %v1562_v28 = vld [vmem:[%s1933_s1 + $0x30] sm:$0xff]  ;;  %v1586_v32 = vld [vmem:[%s1933_s1 + $0x28] sm:$0xff]  ;;  %vm574_vm0 = vcmask 523264   ;;  %s1940_s17 = smov (!%p245_p8, %s1071_s17), 3 }
  0x33   : > { %v1545_v25 = vld [vmem:[%s1933_s1 + $0x78] sm:$0xff]  ;;  %578 = vmatpush.bf16.msra.mxu0 %v1540_v24  ;;  %v1567_v29 = vld [vmem:[%s1933_s1 + $0x70] sm:$0xff]  ;;  %v1591_v33 = vld [vmem:[%s1933_s1 + $0x68] sm:$0xff]  ;;  %s1072_s14 = sshll.u32 %s1940_s17, 3 }
  0x34   : > { %v1550_v26 = vld [vmem:[%s1933_s1 + $0xb8] sm:$0xff]  ;;  %592 = vmatpush.bf16.msra.mxu1 %v1545_v25  ;;  %v1574_v30 = vld [vmem:[%s1933_s1 + $0xb0] sm:$0xff]  ;;  %v1598_v34 = vld [vmem:[%s1933_s1 + $0xa8] sm:$0xff]  ;;  %s248_s20 = scalar_lea.vmem %s1935_s3, %s1072_s14 }
  0x35   : > { %v1555_v27 = vld [vmem:[%s1933_s1 + $0xf8] sm:$0xff]  ;;  %606 = vmatpush.bf16.msra.mxu2 %v1550_v26  ;;  %v1579_v31 = vld [vmem:[%s1933_s1 + $0xf0] sm:$0xff]  ;;  %v1603_v35 = vld [vmem:[%s1933_s1 + $0xe8] sm:$0xff] }
  0x36   : > { %620 = vmatpush.bf16.msra.mxu3 %v1555_v27  ;;  %v1610_v36 = vld [vmem:[%s1933_s1 + $0x20] sm:$0xff]  ;;  %v1634_v40 = vld [vmem:[%s1933_s1 + $0x18] sm:$0xff]  ;;  %v1659_v44 = vld [vmem:[%s1933_s1 + $0x10] sm:$0xff] }
  0x37   : > { %579 = vmatpush.bf16.msra.mxu0 %v1562_v28  ;;  %v1615_v37 = vld [vmem:[%s1933_s1 + $0x60] sm:$0xff]  ;;  %v1639_v41 = vld [vmem:[%s1933_s1 + $0x58] sm:$0xff]  ;;  %v1664_v45 = vld [vmem:[%s1933_s1 + $0x50] sm:$0xff] }
  0x38   : > { %593 = vmatpush.bf16.msra.mxu1 %v1567_v29  ;;  %v1622_v38 = vld [vmem:[%s1933_s1 + $0xa0] sm:$0xff]  ;;  %v1646_v42 = vld [vmem:[%s1933_s1 + $0x98] sm:$0xff]  ;;  %v1671_v46 = vld [vmem:[%s1933_s1 + $0x90] sm:$0xff] }
  0x39   : > { %607 = vmatpush.bf16.msra.mxu2 %v1574_v30  ;;  %v1627_v39 = vld [vmem:[%s1933_s1 + $0xe0] sm:$0xff]  ;;  %v1651_v43 = vld [vmem:[%s1933_s1 + $0xd8] sm:$0xff]  ;;  %v1676_v47 = vld [vmem:[%s1933_s1 + $0xd0] sm:$0xff] }
  0x3a   : > { %621 = vmatpush.bf16.msra.mxu3 %v1579_v31  ;;  %v1683_v48 = vld [vmem:[%s1933_s1 + $0x8] sm:$0xff]  ;;  %v1705_v52 = vld [vmem:[%s1933_s1] sm:$0xff]  ;;  %v1727_v56 = vld [vmem:[%s1933_s1 + $0x118] sm:$0xff] }
  0x3b   : > { %580 = vmatpush.bf16.msra.mxu0 %v1586_v32  ;;  %v1688_v49 = vld [vmem:[%s1933_s1 + $0x48] sm:$0xff]  ;;  %v1710_v53 = vld [vmem:[%s1933_s1 + $0x40] sm:$0xff]  ;;  %v1359_v58 = vld [vmem:[%s1729_s12 + $0x10] sm:$0xf0] }
  0x3c   : > { %594 = vmatpush.bf16.msra.mxu1 %v1591_v33  ;;  %v1695_v50 = vld [vmem:[%s1933_s1 + $0x88] sm:$0xff]  ;;  %v1715_v54 = vld [vmem:[%s1933_s1 + $0x80] sm:$0xff]  ;;  %v1360_v60 = vld [vmem:[%s1729_s12 + $0x18] sm:$0xf0] }
  0x3d   : > { %608 = vmatpush.bf16.msra.mxu2 %v1598_v34  ;;  %v1700_v51 = vld [vmem:[%s1933_s1 + $0xc8] sm:$0xff]  ;;  %v1720_v55 = vld [vmem:[%s1933_s1 + $0xc0] sm:$0xff]  ;;  %v1077_v0 = vld [vmem:[%s1729_s12 + $0x14] sm:$0xf0] }
  0x3e   : > { %622 = vmatpush.bf16.msra.mxu3 %v1603_v35  ;;  %v1075_v57 = vld [vmem:[%s1729_s12] sm:$0xf]  ;;  %v1083_v59 = vld [vmem:[%s1729_s12 + $0x8] sm:$0xf]  ;;  %v1358_v61 = vld [vmem:[%s1729_s12 + $0xc] sm:$0xf] }
  0x3f   : > { %581 = vmatpush.bf16.msra.mxu0 %v1610_v36  ;;  %v1085_v62 = vld [vmem:[%s1729_s12 + $0x1c] sm:$0xf0]  ;;  %v1357_v63 = vld [vmem:[%s1729_s12 + $0x4] sm:$0xf]  ;;  %v1076_v1 = vor.u32 %v1359_v58, %v1075_v57  ;;  %v1084_v2 = vor.u32 %v1360_v60, %v1083_v59  ;;  %v1750_v5 = vld [vmem:[%s1933_s1 + $0x110] sm:$0xff] }
  0x40   : > { %595 = vmatpush.bf16.msra.mxu1 %v1615_v37  ;;  %v1088_v3 = vor.u32 %v1358_v61, %v1085_v62  ;;  %v1080_v4 = vor.u32 %v1357_v63, %v1077_v0  ;;  %v1759_v6 = vld [vmem:[%s1933_s1 + $0x108] sm:$0xff]  ;;  %v1768_v7 = vld [vmem:[%s1933_s1 + $0x100] sm:$0xff]  ;;  %v1091_v8 = vld [vmem:[%s1729_s12 + $0x10] sm:$0xf] }
  0x41   : > { %609 = vmatpush.bf16.msra.mxu2 %v1622_v38  ;;  %v1361_v9 = vld [vmem:[%s1729_s12 + $0x20] sm:$0xf0]  ;;  %v1246_v11 = vld [vmem:[%s1729_s12 + $0x28] sm:$0xf]  ;;  %v1364_v12 = vld [vmem:[%s1729_s12 + $0x38] sm:$0xf0] }
  0x42   : > { %623 = vmatpush.bf16.msra.mxu3 %v1627_v39  ;;  %v1092_v10 = vor.u32 %v1361_v9, %v1091_v8  ;;  %v1362_v13 = vld [vmem:[%s1729_s12 + $0x2c] sm:$0xf]  ;;  %v1248_v14 = vld [vmem:[%s1729_s12 + $0x3c] sm:$0xf0]  ;;  %v1254_v15 = vld [vmem:[%s1729_s12 + $0x30] sm:$0xf]  ;;  %v1247_v17 = vor.u32 %v1364_v12, %v1246_v11 }
  0x43   : > { %582 = vmatpush.bf16.msra.mxu0 %v1634_v40  ;;  %v1365_v16 = vld [vmem:[%s1729_s12 + $0x40] sm:$0xf0]  ;;  %v1251_v18 = vor.u32 %v1362_v13, %v1248_v14  ;;  %v1363_v20 = vld [vmem:[%s1729_s12 + $0x34] sm:$0xf]  ;;  %v1256_v21 = vld [vmem:[%s1729_s12 + $0x44] sm:$0xf0] }
  0x44   : > { %596 = vmatpush.bf16.msra.mxu1 %v1639_v41  ;;  %v1255_v19 = vor.u32 %v1365_v16, %v1254_v15  ;;  %v1259_v22 = vor.u32 %v1363_v20, %v1256_v21  ;;  %v1262_v23 = vld [vmem:[%s1729_s12 + $0x38] sm:$0xf]  ;;  %v1366_v57 = vld [vmem:[%s1729_s12 + $0x48] sm:$0xf0]  ;;  %v1273_v59 = vld [vmem:[%s1729_s12 + $0x50] sm:$0xf] }
  0x45   : > { %610 = vmatpush.bf16.msra.mxu2 %v1646_v42  ;;  %v1263_v58 = vor.u32 %v1366_v57, %v1262_v23  ;;  %v1369_v60 = vld [vmem:[%s1729_s12 + $0x60] sm:$0xf0]  ;;  %v1367_v61 = vld [vmem:[%s1729_s12 + $0x54] sm:$0xf]  ;;  %v1275_v62 = vld [vmem:[%s1729_s12 + $0x64] sm:$0xf0] }
  0x46   : > { %624 = vmatpush.bf16.msra.mxu3 %v1651_v43  ;;  %v1274_v63 = vor.u32 %v1369_v60, %v1273_v59  ;;  %v1278_v0 = vor.u32 %v1367_v61, %v1275_v62  ;;  %v1371_v9 = vld [vmem:[%s1729_s12 + $0x70] sm:$0xf0]  ;;  %v1404_v16 = vld [vmem:[%s1934_s2] ss:$0 sm:$0xff] }
  0x47   : > { %583 = vmatpush.bf16.msra.mxu0 %v1659_v44 }
  0x48   : > { %597 = vmatpush.bf16.msra.mxu1 %v1664_v45 }
  0x49   : > { %611 = vmatpush.bf16.msra.mxu2 %v1671_v46 }
  0x4a   : > { %625 = vmatpush.bf16.msra.mxu3 %v1676_v47 }
  0x4b   : > { %584 = vmatpush.bf16.msra.mxu0 %v1683_v48 }
  0x4c   : > { %598 = vmatpush.bf16.msra.mxu1 %v1688_v49 }
  0x4d   : > { %612 = vmatpush.bf16.msra.mxu2 %v1695_v50 }
  0x4e   : > { %626 = vmatpush.bf16.msra.mxu3 %v1700_v51 }
  0x4f   : > { %585 = vmatpush.bf16.msra.mxu0 %v1705_v52 }
  0x50   : > { %599 = vmatpush.bf16.msra.mxu1 %v1710_v53 }
  0x51   : > { %613 = vmatpush.bf16.msra.mxu2 %v1715_v54 }
  0x52   : > { %627 = vmatpush.bf16.msra.mxu3 %v1720_v55  ;;  %586 = vmatmul.bf16.vlgmr.msra.gmra.mxu0 %v1076_v1  ;;  %v1281_v1 = vld [vmem:[%s1729_s12 + $0x58] sm:$0xf] }
  0x53   : > { %638 = vmatpush.bf16.msrb.mxu0 %v1727_v56  ;;  %600 = vmatmul.bf16.vlgmr.msra.gmra.mxu1 %v1080_v4 }
  0x54   : > { %685 = vmatpush.bf16.msrb.mxu1 %v1540_v24  ;;  %614 = vmatmul.bf16.vlgmr.msra.gmra.mxu2 %v1084_v2  ;;  %v1370_v2 = vld [vmem:[%s1729_s12 + $0x68] sm:$0xf0] }
  0x55   : > { %699 = vmatpush.bf16.msrb.mxu2 %v1545_v25  ;;  %628 = vmatmul.bf16.vlgmr.msra.gmra.mxu3 %v1088_v3  ;;  %v1283_v3 = vld [vmem:[%s1729_s12 + $0x6c] sm:$0xf0]  ;;  %v1282_v4 = vor.u32 %v1370_v2, %v1281_v1 }
  0x56   : > { %713 = vmatpush.bf16.msrb.mxu3 %v1550_v26 }
  0x57   : > { %639 = vmatpush.bf16.msrb.mxu0 %v1750_v5 }
  0x58   : > { %686 = vmatpush.bf16.msrb.mxu1 %v1562_v28 }
  0x59   : > { %700 = vmatpush.bf16.msrb.mxu2 %v1567_v29 }
  0x5a   : > { %714 = vmatpush.bf16.msrb.mxu3 %v1574_v30 }
  0x5b   : > { %640 = vmatpush.bf16.msrb.mxu0 %v1759_v6 }
  0x5c   : > { %687 = vmatpush.bf16.msrb.mxu1 %v1586_v32 }
  0x5d   : > { %701 = vmatpush.bf16.msrb.mxu2 %v1591_v33 }
  0x5e   : > { %715 = vmatpush.bf16.msrb.mxu3 %v1598_v34 }
  0x5f   : > { %641 = vmatpush.bf16.msrb.mxu0 %v1768_v7 }
  0x60   : > { %688 = vmatpush.bf16.msrb.mxu1 %v1610_v36 }
  0x61   : > { %702 = vmatpush.bf16.msrb.mxu2 %v1615_v37 }
  0x62   : > { %716 = vmatpush.bf16.msrb.mxu3 %v1622_v38  ;;  %1237 = vmatmul.msk.bf16.vlgmr.msrb.gmra.mxu0 %vm574_vm0, %v1092_v10 }
  0x63   : > { %727 = vmatpush.bf16.msra.mxu0 %v1555_v27 }
  0x64   : > { %689 = vmatpush.bf16.msrb.mxu1 %v1634_v40 }
  0x65   : > { %703 = vmatpush.bf16.msrb.mxu2 %v1639_v41 }
  0x66   : > { %717 = vmatpush.bf16.msrb.mxu3 %v1646_v42 }
  0x67   : > { %728 = vmatpush.bf16.msra.mxu0 %v1579_v31 }
  0x68   : > { %690 = vmatpush.bf16.msrb.mxu1 %v1659_v44 }
  0x69   : > { %704 = vmatpush.bf16.msrb.mxu2 %v1664_v45 }
  0x6a   : > { %718 = vmatpush.bf16.msrb.mxu3 %v1671_v46 }
  0x6b   : > { %729 = vmatpush.bf16.msra.mxu0 %v1603_v35 }
  0x6c   : > { %691 = vmatpush.bf16.msrb.mxu1 %v1683_v48 }
  0x6d   : > { %705 = vmatpush.bf16.msrb.mxu2 %v1688_v49 }
  0x6e   : > { %719 = vmatpush.bf16.msrb.mxu3 %v1695_v50 }
  0x6f   : > { %730 = vmatpush.bf16.msra.mxu0 %v1627_v39 }
  0x70   : > { %692 = vmatpush.bf16.msrb.mxu1 %v1705_v52 }
  0x71   : > { %706 = vmatpush.bf16.msrb.mxu2 %v1710_v53 }
  0x72   : > { %720 = vmatpush.bf16.msrb.mxu3 %v1715_v54 }
  0x73   : > { %731 = vmatpush.bf16.msra.mxu0 %v1651_v43  ;;  %693 = vmatmul.bf16.vlgmr.msrb.gmra.mxu1 %v1247_v17 }
  0x74   : > { %745 = vmatpush.bf16.msra.mxu1 %v1727_v56  ;;  %707 = vmatmul.bf16.vlgmr.msrb.gmra.mxu2 %v1251_v18 }
  0x75   : > { %794 = vmatpush.bf16.msra.mxu2 %v1540_v24  ;;  %721 = vmatmul.bf16.vlgmr.msrb.gmra.mxu3 %v1255_v19 }
  0x76   : > { %808 = vmatpush.bf16.msra.mxu3 %v1545_v25 }
  0x77   : > { %732 = vmatpush.bf16.msra.mxu0 %v1676_v47 }
  0x78   : > { %746 = vmatpush.bf16.msra.mxu1 %v1750_v5 }
  0x79   : > { %795 = vmatpush.bf16.msra.mxu2 %v1562_v28 }
  0x7a   : > { %809 = vmatpush.bf16.msra.mxu3 %v1567_v29 }
  0x7b   : > { %733 = vmatpush.bf16.msra.mxu0 %v1700_v51 }
  0x7c   : > { %747 = vmatpush.bf16.msra.mxu1 %v1759_v6 }
  0x7d   : > { %796 = vmatpush.bf16.msra.mxu2 %v1586_v32 }
  0x7e   : > { %810 = vmatpush.bf16.msra.mxu3 %v1591_v33 }
  0x7f   : > { %734 = vmatpush.bf16.msra.mxu0 %v1720_v55 }
  0x80   : > { %748 = vmatpush.bf16.msra.mxu1 %v1768_v7 }
  0x81   : > { %797 = vmatpush.bf16.msra.mxu2 %v1610_v36 }
  0x82   : > { %811 = vmatpush.bf16.msra.mxu3 %v1615_v37  ;;  %735 = vmatmul.bf16.vlgmr.msra.gmra.mxu0 %v1259_v22 }
  0x83   : > { %822 = vmatpush.bf16.msrb.mxu0 %v1550_v26  ;;  %1264 = vmatmul.msk.bf16.vlgmr.msra.gmra.mxu1 %vm574_vm0, %v1263_v58 }
  0x84   : > { %836 = vmatpush.bf16.msrb.mxu1 %v1555_v27 }
  0x85   : > { %798 = vmatpush.bf16.msra.mxu2 %v1634_v40 }
  0x86   : > { %812 = vmatpush.bf16.msra.mxu3 %v1639_v41 }
  0x87   : > { %823 = vmatpush.bf16.msrb.mxu0 %v1574_v30 }
  0x88   : > { %837 = vmatpush.bf16.msrb.mxu1 %v1579_v31 }
  0x89   : > { %799 = vmatpush.bf16.msra.mxu2 %v1659_v44 }
  0x8a   : > { %813 = vmatpush.bf16.msra.mxu3 %v1664_v45 }
  0x8b   : > { %824 = vmatpush.bf16.msrb.mxu0 %v1598_v34 }
  0x8c   : > { %838 = vmatpush.bf16.msrb.mxu1 %v1603_v35 }
  0x8d   : > { %800 = vmatpush.bf16.msra.mxu2 %v1683_v48 }
  0x8e   : > { %814 = vmatpush.bf16.msra.mxu3 %v1688_v49 }
  0x8f   : > { %825 = vmatpush.bf16.msrb.mxu0 %v1622_v38 }
  0x90   : > { %839 = vmatpush.bf16.msrb.mxu1 %v1627_v39 }
  0x91   : > { %801 = vmatpush.bf16.msra.mxu2 %v1705_v52 }
  0x92   : > { %815 = vmatpush.bf16.msra.mxu3 %v1710_v53 }
  0x93   : > { %826 = vmatpush.bf16.msrb.mxu0 %v1646_v42 }
  0x94   : > { %840 = vmatpush.bf16.msrb.mxu1 %v1651_v43  ;;  %802 = vmatmul.bf16.vlgmr.msra.gmra.mxu2 %v1274_v63 }
  0x95   : > { %854 = vmatpush.bf16.msrb.mxu2 %v1727_v56  ;;  %816 = vmatmul.bf16.vlgmr.msra.gmra.mxu3 %v1278_v0 }
  0x96   : > { %903 = vmatpush.bf16.msrb.mxu3 %v1540_v24  ;;  %v1368_v24 = vld [vmem:[%s1729_s12 + $0x5c] sm:$0xf] }
  0x97   : > { %827 = vmatpush.bf16.msrb.mxu0 %v1671_v46  ;;  %v1286_v8 = vor.u32 %v1368_v24, %v1283_v3 }
  0x98   : > { %841 = vmatpush.bf16.msrb.mxu1 %v1676_v47 }
  0x99   : > { %855 = vmatpush.bf16.msrb.mxu2 %v1750_v5 }
  0x9a   : > { %904 = vmatpush.bf16.msrb.mxu3 %v1562_v28  ;;  %v1289_v28 = vld [vmem:[%s1729_s12 + $0x60] sm:$0xf] }
  0x9b   : > { %828 = vmatpush.bf16.msrb.mxu0 %v1695_v50 }
  0x9c   : > { %842 = vmatpush.bf16.msrb.mxu1 %v1700_v51 }
  0x9d   : > { %856 = vmatpush.bf16.msrb.mxu2 %v1759_v6 }
  0x9e   : > { %905 = vmatpush.bf16.msrb.mxu3 %v1586_v32  ;;  %v1290_v32 = vor.u32 %v1371_v9, %v1289_v28 }
  0x9f   : > { %829 = vmatpush.bf16.msrb.mxu0 %v1715_v54 }
  0xa0   : > { %843 = vmatpush.bf16.msrb.mxu1 %v1720_v55 }
  0xa1   : > { %857 = vmatpush.bf16.msrb.mxu2 %v1768_v7 }
  0xa2   : > { %906 = vmatpush.bf16.msrb.mxu3 %v1610_v36  ;;  %830 = vmatmul.bf16.vlgmr.msrb.gmra.mxu0 %v1282_v4 }
  0xa3   : > { %917 = vmatpush.bf16.msra.mxu0 %v1545_v25  ;;  %844 = vmatmul.bf16.vlgmr.msrb.gmra.mxu1 %v1286_v8  ;;  %v1300_v25 = vld [vmem:[%s1729_s12 + $0x78] sm:$0xf] }
  0xa4   : > { %931 = vmatpush.bf16.msra.mxu1 %v1550_v26  ;;  %1291 = vmatmul.msk.bf16.vlgmr.msrb.gmra.mxu2 %vm574_vm0, %v1290_v32  ;;  %v1374_v26 = vld [vmem:[%s1729_s12 + $0x88] sm:$0xf0] }
  0xa5   : > { %945 = vmatpush.bf16.msra.mxu2 %v1555_v27  ;;  %v1301_v27 = vor.u32 %v1374_v26, %v1300_v25 }
  0xa6   : > { %907 = vmatpush.bf16.msrb.mxu3 %v1634_v40 }
  0xa7   : > { %918 = vmatpush.bf16.msra.mxu0 %v1567_v29  ;;  %v1372_v29 = vld [vmem:[%s1729_s12 + $0x7c] sm:$0xf] }
  0xa8   : > { %932 = vmatpush.bf16.msra.mxu1 %v1574_v30  ;;  %v1302_v30 = vld [vmem:[%s1729_s12 + $0x8c] sm:$0xf0] }
  0xa9   : > { %946 = vmatpush.bf16.msra.mxu2 %v1579_v31  ;;  %v1308_v31 = vld [vmem:[%s1729_s12 + $0x80] sm:$0xf]  ;;  %v1305_v36 = vor.u32 %v1372_v29, %v1302_v30 }
  0xaa   : > { %908 = vmatpush.bf16.msrb.mxu3 %v1659_v44 }
  0xab   : > { %919 = vmatpush.bf16.msra.mxu0 %v1591_v33  ;;  %v1375_v33 = vld [vmem:[%s1729_s12 + $0x90] sm:$0xf0] }
  0xac   : > { %933 = vmatpush.bf16.msra.mxu1 %v1598_v34  ;;  %v1373_v34 = vld [vmem:[%s1729_s12 + $0x84] sm:$0xf] }
  0xad   : > { %947 = vmatpush.bf16.msra.mxu2 %v1603_v35  ;;  %v1310_v35 = vld [vmem:[%s1729_s12 + $0x94] sm:$0xf0] }
  0xae   : > { %909 = vmatpush.bf16.msrb.mxu3 %v1683_v48  ;;  %v1313_v40 = vor.u32 %v1373_v34, %v1310_v35 }
  0xaf   : > { %920 = vmatpush.bf16.msra.mxu0 %v1615_v37  ;;  %v1309_v37 = vor.u32 %v1375_v33, %v1308_v31 }
  0xb0   : > { %934 = vmatpush.bf16.msra.mxu1 %v1622_v38  ;;  %v1316_v38 = vld [vmem:[%s1729_s12 + $0x88] sm:$0xf] }
  0xb1   : > { %948 = vmatpush.bf16.msra.mxu2 %v1627_v39  ;;  %v1376_v39 = vld [vmem:[%s1729_s12 + $0x98] sm:$0xf0] }
  0xb2   : > { %910 = vmatpush.bf16.msrb.mxu3 %v1705_v52 }
  0xb3   : > { %921 = vmatpush.bf16.msra.mxu0 %v1639_v41  ;;  %v1317_v41 = vor.u32 %v1376_v39, %v1316_v38 }
  0xb4   : > { %935 = vmatpush.bf16.msra.mxu1 %v1646_v42 }
  0xb5   : > { %949 = vmatpush.bf16.msra.mxu2 %v1651_v43  ;;  %911 = vmatmul.bf16.vlgmr.msrb.gmra.mxu3 %v1301_v27 }
  0xb6   : > { %963 = vmatpush.bf16.msra.mxu3 %v1727_v56 }
  0xb7   : > { %922 = vmatpush.bf16.msra.mxu0 %v1664_v45 }
  0xb8   : > { %936 = vmatpush.bf16.msra.mxu1 %v1671_v46 }
  0xb9   : > { %950 = vmatpush.bf16.msra.mxu2 %v1676_v47 }
  0xba   : > { %964 = vmatpush.bf16.msra.mxu3 %v1750_v5 }
  0xbb   : > { %923 = vmatpush.bf16.msra.mxu0 %v1688_v49 }
  0xbc   : > { %937 = vmatpush.bf16.msra.mxu1 %v1695_v50 }
  0xbd   : > { %951 = vmatpush.bf16.msra.mxu2 %v1700_v51 }
  0xbe   : > { %965 = vmatpush.bf16.msra.mxu3 %v1759_v6 }
  0xbf   : > { %924 = vmatpush.bf16.msra.mxu0 %v1710_v53 }
  0xc0   : > { %938 = vmatpush.bf16.msra.mxu1 %v1715_v54 }
  0xc1   : > { %952 = vmatpush.bf16.msra.mxu2 %v1720_v55 }
  0xc2   : > { %966 = vmatpush.bf16.msra.mxu3 %v1768_v7  ;;  %925 = vmatmul.bf16.vlgmr.msra.gmra.mxu0 %v1305_v36 }
  0xc3   : > { %939 = vmatmul.bf16.vlgmr.msra.gmra.mxu1 %v1309_v37 }
  0xc4   : > { %953 = vmatmul.bf16.vlgmr.msra.gmra.mxu2 %v1313_v40 }
  0xc5   : > { %1318 = vmatmul.msk.bf16.vlgmr.msra.gmra.mxu3 %vm574_vm0, %v1317_v41 }
  0xcf   : > { %v587_v42 = vpop.f32.mrf.mxu0 }
  0xd0   : > { %v601_v43 = vpop.f32.mrf.mxu1  ;;  %v588_v20 = vadd.f32 %v1404_v16, %v587_v42 }
  0xd2   : > { %v602_v57 = vadd.f32 %v601_v43, %v588_v20 }
  0xd7   : > { %v615_v44 = vpop.f32.mrf.mxu2  ;;  %v589_v45 = vpop.f32.mrf.mxu0 }
  0xd8   : > { %v629_v46 = vpop.f32.mrf.mxu3  ;;  %v603_v47 = vpop.f32.mrf.mxu1  ;;  %v616_v63 = vadd.f32 %v615_v44, %v602_v57  ;;  %v590_v2 = vadd.f32 %v1404_v16, %v589_v45 }
  0xda   : > { %v630_v8 = vadd.f32 %v629_v46, %v616_v63  ;;  %v604_v26 = vadd.f32 %v603_v47, %v590_v2 }
  0xdf   : > { %v617_v48 = vpop.f32.mrf.mxu2  ;;  %v643_v49 = vpop.f32.mrf.mxu0 }
  0xe0   : > { %v1908_v51 = vpop.f32.mrf.mxu3  ;;  %v644_v34 = vadd.f32 %v643_v49, %v630_v8  ;;  %v618_v37 = vadd.f32 %v617_v48, %v604_v26 }
  0xe2   : > { %v648_v42 = vmax.f32 %v644_v34, 0.0 }
  0xe7   : > { %v1910_v53 = vpop.f32.mrf.mxu0 }
  0xf0   : > { %v694_v50 = vpop.f32.mrf.mxu1 }
  0xf1   : > { %v695_v17 = vadd.f32 %v1404_v16, %v694_v50  ;;  %v632_v50 = vadd.f32 %v1908_v51, %v618_v37 }
  0xf3   : > { %v646_v48 = vadd.f32 %v1910_v53, %v632_v50 }
  0xf7   : > { %v708_v52 = vpop.f32.mrf.mxu2 }
  0xf8   : > { %v696_v54 = vpop.f32.mrf.mxu1  ;;  %v722_v55 = vpop.f32.mrf.mxu3  ;;  %v709_v22 = vadd.f32 %v708_v52, %v695_v17 }
  0xf9   : > { %v697_v62 = vadd.f32 %v1404_v16, %v696_v54 }
  0xfa   : > { %v723_v60 = vadd.f32 %v722_v55, %v709_v22 }
  0xff   : > { %v710_v56 = vpop.f32.mrf.mxu2  ;;  %v736_v5 = vpop.f32.mrf.mxu0 }
 0x100   : > { %v750_v6 = vpop.f32.mrf.mxu1  ;;  %v724_v7 = vpop.f32.mrf.mxu3  ;;  %v737_v24 = vadd.f32 %v736_v5, %v723_v60  ;;  %v711_v3 = vadd.f32 %v710_v56, %v697_v62 }
 0x102   : > { %v751_v27 = vadd.f32 %v750_v6, %v737_v24  ;;  %v725_v30 = vadd.f32 %v724_v7, %v711_v3 }
 0x104   : > { %v755_v38 = vmax.f32 %v751_v27, 0.0 }
 0x106   : > { %v757_v52 = vadd.f32 %v755_v38, %v648_v42 }
 0x107   : > { %v738_v11 = vpop.f32.mrf.mxu0 }
 0x108   : > { %v752_v13 = vpop.f32.mrf.mxu1  ;;  %v739_v39 = vadd.f32 %v738_v11, %v725_v30 }
 0x10a   : > { %v753_v49 = vadd.f32 %v752_v13, %v739_v39 }
 0x117   : > { %v803_v10 = vpop.f32.mrf.mxu2 }
 0x118   : > { %v817_v12 = vpop.f32.mrf.mxu3  ;;  %v804_v21 = vadd.f32 %v1404_v16, %v803_v10 }
 0x11a   : > { %v818_v58 = vadd.f32 %v817_v12, %v804_v21  ;;  %v756_v12 = vmax.f32 %v753_v49, 0.0 }
 0x11f   : > { %v805_v14 = vpop.f32.mrf.mxu2  ;;  %v831_v15 = vpop.f32.mrf.mxu0 }
 0x120   : > { %v845_v18 = vpop.f32.mrf.mxu1  ;;  %v819_v19 = vpop.f32.mrf.mxu3  ;;  %v832_v1 = vadd.f32 %v831_v15, %v818_v58  ;;  %v806_v4 = vadd.f32 %v1404_v16, %v805_v14 }
 0x122   : > { %v846_v9 = vadd.f32 %v845_v18, %v832_v1  ;;  %v820_v31 = vadd.f32 %v819_v19, %v806_v4 }
 0x127   : > { %v859_v23 = vpop.f32.mrf.mxu2  ;;  %v833_v59 = vpop.f32.mrf.mxu0 }
 0x128   : > { %v847_v0 = vpop.f32.mrf.mxu1  ;;  %v860_v36 = vadd.f32 %v859_v23, %v846_v9  ;;  %v834_v40 = vadd.f32 %v833_v59, %v820_v31 }
 0x12a   : > { %v864_v44 = vmax.f32 %v860_v36, 0.0  ;;  %v848_v55 = vadd.f32 %v847_v0, %v834_v40 }
 0x12c   : > { %v866_v6 = vadd.f32 %v864_v44, %v757_v52 }
 0x12f   : > { %v861_v28 = vpop.f32.mrf.mxu2 }
 0x130   : > { %v862_v7 = vadd.f32 %v861_v28, %v848_v55 }
 0x132   : > { %v865_v13 = vmax.f32 %v862_v7, 0.0 }
 0x138   : > { %v912_v61 = vpop.f32.mrf.mxu3 }
 0x139   : > { %v913_v32 = vadd.f32 %v1404_v16, %v912_v61 }
 0x13f   : > { %v926_v25 = vpop.f32.mrf.mxu0 }
 0x140   : > { %v914_v29 = vpop.f32.mrf.mxu3  ;;  %v927_v33 = vadd.f32 %v926_v25, %v913_v32  ;;  %v940_v35 = vpop.f32.mrf.mxu1 }
 0x141   : > { %v915_v45 = vadd.f32 %v1404_v16, %v914_v29  ;;  %v649_v16 = vmax.f32 %v646_v48, 0.0 }
 0x142   : > { %v941_v41 = vadd.f32 %v940_v35, %v927_v33 }
 0x143   : > { %v758_v20 = vadd.f32 %v756_v12, %v649_v16 }
 0x145   : > { %v867_v21 = vadd.f32 %v865_v13, %v758_v20 }
 0x147   : > { %v954_v43 = vpop.f32.mrf.mxu2  ;;  %v928_v47 = vpop.f32.mrf.mxu0 }
 0x148   : > { %v955_v46 = vadd.f32 %v954_v43, %v941_v41  ;;  %v968_v54 = vpop.f32.mrf.mxu3  ;;  %v929_v56 = vadd.f32 %v928_v47, %v915_v45  ;;  %v942_v11 = vpop.f32.mrf.mxu1 }
 0x14a   : > { %v969_v5 = vadd.f32 %v968_v54, %v955_v46  ;;  %v943_v14 = vadd.f32 %v942_v11, %v929_v56 }
 0x14c   : > { %v973_v10 = vmax.f32 %v969_v5, 0.0 }
 0x14e   : > { %v975_v15 = vadd.f32 %v973_v10, %v866_v6 }
 0x14f   : > { %v956_v51 = vpop.f32.mrf.mxu2 }
 0x150   : > { %v977_v17 = vmul.f32 0.25, %v975_v15  ;;  %v957_v18 = vadd.f32 %v956_v51, %v943_v14  ;;  %v970_v19 = vpop.f32.mrf.mxu3 }
 0x152   : > { %979 = vst [vmem:[%s248_s20] sm:$0xff] %v977_v17  ;;  %v971_v53 = vadd.f32 %v970_v19, %v957_v18 }
 0x154   : > { %v974_v22 = vmax.f32 %v971_v53, 0.0 }
 0x156   : > { %v976_v23 = vadd.f32 %v974_v22, %v867_v21 }
 0x158   : > { %v978_v57 = vmul.f32 0.25, %v976_v23 }
 0x15a   : > { %980 = vst [vmem:[%s248_s20 + $0x8] sm:$0xff] %v978_v57 }
 0x15b PF: > { %p10_p9 = scmp.ge.s32.totalorder %s1466_s16, 4   ;;  %s1936_s12 = smov %s1423_s13 }
 0x15c   : > { %s1937_s13 = smov %s1475_s19  ;;  %s1938_s14 = smov %s1466_s16 }
 0x15d   :  { %12 = sbr.rel (!%p10_p9) target bundleno = 2 (0x2), region = 102 }

// kernel: tiny_imagenet_cnn_forward.9
= control target key start
LH: loop header
LB: loop body
LE: loop exit
PB: predicated region body
PF: predicated region fallthrough
CT: control target
= control target key end

     0   :  { %s11085_s1 = inlined_call_operand.vmem [shape: bf16[2048,512], index: 1, kind: input, shape index: {}]   ;;  %s11086_s0 = inlined_call_operand.vmem [shape: bf16[8,2048], index: 0, kind: input, shape index: {}]   ;;  %s11087_s2 = inlined_call_operand.vmem [shape: f32[1,512], index: 2, kind: input, shape index: {}]   ;;  %s11088_s3 = inlined_call_operand.vmem [shape: bf16[512,256], index: 3, kind: input, shape index: {}]   ;;  %s11089_s4 = inlined_call_operand.vmem [shape: f32[1,256], index: 4, kind: input, shape index: {}]   ;;  %s11090_s5 = inlined_call_operand.vmem [shape: f32[8,256], index: 5, kind: output, shape index: {}]  }
   0x1   :  { %v4620_v0 = vld [vmem:[%s11085_s1 + $0xe0] sm:$0xf]  ;;  %v6840_v1 = vld [vmem:[%s11085_s1 + $0xec] sm:$0xf0] }
   0x2   :  { %v4748_v2 = vld [vmem:[%s11085_s1 + $0x1e0] sm:$0xf]  ;;  %v4621_v3 = vor.u32 %v6840_v1, %v4620_v0  ;;  %v6872_v4 = vld [vmem:[%s11085_s1 + $0x1ec] sm:$0xf0] }
   0x3   :  { %v4876_v5 = vld [vmem:[%s11085_s1 + $0x2e0] sm:$0xf]  ;;  %v6904_v6 = vld [vmem:[%s11085_s1 + $0x2ec] sm:$0xf0]  ;;  %v4749_v7 = vor.u32 %v6872_v4, %v4748_v2 }
   0x4   :  { %v4877_v8 = vor.u32 %v6904_v6, %v4876_v5  ;;  %v5004_v9 = vld [vmem:[%s11085_s1 + $0x3e0] sm:$0xf]  ;;  %v6936_v10 = vld [vmem:[%s11085_s1 + $0x3ec] sm:$0xf0]  ;;  %3166 = vmatpush.bf16.msra.mxu0 %v4621_v3 }
   0x5   :  { %v4604_v11 = vld [vmem:[%s11085_s1 + $0xc0] sm:$0xf]  ;;  %v5005_v12 = vor.u32 %v6936_v10, %v5004_v9  ;;  %v6836_v13 = vld [vmem:[%s11085_s1 + $0xcc] sm:$0xf0]  ;;  %3179 = vmatpush.bf16.msra.mxu1 %v4749_v7 }
   0x6   :  { %v4732_v14 = vld [vmem:[%s11085_s1 + $0x1c0] sm:$0xf]  ;;  %v6868_v15 = vld [vmem:[%s11085_s1 + $0x1cc] sm:$0xf0]  ;;  %3192 = vmatpush.bf16.msra.mxu2 %v4877_v8  ;;  %v4605_v16 = vor.u32 %v6836_v13, %v4604_v11 }
   0x7   :  { %v4733_v17 = vor.u32 %v6868_v15, %v4732_v14  ;;  %v4860_v18 = vld [vmem:[%s11085_s1 + $0x2c0] sm:$0xf]  ;;  %v6900_v19 = vld [vmem:[%s11085_s1 + $0x2cc] sm:$0xf0]  ;;  %3205 = vmatpush.bf16.msra.mxu3 %v5005_v12 }
   0x8   :  { %v4988_v20 = vld [vmem:[%s11085_s1 + $0x3c0] sm:$0xf]  ;;  %v4861_v21 = vor.u32 %v6900_v19, %v4860_v18  ;;  %v6932_v22 = vld [vmem:[%s11085_s1 + $0x3cc] sm:$0xf0]  ;;  %3167 = vmatpush.bf16.msra.mxu0 %v4605_v16 }
   0x9   :  { %v4588_v23 = vld [vmem:[%s11085_s1 + $0xa0] sm:$0xf]  ;;  %v6832_v24 = vld [vmem:[%s11085_s1 + $0xac] sm:$0xf0]  ;;  %v4989_v25 = vor.u32 %v6932_v22, %v4988_v20  ;;  %3180 = vmatpush.bf16.msra.mxu1 %v4733_v17 }
   0xa   :  { %v4716_v26 = vld [vmem:[%s11085_s1 + $0x1a0] sm:$0xf]  ;;  %v6864_v27 = vld [vmem:[%s11085_s1 + $0x1ac] sm:$0xf0]  ;;  %v4589_v29 = vor.u32 %v6832_v24, %v4588_v23  ;;  %3193 = vmatpush.bf16.msra.mxu2 %v4861_v21 }
   0xb   :  { %v4844_v28 = vld [vmem:[%s11085_s1 + $0x2a0] sm:$0xf]  ;;  %v6896_v30 = vld [vmem:[%s11085_s1 + $0x2ac] sm:$0xf0]  ;;  %v4717_v33 = vor.u32 %v6864_v27, %v4716_v26  ;;  %3206 = vmatpush.bf16.msra.mxu3 %v4989_v25 }
   0xc   :  { %v4972_v31 = vld [vmem:[%s11085_s1 + $0x3a0] sm:$0xf]  ;;  %v6928_v32 = vld [vmem:[%s11085_s1 + $0x3ac] sm:$0xf0]  ;;  %v4845_v34 = vor.u32 %v6896_v30, %v4844_v28  ;;  %3168 = vmatpush.bf16.msra.mxu0 %v4589_v29 }
   0xd   :  { %v4572_v35 = vld [vmem:[%s11085_s1 + $0x80] sm:$0xf]  ;;  %v6828_v36 = vld [vmem:[%s11085_s1 + $0x8c] sm:$0xf0]  ;;  %v4973_v38 = vor.u32 %v6928_v32, %v4972_v31  ;;  %3181 = vmatpush.bf16.msra.mxu1 %v4717_v33 }
   0xe   :  { %v4700_v37 = vld [vmem:[%s11085_s1 + $0x180] sm:$0xf]  ;;  %v6860_v39 = vld [vmem:[%s11085_s1 + $0x18c] sm:$0xf0]  ;;  %v4573_v44 = vor.u32 %v6828_v36, %v4572_v35  ;;  %3194 = vmatpush.bf16.msra.mxu2 %v4845_v34 }
   0xf   :  { %v4828_v40 = vld [vmem:[%s11085_s1 + $0x280] sm:$0xf]  ;;  %v6892_v41 = vld [vmem:[%s11085_s1 + $0x28c] sm:$0xf0]  ;;  %v4701_v45 = vor.u32 %v6860_v39, %v4700_v37  ;;  %3207 = vmatpush.bf16.msra.mxu3 %v4973_v38 }
  0x10   :  { %v4956_v42 = vld [vmem:[%s11085_s1 + $0x380] sm:$0xf]  ;;  %v6924_v43 = vld [vmem:[%s11085_s1 + $0x38c] sm:$0xf0]  ;;  %v4829_v46 = vor.u32 %v6892_v41, %v4828_v40  ;;  %3169 = vmatpush.bf16.msra.mxu0 %v4573_v44 }
  0x11   :  { %v4556_v47 = vld [vmem:[%s11085_s1 + $0x60] sm:$0xf]  ;;  %v6824_v48 = vld [vmem:[%s11085_s1 + $0x6c] sm:$0xf0]  ;;  %v4957_v50 = vor.u32 %v6924_v43, %v4956_v42  ;;  %3182 = vmatpush.bf16.msra.mxu1 %v4701_v45 }
  0x12   :  { %v4684_v49 = vld [vmem:[%s11085_s1 + $0x160] sm:$0xf]  ;;  %v6856_v51 = vld [vmem:[%s11085_s1 + $0x16c] sm:$0xf0]  ;;  %v4557_v56 = vor.u32 %v6824_v48, %v4556_v47  ;;  %3195 = vmatpush.bf16.msra.mxu2 %v4829_v46 }
  0x13   :  { %v4812_v52 = vld [vmem:[%s11085_s1 + $0x260] sm:$0xf]  ;;  %v6888_v53 = vld [vmem:[%s11085_s1 + $0x26c] sm:$0xf0]  ;;  %v4685_v57 = vor.u32 %v6856_v51, %v4684_v49  ;;  %3208 = vmatpush.bf16.msra.mxu3 %v4957_v50 }
  0x14   :  { %v4940_v54 = vld [vmem:[%s11085_s1 + $0x360] sm:$0xf]  ;;  %v6920_v55 = vld [vmem:[%s11085_s1 + $0x36c] sm:$0xf0]  ;;  %v4813_v58 = vor.u32 %v6888_v53, %v4812_v52  ;;  %3170 = vmatpush.bf16.msra.mxu0 %v4557_v56 }
  0x15   :  { %v4540_v59 = vld [vmem:[%s11085_s1 + $0x40] sm:$0xf]  ;;  %v6820_v60 = vld [vmem:[%s11085_s1 + $0x4c] sm:$0xf0]  ;;  %v4941_v62 = vor.u32 %v6920_v55, %v4940_v54  ;;  %3183 = vmatpush.bf16.msra.mxu1 %v4685_v57 }
  0x16   :  { %v4668_v61 = vld [vmem:[%s11085_s1 + $0x140] sm:$0xf]  ;;  %v6852_v63 = vld [vmem:[%s11085_s1 + $0x14c] sm:$0xf0]  ;;  %v4541_v4 = vor.u32 %v6820_v60, %v4540_v59  ;;  %3196 = vmatpush.bf16.msra.mxu2 %v4813_v58 }
  0x17   :  { %v4796_v0 = vld [vmem:[%s11085_s1 + $0x240] sm:$0xf]  ;;  %v6884_v1 = vld [vmem:[%s11085_s1 + $0x24c] sm:$0xf0]  ;;  %v4669_v5 = vor.u32 %v6852_v63, %v4668_v61  ;;  %3209 = vmatpush.bf16.msra.mxu3 %v4941_v62 }
  0x18   :  { %v4924_v2 = vld [vmem:[%s11085_s1 + $0x340] sm:$0xf]  ;;  %v6916_v3 = vld [vmem:[%s11085_s1 + $0x34c] sm:$0xf0]  ;;  %v4797_v6 = vor.u32 %v6884_v1, %v4796_v0  ;;  %3171 = vmatpush.bf16.msra.mxu0 %v4541_v4 }
  0x19   :  { %v4524_v7 = vld [vmem:[%s11085_s1 + $0x20] sm:$0xf]  ;;  %v6816_v8 = vld [vmem:[%s11085_s1 + $0x2c] sm:$0xf0]  ;;  %v4925_v10 = vor.u32 %v6916_v3, %v4924_v2  ;;  %3184 = vmatpush.bf16.msra.mxu1 %v4669_v5  ;;  %v21_v2 = vld [vmem:[%s11086_s0 + $0x8] sm:$0xff] }
  0x1a   :  { %v4652_v9 = vld [vmem:[%s11085_s1 + $0x120] sm:$0xf]  ;;  %v6848_v11 = vld [vmem:[%s11085_s1 + $0x12c] sm:$0xf0]  ;;  %v4525_v16 = vor.u32 %v6816_v8, %v4524_v7  ;;  %3197 = vmatpush.bf16.msra.mxu2 %v4797_v6  ;;  %v560_v8 = vunpack.c.l.b16 %v21_v2 }
  0x1b   :  { %v4780_v12 = vld [vmem:[%s11085_s1 + $0x220] sm:$0xf]  ;;  %v6880_v13 = vld [vmem:[%s11085_s1 + $0x22c] sm:$0xf0]  ;;  %v4653_v19 = vor.u32 %v6848_v11, %v4652_v9  ;;  %3210 = vmatpush.bf16.msra.mxu3 %v4925_v10  ;;  %v561_v10 = vunpack.c.h.b16 %v21_v2 }
  0x1c   :  { %v4908_v14 = vld [vmem:[%s11085_s1 + $0x320] sm:$0xf]  ;;  %v6912_v15 = vld [vmem:[%s11085_s1 + $0x32c] sm:$0xf0]  ;;  %v4781_v20 = vor.u32 %v6880_v13, %v4780_v12  ;;  %3172 = vmatpush.bf16.msra.mxu0 %v4525_v16 }
  0x1d   :  { %v4508_v17 = vld [vmem:[%s11085_s1] sm:$0xf]  ;;  %v6812_v18 = vld [vmem:[%s11085_s1 + $0xc] sm:$0xf0]  ;;  %v4909_v24 = vor.u32 %v6912_v15, %v4908_v14  ;;  %3185 = vmatpush.bf16.msra.mxu1 %v4653_v19 }
  0x1e   :  { %v4636_v21 = vld [vmem:[%s11085_s1 + $0x100] sm:$0xf]  ;;  %v6844_v22 = vld [vmem:[%s11085_s1 + $0x10c] sm:$0xf0]  ;;  %v4509_v31 = vor.u32 %v6812_v18, %v4508_v17  ;;  %3198 = vmatpush.bf16.msra.mxu2 %v4781_v20  ;;  %v7713_v18 = vpack.c.b16 %v560_v8, %v560_v8  ;;  %v7717_v20 = vpack.c.b16 %v561_v10, %v561_v10 }
  0x1f   :  { %v4764_v23 = vld [vmem:[%s11085_s1 + $0x200] sm:$0xf]  ;;  %v6876_v25 = vld [vmem:[%s11085_s1 + $0x20c] sm:$0xf0]  ;;  %v4637_v35 = vor.u32 %v6844_v22, %v4636_v21  ;;  %3211 = vmatpush.bf16.msra.mxu3 %v4909_v24 }
  0x20   :  { %v4892_v26 = vld [vmem:[%s11085_s1 + $0x300] sm:$0xf]  ;;  %v6908_v27 = vld [vmem:[%s11085_s1 + $0x30c] sm:$0xf0]  ;;  %v4765_v36 = vor.u32 %v6876_v25, %v4764_v23  ;;  %3173 = vmatpush.bf16.msra.mxu0 %v4509_v31 }
  0x21   :  { %v5132_v28 = vld [vmem:[%s11085_s1 + $0x4e0] sm:$0xf]  ;;  %v6968_v29 = vld [vmem:[%s11085_s1 + $0x4ec] sm:$0xf0]  ;;  %v4893_v39 = vor.u32 %v6908_v27, %v4892_v26  ;;  %3186 = vmatpush.bf16.msra.mxu1 %v4637_v35 }
  0x22   :  { %v5260_v30 = vld [vmem:[%s11085_s1 + $0x5e0] sm:$0xf]  ;;  %v7000_v32 = vld [vmem:[%s11085_s1 + $0x5ec] sm:$0xf0]  ;;  %v5133_v40 = vor.u32 %v6968_v29, %v5132_v28  ;;  %3199 = vmatpush.bf16.msra.mxu2 %v4765_v36 }
  0x23   :  { %v5388_v33 = vld [vmem:[%s11085_s1 + $0x6e0] sm:$0xf]  ;;  %v7032_v34 = vld [vmem:[%s11085_s1 + $0x6ec] sm:$0xf0]  ;;  %v5261_v41 = vor.u32 %v7000_v32, %v5260_v30  ;;  %3212 = vmatpush.bf16.msra.mxu3 %v4893_v39 }
  0x24   :  { %v5516_v37 = vld [vmem:[%s11085_s1 + $0x7e0] sm:$0xf]  ;;  %v7064_v38 = vld [vmem:[%s11085_s1 + $0x7ec] sm:$0xf0]  ;;  %v5389_v42 = vor.u32 %v7032_v34, %v5388_v33  ;;  %3218 = vmatpush.bf16.msrb.mxu0 %v5133_v40 }
  0x25   :  { %v5116_v43 = vld [vmem:[%s11085_s1 + $0x4c0] sm:$0xf]  ;;  %v6964_v44 = vld [vmem:[%s11085_s1 + $0x4cc] sm:$0xf0]  ;;  %v5517_v46 = vor.u32 %v7064_v38, %v5516_v37  ;;  %3231 = vmatpush.bf16.msrb.mxu1 %v5261_v41  ;;  %3200 = vmatmul.bf16.vlgmr.msra.gmra.mxu2 %v7713_v18 }
  0x26   :  { %v5244_v45 = vld [vmem:[%s11085_s1 + $0x5c0] sm:$0xf]  ;;  %v6996_v47 = vld [vmem:[%s11085_s1 + $0x5cc] sm:$0xf0]  ;;  %v5117_v52 = vor.u32 %v6964_v44, %v5116_v43  ;;  %3244 = vmatpush.bf16.msrb.mxu2 %v5389_v42  ;;  %3213 = vmatmul.bf16.vlgmr.msra.gmra.mxu3 %v7717_v20 }
  0x27   :  { %v5372_v48 = vld [vmem:[%s11085_s1 + $0x6c0] sm:$0xf]  ;;  %v7028_v49 = vld [vmem:[%s11085_s1 + $0x6cc] sm:$0xf0]  ;;  %v5245_v54 = vor.u32 %v6996_v47, %v5244_v45  ;;  %3257 = vmatpush.bf16.msrb.mxu3 %v5517_v46 }
  0x28   :  { %v5500_v50 = vld [vmem:[%s11085_s1 + $0x7c0] sm:$0xf]  ;;  %v7060_v51 = vld [vmem:[%s11085_s1 + $0x7cc] sm:$0xf0]  ;;  %v5373_v55 = vor.u32 %v7028_v49, %v5372_v48  ;;  %3219 = vmatpush.bf16.msrb.mxu0 %v5117_v52 }
  0x29   :  { %v5100_v53 = vld [vmem:[%s11085_s1 + $0x4a0] sm:$0xf]  ;;  %v6960_v56 = vld [vmem:[%s11085_s1 + $0x4ac] sm:$0xf0]  ;;  %v5501_v59 = vor.u32 %v7060_v51, %v5500_v50  ;;  %3232 = vmatpush.bf16.msrb.mxu1 %v5245_v54 }
  0x2a   :  { %v5228_v57 = vld [vmem:[%s11085_s1 + $0x5a0] sm:$0xf]  ;;  %v6992_v58 = vld [vmem:[%s11085_s1 + $0x5ac] sm:$0xf0]  ;;  %v5101_v0 = vor.u32 %v6960_v56, %v5100_v53  ;;  %3245 = vmatpush.bf16.msrb.mxu2 %v5373_v55 }
  0x2b   :  { %v5356_v60 = vld [vmem:[%s11085_s1 + $0x6a0] sm:$0xf]  ;;  %v7024_v61 = vld [vmem:[%s11085_s1 + $0x6ac] sm:$0xf0]  ;;  %v5229_v1 = vor.u32 %v6992_v58, %v5228_v57  ;;  %3258 = vmatpush.bf16.msrb.mxu3 %v5501_v59 }
  0x2c   :  { %v5484_v62 = vld [vmem:[%s11085_s1 + $0x7a0] sm:$0xf]  ;;  %v7056_v63 = vld [vmem:[%s11085_s1 + $0x7ac] sm:$0xf0]  ;;  %v5357_v4 = vor.u32 %v7024_v61, %v5356_v60  ;;  %3220 = vmatpush.bf16.msrb.mxu0 %v5101_v0 }
  0x2d   :  { %v20_v3 = vld [vmem:[%s11086_s0] sm:$0xff]  ;;  %v6956_v6 = vld [vmem:[%s11085_s1 + $0x48c] sm:$0xf0]  ;;  %v5485_v11 = vor.u32 %v7056_v63, %v5484_v62  ;;  %3233 = vmatpush.bf16.msrb.mxu1 %v5229_v1 }
  0x2e   :  { %v5084_v5 = vld [vmem:[%s11085_s1 + $0x480] sm:$0xf]  ;;  %v558_v9 = vunpack.c.l.b16 %v20_v3  ;;  %v6988_v12 = vld [vmem:[%s11085_s1 + $0x58c] sm:$0xf0]  ;;  %v559_v15 = vunpack.c.h.b16 %v20_v3  ;;  %3246 = vmatpush.bf16.msrb.mxu2 %v5357_v4  ;;  %v23_v3 = vld [vmem:[%s11086_s0 + $0x18] sm:$0xff] }
  0x2f   :  { %v5212_v7 = vld [vmem:[%s11085_s1 + $0x580] sm:$0xf]  ;;  %v7020_v14 = vld [vmem:[%s11085_s1 + $0x68c] sm:$0xf0]  ;;  %v5085_v21 = vor.u32 %v6956_v6, %v5084_v5  ;;  %3259 = vmatpush.bf16.msrb.mxu3 %v5485_v11 }
  0x30   :  { %v5340_v13 = vld [vmem:[%s11085_s1 + $0x680] sm:$0xf]  ;;  %v7052_v17 = vld [vmem:[%s11085_s1 + $0x78c] sm:$0xf0]  ;;  %v7715_v19 = vpack.c.b16 %v558_v9, %v558_v9  ;;  %v7719_v22 = vpack.c.b16 %v559_v15, %v559_v15  ;;  %v5213_v23 = vor.u32 %v6988_v12, %v5212_v7  ;;  %v564_v15 = vunpack.c.l.b16 %v23_v3 }
  0x31   :  { %v5468_v16 = vld [vmem:[%s11085_s1 + $0x780] sm:$0xf]  ;;  %v5341_v24 = vor.u32 %v7020_v14, %v5340_v13  ;;  %v6952_v26 = vld [vmem:[%s11085_s1 + $0x46c] sm:$0xf0]  ;;  %3221 = vmatpush.bf16.msrb.mxu0 %v5085_v21 }
  0x32   :  { %v5068_v25 = vld [vmem:[%s11085_s1 + $0x460] sm:$0xf]  ;;  %v5469_v28 = vor.u32 %v7052_v17, %v5468_v16  ;;  %v6984_v29 = vld [vmem:[%s11085_s1 + $0x56c] sm:$0xf0]  ;;  %3174 = vmatmul.bf16.vlgmr.msra.gmra.mxu0 %v7715_v19  ;;  %3187 = vmatmul.bf16.vlgmr.msra.gmra.mxu1 %v7719_v22 }
  0x33   :  { %v5196_v27 = vld [vmem:[%s11085_s1 + $0x560] sm:$0xf]  ;;  %v7016_v31 = vld [vmem:[%s11085_s1 + $0x66c] sm:$0xf0]  ;;  %v5069_v34 = vor.u32 %v6952_v26, %v5068_v25  ;;  %3234 = vmatpush.bf16.msrb.mxu1 %v5213_v23  ;;  %3247 = vmatpush.bf16.msrb.mxu2 %v5341_v24  ;;  %v565_v25 = vunpack.c.h.b16 %v23_v3 }
  0x34   :  { %v5324_v30 = vld [vmem:[%s11085_s1 + $0x660] sm:$0xf]  ;;  %v7048_v33 = vld [vmem:[%s11085_s1 + $0x76c] sm:$0xf0]  ;;  %v5197_v35 = vor.u32 %v6984_v29, %v5196_v27  ;;  %3260 = vmatpush.bf16.msrb.mxu3 %v5469_v28 }
  0x35   :  { %v5452_v32 = vld [vmem:[%s11085_s1 + $0x760] sm:$0xf]  ;;  %v5325_v36 = vor.u32 %v7016_v31, %v5324_v30  ;;  %v6948_v38 = vld [vmem:[%s11085_s1 + $0x44c] sm:$0xf0]  ;;  %3222 = vmatpush.bf16.msrb.mxu0 %v5069_v34 }
  0x36   :  { %v5052_v37 = vld [vmem:[%s11085_s1 + $0x440] sm:$0xf]  ;;  %v5453_v40 = vor.u32 %v7048_v33, %v5452_v32  ;;  %v6980_v41 = vld [vmem:[%s11085_s1 + $0x54c] sm:$0xf0] }
  0x37   :  { %v5180_v39 = vld [vmem:[%s11085_s1 + $0x540] sm:$0xf]  ;;  %v7012_v43 = vld [vmem:[%s11085_s1 + $0x64c] sm:$0xf0]  ;;  %v5053_v46 = vor.u32 %v6948_v38, %v5052_v37  ;;  %3235 = vmatpush.bf16.msrb.mxu1 %v5197_v35  ;;  %3248 = vmatpush.bf16.msrb.mxu2 %v5325_v36  ;;  %v7869_v38 = vpack.c.b16 %v564_v15, %v564_v15 }
  0x38   :  { %v5308_v42 = vld [vmem:[%s11085_s1 + $0x640] sm:$0xf]  ;;  %v7044_v45 = vld [vmem:[%s11085_s1 + $0x74c] sm:$0xf0]  ;;  %v5181_v47 = vor.u32 %v6980_v41, %v5180_v39  ;;  %3261 = vmatpush.bf16.msrb.mxu3 %v5453_v40 }
  0x39   :  { %v5436_v44 = vld [vmem:[%s11085_s1 + $0x740] sm:$0xf]  ;;  %v5309_v48 = vor.u32 %v7012_v43, %v5308_v42  ;;  %v6944_v50 = vld [vmem:[%s11085_s1 + $0x42c] sm:$0xf0]  ;;  %3223 = vmatpush.bf16.msrb.mxu0 %v5053_v46  ;;  %v7879_v42 = vpack.c.b16 %v565_v25, %v565_v25 }
  0x3a   :  { %v5036_v49 = vld [vmem:[%s11085_s1 + $0x420] sm:$0xf]  ;;  %v5437_v52 = vor.u32 %v7044_v45, %v5436_v44  ;;  %v6976_v53 = vld [vmem:[%s11085_s1 + $0x52c] sm:$0xf0] }
  0x3b   :  { %v5164_v51 = vld [vmem:[%s11085_s1 + $0x520] sm:$0xf]  ;;  %v7008_v55 = vld [vmem:[%s11085_s1 + $0x62c] sm:$0xf0]  ;;  %v5037_v59 = vor.u32 %v6944_v50, %v5036_v49  ;;  %3236 = vmatpush.bf16.msrb.mxu1 %v5181_v47  ;;  %3249 = vmatpush.bf16.msrb.mxu2 %v5309_v48 }
  0x3c   :  { %v5292_v54 = vld [vmem:[%s11085_s1 + $0x620] sm:$0xf]  ;;  %v7040_v57 = vld [vmem:[%s11085_s1 + $0x72c] sm:$0xf0]  ;;  %v5165_v63 = vor.u32 %v6976_v53, %v5164_v51  ;;  %3262 = vmatpush.bf16.msrb.mxu3 %v5437_v52 }
  0x3d   :  { %v5420_v56 = vld [vmem:[%s11085_s1 + $0x720] sm:$0xf]  ;;  %v6940_v60 = vld [vmem:[%s11085_s1 + $0x40c] sm:$0xf0]  ;;  %v5293_v0 = vor.u32 %v7008_v55, %v5292_v54  ;;  %3224 = vmatpush.bf16.msrb.mxu0 %v5037_v59 }
  0x3e   :  { %v5020_v58 = vld [vmem:[%s11085_s1 + $0x400] sm:$0xf]  ;;  %v6972_v62 = vld [vmem:[%s11085_s1 + $0x50c] sm:$0xf0]  ;;  %v5421_v4 = vor.u32 %v7040_v57, %v5420_v56 }
  0x3f   :  { %v5148_v61 = vld [vmem:[%s11085_s1 + $0x500] sm:$0xf]  ;;  %v7004_v2 = vld [vmem:[%s11085_s1 + $0x60c] sm:$0xf0]  ;;  %v5021_v11 = vor.u32 %v6940_v60, %v5020_v58  ;;  %3237 = vmatpush.bf16.msrb.mxu1 %v5165_v63  ;;  %3250 = vmatpush.bf16.msrb.mxu2 %v5293_v0 }
  0x40   :  { %v5276_v1 = vld [vmem:[%s11085_s1 + $0x600] sm:$0xf]  ;;  %v7036_v6 = vld [vmem:[%s11085_s1 + $0x70c] sm:$0xf0]  ;;  %v5149_v16 = vor.u32 %v6972_v62, %v5148_v61  ;;  %3263 = vmatpush.bf16.msrb.mxu3 %v5421_v4 }
  0x41   :  { %v5404_v5 = vld [vmem:[%s11085_s1 + $0x700] sm:$0xf]  ;;  %v22_v7 = vld [vmem:[%s11086_s0 + $0x10] sm:$0xff]  ;;  %v5277_v17 = vor.u32 %v7004_v2, %v5276_v1  ;;  %3225 = vmatpush.bf16.msrb.mxu0 %v5021_v11 }
  0x42   :  { %v5644_v8 = vld [vmem:[%s11085_s1 + $0x8e0] sm:$0xf]  ;;  %v7096_v9 = vld [vmem:[%s11085_s1 + $0x8ec] sm:$0xf0]  ;;  %v562_v24 = vunpack.c.l.b16 %v22_v7  ;;  %v5405_v26 = vor.u32 %v7036_v6, %v5404_v5  ;;  %v563_v28 = vunpack.c.h.b16 %v22_v7 }
  0x43   :  { %v5772_v10 = vld [vmem:[%s11085_s1 + $0x9e0] sm:$0xf]  ;;  %v7128_v12 = vld [vmem:[%s11085_s1 + $0x9ec] sm:$0xf0]  ;;  %v5645_v27 = vor.u32 %v7096_v9, %v5644_v8  ;;  %3238 = vmatpush.bf16.msrb.mxu1 %v5149_v16  ;;  %3251 = vmatpush.bf16.msrb.mxu2 %v5277_v17 }
  0x44   :  { %v5900_v13 = vld [vmem:[%s11085_s1 + $0xae0] sm:$0xf]  ;;  %v7160_v14 = vld [vmem:[%s11085_s1 + $0xaec] sm:$0xf0]  ;;  %v5773_v29 = vor.u32 %v7128_v12, %v5772_v10  ;;  %v7877_v41 = vpack.c.b16 %v562_v24, %v562_v24  ;;  %3264 = vmatpush.bf16.msrb.mxu3 %v5405_v26  ;;  %v7881_v44 = vpack.c.b16 %v563_v28, %v563_v28 }
  0x45   :  { %v6028_v21 = vld [vmem:[%s11085_s1 + $0xbe0] sm:$0xf]  ;;  %v7192_v23 = vld [vmem:[%s11085_s1 + $0xbec] sm:$0xf0]  ;;  %v5901_v30 = vor.u32 %v7160_v14, %v5900_v13  ;;  %3270 = vmatpush.bf16.msra.mxu0 %v5645_v27 }
  0x46   :  { %v5628_v31 = vld [vmem:[%s11085_s1 + $0x8c0] sm:$0xf]  ;;  %v7092_v32 = vld [vmem:[%s11085_s1 + $0x8cc] sm:$0xf0]  ;;  %v6029_v34 = vor.u32 %v7192_v23, %v6028_v21  ;;  %3252 = vmatmul.bf16.vlgmr.msrb.gmra.mxu2 %v7869_v38  ;;  %3226 = vmatmul.bf16.vlgmr.msrb.gmra.mxu0 %v7877_v41 }
  0x47   :  { %v5756_v33 = vld [vmem:[%s11085_s1 + $0x9c0] sm:$0xf]  ;;  %v7124_v35 = vld [vmem:[%s11085_s1 + $0x9cc] sm:$0xf0]  ;;  %v5629_v43 = vor.u32 %v7092_v32, %v5628_v31  ;;  %3283 = vmatpush.bf16.msra.mxu1 %v5773_v29  ;;  %3296 = vmatpush.bf16.msra.mxu2 %v5901_v30 }
  0x48   :  { %v5884_v36 = vld [vmem:[%s11085_s1 + $0xac0] sm:$0xf]  ;;  %v7156_v37 = vld [vmem:[%s11085_s1 + $0xacc] sm:$0xf0]  ;;  %v5757_v45 = vor.u32 %v7124_v35, %v5756_v33  ;;  %3309 = vmatpush.bf16.msra.mxu3 %v6029_v34  ;;  %3239 = vmatmul.bf16.vlgmr.msrb.gmra.mxu1 %v7881_v44 }
  0x49   :  { %v6012_v39 = vld [vmem:[%s11085_s1 + $0xbc0] sm:$0xf]  ;;  %v7188_v40 = vld [vmem:[%s11085_s1 + $0xbcc] sm:$0xf0]  ;;  %v5885_v46 = vor.u32 %v7156_v37, %v5884_v36  ;;  %3265 = vmatmul.bf16.vlgmr.msrb.gmra.mxu3 %v7879_v42  ;;  %3271 = vmatpush.bf16.msra.mxu0 %v5629_v43 }
  0x4a   :  { %v5612_v47 = vld [vmem:[%s11085_s1 + $0x8a0] sm:$0xf]  ;;  %v7088_v48 = vld [vmem:[%s11085_s1 + $0x8ac] sm:$0xf0]  ;;  %v6013_v50 = vor.u32 %v7188_v40, %v6012_v39 }
  0x4b   :  { %v5740_v49 = vld [vmem:[%s11085_s1 + $0x9a0] sm:$0xf]  ;;  %v7120_v51 = vld [vmem:[%s11085_s1 + $0x9ac] sm:$0xf0]  ;;  %v5613_v56 = vor.u32 %v7088_v48, %v5612_v47  ;;  %3284 = vmatpush.bf16.msra.mxu1 %v5757_v45  ;;  %3297 = vmatpush.bf16.msra.mxu2 %v5885_v46 }
  0x4c   :  { %v5868_v52 = vld [vmem:[%s11085_s1 + $0xaa0] sm:$0xf]  ;;  %v7152_v53 = vld [vmem:[%s11085_s1 + $0xaac] sm:$0xf0]  ;;  %v5741_v57 = vor.u32 %v7120_v51, %v5740_v49  ;;  %3310 = vmatpush.bf16.msra.mxu3 %v6013_v50 }
  0x4d   :  { %v5996_v54 = vld [vmem:[%s11085_s1 + $0xba0] sm:$0xf]  ;;  %v7184_v55 = vld [vmem:[%s11085_s1 + $0xbac] sm:$0xf0]  ;;  %v5869_v58 = vor.u32 %v7152_v53, %v5868_v52  ;;  %3272 = vmatpush.bf16.msra.mxu0 %v5613_v56 }
  0x4e   :  { %v5596_v59 = vld [vmem:[%s11085_s1 + $0x880] sm:$0xf]  ;;  %v7084_v60 = vld [vmem:[%s11085_s1 + $0x88c] sm:$0xf0]  ;;  %v5997_v62 = vor.u32 %v7184_v55, %v5996_v54 }
  0x4f   :  { %v5724_v61 = vld [vmem:[%s11085_s1 + $0x980] sm:$0xf]  ;;  %v7116_v63 = vld [vmem:[%s11085_s1 + $0x98c] sm:$0xf0]  ;;  %v5597_v4 = vor.u32 %v7084_v60, %v5596_v59  ;;  %3285 = vmatpush.bf16.msra.mxu1 %v5741_v57  ;;  %3298 = vmatpush.bf16.msra.mxu2 %v5869_v58 }
  0x50   :  { %v5852_v0 = vld [vmem:[%s11085_s1 + $0xa80] sm:$0xf]  ;;  %v7148_v1 = vld [vmem:[%s11085_s1 + $0xa8c] sm:$0xf0]  ;;  %v5725_v5 = vor.u32 %v7116_v63, %v5724_v61  ;;  %3311 = vmatpush.bf16.msra.mxu3 %v5997_v62  ;;  %v25_v61 = vld [vmem:[%s11086_s0 + $0x28] sm:$0xff] }
  0x51   :  { %v5980_v2 = vld [vmem:[%s11085_s1 + $0xb80] sm:$0xf]  ;;  %v7180_v3 = vld [vmem:[%s11085_s1 + $0xb8c] sm:$0xf0]  ;;  %v5853_v6 = vor.u32 %v7148_v1, %v5852_v0  ;;  %3273 = vmatpush.bf16.msra.mxu0 %v5597_v4 }
  0x52   :  { %v5580_v7 = vld [vmem:[%s11085_s1 + $0x860] sm:$0xf]  ;;  %v7080_v8 = vld [vmem:[%s11085_s1 + $0x86c] sm:$0xf0]  ;;  %v5981_v10 = vor.u32 %v7180_v3, %v5980_v2 }
  0x53   :  { %v5708_v9 = vld [vmem:[%s11085_s1 + $0x960] sm:$0xf]  ;;  %v7112_v11 = vld [vmem:[%s11085_s1 + $0x96c] sm:$0xf0]  ;;  %v5581_v16 = vor.u32 %v7080_v8, %v5580_v7  ;;  %3286 = vmatpush.bf16.msra.mxu1 %v5725_v5  ;;  %3299 = vmatpush.bf16.msra.mxu2 %v5853_v6 }
  0x54   :  { %v5836_v12 = vld [vmem:[%s11085_s1 + $0xa60] sm:$0xf]  ;;  %v7144_v13 = vld [vmem:[%s11085_s1 + $0xa6c] sm:$0xf0]  ;;  %v5709_v17 = vor.u32 %v7112_v11, %v5708_v9  ;;  %3312 = vmatpush.bf16.msra.mxu3 %v5981_v10  ;;  %v568_v10 = vunpack.c.l.b16 %v25_v61 }
  0x55   :  { %v5964_v14 = vld [vmem:[%s11085_s1 + $0xb60] sm:$0xf]  ;;  %v7176_v15 = vld [vmem:[%s11085_s1 + $0xb6c] sm:$0xf0]  ;;  %v5837_v21 = vor.u32 %v7144_v13, %v5836_v12  ;;  %3274 = vmatpush.bf16.msra.mxu0 %v5581_v16 }
  0x56   :  { %v5564_v23 = vld [vmem:[%s11085_s1 + $0x840] sm:$0xf]  ;;  %v7076_v24 = vld [vmem:[%s11085_s1 + $0x84c] sm:$0xf0]  ;;  %v5965_v26 = vor.u32 %v7176_v15, %v5964_v14  ;;  %v569_v14 = vunpack.c.h.b16 %v25_v61 }
  0x57   :  { %v5692_v25 = vld [vmem:[%s11085_s1 + $0x940] sm:$0xf]  ;;  %v7108_v27 = vld [vmem:[%s11085_s1 + $0x94c] sm:$0xf0]  ;;  %v5565_v32 = vor.u32 %v7076_v24, %v5564_v23  ;;  %3287 = vmatpush.bf16.msra.mxu1 %v5709_v17  ;;  %3300 = vmatpush.bf16.msra.mxu2 %v5837_v21 }
  0x58   :  { %v5820_v28 = vld [vmem:[%s11085_s1 + $0xa40] sm:$0xf]  ;;  %v7140_v29 = vld [vmem:[%s11085_s1 + $0xa4c] sm:$0xf0]  ;;  %v5693_v33 = vor.u32 %v7108_v27, %v5692_v25  ;;  %3313 = vmatpush.bf16.msra.mxu3 %v5965_v26 }
  0x59   :  { %v5948_v30 = vld [vmem:[%s11085_s1 + $0xb40] sm:$0xf]  ;;  %v7172_v31 = vld [vmem:[%s11085_s1 + $0xb4c] sm:$0xf0]  ;;  %v5821_v34 = vor.u32 %v7140_v29, %v5820_v28  ;;  %3275 = vmatpush.bf16.msra.mxu0 %v5565_v32  ;;  %v8081_v29 = vpack.c.b16 %v568_v10, %v568_v10 }
  0x5a   :  { %v5548_v35 = vld [vmem:[%s11085_s1 + $0x820] sm:$0xf]  ;;  %v7072_v36 = vld [vmem:[%s11085_s1 + $0x82c] sm:$0xf0]  ;;  %v5949_v39 = vor.u32 %v7172_v31, %v5948_v30 }
  0x5b   :  { %v5676_v37 = vld [vmem:[%s11085_s1 + $0x920] sm:$0xf]  ;;  %v7104_v40 = vld [vmem:[%s11085_s1 + $0x92c] sm:$0xf0]  ;;  %v5549_v49 = vor.u32 %v7072_v36, %v5548_v35  ;;  %3288 = vmatpush.bf16.msra.mxu1 %v5693_v33  ;;  %3301 = vmatpush.bf16.msra.mxu2 %v5821_v34  ;;  %v8091_v33 = vpack.c.b16 %v569_v14, %v569_v14 }
  0x5c   :  { %v5804_v43 = vld [vmem:[%s11085_s1 + $0xa20] sm:$0xf]  ;;  %v7136_v45 = vld [vmem:[%s11085_s1 + $0xa2c] sm:$0xf0]  ;;  %v5677_v53 = vor.u32 %v7104_v40, %v5676_v37  ;;  %3314 = vmatpush.bf16.msra.mxu3 %v5949_v39 }
  0x5d   :  { %v5932_v46 = vld [vmem:[%s11085_s1 + $0xb20] sm:$0xf]  ;;  %v7168_v47 = vld [vmem:[%s11085_s1 + $0xb2c] sm:$0xf0]  ;;  %v5805_v54 = vor.u32 %v7136_v45, %v5804_v43  ;;  %3276 = vmatpush.bf16.msra.mxu0 %v5549_v49 }
  0x5e   :  { %v5532_v48 = vld [vmem:[%s11085_s1 + $0x800] sm:$0xf]  ;;  %v7068_v50 = vld [vmem:[%s11085_s1 + $0x80c] sm:$0xf0]  ;;  %v5933_v58 = vor.u32 %v7168_v47, %v5932_v46 }
  0x5f   :  { %v5660_v51 = vld [vmem:[%s11085_s1 + $0x900] sm:$0xf]  ;;  %v7100_v52 = vld [vmem:[%s11085_s1 + $0x90c] sm:$0xf0]  ;;  %v5533_v1 = vor.u32 %v7068_v50, %v5532_v48  ;;  %3289 = vmatpush.bf16.msra.mxu1 %v5677_v53  ;;  %3302 = vmatpush.bf16.msra.mxu2 %v5805_v54 }
  0x60   :  { %v5788_v55 = vld [vmem:[%s11085_s1 + $0xa00] sm:$0xf]  ;;  %v7132_v56 = vld [vmem:[%s11085_s1 + $0xa0c] sm:$0xf0]  ;;  %v5661_v6 = vor.u32 %v7100_v52, %v5660_v51  ;;  %3315 = vmatpush.bf16.msra.mxu3 %v5933_v58 }
  0x61   :  { %v24_v57 = vld [vmem:[%s11086_s0 + $0x20] sm:$0xff]  ;;  %v7164_v60 = vld [vmem:[%s11085_s1 + $0xb0c] sm:$0xf0]  ;;  %v5789_v7 = vor.u32 %v7132_v56, %v5788_v55  ;;  %3277 = vmatpush.bf16.msra.mxu0 %v5533_v1 }
  0x62   :  { %v5916_v59 = vld [vmem:[%s11085_s1 + $0xb00] sm:$0xf]  ;;  %v7224_v63 = vld [vmem:[%s11085_s1 + $0xcec] sm:$0xf0]  ;;  %v566_v5 = vunpack.c.l.b16 %v24_v57  ;;  %v567_v11 = vunpack.c.h.b16 %v24_v57 }
  0x63   :  { %v6156_v62 = vld [vmem:[%s11085_s1 + $0xce0] sm:$0xf]  ;;  %v7256_v2 = vld [vmem:[%s11085_s1 + $0xdec] sm:$0xf0]  ;;  %v5917_v12 = vor.u32 %v7164_v60, %v5916_v59  ;;  %3290 = vmatpush.bf16.msra.mxu1 %v5661_v6  ;;  %3303 = vmatpush.bf16.msra.mxu2 %v5789_v7 }
  0x64   :  { %v6284_v0 = vld [vmem:[%s11085_s1 + $0xde0] sm:$0xf]  ;;  %v7288_v4 = vld [vmem:[%s11085_s1 + $0xeec] sm:$0xf0]  ;;  %v6157_v13 = vor.u32 %v7224_v63, %v6156_v62  ;;  %v8070_v25 = vpack.c.b16 %v566_v5, %v566_v5  ;;  %v8083_v30 = vpack.c.b16 %v567_v11, %v567_v11 }
  0x65   :  { %v6412_v3 = vld [vmem:[%s11085_s1 + $0xee0] sm:$0xf]  ;;  %v7320_v9 = vld [vmem:[%s11085_s1 + $0xfec] sm:$0xf0]  ;;  %v6285_v15 = vor.u32 %v7256_v2, %v6284_v0  ;;  %3316 = vmatpush.bf16.msra.mxu3 %v5917_v12 }
  0x66   :  { %v6540_v8 = vld [vmem:[%s11085_s1 + $0xfe0] sm:$0xf]  ;;  %v6413_v16 = vor.u32 %v7288_v4, %v6412_v3  ;;  %v7220_v21 = vld [vmem:[%s11085_s1 + $0xccc] sm:$0xf0]  ;;  %3322 = vmatpush.bf16.msrb.mxu0 %v6157_v13  ;;  %3304 = vmatmul.bf16.vlgmr.msra.gmra.mxu2 %v8081_v29 }
  0x67   :  { %v6140_v17 = vld [vmem:[%s11085_s1 + $0xcc0] sm:$0xf]  ;;  %v6541_v24 = vor.u32 %v7320_v9, %v6540_v8  ;;  %v7252_v26 = vld [vmem:[%s11085_s1 + $0xdcc] sm:$0xf0]  ;;  %3335 = vmatpush.bf16.msrb.mxu1 %v6285_v15  ;;  %3278 = vmatmul.bf16.vlgmr.msra.gmra.mxu0 %v8070_v25 }
  0x68   :  { %v6268_v23 = vld [vmem:[%s11085_s1 + $0xdc0] sm:$0xf]  ;;  %v7284_v28 = vld [vmem:[%s11085_s1 + $0xecc] sm:$0xf0]  ;;  %v6141_v34 = vor.u32 %v7220_v21, %v6140_v17  ;;  %3348 = vmatpush.bf16.msrb.mxu2 %v6413_v16  ;;  %3291 = vmatmul.bf16.vlgmr.msra.gmra.mxu1 %v8083_v30 }
  0x69   :  { %v6396_v27 = vld [vmem:[%s11085_s1 + $0xec0] sm:$0xf]  ;;  %v7316_v32 = vld [vmem:[%s11085_s1 + $0xfcc] sm:$0xf0]  ;;  %v6269_v35 = vor.u32 %v7252_v26, %v6268_v23  ;;  %3361 = vmatpush.bf16.msrb.mxu3 %v6541_v24 }
  0x6a   :  { %v6524_v31 = vld [vmem:[%s11085_s1 + $0xfc0] sm:$0xf]  ;;  %v6397_v36 = vor.u32 %v7284_v28, %v6396_v27  ;;  %v7216_v39 = vld [vmem:[%s11085_s1 + $0xcac] sm:$0xf0]  ;;  %3317 = vmatmul.bf16.vlgmr.msra.gmra.mxu3 %v8091_v33  ;;  %3323 = vmatpush.bf16.msrb.mxu0 %v6141_v34 }
  0x6b   :  { %v6124_v37 = vld [vmem:[%s11085_s1 + $0xca0] sm:$0xf]  ;;  %v6525_v43 = vor.u32 %v7316_v32, %v6524_v31  ;;  %v7248_v45 = vld [vmem:[%s11085_s1 + $0xdac] sm:$0xf0]  ;;  %3336 = vmatpush.bf16.msrb.mxu1 %v6269_v35 }
  0x6c   :  { %v6252_v40 = vld [vmem:[%s11085_s1 + $0xda0] sm:$0xf]  ;;  %v7280_v47 = vld [vmem:[%s11085_s1 + $0xeac] sm:$0xf0]  ;;  %v6125_v50 = vor.u32 %v7216_v39, %v6124_v37  ;;  %3349 = vmatpush.bf16.msrb.mxu2 %v6397_v36 }
  0x6d   :  { %v6380_v46 = vld [vmem:[%s11085_s1 + $0xea0] sm:$0xf]  ;;  %v7312_v49 = vld [vmem:[%s11085_s1 + $0xfac] sm:$0xf0]  ;;  %v6253_v51 = vor.u32 %v7248_v45, %v6252_v40  ;;  %3362 = vmatpush.bf16.msrb.mxu3 %v6525_v43 }
  0x6e   :  { %v6508_v48 = vld [vmem:[%s11085_s1 + $0xfa0] sm:$0xf]  ;;  %v6381_v52 = vor.u32 %v7280_v47, %v6380_v46  ;;  %v7212_v54 = vld [vmem:[%s11085_s1 + $0xc8c] sm:$0xf0]  ;;  %3324 = vmatpush.bf16.msrb.mxu0 %v6125_v50 }
  0x6f   :  { %v6108_v53 = vld [vmem:[%s11085_s1 + $0xc80] sm:$0xf]  ;;  %v6509_v56 = vor.u32 %v7312_v49, %v6508_v48  ;;  %v7244_v57 = vld [vmem:[%s11085_s1 + $0xd8c] sm:$0xf0]  ;;  %3337 = vmatpush.bf16.msrb.mxu1 %v6253_v51 }
  0x70   :  { %v6236_v55 = vld [vmem:[%s11085_s1 + $0xd80] sm:$0xf]  ;;  %v7276_v59 = vld [vmem:[%s11085_s1 + $0xe8c] sm:$0xf0]  ;;  %v6109_v62 = vor.u32 %v7212_v54, %v6108_v53  ;;  %3350 = vmatpush.bf16.msrb.mxu2 %v6381_v52 }
  0x71   :  { %v6364_v58 = vld [vmem:[%s11085_s1 + $0xe80] sm:$0xf]  ;;  %v7308_v61 = vld [vmem:[%s11085_s1 + $0xf8c] sm:$0xf0]  ;;  %v6237_v63 = vor.u32 %v7244_v57, %v6236_v55  ;;  %3363 = vmatpush.bf16.msrb.mxu3 %v6509_v56 }
  0x72   :  { %v6492_v60 = vld [vmem:[%s11085_s1 + $0xf80] sm:$0xf]  ;;  %v6365_v0 = vor.u32 %v7276_v59, %v6364_v58  ;;  %v7208_v2 = vld [vmem:[%s11085_s1 + $0xc6c] sm:$0xf0]  ;;  %3325 = vmatpush.bf16.msrb.mxu0 %v6109_v62  ;;  %v27_v59 = vld [vmem:[%s11086_s0 + $0x38] sm:$0xff] }
  0x73   :  { %v6092_v1 = vld [vmem:[%s11085_s1 + $0xc60] sm:$0xf]  ;;  %v6493_v4 = vor.u32 %v7308_v61, %v6492_v60  ;;  %v7240_v5 = vld [vmem:[%s11085_s1 + $0xd6c] sm:$0xf0]  ;;  %3338 = vmatpush.bf16.msrb.mxu1 %v6237_v63  ;;  %v6838_v60 = vld [vmem:[%s11085_s1 + $0xe4] sm:$0xf] }
  0x74   :  { %v6220_v3 = vld [vmem:[%s11085_s1 + $0xd60] sm:$0xf]  ;;  %v7272_v7 = vld [vmem:[%s11085_s1 + $0xe6c] sm:$0xf0]  ;;  %v6093_v10 = vor.u32 %v7208_v2, %v6092_v1  ;;  %3351 = vmatpush.bf16.msrb.mxu2 %v6365_v0  ;;  %v4622_v61 = vld [vmem:[%s11085_s1 + $0xf0] sm:$0xf0] }
  0x75   :  { %v6348_v6 = vld [vmem:[%s11085_s1 + $0xe60] sm:$0xf]  ;;  %v7304_v9 = vld [vmem:[%s11085_s1 + $0xf6c] sm:$0xf0]  ;;  %v6221_v11 = vor.u32 %v7240_v5, %v6220_v3  ;;  %3364 = vmatpush.bf16.msrb.mxu3 %v6493_v4  ;;  %v6870_v62 = vld [vmem:[%s11085_s1 + $0x1e4] sm:$0xf] }
  0x76   :  { %v6476_v8 = vld [vmem:[%s11085_s1 + $0xf60] sm:$0xf]  ;;  %v6349_v12 = vor.u32 %v7272_v7, %v6348_v6  ;;  %v7204_v14 = vld [vmem:[%s11085_s1 + $0xc4c] sm:$0xf0]  ;;  %3326 = vmatpush.bf16.msrb.mxu0 %v6093_v10  ;;  %v4750_v0 = vld [vmem:[%s11085_s1 + $0x1f0] sm:$0xf0] }
  0x77   :  { %v6076_v13 = vld [vmem:[%s11085_s1 + $0xc40] sm:$0xf]  ;;  %v6477_v16 = vor.u32 %v7304_v9, %v6476_v8  ;;  %v7236_v17 = vld [vmem:[%s11085_s1 + $0xd4c] sm:$0xf0]  ;;  %3339 = vmatpush.bf16.msrb.mxu1 %v6221_v11  ;;  %v6902_v1 = vld [vmem:[%s11085_s1 + $0x2e4] sm:$0xf]  ;;  %v572_v8 = vunpack.c.l.b16 %v27_v59  ;;  %v4625_v11 = vor.u32 %v6838_v60, %v4622_v61 }
  0x78   :  { %v6204_v15 = vld [vmem:[%s11085_s1 + $0xd40] sm:$0xf]  ;;  %v7268_v23 = vld [vmem:[%s11085_s1 + $0xe4c] sm:$0xf0]  ;;  %v6077_v27 = vor.u32 %v7204_v14, %v6076_v13  ;;  %3352 = vmatpush.bf16.msrb.mxu2 %v6349_v12  ;;  %v4878_v2 = vld [vmem:[%s11085_s1 + $0x2f0] sm:$0xf0]  ;;  %v573_v12 = vunpack.c.h.b16 %v27_v59  ;;  %v4753_v13 = vor.u32 %v6870_v62, %v4750_v0 }
  0x79   :  { %v6332_v21 = vld [vmem:[%s11085_s1 + $0xe40] sm:$0xf]  ;;  %v7300_v26 = vld [vmem:[%s11085_s1 + $0xf4c] sm:$0xf0]  ;;  %v6205_v28 = vor.u32 %v7236_v17, %v6204_v15  ;;  %3365 = vmatpush.bf16.msrb.mxu3 %v6477_v16  ;;  %v6934_v6 = vld [vmem:[%s11085_s1 + $0x3e4] sm:$0xf]  ;;  %v4881_v14 = vor.u32 %v6902_v1, %v4878_v2 }
  0x7a   :  { %v6460_v24 = vld [vmem:[%s11085_s1 + $0xf40] sm:$0xf]  ;;  %v6333_v31 = vor.u32 %v7268_v23, %v6332_v21  ;;  %v7200_v34 = vld [vmem:[%s11085_s1 + $0xc2c] sm:$0xf0]  ;;  %3327 = vmatpush.bf16.msrb.mxu0 %v6077_v27  ;;  %v5006_v7 = vld [vmem:[%s11085_s1 + $0x3f0] sm:$0xf0] }
  0x7b   :  { %v6060_v32 = vld [vmem:[%s11085_s1 + $0xc20] sm:$0xf]  ;;  %v6461_v36 = vor.u32 %v7300_v26, %v6460_v24  ;;  %v7232_v37 = vld [vmem:[%s11085_s1 + $0xd2c] sm:$0xf0]  ;;  %3340 = vmatpush.bf16.msrb.mxu1 %v6205_v28  ;;  %v6834_v15 = vld [vmem:[%s11085_s1 + $0xc4] sm:$0xf]  ;;  %v5009_v21 = vor.u32 %v6934_v6, %v5006_v7  ;;  %v8291_v28 = vpack.c.b16 %v572_v8, %v572_v8 }
  0x7c   :  { %v6188_v35 = vld [vmem:[%s11085_s1 + $0xd20] sm:$0xf]  ;;  %v7264_v40 = vld [vmem:[%s11085_s1 + $0xe2c] sm:$0xf0]  ;;  %v6061_v47 = vor.u32 %v7200_v34, %v6060_v32  ;;  %3353 = vmatpush.bf16.msrb.mxu2 %v6333_v31  ;;  %v4606_v16 = vld [vmem:[%s11085_s1 + $0xd0] sm:$0xf0] }
  0x7d   :  { %v6316_v39 = vld [vmem:[%s11085_s1 + $0xe20] sm:$0xf]  ;;  %v7296_v45 = vld [vmem:[%s11085_s1 + $0xf2c] sm:$0xf0]  ;;  %v6189_v51 = vor.u32 %v7232_v37, %v6188_v35  ;;  %3366 = vmatpush.bf16.msrb.mxu3 %v6461_v36  ;;  %v6866_v17 = vld [vmem:[%s11085_s1 + $0x1c4] sm:$0xf]  ;;  %v8301_v35 = vpack.c.b16 %v573_v12, %v573_v12  ;;  %v4609_v36 = vor.u32 %v6834_v15, %v4606_v16 }
  0x7e   :  { %v6444_v43 = vld [vmem:[%s11085_s1 + $0xf20] sm:$0xf]  ;;  %v7196_v48 = vld [vmem:[%s11085_s1 + $0xc0c] sm:$0xf0]  ;;  %v6317_v52 = vor.u32 %v7264_v40, %v6316_v39  ;;  %3328 = vmatpush.bf16.msrb.mxu0 %v6061_v47  ;;  %v4734_v24 = vld [vmem:[%s11085_s1 + $0x1d0] sm:$0xf0] }
  0x7f   :  { %v6044_v46 = vld [vmem:[%s11085_s1 + $0xc00] sm:$0xf]  ;;  %v7228_v50 = vld [vmem:[%s11085_s1 + $0xd0c] sm:$0xf0]  ;;  %v6445_v56 = vor.u32 %v7296_v45, %v6444_v43  ;;  %3341 = vmatpush.bf16.msrb.mxu1 %v6189_v51  ;;  %v6898_v26 = vld [vmem:[%s11085_s1 + $0x2c4] sm:$0xf]  ;;  %v4737_v37 = vor.u32 %v6866_v17, %v4734_v24 }
  0x80   :  { %v6172_v49 = vld [vmem:[%s11085_s1 + $0xd00] sm:$0xf]  ;;  %v7260_v54 = vld [vmem:[%s11085_s1 + $0xe0c] sm:$0xf0]  ;;  %v6045_v63 = vor.u32 %v7196_v48, %v6044_v46  ;;  %3354 = vmatpush.bf16.msrb.mxu2 %v6317_v52  ;;  %v4862_v27 = vld [vmem:[%s11085_s1 + $0x2d0] sm:$0xf0] }
  0x81   :  { %v6300_v53 = vld [vmem:[%s11085_s1 + $0xe00] sm:$0xf]  ;;  %v26_v55 = vld [vmem:[%s11086_s0 + $0x30] sm:$0xff]  ;;  %v6173_v4 = vor.u32 %v7228_v50, %v6172_v49  ;;  %3367 = vmatpush.bf16.msrb.mxu3 %v6445_v56  ;;  %v6930_v32 = vld [vmem:[%s11085_s1 + $0x3c4] sm:$0xf]  ;;  %v4865_v39 = vor.u32 %v6898_v26, %v4862_v27 }
  0x82   :  { %v6428_v57 = vld [vmem:[%s11085_s1 + $0xf00] sm:$0xf]  ;;  %v7292_v58 = vld [vmem:[%s11085_s1 + $0xf0c] sm:$0xf0]  ;;  %v570_v3 = vunpack.c.l.b16 %v26_v55  ;;  %v6301_v5 = vor.u32 %v7260_v54, %v6300_v53  ;;  %v571_v9 = vunpack.c.h.b16 %v26_v55  ;;  %3329 = vmatpush.bf16.msrb.mxu0 %v6045_v63  ;;  %v4990_v34 = vld [vmem:[%s11085_s1 + $0x3d0] sm:$0xf0] }
  0x83   :  { %v6429_v10 = vor.u32 %v7292_v58, %v6428_v57  ;;  %3342 = vmatpush.bf16.msrb.mxu1 %v6173_v4  ;;  %v6830_v40 = vld [vmem:[%s11085_s1 + $0xa4] sm:$0xf]  ;;  %v4590_v43 = vld [vmem:[%s11085_s1 + $0xb0] sm:$0xf0]  ;;  %v4993_v46 = vor.u32 %v6930_v32, %v4990_v34 }
  0x84   :  { %v8280_v23 = vpack.c.b16 %v570_v3, %v570_v3  ;;  %3355 = vmatpush.bf16.msrb.mxu2 %v6301_v5  ;;  %v8293_v31 = vpack.c.b16 %v571_v9, %v571_v9  ;;  %v6862_v45 = vld [vmem:[%s11085_s1 + $0x1a4] sm:$0xf]  ;;  %v4718_v47 = vld [vmem:[%s11085_s1 + $0x1b0] sm:$0xf0]  ;;  %v4593_v52 = vor.u32 %v6830_v40, %v4590_v43 }
  0x85   :  { %3368 = vmatpush.bf16.msrb.mxu3 %v6429_v10  ;;  %v6894_v48 = vld [vmem:[%s11085_s1 + $0x2a4] sm:$0xf]  ;;  %v4846_v49 = vld [vmem:[%s11085_s1 + $0x2b0] sm:$0xf0]  ;;  %v4721_v53 = vor.u32 %v6862_v45, %v4718_v47 }
  0x86   :  { %3374 = vmatpush.bf16.msra.mxu0 %v4625_v11  ;;  %3343 = vmatmul.bf16.vlgmr.msrb.gmra.mxu1 %v8293_v31  ;;  %v6926_v50 = vld [vmem:[%s11085_s1 + $0x3a4] sm:$0xf]  ;;  %v4974_v51 = vld [vmem:[%s11085_s1 + $0x3b0] sm:$0xf0]  ;;  %v4849_v54 = vor.u32 %v6894_v48, %v4846_v49 }
  0x87   :  { %3387 = vmatpush.bf16.msra.mxu1 %v4753_v13  ;;  %3330 = vmatmul.bf16.vlgmr.msrb.gmra.mxu0 %v8280_v23  ;;  %v6826_v55 = vld [vmem:[%s11085_s1 + $0x84] sm:$0xf]  ;;  %v4574_v56 = vld [vmem:[%s11085_s1 + $0x90] sm:$0xf0]  ;;  %v4977_v58 = vor.u32 %v6926_v50, %v4974_v51 }
  0x88   :  { %3400 = vmatpush.bf16.msra.mxu2 %v4881_v14  ;;  %3369 = vmatmul.bf16.vlgmr.msrb.gmra.mxu3 %v8301_v35  ;;  %v6858_v57 = vld [vmem:[%s11085_s1 + $0x184] sm:$0xf]  ;;  %v4702_v59 = vld [vmem:[%s11085_s1 + $0x190] sm:$0xf0]  ;;  %v4577_v0 = vor.u32 %v6826_v55, %v4574_v56 }
  0x89   :  { %3413 = vmatpush.bf16.msra.mxu3 %v5009_v21  ;;  %3356 = vmatmul.bf16.vlgmr.msrb.gmra.mxu2 %v8291_v28  ;;  %v6890_v60 = vld [vmem:[%s11085_s1 + $0x284] sm:$0xf]  ;;  %v4830_v61 = vld [vmem:[%s11085_s1 + $0x290] sm:$0xf0]  ;;  %v4705_v1 = vor.u32 %v6858_v57, %v4702_v59 }
  0x8a   :  { %3375 = vmatpush.bf16.msra.mxu0 %v4609_v36  ;;  %v6922_v62 = vld [vmem:[%s11085_s1 + $0x384] sm:$0xf]  ;;  %v4958_v63 = vld [vmem:[%s11085_s1 + $0x390] sm:$0xf0]  ;;  %v4833_v2 = vor.u32 %v6890_v60, %v4830_v61 }
  0x8b   :  { %3388 = vmatpush.bf16.msra.mxu1 %v4737_v37  ;;  %v6822_v3 = vld [vmem:[%s11085_s1 + $0x64] sm:$0xf]  ;;  %v4558_v4 = vld [vmem:[%s11085_s1 + $0x70] sm:$0xf0]  ;;  %v4961_v6 = vor.u32 %v6922_v62, %v4958_v63 }
  0x8c   :  { %3401 = vmatpush.bf16.msra.mxu2 %v4865_v39  ;;  %v6854_v5 = vld [vmem:[%s11085_s1 + $0x164] sm:$0xf]  ;;  %v4686_v7 = vld [vmem:[%s11085_s1 + $0x170] sm:$0xf0]  ;;  %v4561_v12 = vor.u32 %v6822_v3, %v4558_v4 }
  0x8d   :  { %3414 = vmatpush.bf16.msra.mxu3 %v4993_v46  ;;  %v6886_v8 = vld [vmem:[%s11085_s1 + $0x264] sm:$0xf]  ;;  %v4814_v9 = vld [vmem:[%s11085_s1 + $0x270] sm:$0xf0]  ;;  %v4689_v13 = vor.u32 %v6854_v5, %v4686_v7 }
  0x8e   :  { %3376 = vmatpush.bf16.msra.mxu0 %v4593_v52  ;;  %v6918_v10 = vld [vmem:[%s11085_s1 + $0x364] sm:$0xf]  ;;  %v4942_v11 = vld [vmem:[%s11085_s1 + $0x370] sm:$0xf0]  ;;  %v4817_v14 = vor.u32 %v6886_v8, %v4814_v9 }
  0x8f   :  { %3389 = vmatpush.bf16.msra.mxu1 %v4721_v53  ;;  %v6818_v15 = vld [vmem:[%s11085_s1 + $0x44] sm:$0xf]  ;;  %v4542_v16 = vld [vmem:[%s11085_s1 + $0x50] sm:$0xf0]  ;;  %v4945_v21 = vor.u32 %v6918_v10, %v4942_v11 }
  0x90   :  { %3402 = vmatpush.bf16.msra.mxu2 %v4849_v54  ;;  %v6850_v17 = vld [vmem:[%s11085_s1 + $0x144] sm:$0xf]  ;;  %v4670_v24 = vld [vmem:[%s11085_s1 + $0x150] sm:$0xf0]  ;;  %v4545_v36 = vor.u32 %v6818_v15, %v4542_v16 }
  0x91   :  { %3415 = vmatpush.bf16.msra.mxu3 %v4977_v58  ;;  %v6882_v26 = vld [vmem:[%s11085_s1 + $0x244] sm:$0xf]  ;;  %v4798_v27 = vld [vmem:[%s11085_s1 + $0x250] sm:$0xf0]  ;;  %v4673_v37 = vor.u32 %v6850_v17, %v4670_v24 }
  0x92   :  { %3377 = vmatpush.bf16.msra.mxu0 %v4577_v0  ;;  %v6914_v32 = vld [vmem:[%s11085_s1 + $0x344] sm:$0xf]  ;;  %v4926_v34 = vld [vmem:[%s11085_s1 + $0x350] sm:$0xf0]  ;;  %v4801_v39 = vor.u32 %v6882_v26, %v4798_v27 }
  0x93   :  { %3390 = vmatpush.bf16.msra.mxu1 %v4705_v1  ;;  %v6814_v40 = vld [vmem:[%s11085_s1 + $0x24] sm:$0xf]  ;;  %v4526_v43 = vld [vmem:[%s11085_s1 + $0x30] sm:$0xf0]  ;;  %v4929_v46 = vor.u32 %v6914_v32, %v4926_v34 }
  0x94   :  { %3403 = vmatpush.bf16.msra.mxu2 %v4833_v2  ;;  %v6846_v45 = vld [vmem:[%s11085_s1 + $0x124] sm:$0xf]  ;;  %v4654_v47 = vld [vmem:[%s11085_s1 + $0x130] sm:$0xf0]  ;;  %v4529_v52 = vor.u32 %v6814_v40, %v4526_v43 }
  0x95   :  { %3416 = vmatpush.bf16.msra.mxu3 %v4961_v6  ;;  %v6878_v48 = vld [vmem:[%s11085_s1 + $0x224] sm:$0xf]  ;;  %v4782_v49 = vld [vmem:[%s11085_s1 + $0x230] sm:$0xf0]  ;;  %v4657_v55 = vor.u32 %v6846_v45, %v4654_v47 }
  0x96   :  { %3378 = vmatpush.bf16.msra.mxu0 %v4561_v12  ;;  %v6910_v50 = vld [vmem:[%s11085_s1 + $0x324] sm:$0xf]  ;;  %v4910_v51 = vld [vmem:[%s11085_s1 + $0x330] sm:$0xf0]  ;;  %v4785_v56 = vor.u32 %v6878_v48, %v4782_v49 }
  0x97   :  { %3391 = vmatpush.bf16.msra.mxu1 %v4689_v13  ;;  %v6810_v53 = vld [vmem:[%s11085_s1 + $0x4] sm:$0xf]  ;;  %v4510_v54 = vld [vmem:[%s11085_s1 + $0x10] sm:$0xf0]  ;;  %v4913_v60 = vor.u32 %v6910_v50, %v4910_v51 }
  0x98   :  { %3404 = vmatpush.bf16.msra.mxu2 %v4817_v14  ;;  %v6842_v57 = vld [vmem:[%s11085_s1 + $0x104] sm:$0xf]  ;;  %v4638_v58 = vld [vmem:[%s11085_s1 + $0x110] sm:$0xf0]  ;;  %v4513_v3 = vor.u32 %v6810_v53, %v4510_v54 }
  0x99   :  { %3417 = vmatpush.bf16.msra.mxu3 %v4945_v21  ;;  %v6874_v59 = vld [vmem:[%s11085_s1 + $0x204] sm:$0xf]  ;;  %v4766_v61 = vld [vmem:[%s11085_s1 + $0x210] sm:$0xf0]  ;;  %v4641_v7 = vor.u32 %v6842_v57, %v4638_v58 }
  0x9a   :  { %3379 = vmatpush.bf16.msra.mxu0 %v4545_v36  ;;  %v6906_v62 = vld [vmem:[%s11085_s1 + $0x304] sm:$0xf]  ;;  %v4894_v63 = vld [vmem:[%s11085_s1 + $0x310] sm:$0xf0]  ;;  %v4769_v8 = vor.u32 %v6874_v59, %v4766_v61 }
  0x9b   :  { %3392 = vmatpush.bf16.msra.mxu1 %v4673_v37  ;;  %v6966_v0 = vld [vmem:[%s11085_s1 + $0x4e4] sm:$0xf]  ;;  %v5134_v1 = vld [vmem:[%s11085_s1 + $0x4f0] sm:$0xf0]  ;;  %v4897_v11 = vor.u32 %v6906_v62, %v4894_v63 }
  0x9c   :  { %3405 = vmatpush.bf16.msra.mxu2 %v4801_v39  ;;  %v6998_v2 = vld [vmem:[%s11085_s1 + $0x5e4] sm:$0xf]  ;;  %v5262_v4 = vld [vmem:[%s11085_s1 + $0x5f0] sm:$0xf0]  ;;  %v5137_v12 = vor.u32 %v6966_v0, %v5134_v1 }
  0x9d   :  { %3418 = vmatpush.bf16.msra.mxu3 %v4929_v46  ;;  %v7030_v5 = vld [vmem:[%s11085_s1 + $0x6e4] sm:$0xf]  ;;  %v5390_v6 = vld [vmem:[%s11085_s1 + $0x6f0] sm:$0xf0]  ;;  %v5265_v13 = vor.u32 %v6998_v2, %v5262_v4 }
  0x9e   :  { %3380 = vmatpush.bf16.msra.mxu0 %v4529_v52  ;;  %v7062_v9 = vld [vmem:[%s11085_s1 + $0x7e4] sm:$0xf]  ;;  %v5518_v10 = vld [vmem:[%s11085_s1 + $0x7f0] sm:$0xf0]  ;;  %v5393_v14 = vor.u32 %v7030_v5, %v5390_v6 }
  0x9f   :  { %3393 = vmatpush.bf16.msra.mxu1 %v4657_v55  ;;  %v6962_v15 = vld [vmem:[%s11085_s1 + $0x4c4] sm:$0xf]  ;;  %v5118_v16 = vld [vmem:[%s11085_s1 + $0x4d0] sm:$0xf0]  ;;  %v5521_v21 = vor.u32 %v7062_v9, %v5518_v10  ;;  %v540_v10 = vld [vmem:[%s11087_s2] sm:$0xf] }
  0xa0   :  { %3406 = vmatpush.bf16.msra.mxu2 %v4785_v56  ;;  %v6994_v17 = vld [vmem:[%s11085_s1 + $0x5c4] sm:$0xf]  ;;  %v5246_v24 = vld [vmem:[%s11085_s1 + $0x5d0] sm:$0xf0]  ;;  %v5121_v36 = vor.u32 %v6962_v15, %v5118_v16 }
  0xa1   :  { %3419 = vmatpush.bf16.msra.mxu3 %v4913_v60  ;;  %v7026_v26 = vld [vmem:[%s11085_s1 + $0x6c4] sm:$0xf]  ;;  %v5374_v27 = vld [vmem:[%s11085_s1 + $0x6d0] sm:$0xf0]  ;;  %v5249_v37 = vor.u32 %v6994_v17, %v5246_v24  ;;  %v542_v24 = vperm.slane %v540_v10, 0 }
  0xa2   :  { %3381 = vmatpush.bf16.msra.mxu0 %v4513_v3  ;;  %v7058_v32 = vld [vmem:[%s11085_s1 + $0x7c4] sm:$0xf]  ;;  %v5502_v34 = vld [vmem:[%s11085_s1 + $0x7d0] sm:$0xf0]  ;;  %v5377_v39 = vor.u32 %v7026_v26, %v5374_v27 }
  0xa3   :  { %3394 = vmatpush.bf16.msra.mxu1 %v4641_v7  ;;  %v6958_v40 = vld [vmem:[%s11085_s1 + $0x4a4] sm:$0xf]  ;;  %v5102_v43 = vld [vmem:[%s11085_s1 + $0x4b0] sm:$0xf0]  ;;  %v5505_v46 = vor.u32 %v7058_v32, %v5502_v34 }
  0xa4   :  { %3407 = vmatpush.bf16.msra.mxu2 %v4769_v8  ;;  %v6990_v45 = vld [vmem:[%s11085_s1 + $0x5a4] sm:$0xf]  ;;  %v5230_v47 = vld [vmem:[%s11085_s1 + $0x5b0] sm:$0xf0]  ;;  %v5105_v52 = vor.u32 %v6958_v40, %v5102_v43 }
  0xa5   :  { %3420 = vmatpush.bf16.msra.mxu3 %v4897_v11  ;;  %v7022_v48 = vld [vmem:[%s11085_s1 + $0x6a4] sm:$0xf]  ;;  %v5358_v49 = vld [vmem:[%s11085_s1 + $0x6b0] sm:$0xf0]  ;;  %3382 = vmatmul.bf16.vlgmr.msra.gmra.mxu0 %v7715_v19  ;;  %v5233_v53 = vor.u32 %v6990_v45, %v5230_v47 }
  0xa6   :  { %3426 = vmatpush.bf16.msrb.mxu0 %v5137_v12  ;;  %v7054_v50 = vld [vmem:[%s11085_s1 + $0x7a4] sm:$0xf]  ;;  %v5486_v51 = vld [vmem:[%s11085_s1 + $0x7b0] sm:$0xf0]  ;;  %3395 = vmatmul.bf16.vlgmr.msra.gmra.mxu1 %v7719_v22  ;;  %v5361_v54 = vor.u32 %v7022_v48, %v5358_v49 }
  0xa7   :  { %3439 = vmatpush.bf16.msrb.mxu1 %v5265_v13  ;;  %3408 = vmatmul.bf16.vlgmr.msra.gmra.mxu2 %v7713_v18  ;;  %v6954_v55 = vld [vmem:[%s11085_s1 + $0x484] sm:$0xf]  ;;  %v5086_v56 = vld [vmem:[%s11085_s1 + $0x490] sm:$0xf0]  ;;  %v5489_v58 = vor.u32 %v7054_v50, %v5486_v51 }
  0xa8   :  { %3452 = vmatpush.bf16.msrb.mxu2 %v5393_v14  ;;  %3421 = vmatmul.bf16.vlgmr.msra.gmra.mxu3 %v7717_v20  ;;  %v6986_v57 = vld [vmem:[%s11085_s1 + $0x584] sm:$0xf]  ;;  %v5214_v59 = vld [vmem:[%s11085_s1 + $0x590] sm:$0xf0]  ;;  %v5089_v0 = vor.u32 %v6954_v55, %v5086_v56 }
  0xa9   :  { %3465 = vmatpush.bf16.msrb.mxu3 %v5521_v21  ;;  %v7018_v60 = vld [vmem:[%s11085_s1 + $0x684] sm:$0xf]  ;;  %v5342_v61 = vld [vmem:[%s11085_s1 + $0x690] sm:$0xf0]  ;;  %v5217_v2 = vor.u32 %v6986_v57, %v5214_v59 }
  0xaa   :  { %3427 = vmatpush.bf16.msrb.mxu0 %v5121_v36  ;;  %v7050_v62 = vld [vmem:[%s11085_s1 + $0x784] sm:$0xf]  ;;  %v5470_v63 = vld [vmem:[%s11085_s1 + $0x790] sm:$0xf0]  ;;  %v5345_v3 = vor.u32 %v7018_v60, %v5342_v61 }
  0xab   :  { %3440 = vmatpush.bf16.msrb.mxu1 %v5249_v37  ;;  %v6950_v1 = vld [vmem:[%s11085_s1 + $0x464] sm:$0xf]  ;;  %v5070_v4 = vld [vmem:[%s11085_s1 + $0x470] sm:$0xf0]  ;;  %v5473_v7 = vor.u32 %v7050_v62, %v5470_v63 }
  0xac   :  { %3453 = vmatpush.bf16.msrb.mxu2 %v5377_v39  ;;  %v6982_v5 = vld [vmem:[%s11085_s1 + $0x564] sm:$0xf]  ;;  %v5198_v6 = vld [vmem:[%s11085_s1 + $0x570] sm:$0xf0]  ;;  %v5073_v13 = vor.u32 %v6950_v1, %v5070_v4 }
  0xad   :  { %3466 = vmatpush.bf16.msrb.mxu3 %v5505_v46  ;;  %v7014_v8 = vld [vmem:[%s11085_s1 + $0x664] sm:$0xf]  ;;  %v5326_v9 = vld [vmem:[%s11085_s1 + $0x670] sm:$0xf0]  ;;  %v5201_v15 = vor.u32 %v6982_v5, %v5198_v6 }
  0xae   :  { %3428 = vmatpush.bf16.msrb.mxu0 %v5105_v52  ;;  %v7046_v11 = vld [vmem:[%s11085_s1 + $0x764] sm:$0xf]  ;;  %v5454_v12 = vld [vmem:[%s11085_s1 + $0x770] sm:$0xf0]  ;;  %v5329_v16 = vor.u32 %v7014_v8, %v5326_v9  ;;  %v3214_v8 = vpop.f32.mrf.mxu3 }
  0xaf   :  { %3441 = vmatpush.bf16.msrb.mxu1 %v5233_v53  ;;  %v6946_v14 = vld [vmem:[%s11085_s1 + $0x444] sm:$0xf]  ;;  %v5054_v17 = vld [vmem:[%s11085_s1 + $0x450] sm:$0xf0]  ;;  %v5457_v26 = vor.u32 %v7046_v11, %v5454_v12  ;;  %v3175_v40 = vpop.f32.mrf.mxu0  ;;  %v3188_v50 = vpop.f32.mrf.mxu1 }
  0xb0   :  { %3454 = vmatpush.bf16.msrb.mxu2 %v5361_v54  ;;  %v6978_v21 = vld [vmem:[%s11085_s1 + $0x544] sm:$0xf]  ;;  %v5182_v27 = vld [vmem:[%s11085_s1 + $0x550] sm:$0xf0]  ;;  %v5057_v39 = vor.u32 %v6946_v14, %v5054_v17  ;;  %v3176_v49 = vadd.f32 %v3175_v40, %v542_v24 }
  0xb1   :  { %3467 = vmatpush.bf16.msrb.mxu3 %v5489_v58  ;;  %v7010_v32 = vld [vmem:[%s11085_s1 + $0x644] sm:$0xf]  ;;  %v5310_v34 = vld [vmem:[%s11085_s1 + $0x650] sm:$0xf0]  ;;  %v5185_v43 = vor.u32 %v6978_v21, %v5182_v27 }
  0xb2   :  { %3429 = vmatpush.bf16.msrb.mxu0 %v5089_v0  ;;  %v7042_v36 = vld [vmem:[%s11085_s1 + $0x744] sm:$0xf]  ;;  %v5438_v37 = vld [vmem:[%s11085_s1 + $0x750] sm:$0xf0]  ;;  %v5313_v45 = vor.u32 %v7010_v32, %v5310_v34  ;;  %v3189_v57 = vadd.f32 %v3188_v50, %v3176_v49 }
  0xb3   :  { %3442 = vmatpush.bf16.msrb.mxu1 %v5217_v2  ;;  %v6942_v46 = vld [vmem:[%s11085_s1 + $0x424] sm:$0xf]  ;;  %v5038_v47 = vld [vmem:[%s11085_s1 + $0x430] sm:$0xf0]  ;;  %v5441_v51 = vor.u32 %v7042_v36, %v5438_v37  ;;  %v3201_v2 = vpop.f32.mrf.mxu2 }
  0xb4   :  { %3455 = vmatpush.bf16.msrb.mxu2 %v5345_v3  ;;  %v6974_v48 = vld [vmem:[%s11085_s1 + $0x524] sm:$0xf]  ;;  %v5166_v52 = vld [vmem:[%s11085_s1 + $0x530] sm:$0xf0]  ;;  %v5041_v58 = vor.u32 %v6942_v46, %v5038_v47 }
  0xb5   :  { %3468 = vmatpush.bf16.msrb.mxu3 %v5473_v7  ;;  %v7006_v53 = vld [vmem:[%s11085_s1 + $0x624] sm:$0xf]  ;;  %v5294_v54 = vld [vmem:[%s11085_s1 + $0x630] sm:$0xf0]  ;;  %v5169_v61 = vor.u32 %v6974_v48, %v5166_v52  ;;  %v3202_v7 = vadd.f32 %v3201_v2, %v3189_v57 }
  0xb6   :  { %3430 = vmatpush.bf16.msrb.mxu0 %v5073_v13  ;;  %v7038_v55 = vld [vmem:[%s11085_s1 + $0x724] sm:$0xf]  ;;  %v5422_v56 = vld [vmem:[%s11085_s1 + $0x730] sm:$0xf0]  ;;  %v5297_v62 = vor.u32 %v7006_v53, %v5294_v54  ;;  %v3216_v54 = vpop.f32.mrf.mxu3 }
  0xb7   :  { %3443 = vmatpush.bf16.msrb.mxu1 %v5201_v15  ;;  %v6938_v59 = vld [vmem:[%s11085_s1 + $0x404] sm:$0xf]  ;;  %v5022_v60 = vld [vmem:[%s11085_s1 + $0x410] sm:$0xf0]  ;;  %v5425_v3 = vor.u32 %v7038_v55, %v5422_v56  ;;  %v3177_v17 = vpop.f32.mrf.mxu0  ;;  %v3190_v32 = vpop.f32.mrf.mxu1 }
  0xb8   :  { %3456 = vmatpush.bf16.msrb.mxu2 %v5329_v16  ;;  %v6970_v63 = vld [vmem:[%s11085_s1 + $0x504] sm:$0xf]  ;;  %v5150_v0 = vld [vmem:[%s11085_s1 + $0x510] sm:$0xf0]  ;;  %v5025_v12 = vor.u32 %v6938_v59, %v5022_v60  ;;  %v8668_v16 = vadd.f32 %v3214_v8, %v3202_v7 }
  0xb9   :  { %3469 = vmatpush.bf16.msrb.mxu3 %v5457_v26  ;;  %v7002_v1 = vld [vmem:[%s11085_s1 + $0x604] sm:$0xf]  ;;  %v5278_v4 = vld [vmem:[%s11085_s1 + $0x610] sm:$0xf0]  ;;  %v5153_v21 = vor.u32 %v6970_v63, %v5150_v0 }
  0xba   :  { %3431 = vmatpush.bf16.msrb.mxu0 %v5057_v39  ;;  %v7034_v5 = vld [vmem:[%s11085_s1 + $0x704] sm:$0xf]  ;;  %v5406_v6 = vld [vmem:[%s11085_s1 + $0x710] sm:$0xf0]  ;;  %v5281_v24 = vor.u32 %v7002_v1, %v5278_v4 }
  0xbb   :  { %3444 = vmatpush.bf16.msrb.mxu1 %v5185_v43  ;;  %v7094_v9 = vld [vmem:[%s11085_s1 + $0x8e4] sm:$0xf]  ;;  %v5646_v10 = vld [vmem:[%s11085_s1 + $0x8f0] sm:$0xf0]  ;;  %v5409_v34 = vor.u32 %v7034_v5, %v5406_v6  ;;  %v3203_v52 = vpop.f32.mrf.mxu2 }
  0xbc   :  { %3457 = vmatpush.bf16.msrb.mxu2 %v5313_v45  ;;  %v7126_v11 = vld [vmem:[%s11085_s1 + $0x9e4] sm:$0xf]  ;;  %v5774_v13 = vld [vmem:[%s11085_s1 + $0x9f0] sm:$0xf0]  ;;  %v5649_v36 = vor.u32 %v7094_v9, %v5646_v10 }
  0xbd   :  { %3470 = vmatpush.bf16.msrb.mxu3 %v5441_v51  ;;  %v7158_v14 = vld [vmem:[%s11085_s1 + $0xae4] sm:$0xf]  ;;  %v5902_v15 = vld [vmem:[%s11085_s1 + $0xaf0] sm:$0xf0]  ;;  %v5777_v37 = vor.u32 %v7126_v11, %v5774_v13 }
  0xbe   :  { %3432 = vmatpush.bf16.msrb.mxu0 %v5041_v58  ;;  %v7190_v26 = vld [vmem:[%s11085_s1 + $0xbe4] sm:$0xf]  ;;  %v6030_v27 = vld [vmem:[%s11085_s1 + $0xbf0] sm:$0xf0]  ;;  %v5905_v39 = vor.u32 %v7158_v14, %v5902_v15 }
  0xbf   :  { %3445 = vmatpush.bf16.msrb.mxu1 %v5169_v61  ;;  %v7090_v40 = vld [vmem:[%s11085_s1 + $0x8c4] sm:$0xf]  ;;  %v5630_v43 = vld [vmem:[%s11085_s1 + $0x8d0] sm:$0xf0]  ;;  %v6033_v46 = vor.u32 %v7190_v26, %v6030_v27 }
  0xc0   :  { %3458 = vmatpush.bf16.msrb.mxu2 %v5297_v62  ;;  %v7122_v45 = vld [vmem:[%s11085_s1 + $0x9c4] sm:$0xf]  ;;  %v5758_v47 = vld [vmem:[%s11085_s1 + $0x9d0] sm:$0xf0]  ;;  %v5633_v53 = vor.u32 %v7090_v40, %v5630_v43 }
  0xc1   :  { %3471 = vmatpush.bf16.msrb.mxu3 %v5425_v3  ;;  %v7154_v48 = vld [vmem:[%s11085_s1 + $0xac4] sm:$0xf]  ;;  %v5886_v49 = vld [vmem:[%s11085_s1 + $0xad0] sm:$0xf0]  ;;  %v5761_v55 = vor.u32 %v7122_v45, %v5758_v47 }
  0xc2   :  { %3433 = vmatpush.bf16.msrb.mxu0 %v5025_v12  ;;  %v7186_v50 = vld [vmem:[%s11085_s1 + $0xbc4] sm:$0xf]  ;;  %v6014_v51 = vld [vmem:[%s11085_s1 + $0xbd0] sm:$0xf0]  ;;  %v5889_v56 = vor.u32 %v7154_v48, %v5886_v49 }
  0xc3   :  { %3446 = vmatpush.bf16.msrb.mxu1 %v5153_v21  ;;  %v7086_v57 = vld [vmem:[%s11085_s1 + $0x8a4] sm:$0xf]  ;;  %v5614_v58 = vld [vmem:[%s11085_s1 + $0x8b0] sm:$0xf0]  ;;  %v6017_v60 = vor.u32 %v7186_v50, %v6014_v51  ;;  %v3227_v15 = vpop.f32.mrf.mxu0 }
  0xc4   :  { %3459 = vmatpush.bf16.msrb.mxu2 %v5281_v24  ;;  %v7118_v59 = vld [vmem:[%s11085_s1 + $0x9a4] sm:$0xf]  ;;  %v5742_v61 = vld [vmem:[%s11085_s1 + $0x9b0] sm:$0xf0]  ;;  %v5617_v2 = vor.u32 %v7086_v57, %v5614_v58  ;;  %v3228_v32 = vadd.f32 %v3227_v15, %v8668_v16 }
  0xc5   :  { %3472 = vmatpush.bf16.msrb.mxu3 %v5409_v34  ;;  %v7150_v62 = vld [vmem:[%s11085_s1 + $0xaa4] sm:$0xf]  ;;  %v5870_v63 = vld [vmem:[%s11085_s1 + $0xab0] sm:$0xf0]  ;;  %3434 = vmatmul.bf16.vlgmr.msrb.gmra.mxu0 %v7877_v41  ;;  %v5745_v3 = vor.u32 %v7118_v59, %v5742_v61  ;;  %v3240_v34 = vpop.f32.mrf.mxu1 }
  0xc6   :  { %3478 = vmatpush.bf16.msra.mxu0 %v5649_v36  ;;  %v7182_v0 = vld [vmem:[%s11085_s1 + $0xba4] sm:$0xf]  ;;  %v5998_v1 = vld [vmem:[%s11085_s1 + $0xbb0] sm:$0xf0]  ;;  %3447 = vmatmul.bf16.vlgmr.msrb.gmra.mxu1 %v7881_v44  ;;  %v5873_v4 = vor.u32 %v7150_v62, %v5870_v63  ;;  %v3241_v45 = vadd.f32 %v3240_v34, %v3228_v32 }
  0xc7   :  { %3491 = vmatpush.bf16.msra.mxu1 %v5777_v37  ;;  %3460 = vmatmul.bf16.vlgmr.msrb.gmra.mxu2 %v7869_v38  ;;  %v7082_v5 = vld [vmem:[%s11085_s1 + $0x884] sm:$0xf]  ;;  %v5598_v6 = vld [vmem:[%s11085_s1 + $0x890] sm:$0xf0]  ;;  %v6001_v8 = vor.u32 %v7182_v0, %v5998_v1 }
  0xc8   :  { %3504 = vmatpush.bf16.msra.mxu2 %v5905_v39  ;;  %3473 = vmatmul.bf16.vlgmr.msrb.gmra.mxu3 %v7879_v42  ;;  %v7114_v7 = vld [vmem:[%s11085_s1 + $0x984] sm:$0xf]  ;;  %v5726_v9 = vld [vmem:[%s11085_s1 + $0x990] sm:$0xf0]  ;;  %v5601_v14 = vor.u32 %v7082_v5, %v5598_v6 }
  0xc9   :  { %3517 = vmatpush.bf16.msra.mxu3 %v6033_v46  ;;  %v7146_v10 = vld [vmem:[%s11085_s1 + $0xa84] sm:$0xf]  ;;  %v5854_v11 = vld [vmem:[%s11085_s1 + $0xa90] sm:$0xf0]  ;;  %v5729_v17 = vor.u32 %v7114_v7, %v5726_v9  ;;  %v3253_v52 = vpop.f32.mrf.mxu2 }
  0xca   :  { %3479 = vmatpush.bf16.msra.mxu0 %v5633_v53  ;;  %v7178_v12 = vld [vmem:[%s11085_s1 + $0xb84] sm:$0xf]  ;;  %v5982_v13 = vld [vmem:[%s11085_s1 + $0xb90] sm:$0xf0]  ;;  %v5857_v21 = vor.u32 %v7146_v10, %v5854_v11  ;;  %v3254_v57 = vadd.f32 %v3253_v52, %v3241_v45 }
  0xcb   :  { %3492 = vmatpush.bf16.msra.mxu1 %v5761_v55  ;;  %v7078_v24 = vld [vmem:[%s11085_s1 + $0x864] sm:$0xf]  ;;  %v5582_v26 = vld [vmem:[%s11085_s1 + $0x870] sm:$0xf0]  ;;  %v5985_v36 = vor.u32 %v7178_v12, %v5982_v13  ;;  %v3229_v63 = vpop.f32.mrf.mxu0 }
  0xcc   :  { %3505 = vmatpush.bf16.msra.mxu2 %v5889_v56  ;;  %v7110_v27 = vld [vmem:[%s11085_s1 + $0x964] sm:$0xf]  ;;  %v5710_v37 = vld [vmem:[%s11085_s1 + $0x970] sm:$0xf0]  ;;  %v5585_v46 = vor.u32 %v7078_v24, %v5582_v26  ;;  %v3266_v58 = vpop.f32.mrf.mxu3 }
  0xcd   :  { %3518 = vmatpush.bf16.msra.mxu3 %v6017_v60  ;;  %v7142_v39 = vld [vmem:[%s11085_s1 + $0xa64] sm:$0xf]  ;;  %v5838_v40 = vld [vmem:[%s11085_s1 + $0xa70] sm:$0xf0]  ;;  %v5713_v47 = vor.u32 %v7110_v27, %v5710_v37  ;;  %v8801_v62 = vadd.f32 %v3266_v58, %v3254_v57  ;;  %v3242_v5 = vpop.f32.mrf.mxu1 }
  0xce   :  { %3480 = vmatpush.bf16.msra.mxu0 %v5617_v2  ;;  %v7174_v43 = vld [vmem:[%s11085_s1 + $0xb64] sm:$0xf]  ;;  %v5966_v16 = vld [vmem:[%s11085_s1 + $0xb70] sm:$0xf0]  ;;  %v5841_v48 = vor.u32 %v7142_v39, %v5838_v40 }
  0xcf   :  { %3493 = vmatpush.bf16.msra.mxu1 %v5745_v3  ;;  %v7074_v49 = vld [vmem:[%s11085_s1 + $0x844] sm:$0xf]  ;;  %v5566_v50 = vld [vmem:[%s11085_s1 + $0x850] sm:$0xf0]  ;;  %v5969_v53 = vor.u32 %v7174_v43, %v5966_v16 }
  0xd0   :  { %3506 = vmatpush.bf16.msra.mxu2 %v5873_v4  ;;  %v7106_v51 = vld [vmem:[%s11085_s1 + $0x944] sm:$0xf]  ;;  %v5694_v54 = vld [vmem:[%s11085_s1 + $0x950] sm:$0xf0]  ;;  %v5569_v61 = vor.u32 %v7074_v49, %v5566_v50 }
  0xd1   :  { %3519 = vmatpush.bf16.msra.mxu3 %v6001_v8  ;;  %v7138_v55 = vld [vmem:[%s11085_s1 + $0xa44] sm:$0xf]  ;;  %v5822_v56 = vld [vmem:[%s11085_s1 + $0xa50] sm:$0xf0]  ;;  %v5697_v0 = vor.u32 %v7106_v51, %v5694_v54  ;;  %v3255_v27 = vpop.f32.mrf.mxu2 }
  0xd2   :  { %3481 = vmatpush.bf16.msra.mxu0 %v5601_v14  ;;  %v7170_v59 = vld [vmem:[%s11085_s1 + $0xb44] sm:$0xf]  ;;  %v5950_v60 = vld [vmem:[%s11085_s1 + $0xb50] sm:$0xf0]  ;;  %v5825_v1 = vor.u32 %v7138_v55, %v5822_v56 }
  0xd3   :  { %3494 = vmatpush.bf16.msra.mxu1 %v5729_v17  ;;  %v7070_v2 = vld [vmem:[%s11085_s1 + $0x824] sm:$0xf]  ;;  %v5550_v3 = vld [vmem:[%s11085_s1 + $0x830] sm:$0xf0]  ;;  %v5953_v6 = vor.u32 %v7170_v59, %v5950_v60 }
  0xd4   :  { %3507 = vmatpush.bf16.msra.mxu2 %v5857_v21  ;;  %v7102_v4 = vld [vmem:[%s11085_s1 + $0x924] sm:$0xf]  ;;  %v5678_v7 = vld [vmem:[%s11085_s1 + $0x930] sm:$0xf0]  ;;  %v5553_v12 = vor.u32 %v7070_v2, %v5550_v3  ;;  %v3268_v39 = vpop.f32.mrf.mxu3 }
  0xd5   :  { %3520 = vmatpush.bf16.msra.mxu3 %v5985_v36  ;;  %v7134_v8 = vld [vmem:[%s11085_s1 + $0xa24] sm:$0xf]  ;;  %v5806_v9 = vld [vmem:[%s11085_s1 + $0xa30] sm:$0xf0]  ;;  %v5681_v15 = vor.u32 %v7102_v4, %v5678_v7 }
  0xd6   :  { %3482 = vmatpush.bf16.msra.mxu0 %v5585_v46  ;;  %v7166_v10 = vld [vmem:[%s11085_s1 + $0xb24] sm:$0xf]  ;;  %v5934_v11 = vld [vmem:[%s11085_s1 + $0xb30] sm:$0xf0]  ;;  %v5809_v17 = vor.u32 %v7134_v8, %v5806_v9 }
  0xd7   :  { %3495 = vmatpush.bf16.msra.mxu1 %v5713_v47  ;;  %v7066_v13 = vld [vmem:[%s11085_s1 + $0x804] sm:$0xf]  ;;  %v5534_v14 = vld [vmem:[%s11085_s1 + $0x810] sm:$0xf0]  ;;  %v5937_v32 = vor.u32 %v7166_v10, %v5934_v11 }
  0xd8   :  { %3508 = vmatpush.bf16.msra.mxu2 %v5841_v48  ;;  %v7098_v21 = vld [vmem:[%s11085_s1 + $0x904] sm:$0xf]  ;;  %v5662_v24 = vld [vmem:[%s11085_s1 + $0x910] sm:$0xf0]  ;;  %v5537_v45 = vor.u32 %v7066_v13, %v5534_v14 }
  0xd9   :  { %3521 = vmatpush.bf16.msra.mxu3 %v5969_v53  ;;  %v7130_v26 = vld [vmem:[%s11085_s1 + $0xa04] sm:$0xf]  ;;  %v5790_v34 = vld [vmem:[%s11085_s1 + $0xa10] sm:$0xf0]  ;;  %v5665_v49 = vor.u32 %v7098_v21, %v5662_v24 }
  0xda   :  { %3483 = vmatpush.bf16.msra.mxu0 %v5569_v61  ;;  %v7162_v36 = vld [vmem:[%s11085_s1 + $0xb04] sm:$0xf]  ;;  %v5918_v37 = vld [vmem:[%s11085_s1 + $0xb10] sm:$0xf0]  ;;  %v5793_v50 = vor.u32 %v7130_v26, %v5790_v34 }
  0xdb   :  { %3496 = vmatpush.bf16.msra.mxu1 %v5697_v0  ;;  %v7222_v40 = vld [vmem:[%s11085_s1 + $0xce4] sm:$0xf]  ;;  %v6158_v43 = vld [vmem:[%s11085_s1 + $0xcf0] sm:$0xf0]  ;;  %v5921_v53 = vor.u32 %v7162_v36, %v5918_v37 }
  0xdc   :  { %3509 = vmatpush.bf16.msra.mxu2 %v5825_v1  ;;  %v7254_v16 = vld [vmem:[%s11085_s1 + $0xde4] sm:$0xf]  ;;  %v6286_v46 = vld [vmem:[%s11085_s1 + $0xdf0] sm:$0xf0]  ;;  %v6161_v54 = vor.u32 %v7222_v40, %v6158_v43 }
  0xdd   :  { %3522 = vmatpush.bf16.msra.mxu3 %v5953_v6  ;;  %v7286_v47 = vld [vmem:[%s11085_s1 + $0xee4] sm:$0xf]  ;;  %v6414_v48 = vld [vmem:[%s11085_s1 + $0xef0] sm:$0xf0]  ;;  %v6289_v55 = vor.u32 %v7254_v16, %v6286_v46 }
  0xde   :  { %3484 = vmatpush.bf16.msra.mxu0 %v5553_v12  ;;  %v7318_v51 = vld [vmem:[%s11085_s1 + $0xfe4] sm:$0xf]  ;;  %v6542_v52 = vld [vmem:[%s11085_s1 + $0xff0] sm:$0xf0]  ;;  %v6417_v56 = vor.u32 %v7286_v47, %v6414_v48 }
  0xdf   :  { %3497 = vmatpush.bf16.msra.mxu1 %v5681_v15  ;;  %v7218_v57 = vld [vmem:[%s11085_s1 + $0xcc4] sm:$0xf]  ;;  %v6142_v58 = vld [vmem:[%s11085_s1 + $0xcd0] sm:$0xf0]  ;;  %v6545_v60 = vor.u32 %v7318_v51, %v6542_v52 }
  0xe0   :  { %3510 = vmatpush.bf16.msra.mxu2 %v5809_v17  ;;  %v7250_v59 = vld [vmem:[%s11085_s1 + $0xdc4] sm:$0xf]  ;;  %v6270_v61 = vld [vmem:[%s11085_s1 + $0xdd0] sm:$0xf0]  ;;  %v6145_v3 = vor.u32 %v7218_v57, %v6142_v58 }
  0xe1   :  { %3523 = vmatpush.bf16.msra.mxu3 %v5937_v32  ;;  %v7282_v63 = vld [vmem:[%s11085_s1 + $0xec4] sm:$0xf]  ;;  %v6398_v0 = vld [vmem:[%s11085_s1 + $0xed0] sm:$0xf0]  ;;  %v6273_v4 = vor.u32 %v7250_v59, %v6270_v61 }
  0xe2   :  { %3485 = vmatpush.bf16.msra.mxu0 %v5537_v45  ;;  %v7314_v1 = vld [vmem:[%s11085_s1 + $0xfc4] sm:$0xf]  ;;  %v6526_v2 = vld [vmem:[%s11085_s1 + $0xfd0] sm:$0xf0]  ;;  %v6401_v5 = vor.u32 %v7282_v63, %v6398_v0 }
  0xe3   :  { %3498 = vmatpush.bf16.msra.mxu1 %v5665_v49  ;;  %v7214_v6 = vld [vmem:[%s11085_s1 + $0xca4] sm:$0xf]  ;;  %v6126_v7 = vld [vmem:[%s11085_s1 + $0xcb0] sm:$0xf0]  ;;  %v6529_v9 = vor.u32 %v7314_v1, %v6526_v2 }
  0xe4   :  { %3511 = vmatpush.bf16.msra.mxu2 %v5793_v50  ;;  %v7246_v8 = vld [vmem:[%s11085_s1 + $0xda4] sm:$0xf]  ;;  %v6254_v10 = vld [vmem:[%s11085_s1 + $0xdb0] sm:$0xf0]  ;;  %v6129_v15 = vor.u32 %v7214_v6, %v6126_v7  ;;  %v3279_v39 = vpop.f32.mrf.mxu0 }
  0xe5   :  { %3524 = vmatpush.bf16.msra.mxu3 %v5921_v53  ;;  %3486 = vmatmul.bf16.vlgmr.msra.gmra.mxu0 %v8070_v25  ;;  %v7278_v11 = vld [vmem:[%s11085_s1 + $0xea4] sm:$0xf]  ;;  %v6382_v12 = vld [vmem:[%s11085_s1 + $0xeb0] sm:$0xf0]  ;;  %v6257_v17 = vor.u32 %v7246_v8, %v6254_v10  ;;  %v3280_v16 = vadd.f32 %v3279_v39, %v8801_v62  ;;  %v3292_v46 = vpop.f32.mrf.mxu1 }
  0xe6   :  { %3530 = vmatpush.bf16.msrb.mxu0 %v6161_v54  ;;  %3499 = vmatmul.bf16.vlgmr.msra.gmra.mxu1 %v8083_v30  ;;  %v7310_v13 = vld [vmem:[%s11085_s1 + $0xfa4] sm:$0xf]  ;;  %v6510_v14 = vld [vmem:[%s11085_s1 + $0xfb0] sm:$0xf0]  ;;  %v6385_v21 = vor.u32 %v7278_v11, %v6382_v12 }
  0xe7   :  { %3543 = vmatpush.bf16.msrb.mxu1 %v6289_v55  ;;  %3512 = vmatmul.bf16.vlgmr.msra.gmra.mxu2 %v8081_v29  ;;  %v7210_v24 = vld [vmem:[%s11085_s1 + $0xc84] sm:$0xf]  ;;  %v6110_v26 = vld [vmem:[%s11085_s1 + $0xc90] sm:$0xf0]  ;;  %v6513_v32 = vor.u32 %v7310_v13, %v6510_v14  ;;  %v3293_v52 = vadd.f32 %v3292_v46, %v3280_v16 }
  0xe8   :  { %3556 = vmatpush.bf16.msrb.mxu2 %v6417_v56  ;;  %3525 = vmatmul.bf16.vlgmr.msra.gmra.mxu3 %v8091_v33  ;;  %v7242_v27 = vld [vmem:[%s11085_s1 + $0xd84] sm:$0xf]  ;;  %v6238_v34 = vld [vmem:[%s11085_s1 + $0xd90] sm:$0xf0]  ;;  %v6113_v45 = vor.u32 %v7210_v24, %v6110_v26 }
  0xe9   :  { %3569 = vmatpush.bf16.msrb.mxu3 %v6545_v60  ;;  %v7274_v36 = vld [vmem:[%s11085_s1 + $0xe84] sm:$0xf]  ;;  %v6366_v37 = vld [vmem:[%s11085_s1 + $0xe90] sm:$0xf0]  ;;  %v6241_v47 = vor.u32 %v7242_v27, %v6238_v34  ;;  %v3305_v2 = vpop.f32.mrf.mxu2 }
  0xea   :  { %3531 = vmatpush.bf16.msrb.mxu0 %v6145_v3  ;;  %v7306_v40 = vld [vmem:[%s11085_s1 + $0xf84] sm:$0xf]  ;;  %v6494_v43 = vld [vmem:[%s11085_s1 + $0xf90] sm:$0xf0]  ;;  %v6369_v48 = vor.u32 %v7274_v36, %v6366_v37  ;;  %v3306_v6 = vadd.f32 %v3305_v2, %v3293_v52 }
  0xeb   :  { %3544 = vmatpush.bf16.msrb.mxu1 %v6273_v4  ;;  %v7206_v49 = vld [vmem:[%s11085_s1 + $0xc64] sm:$0xf]  ;;  %v6094_v50 = vld [vmem:[%s11085_s1 + $0xc70] sm:$0xf0]  ;;  %v6497_v62 = vor.u32 %v7306_v40, %v6494_v43 }
  0xec   :  { %3557 = vmatpush.bf16.msrb.mxu2 %v6401_v5  ;;  %v7238_v51 = vld [vmem:[%s11085_s1 + $0xd64] sm:$0xf]  ;;  %v6222_v53 = vld [vmem:[%s11085_s1 + $0xd70] sm:$0xf0]  ;;  %v6097_v58 = vor.u32 %v7206_v49, %v6094_v50  ;;  %v3281_v10 = vpop.f32.mrf.mxu0 }
  0xed   :  { %3570 = vmatpush.bf16.msrb.mxu3 %v6529_v9  ;;  %v7270_v54 = vld [vmem:[%s11085_s1 + $0xe64] sm:$0xf]  ;;  %v6350_v55 = vld [vmem:[%s11085_s1 + $0xe70] sm:$0xf0]  ;;  %v6225_v59 = vor.u32 %v7238_v51, %v6222_v53  ;;  %v3318_v7 = vpop.f32.mrf.mxu3  ;;  %v3294_v12 = vpop.f32.mrf.mxu1  ;;  %v4628_v53 = vld [vmem:[%s11085_s1 + $0xe8] sm:$0xf] }
  0xee   :  { %3532 = vmatpush.bf16.msrb.mxu0 %v6129_v15  ;;  %v7302_v56 = vld [vmem:[%s11085_s1 + $0xf64] sm:$0xf]  ;;  %v6478_v57 = vld [vmem:[%s11085_s1 + $0xf70] sm:$0xf0]  ;;  %v6353_v60 = vor.u32 %v7270_v54, %v6350_v55  ;;  %v9000_v13 = vadd.f32 %v3318_v7, %v3306_v6  ;;  %v6841_v54 = vld [vmem:[%s11085_s1 + $0xf4] sm:$0xf0] }
  0xef   :  { %3545 = vmatpush.bf16.msrb.mxu1 %v6257_v17  ;;  %v7202_v61 = vld [vmem:[%s11085_s1 + $0xc44] sm:$0xf]  ;;  %v6078_v63 = vld [vmem:[%s11085_s1 + $0xc50] sm:$0xf0]  ;;  %v6481_v1 = vor.u32 %v7302_v56, %v6478_v57  ;;  %v4756_v55 = vld [vmem:[%s11085_s1 + $0x1e8] sm:$0xf] }
  0xf0   :  { %3558 = vmatpush.bf16.msrb.mxu2 %v6385_v21  ;;  %v7234_v0 = vld [vmem:[%s11085_s1 + $0xd44] sm:$0xf]  ;;  %v6206_v3 = vld [vmem:[%s11085_s1 + $0xd50] sm:$0xf0]  ;;  %v6081_v11 = vor.u32 %v7202_v61, %v6078_v63  ;;  %v4612_v6 = vld [vmem:[%s11085_s1 + $0xc8] sm:$0xf] }
  0xf1   :  { %3571 = vmatpush.bf16.msrb.mxu3 %v6513_v32  ;;  %v7266_v4 = vld [vmem:[%s11085_s1 + $0xe44] sm:$0xf]  ;;  %v6334_v5 = vld [vmem:[%s11085_s1 + $0xe50] sm:$0xf0]  ;;  %v6209_v14 = vor.u32 %v7234_v0, %v6206_v3  ;;  %v3307_v52 = vpop.f32.mrf.mxu2  ;;  %v5012_v0 = vld [vmem:[%s11085_s1 + $0x3e8] sm:$0xf]  ;;  %v4629_v3 = vor.u32 %v6841_v54, %v4628_v53 }
  0xf2   :  { %3533 = vmatpush.bf16.msrb.mxu0 %v6113_v45  ;;  %v7298_v8 = vld [vmem:[%s11085_s1 + $0xf44] sm:$0xf]  ;;  %v6462_v9 = vld [vmem:[%s11085_s1 + $0xf50] sm:$0xf0]  ;;  %v6337_v15 = vor.u32 %v7266_v4, %v6334_v5  ;;  %v6837_v7 = vld [vmem:[%s11085_s1 + $0xd4] sm:$0xf0] }
  0xf3   :  { %3546 = vmatpush.bf16.msrb.mxu1 %v6241_v47  ;;  %v7198_v17 = vld [vmem:[%s11085_s1 + $0xc24] sm:$0xf]  ;;  %v6062_v21 = vld [vmem:[%s11085_s1 + $0xc30] sm:$0xf0]  ;;  %v6465_v26 = vor.u32 %v7298_v8, %v6462_v9  ;;  %v4740_v8 = vld [vmem:[%s11085_s1 + $0x1c8] sm:$0xf] }
  0xf4   :  { %3559 = vmatpush.bf16.msrb.mxu2 %v6369_v48  ;;  %v7230_v24 = vld [vmem:[%s11085_s1 + $0xd24] sm:$0xf]  ;;  %v6190_v27 = vld [vmem:[%s11085_s1 + $0xd30] sm:$0xf0]  ;;  %v6065_v39 = vor.u32 %v7198_v17, %v6062_v21  ;;  %v6869_v10 = vld [vmem:[%s11085_s1 + $0x1d4] sm:$0xf0]  ;;  %v4613_v17 = vor.u32 %v6837_v7, %v4612_v6 }
  0xf5   :  { %3572 = vmatpush.bf16.msrb.mxu3 %v6497_v62  ;;  %v7262_v32 = vld [vmem:[%s11085_s1 + $0xe24] sm:$0xf]  ;;  %v6318_v34 = vld [vmem:[%s11085_s1 + $0xe30] sm:$0xf0]  ;;  %v6193_v16 = vor.u32 %v7230_v24, %v6190_v27  ;;  %v3320_v56 = vpop.f32.mrf.mxu3  ;;  %v6901_v12 = vld [vmem:[%s11085_s1 + $0x2d4] sm:$0xf0]  ;;  %v4741_v21 = vor.u32 %v6869_v10, %v4740_v8 }
  0xf6   :  { %3534 = vmatpush.bf16.msrb.mxu0 %v6097_v58  ;;  %v7294_v36 = vld [vmem:[%s11085_s1 + $0xf24] sm:$0xf]  ;;  %v6446_v37 = vld [vmem:[%s11085_s1 + $0xf30] sm:$0xf0]  ;;  %v6321_v45 = vor.u32 %v7262_v32, %v6318_v34  ;;  %v6873_v58 = vld [vmem:[%s11085_s1 + $0x1f4] sm:$0xf0] }
  0xf7   :  { %3547 = vmatpush.bf16.msrb.mxu1 %v6225_v59  ;;  %v7194_v40 = vld [vmem:[%s11085_s1 + $0xc04] sm:$0xf]  ;;  %v6046_v43 = vld [vmem:[%s11085_s1 + $0xc10] sm:$0xf0]  ;;  %v6449_v49 = vor.u32 %v7294_v36, %v6446_v37  ;;  %v4884_v59 = vld [vmem:[%s11085_s1 + $0x2e8] sm:$0xf]  ;;  %v4757_v4 = vor.u32 %v6873_v58, %v4756_v55 }
  0xf8   :  { %3560 = vmatpush.bf16.msrb.mxu2 %v6353_v60  ;;  %v7226_v46 = vld [vmem:[%s11085_s1 + $0xd04] sm:$0xf]  ;;  %v6174_v47 = vld [vmem:[%s11085_s1 + $0xd10] sm:$0xf0]  ;;  %v6049_v57 = vor.u32 %v7194_v40, %v6046_v43  ;;  %v6905_v60 = vld [vmem:[%s11085_s1 + $0x2f4] sm:$0xf0] }
  0xf9   :  { %3573 = vmatpush.bf16.msrb.mxu3 %v6481_v1  ;;  %v7258_v48 = vld [vmem:[%s11085_s1 + $0xe04] sm:$0xf]  ;;  %v6302_v50 = vld [vmem:[%s11085_s1 + $0xe10] sm:$0xf0]  ;;  %v6177_v61 = vor.u32 %v7226_v46, %v6174_v47  ;;  %v6937_v1 = vld [vmem:[%s11085_s1 + $0x3f4] sm:$0xf0]  ;;  %v4885_v5 = vor.u32 %v6905_v60, %v4884_v59 }
  0xfa   :  { %3535 = vmatpush.bf16.msrb.mxu0 %v6081_v11  ;;  %v7290_v51 = vld [vmem:[%s11085_s1 + $0xf04] sm:$0xf]  ;;  %v6430_v62 = vld [vmem:[%s11085_s1 + $0xf10] sm:$0xf0]  ;;  %v6305_v63 = vor.u32 %v7258_v48, %v6302_v50  ;;  %v5013_v9 = vor.u32 %v6937_v1, %v5012_v0  ;;  %v4868_v11 = vld [vmem:[%s11085_s1 + $0x2c8] sm:$0xf] }
  0xfb   :  { %3548 = vmatpush.bf16.msrb.mxu1 %v6209_v14  ;;  %v6433_v2 = vor.u32 %v7290_v51, %v6430_v62  ;;  %v4996_v14 = vld [vmem:[%s11085_s1 + $0x3c8] sm:$0xf]  ;;  %v4869_v24 = vor.u32 %v6901_v12, %v4868_v11  ;;  %v6833_v27 = vld [vmem:[%s11085_s1 + $0xb4] sm:$0xf0] }
  0xfc   :  { %3561 = vmatpush.bf16.msrb.mxu2 %v6337_v15  ;;  %v6933_v15 = vld [vmem:[%s11085_s1 + $0x3d4] sm:$0xf0]  ;;  %v4724_v32 = vld [vmem:[%s11085_s1 + $0x1a8] sm:$0xf] }
  0xfd   :  { %3574 = vmatpush.bf16.msrb.mxu3 %v6465_v26  ;;  %v4596_v26 = vld [vmem:[%s11085_s1 + $0xa8] sm:$0xf]  ;;  %v4997_v34 = vor.u32 %v6933_v15, %v4996_v14  ;;  %v6865_v36 = vld [vmem:[%s11085_s1 + $0x1b4] sm:$0xf0] }
  0xfe   :  { %3536 = vmatpush.bf16.msrb.mxu0 %v6065_v39  ;;  %v4852_v37 = vld [vmem:[%s11085_s1 + $0x2a8] sm:$0xf]  ;;  %v6897_v39 = vld [vmem:[%s11085_s1 + $0x2b4] sm:$0xf0] }
  0xff   :  { %3549 = vmatpush.bf16.msrb.mxu1 %v6193_v16  ;;  %v4980_v40 = vld [vmem:[%s11085_s1 + $0x3a8] sm:$0xf]  ;;  %v6929_v43 = vld [vmem:[%s11085_s1 + $0x3b4] sm:$0xf0]  ;;  %v4597_v16 = vor.u32 %v6833_v27, %v4596_v26  ;;  %v4853_v46 = vor.u32 %v6897_v39, %v4852_v37 }
 0x100   :  { %3562 = vmatpush.bf16.msrb.mxu2 %v6321_v45  ;;  %v4725_v45 = vor.u32 %v6865_v36, %v4724_v32  ;;  %v4580_v47 = vld [vmem:[%s11085_s1 + $0x88] sm:$0xf]  ;;  %v6829_v48 = vld [vmem:[%s11085_s1 + $0x94] sm:$0xf0]  ;;  %v4981_v50 = vor.u32 %v6929_v43, %v4980_v40 }
 0x101   :  { %3575 = vmatpush.bf16.msrb.mxu3 %v6449_v49  ;;  %v4708_v49 = vld [vmem:[%s11085_s1 + $0x188] sm:$0xf]  ;;  %v6861_v51 = vld [vmem:[%s11085_s1 + $0x194] sm:$0xf0] }
 0x102   :  { %3537 = vmatpush.bf16.msrb.mxu0 %v6049_v57  ;;  %v4836_v62 = vld [vmem:[%s11085_s1 + $0x288] sm:$0xf]  ;;  %v6893_v52 = vld [vmem:[%s11085_s1 + $0x294] sm:$0xf0]  ;;  %v4581_v57 = vor.u32 %v6829_v48, %v4580_v47  ;;  %v4709_v59 = vor.u32 %v6861_v51, %v4708_v49 }
 0x103   :  { %3550 = vmatpush.bf16.msrb.mxu1 %v6177_v61  ;;  %v4964_v54 = vld [vmem:[%s11085_s1 + $0x388] sm:$0xf]  ;;  %v6925_v55 = vld [vmem:[%s11085_s1 + $0x394] sm:$0xf0]  ;;  %v3344_v58 = vpop.f32.mrf.mxu1  ;;  %v4837_v60 = vor.u32 %v6893_v52, %v4836_v62 }
 0x104   :  { %3563 = vmatpush.bf16.msrb.mxu2 %v6305_v63  ;;  %v3331_v53 = vpop.f32.mrf.mxu0  ;;  %v4564_v61 = vld [vmem:[%s11085_s1 + $0x68] sm:$0xf]  ;;  %v6825_v63 = vld [vmem:[%s11085_s1 + $0x74] sm:$0xf0] }
 0x105   :  { %3576 = vmatpush.bf16.msrb.mxu3 %v6433_v2  ;;  %3538 = vmatmul.bf16.vlgmr.msrb.gmra.mxu0 %v8280_v23  ;;  %v3332_v56 = vadd.f32 %v3331_v53, %v9000_v13  ;;  %v4692_v0 = vld [vmem:[%s11085_s1 + $0x168] sm:$0xf]  ;;  %v4965_v13 = vor.u32 %v6925_v55, %v4964_v54  ;;  %v6857_v2 = vld [vmem:[%s11085_s1 + $0x174] sm:$0xf0]  ;;  %v4565_v7 = vor.u32 %v6825_v63, %v4564_v61 }
 0x106   :  { %3582 = vmatpush.bf16.msra.mxu0 %v4629_v3  ;;  %3551 = vmatmul.bf16.vlgmr.msrb.gmra.mxu1 %v8293_v31  ;;  %v4820_v3 = vld [vmem:[%s11085_s1 + $0x268] sm:$0xf]  ;;  %v6921_v6 = vld [vmem:[%s11085_s1 + $0x374] sm:$0xf0]  ;;  %v4693_v8 = vor.u32 %v6857_v2, %v4692_v0 }
 0x107   :  { %3595 = vmatpush.bf16.msra.mxu1 %v4757_v4  ;;  %3564 = vmatmul.bf16.vlgmr.msrb.gmra.mxu2 %v8291_v28  ;;  %v3345_v1 = vadd.f32 %v3344_v58, %v3332_v56  ;;  %v6889_v4 = vld [vmem:[%s11085_s1 + $0x274] sm:$0xf0]  ;;  %v4548_v10 = vld [vmem:[%s11085_s1 + $0x48] sm:$0xf] }
 0x108   :  { %3608 = vmatpush.bf16.msra.mxu2 %v4885_v5  ;;  %3577 = vmatmul.bf16.vlgmr.msrb.gmra.mxu3 %v8301_v35  ;;  %v4948_v5 = vld [vmem:[%s11085_s1 + $0x368] sm:$0xf]  ;;  %v6821_v11 = vld [vmem:[%s11085_s1 + $0x54] sm:$0xf0] }
 0x109   :  { %3621 = vmatpush.bf16.msra.mxu3 %v5013_v9  ;;  %v4821_v9 = vor.u32 %v6889_v4, %v4820_v3  ;;  %v4676_v12 = vld [vmem:[%s11085_s1 + $0x148] sm:$0xf]  ;;  %v4949_v14 = vor.u32 %v6921_v6, %v4948_v5  ;;  %v4549_v37 = vor.u32 %v6821_v11, %v4548_v10  ;;  %v6849_v49 = vld [vmem:[%s11085_s1 + $0x134] sm:$0xf0] }
 0x10a   :  { %3583 = vmatpush.bf16.msra.mxu0 %v4613_v17  ;;  %v6853_v17 = vld [vmem:[%s11085_s1 + $0x154] sm:$0xf0]  ;;  %v4932_v32 = vld [vmem:[%s11085_s1 + $0x348] sm:$0xf] }
 0x10b   :  { %3596 = vmatpush.bf16.msra.mxu1 %v4741_v21  ;;  %v4804_v21 = vld [vmem:[%s11085_s1 + $0x248] sm:$0xf]  ;;  %v3370_v27 = vpop.f32.mrf.mxu3  ;;  %v3346_v39 = vpop.f32.mrf.mxu1  ;;  %v4677_v43 = vor.u32 %v6853_v17, %v4676_v12  ;;  %v6881_v51 = vld [vmem:[%s11085_s1 + $0x234] sm:$0xf0] }
 0x10c   :  { %3609 = vmatpush.bf16.msra.mxu2 %v4869_v24  ;;  %v3357_v15 = vpop.f32.mrf.mxu2  ;;  %v6885_v24 = vld [vmem:[%s11085_s1 + $0x254] sm:$0xf0]  ;;  %v3333_v36 = vpop.f32.mrf.mxu0  ;;  %v4660_v47 = vld [vmem:[%s11085_s1 + $0x128] sm:$0xf] }
 0x10d   :  { %3622 = vmatpush.bf16.msra.mxu3 %v4997_v34  ;;  %v3358_v26 = vadd.f32 %v3357_v15, %v3345_v1  ;;  %v6917_v34 = vld [vmem:[%s11085_s1 + $0x354] sm:$0xf0]  ;;  %v4916_v62 = vld [vmem:[%s11085_s1 + $0x328] sm:$0xf]  ;;  %v4661_v56 = vor.u32 %v6849_v49, %v4660_v47 }
 0x10e   :  { %3584 = vmatpush.bf16.msra.mxu0 %v4597_v16  ;;  %v4805_v16 = vor.u32 %v6885_v24, %v4804_v21  ;;  %v4933_v48 = vor.u32 %v6917_v34, %v4932_v32  ;;  %v6913_v52 = vld [vmem:[%s11085_s1 + $0x334] sm:$0xf0]  ;;  %v4516_v54 = vld [vmem:[%s11085_s1 + $0x8] sm:$0xf] }
 0x10f   :  { %3597 = vmatpush.bf16.msra.mxu1 %v4725_v45  ;;  %v9199_v40 = vadd.f32 %v3370_v27, %v3358_v26  ;;  %v4532_v45 = vld [vmem:[%s11085_s1 + $0x28] sm:$0xf]  ;;  %v6813_v55 = vld [vmem:[%s11085_s1 + $0x14] sm:$0xf0]  ;;  %v4917_v61 = vor.u32 %v6913_v52, %v4916_v62 }
 0x110   :  { %3610 = vmatpush.bf16.msra.mxu2 %v4853_v46  ;;  %v6817_v46 = vld [vmem:[%s11085_s1 + $0x34] sm:$0xf0]  ;;  %v4644_v58 = vld [vmem:[%s11085_s1 + $0x108] sm:$0xf]  ;;  %v4517_v6 = vor.u32 %v6813_v55, %v4516_v54 }
 0x111   :  { %3623 = vmatpush.bf16.msra.mxu3 %v4981_v50  ;;  %v4788_v50 = vld [vmem:[%s11085_s1 + $0x228] sm:$0xf]  ;;  %v4533_v53 = vor.u32 %v6817_v46, %v4532_v45  ;;  %v6877_v63 = vld [vmem:[%s11085_s1 + $0x214] sm:$0xf0] }
 0x112   :  { %3585 = vmatpush.bf16.msra.mxu0 %v4581_v57  ;;  %v4789_v57 = vor.u32 %v6881_v51, %v4788_v50  ;;  %v4900_v0 = vld [vmem:[%s11085_s1 + $0x308] sm:$0xf]  ;;  %v6969_v3 = vld [vmem:[%s11085_s1 + $0x4f4] sm:$0xf0] }
 0x113   :  { %3598 = vmatpush.bf16.msra.mxu1 %v4709_v59  ;;  %v6845_v59 = vld [vmem:[%s11085_s1 + $0x114] sm:$0xf0]  ;;  %v5140_v2 = vld [vmem:[%s11085_s1 + $0x4e8] sm:$0xf]  ;;  %v3372_v5 = vpop.f32.mrf.mxu3 }
 0x114   :  { %3611 = vmatpush.bf16.msra.mxu2 %v4837_v60  ;;  %v4772_v60 = vld [vmem:[%s11085_s1 + $0x208] sm:$0xf]  ;;  %v3359_v1 = vpop.f32.mrf.mxu2  ;;  %v4645_v10 = vor.u32 %v6845_v59, %v4644_v58  ;;  %v5141_v17 = vor.u32 %v6969_v3, %v5140_v2  ;;  %v6965_v27 = vld [vmem:[%s11085_s1 + $0x4d4] sm:$0xf0] }
 0x115   :  { %3624 = vmatpush.bf16.msra.mxu3 %v4965_v13  ;;  %v6909_v13 = vld [vmem:[%s11085_s1 + $0x314] sm:$0xf0]  ;;  %v5268_v4 = vld [vmem:[%s11085_s1 + $0x5e8] sm:$0xf]  ;;  %v4773_v11 = vor.u32 %v6877_v63, %v4772_v60  ;;  %v7386_v63 = vld [vmem:[%s11087_s2] sm:$0xf] }
 0x116   :  { %3586 = vmatpush.bf16.msra.mxu0 %v4565_v7  ;;  %v7001_v7 = vld [vmem:[%s11085_s1 + $0x5f4] sm:$0xf0]  ;;  %v5524_v12 = vld [vmem:[%s11085_s1 + $0x7e8] sm:$0xf]  ;;  %v4901_v15 = vor.u32 %v6909_v13, %v4900_v0  ;;  %v543_v0 = vperm.slane %v7386_v63, 1 }
 0x117   :  { %3599 = vmatpush.bf16.msra.mxu1 %v4693_v8  ;;  %v5396_v8 = vld [vmem:[%s11085_s1 + $0x6e8] sm:$0xf]  ;;  %v5269_v21 = vor.u32 %v7001_v7, %v5268_v4  ;;  %v6997_v36 = vld [vmem:[%s11085_s1 + $0x5d4] sm:$0xf0] }
 0x118   :  { %3612 = vmatpush.bf16.msra.mxu2 %v4821_v9  ;;  %v7033_v9 = vld [vmem:[%s11085_s1 + $0x6f4] sm:$0xf0]  ;;  %v5124_v26 = vld [vmem:[%s11085_s1 + $0x4c8] sm:$0xf] }
 0x119   :  { %3625 = vmatpush.bf16.msra.mxu3 %v4949_v14  ;;  %v7065_v14 = vld [vmem:[%s11085_s1 + $0x7f4] sm:$0xf0]  ;;  %v5397_v24 = vor.u32 %v7033_v9, %v5396_v8  ;;  %v5252_v32 = vld [vmem:[%s11085_s1 + $0x5c8] sm:$0xf]  ;;  %v5125_v45 = vor.u32 %v6965_v27, %v5124_v26 }
 0x11a   :  { %3587 = vmatpush.bf16.msra.mxu0 %v4549_v37  ;;  %v5525_v34 = vor.u32 %v7065_v14, %v5524_v12  ;;  %v5380_v37 = vld [vmem:[%s11085_s1 + $0x6c8] sm:$0xf]  ;;  %v7029_v39 = vld [vmem:[%s11085_s1 + $0x6d4] sm:$0xf0]  ;;  %v5253_v46 = vor.u32 %v6997_v36, %v5252_v32 }
 0x11b   :  { %3600 = vmatpush.bf16.msra.mxu1 %v4677_v43  ;;  %v5508_v43 = vld [vmem:[%s11085_s1 + $0x7c8] sm:$0xf]  ;;  %v5381_v47 = vor.u32 %v7029_v39, %v5380_v37  ;;  %v6961_v49 = vld [vmem:[%s11085_s1 + $0x4b4] sm:$0xf0] }
 0x11c   :  { %3613 = vmatpush.bf16.msra.mxu2 %v4805_v16  ;;  %v7061_v16 = vld [vmem:[%s11085_s1 + $0x7d4] sm:$0xf0]  ;;  %v5236_v50 = vld [vmem:[%s11085_s1 + $0x5a8] sm:$0xf] }
 0x11d   :  { %3626 = vmatpush.bf16.msra.mxu3 %v4933_v48  ;;  %v5108_v48 = vld [vmem:[%s11085_s1 + $0x4a8] sm:$0xf]  ;;  %v5509_v51 = vor.u32 %v7061_v16, %v5508_v43  ;;  %v6993_v62 = vld [vmem:[%s11085_s1 + $0x5b4] sm:$0xf0] }
 0x11e   :  { %3588 = vmatpush.bf16.msra.mxu0 %v4533_v53  ;;  %v5364_v52 = vld [vmem:[%s11085_s1 + $0x6a8] sm:$0xf]  ;;  %v7025_v53 = vld [vmem:[%s11085_s1 + $0x6b4] sm:$0xf0]  ;;  %v5237_v58 = vor.u32 %v6993_v62, %v5236_v50 }
 0x11f   :  { %3601 = vmatpush.bf16.msra.mxu1 %v4661_v56  ;;  %v5492_v54 = vld [vmem:[%s11085_s1 + $0x7a8] sm:$0xf]  ;;  %v7057_v55 = vld [vmem:[%s11085_s1 + $0x7b4] sm:$0xf0]  ;;  %v5109_v56 = vor.u32 %v6961_v49, %v5108_v48  ;;  %v5365_v59 = vor.u32 %v7025_v53, %v5364_v52 }
 0x120   :  { %3614 = vmatpush.bf16.msra.mxu2 %v4789_v57  ;;  %v5092_v57 = vld [vmem:[%s11085_s1 + $0x488] sm:$0xf]  ;;  %v6957_v60 = vld [vmem:[%s11085_s1 + $0x494] sm:$0xf0]  ;;  %v5493_v13 = vor.u32 %v7057_v55, %v5492_v54 }
 0x121   :  { %3627 = vmatpush.bf16.msra.mxu3 %v4917_v61  ;;  %v5220_v61 = vld [vmem:[%s11085_s1 + $0x588] sm:$0xf]  ;;  %v6989_v1 = vld [vmem:[%s11085_s1 + $0x594] sm:$0xf0] }
 0x122   :  { %3589 = vmatpush.bf16.msra.mxu0 %v4517_v6  ;;  %v5348_v2 = vld [vmem:[%s11085_s1 + $0x688] sm:$0xf]  ;;  %v7021_v3 = vld [vmem:[%s11085_s1 + $0x694] sm:$0xf0]  ;;  %v5093_v6 = vor.u32 %v6957_v60, %v5092_v57  ;;  %v3383_v7 = vpop.f32.mrf.mxu0  ;;  %v5221_v8 = vor.u32 %v6989_v1, %v5220_v61 }
 0x123   :  { %3602 = vmatpush.bf16.msra.mxu1 %v4645_v10  ;;  %v5476_v4 = vld [vmem:[%s11085_s1 + $0x788] sm:$0xf]  ;;  %v7053_v5 = vld [vmem:[%s11085_s1 + $0x794] sm:$0xf0]  ;;  %v5349_v9 = vor.u32 %v7021_v3, %v5348_v2  ;;  %v3384_v14 = vadd.f32 %v3383_v7, %v543_v0 }
 0x124   :  { %3615 = vmatpush.bf16.msra.mxu2 %v4773_v11  ;;  %v5076_v10 = vld [vmem:[%s11085_s1 + $0x468] sm:$0xf]  ;;  %v6953_v11 = vld [vmem:[%s11085_s1 + $0x474] sm:$0xf0] }
 0x125   :  { %3628 = vmatpush.bf16.msra.mxu3 %v4901_v15  ;;  %3590 = vmatmul.bf16.vlgmr.msra.gmra.mxu0 %v7715_v19  ;;  %v5204_v12 = vld [vmem:[%s11085_s1 + $0x568] sm:$0xf]  ;;  %v3396_v15 = vpop.f32.mrf.mxu1  ;;  %v7017_v26 = vld [vmem:[%s11085_s1 + $0x674] sm:$0xf0]  ;;  %v5077_v36 = vor.u32 %v6953_v11, %v5076_v10 }
 0x126   :  { %3634 = vmatpush.bf16.msrb.mxu0 %v5141_v17  ;;  %3603 = vmatmul.bf16.vlgmr.msra.gmra.mxu1 %v7719_v22  ;;  %v5477_v17 = vor.u32 %v7053_v5, %v5476_v4  ;;  %v5460_v27 = vld [vmem:[%s11085_s1 + $0x768] sm:$0xf]  ;;  %v7049_v32 = vld [vmem:[%s11085_s1 + $0x774] sm:$0xf0] }
 0x127   :  { %3647 = vmatpush.bf16.msrb.mxu1 %v5269_v21  ;;  %3616 = vmatmul.bf16.vlgmr.msra.gmra.mxu2 %v7713_v18  ;;  %v6985_v21 = vld [vmem:[%s11085_s1 + $0x574] sm:$0xf0]  ;;  %v5060_v43 = vld [vmem:[%s11085_s1 + $0x448] sm:$0xf] }
 0x128   :  { %3660 = vmatpush.bf16.msrb.mxu2 %v5397_v24  ;;  %3629 = vmatmul.bf16.vlgmr.msra.gmra.mxu3 %v7717_v20  ;;  %v5332_v24 = vld [vmem:[%s11085_s1 + $0x668] sm:$0xf]  ;;  %v5205_v37 = vor.u32 %v6985_v21, %v5204_v12  ;;  %v6949_v16 = vld [vmem:[%s11085_s1 + $0x454] sm:$0xf0] }
 0x129   :  { %3673 = vmatpush.bf16.msrb.mxu3 %v5525_v34  ;;  %v3397_v34 = vadd.f32 %v3396_v15, %v3384_v14  ;;  %v5333_v39 = vor.u32 %v7017_v26, %v5332_v24  ;;  %v6981_v48 = vld [vmem:[%s11085_s1 + $0x554] sm:$0xf0]  ;;  %v5316_v49 = vld [vmem:[%s11085_s1 + $0x648] sm:$0xf]  ;;  %v5061_v54 = vor.u32 %v6949_v16, %v5060_v43 }
 0x12a   :  { %3635 = vmatpush.bf16.msrb.mxu0 %v5125_v45  ;;  %v5188_v45 = vld [vmem:[%s11085_s1 + $0x548] sm:$0xf]  ;;  %v7013_v50 = vld [vmem:[%s11085_s1 + $0x654] sm:$0xf0] }
 0x12b   :  { %3648 = vmatpush.bf16.msrb.mxu1 %v5253_v46  ;;  %v3409_v46 = vpop.f32.mrf.mxu2  ;;  %v3422_v62 = vpop.f32.mrf.mxu3  ;;  %v5444_v52 = vld [vmem:[%s11085_s1 + $0x748] sm:$0xf]  ;;  %v7045_v53 = vld [vmem:[%s11085_s1 + $0x754] sm:$0xf0]  ;;  %v5189_v57 = vor.u32 %v6981_v48, %v5188_v45 }
 0x12c   :  { %3661 = vmatpush.bf16.msrb.mxu2 %v5381_v47  ;;  %v5461_v47 = vor.u32 %v7049_v32, %v5460_v27  ;;  %v6945_v60 = vld [vmem:[%s11085_s1 + $0x434] sm:$0xf0]  ;;  %v5172_v61 = vld [vmem:[%s11085_s1 + $0x528] sm:$0xf]  ;;  %v5445_v0 = vor.u32 %v7045_v53, %v5444_v52 }
 0x12d   :  { %3674 = vmatpush.bf16.msrb.mxu3 %v5509_v51  ;;  %v3410_v51 = vadd.f32 %v3409_v46, %v3397_v34  ;;  %v3398_v63 = vpop.f32.mrf.mxu1  ;;  %v5300_v1 = vld [vmem:[%s11085_s1 + $0x628] sm:$0xf]  ;;  %v7009_v2 = vld [vmem:[%s11085_s1 + $0x634] sm:$0xf0] }
 0x12e   :  { %3636 = vmatpush.bf16.msrb.mxu0 %v5109_v56  ;;  %v3385_v56 = vpop.f32.mrf.mxu0  ;;  %v5428_v3 = vld [vmem:[%s11085_s1 + $0x728] sm:$0xf]  ;;  %v7041_v4 = vld [vmem:[%s11085_s1 + $0x734] sm:$0xf0] }
 0x12f   :  { %3649 = vmatpush.bf16.msrb.mxu1 %v5237_v58  ;;  %v9400_v55 = vadd.f32 %v3422_v62, %v3410_v51  ;;  %v5317_v58 = vor.u32 %v7013_v50, %v5316_v49  ;;  %v6941_v7 = vld [vmem:[%s11085_s1 + $0x414] sm:$0xf0]  ;;  %v5156_v10 = vld [vmem:[%s11085_s1 + $0x508] sm:$0xf]  ;;  %v5429_v15 = vor.u32 %v7041_v4, %v5428_v3 }
 0x130   :  { %3662 = vmatpush.bf16.msrb.mxu2 %v5365_v59  ;;  %v5044_v59 = vld [vmem:[%s11085_s1 + $0x428] sm:$0xf]  ;;  %v6973_v11 = vld [vmem:[%s11085_s1 + $0x514] sm:$0xf0] }
 0x131   :  { %3675 = vmatpush.bf16.msrb.mxu3 %v5493_v13  ;;  %v6977_v13 = vld [vmem:[%s11085_s1 + $0x534] sm:$0xf0]  ;;  %v5045_v5 = vor.u32 %v6945_v60, %v5044_v59  ;;  %v5284_v12 = vld [vmem:[%s11085_s1 + $0x608] sm:$0xf]  ;;  %v5157_v16 = vor.u32 %v6973_v11, %v5156_v10 }
 0x132   :  { %3637 = vmatpush.bf16.msrb.mxu0 %v5093_v6  ;;  %v5028_v6 = vld [vmem:[%s11085_s1 + $0x408] sm:$0xf]  ;;  %v7037_v24 = vld [vmem:[%s11085_s1 + $0x714] sm:$0xf0] }
 0x133   :  { %3650 = vmatpush.bf16.msrb.mxu1 %v5221_v8  ;;  %v5173_v8 = vor.u32 %v6977_v13, %v5172_v61  ;;  %v3411_v14 = vpop.f32.mrf.mxu2  ;;  %v5412_v21 = vld [vmem:[%s11085_s1 + $0x708] sm:$0xf]  ;;  %v3424_v26 = vpop.f32.mrf.mxu3  ;;  %v7097_v32 = vld [vmem:[%s11085_s1 + $0x8f4] sm:$0xf0] }
 0x134   :  { %3663 = vmatpush.bf16.msrb.mxu2 %v5349_v9  ;;  %v5301_v9 = vor.u32 %v7009_v2, %v5300_v1  ;;  %v5652_v27 = vld [vmem:[%s11085_s1 + $0x8e8] sm:$0xf]  ;;  %v7161_v43 = vld [vmem:[%s11085_s1 + $0xaf4] sm:$0xf0]  ;;  %v5413_v48 = vor.u32 %v7037_v24, %v5412_v21 }
 0x135   :  { %3676 = vmatpush.bf16.msrb.mxu3 %v5477_v17  ;;  %v7005_v17 = vld [vmem:[%s11085_s1 + $0x614] sm:$0xf0]  ;;  %v5780_v34 = vld [vmem:[%s11085_s1 + $0x9e8] sm:$0xf]  ;;  %v5653_v49 = vor.u32 %v7097_v32, %v5652_v27 }
 0x136   :  { %3638 = vmatpush.bf16.msrb.mxu0 %v5077_v36  ;;  %v5029_v36 = vor.u32 %v6941_v7, %v5028_v6  ;;  %v5285_v45 = vor.u32 %v7005_v17, %v5284_v12  ;;  %v6036_v46 = vld [vmem:[%s11085_s1 + $0xbe8] sm:$0xf]  ;;  %v7093_v52 = vld [vmem:[%s11085_s1 + $0x8d4] sm:$0xf0] }
 0x137   :  { %3651 = vmatpush.bf16.msrb.mxu1 %v5205_v37  ;;  %v7129_v37 = vld [vmem:[%s11085_s1 + $0x9f4] sm:$0xf0]  ;;  %v5636_v62 = vld [vmem:[%s11085_s1 + $0x8c8] sm:$0xf] }
 0x138   :  { %3664 = vmatpush.bf16.msrb.mxu2 %v5333_v39  ;;  %v5908_v39 = vld [vmem:[%s11085_s1 + $0xae8] sm:$0xf]  ;;  %v5781_v50 = vor.u32 %v7129_v37, %v5780_v34  ;;  %v7125_v56 = vld [vmem:[%s11085_s1 + $0x9d4] sm:$0xf0]  ;;  %v5637_v61 = vor.u32 %v7093_v52, %v5636_v62 }
 0x139   :  { %3677 = vmatpush.bf16.msrb.mxu3 %v5461_v47  ;;  %v7193_v47 = vld [vmem:[%s11085_s1 + $0xbf4] sm:$0xf0]  ;;  %v5909_v51 = vor.u32 %v7161_v43, %v5908_v39  ;;  %v5764_v53 = vld [vmem:[%s11085_s1 + $0x9c8] sm:$0xf] }
 0x13a   :  { %3639 = vmatpush.bf16.msrb.mxu0 %v5061_v54  ;;  %v6037_v54 = vor.u32 %v7193_v47, %v6036_v46  ;;  %v6020_v59 = vld [vmem:[%s11085_s1 + $0xbc8] sm:$0xf]  ;;  %v7189_v60 = vld [vmem:[%s11085_s1 + $0xbd4] sm:$0xf0]  ;;  %v5765_v63 = vor.u32 %v7125_v56, %v5764_v53 }
 0x13b   :  { %3652 = vmatpush.bf16.msrb.mxu1 %v5189_v57  ;;  %v5892_v57 = vld [vmem:[%s11085_s1 + $0xac8] sm:$0xf]  ;;  %v7089_v1 = vld [vmem:[%s11085_s1 + $0x8b4] sm:$0xf0]  ;;  %v6021_v3 = vor.u32 %v7189_v60, %v6020_v59 }
 0x13c   :  { %3665 = vmatpush.bf16.msrb.mxu2 %v5317_v58  ;;  %v7157_v58 = vld [vmem:[%s11085_s1 + $0xad4] sm:$0xf0]  ;;  %v5620_v13 = vld [vmem:[%s11085_s1 + $0x8a8] sm:$0xf] }
 0x13d   :  { %3678 = vmatpush.bf16.msrb.mxu3 %v5445_v0  ;;  %v5893_v0 = vor.u32 %v7157_v58, %v5892_v57  ;;  %v5748_v2 = vld [vmem:[%s11085_s1 + $0x9a8] sm:$0xf]  ;;  %v7121_v4 = vld [vmem:[%s11085_s1 + $0x9b4] sm:$0xf0] }
 0x13e   :  { %3640 = vmatpush.bf16.msrb.mxu0 %v5045_v5  ;;  %v5876_v5 = vld [vmem:[%s11085_s1 + $0xaa8] sm:$0xf]  ;;  %v7153_v6 = vld [vmem:[%s11085_s1 + $0xab4] sm:$0xf0]  ;;  %v5749_v10 = vor.u32 %v7121_v4, %v5748_v2 }
 0x13f   :  { %3653 = vmatpush.bf16.msrb.mxu1 %v5173_v8  ;;  %v6004_v7 = vld [vmem:[%s11085_s1 + $0xba8] sm:$0xf]  ;;  %v7185_v8 = vld [vmem:[%s11085_s1 + $0xbb4] sm:$0xf0]  ;;  %v5877_v11 = vor.u32 %v7153_v6, %v5876_v5 }
 0x140   :  { %3666 = vmatpush.bf16.msrb.mxu2 %v5301_v9  ;;  %v5621_v9 = vor.u32 %v7089_v1, %v5620_v13  ;;  %v5604_v12 = vld [vmem:[%s11085_s1 + $0x888] sm:$0xf]  ;;  %v7085_v14 = vld [vmem:[%s11085_s1 + $0x894] sm:$0xf0]  ;;  %v6005_v17 = vor.u32 %v7185_v8, %v6004_v7 }
 0x141   :  { %3679 = vmatpush.bf16.msrb.mxu3 %v5429_v15  ;;  %v5732_v15 = vld [vmem:[%s11085_s1 + $0x988] sm:$0xf]  ;;  %v7117_v21 = vld [vmem:[%s11085_s1 + $0x994] sm:$0xf0]  ;;  %v5605_v34 = vor.u32 %v7085_v14, %v5604_v12 }
 0x142   :  { %3641 = vmatpush.bf16.msrb.mxu0 %v5029_v36  ;;  %v5860_v24 = vld [vmem:[%s11085_s1 + $0xa88] sm:$0xf]  ;;  %v7149_v26 = vld [vmem:[%s11085_s1 + $0xa94] sm:$0xf0]  ;;  %v3435_v36 = vpop.f32.mrf.mxu0  ;;  %v5733_v37 = vor.u32 %v7117_v21, %v5732_v15 }
 0x143   :  { %3654 = vmatpush.bf16.msrb.mxu1 %v5157_v16  ;;  %v5988_v27 = vld [vmem:[%s11085_s1 + $0xb88] sm:$0xf]  ;;  %v7181_v32 = vld [vmem:[%s11085_s1 + $0xb94] sm:$0xf0]  ;;  %v5861_v39 = vor.u32 %v7149_v26, %v5860_v24  ;;  %v3436_v46 = vadd.f32 %v3435_v36, %v9400_v55  ;;  %v3448_v47 = vpop.f32.mrf.mxu1 }
 0x144   :  { %3667 = vmatpush.bf16.msrb.mxu2 %v5285_v45  ;;  %v5588_v43 = vld [vmem:[%s11085_s1 + $0x868] sm:$0xf]  ;;  %v7081_v16 = vld [vmem:[%s11085_s1 + $0x874] sm:$0xf0] }
 0x145   :  { %3680 = vmatpush.bf16.msrb.mxu3 %v5413_v48  ;;  %3642 = vmatmul.bf16.vlgmr.msrb.gmra.mxu0 %v7877_v41  ;;  %v5716_v45 = vld [vmem:[%s11085_s1 + $0x968] sm:$0xf]  ;;  %v5989_v48 = vor.u32 %v7181_v32, %v5988_v27  ;;  %v7177_v55 = vld [vmem:[%s11085_s1 + $0xb74] sm:$0xf0]  ;;  %v3449_v52 = vadd.f32 %v3448_v47, %v3436_v46  ;;  %v5589_v53 = vor.u32 %v7081_v16, %v5588_v43 }
 0x146   :  { %3686 = vmatpush.bf16.msra.mxu0 %v5653_v49  ;;  %3655 = vmatmul.bf16.vlgmr.msrb.gmra.mxu1 %v7881_v44  ;;  %v7113_v49 = vld [vmem:[%s11085_s1 + $0x974] sm:$0xf0]  ;;  %v5972_v62 = vld [vmem:[%s11085_s1 + $0xb68] sm:$0xf] }
 0x147   :  { %3699 = vmatpush.bf16.msra.mxu1 %v5781_v50  ;;  %3668 = vmatmul.bf16.vlgmr.msrb.gmra.mxu2 %v7869_v38  ;;  %v5844_v50 = vld [vmem:[%s11085_s1 + $0xa68] sm:$0xf]  ;;  %v7077_v58 = vld [vmem:[%s11085_s1 + $0x854] sm:$0xf0] }
 0x148   :  { %3712 = vmatpush.bf16.msra.mxu2 %v5909_v51  ;;  %3681 = vmatmul.bf16.vlgmr.msrb.gmra.mxu3 %v7879_v42  ;;  %v7145_v51 = vld [vmem:[%s11085_s1 + $0xa74] sm:$0xf0]  ;;  %v5572_v57 = vld [vmem:[%s11085_s1 + $0x848] sm:$0xf] }
 0x149   :  { %3725 = vmatpush.bf16.msra.mxu3 %v6037_v54  ;;  %v5717_v54 = vor.u32 %v7113_v49, %v5716_v45  ;;  %v5845_v56 = vor.u32 %v7145_v51, %v5844_v50  ;;  %v5700_v59 = vld [vmem:[%s11085_s1 + $0x948] sm:$0xf]  ;;  %v7141_v13 = vld [vmem:[%s11085_s1 + $0xa54] sm:$0xf0]  ;;  %v5573_v5 = vor.u32 %v7077_v58, %v5572_v57 }
 0x14a   :  { %3687 = vmatpush.bf16.msra.mxu0 %v5637_v61  ;;  %v3461_v60 = vpop.f32.mrf.mxu2  ;;  %v5973_v61 = vor.u32 %v7177_v55, %v5972_v62  ;;  %v7173_v4 = vld [vmem:[%s11085_s1 + $0xb54] sm:$0xf0]  ;;  %v3437_v7 = vpop.f32.mrf.mxu0  ;;  %v5684_v12 = vld [vmem:[%s11085_s1 + $0x928] sm:$0xf] }
 0x14b   :  { %3700 = vmatpush.bf16.msra.mxu1 %v5765_v63  ;;  %v7109_v63 = vld [vmem:[%s11085_s1 + $0x954] sm:$0xf0]  ;;  %v3462_v1 = vadd.f32 %v3461_v60, %v3449_v52  ;;  %v3474_v2 = vpop.f32.mrf.mxu3  ;;  %v3450_v14 = vpop.f32.mrf.mxu1  ;;  %v5812_v21 = vld [vmem:[%s11085_s1 + $0xa28] sm:$0xf] }
 0x14c   :  { %3713 = vmatpush.bf16.msra.mxu2 %v5893_v0  ;;  %v5828_v0 = vld [vmem:[%s11085_s1 + $0xa48] sm:$0xf]  ;;  %v5701_v8 = vor.u32 %v7109_v63, %v5700_v59  ;;  %v7137_v24 = vld [vmem:[%s11085_s1 + $0xa34] sm:$0xf0] }
 0x14d   :  { %3726 = vmatpush.bf16.msra.mxu3 %v6021_v3  ;;  %v5956_v3 = vld [vmem:[%s11085_s1 + $0xb48] sm:$0xf]  ;;  %v9599_v6 = vadd.f32 %v3474_v2, %v3462_v1  ;;  %v7169_v27 = vld [vmem:[%s11085_s1 + $0xb34] sm:$0xf0] }
 0x14e   :  { %3688 = vmatpush.bf16.msra.mxu0 %v5621_v9  ;;  %v5829_v9 = vor.u32 %v7141_v13, %v5828_v0  ;;  %v5957_v15 = vor.u32 %v7173_v4, %v5956_v3  ;;  %v5940_v26 = vld [vmem:[%s11085_s1 + $0xb28] sm:$0xf]  ;;  %v7069_v36 = vld [vmem:[%s11085_s1 + $0x814] sm:$0xf0] }
 0x14f   :  { %3701 = vmatpush.bf16.msra.mxu1 %v5749_v10  ;;  %v5556_v10 = vld [vmem:[%s11085_s1 + $0x828] sm:$0xf]  ;;  %v7101_v16 = vld [vmem:[%s11085_s1 + $0x914] sm:$0xf0]  ;;  %v5941_v47 = vor.u32 %v7169_v27, %v5940_v26 }
 0x150   :  { %3714 = vmatpush.bf16.msra.mxu2 %v5877_v11  ;;  %v7073_v11 = vld [vmem:[%s11085_s1 + $0x834] sm:$0xf0]  ;;  %v5668_v43 = vld [vmem:[%s11085_s1 + $0x908] sm:$0xf] }
 0x151   :  { %3727 = vmatpush.bf16.msra.mxu3 %v6005_v17  ;;  %v7105_v17 = vld [vmem:[%s11085_s1 + $0x934] sm:$0xf0]  ;;  %v5557_v32 = vor.u32 %v7073_v11, %v5556_v10  ;;  %v5796_v45 = vld [vmem:[%s11085_s1 + $0xa08] sm:$0xf]  ;;  %v5669_v58 = vor.u32 %v7101_v16, %v5668_v43 }
 0x152   :  { %3689 = vmatpush.bf16.msra.mxu0 %v5605_v34  ;;  %v5540_v34 = vld [vmem:[%s11085_s1 + $0x808] sm:$0xf]  ;;  %v3463_v46 = vpop.f32.mrf.mxu2  ;;  %v7165_v50 = vld [vmem:[%s11085_s1 + $0xb14] sm:$0xf0] }
 0x153   :  { %3702 = vmatpush.bf16.msra.mxu1 %v5733_v37  ;;  %v5685_v37 = vor.u32 %v7105_v17, %v5684_v12  ;;  %v5924_v49 = vld [vmem:[%s11085_s1 + $0xb08] sm:$0xf]  ;;  %v3476_v51 = vpop.f32.mrf.mxu3  ;;  %v7225_v55 = vld [vmem:[%s11085_s1 + $0xcf4] sm:$0xf0] }
 0x154   :  { %3715 = vmatpush.bf16.msra.mxu2 %v5861_v39  ;;  %v5813_v39 = vor.u32 %v7137_v24, %v5812_v21  ;;  %v6164_v62 = vld [vmem:[%s11085_s1 + $0xce8] sm:$0xf]  ;;  %v7289_v57 = vld [vmem:[%s11085_s1 + $0xef4] sm:$0xf0]  ;;  %v5925_v63 = vor.u32 %v7165_v50, %v5924_v49 }
 0x155   :  { %3728 = vmatpush.bf16.msra.mxu3 %v5989_v48  ;;  %v7133_v48 = vld [vmem:[%s11085_s1 + $0xa14] sm:$0xf0]  ;;  %v6292_v52 = vld [vmem:[%s11085_s1 + $0xde8] sm:$0xf]  ;;  %v6165_v0 = vor.u32 %v7225_v55, %v6164_v62 }
 0x156   :  { %3690 = vmatpush.bf16.msra.mxu0 %v5589_v53  ;;  %v5541_v53 = vor.u32 %v7069_v36, %v5540_v34  ;;  %v5797_v59 = vor.u32 %v7133_v48, %v5796_v45  ;;  %v6548_v60 = vld [vmem:[%s11085_s1 + $0xfe8] sm:$0xf]  ;;  %v7221_v3 = vld [vmem:[%s11085_s1 + $0xcd4] sm:$0xf0] }
 0x157   :  { %3703 = vmatpush.bf16.msra.mxu1 %v5717_v54  ;;  %v7257_v54 = vld [vmem:[%s11085_s1 + $0xdf4] sm:$0xf0]  ;;  %v6148_v2 = vld [vmem:[%s11085_s1 + $0xcc8] sm:$0xf] }
 0x158   :  { %3716 = vmatpush.bf16.msra.mxu2 %v5845_v56  ;;  %v6420_v56 = vld [vmem:[%s11085_s1 + $0xee8] sm:$0xf]  ;;  %v6293_v13 = vor.u32 %v7257_v54, %v6292_v52  ;;  %v7253_v7 = vld [vmem:[%s11085_s1 + $0xdd4] sm:$0xf0]  ;;  %v6149_v12 = vor.u32 %v7221_v3, %v6148_v2 }
 0x159   :  { %3729 = vmatpush.bf16.msra.mxu3 %v5973_v61  ;;  %v7321_v61 = vld [vmem:[%s11085_s1 + $0xff4] sm:$0xf0]  ;;  %v6421_v1 = vor.u32 %v7289_v57, %v6420_v56  ;;  %v6276_v4 = vld [vmem:[%s11085_s1 + $0xdc8] sm:$0xf] }
 0x15a   :  { %3691 = vmatpush.bf16.msra.mxu0 %v5573_v5  ;;  %v6549_v5 = vor.u32 %v7321_v61, %v6548_v60  ;;  %v6532_v10 = vld [vmem:[%s11085_s1 + $0xfc8] sm:$0xf]  ;;  %v7317_v11 = vld [vmem:[%s11085_s1 + $0xfd4] sm:$0xf0]  ;;  %v6277_v14 = vor.u32 %v7253_v7, %v6276_v4 }
 0x15b   :  { %3704 = vmatpush.bf16.msra.mxu1 %v5701_v8  ;;  %v6404_v8 = vld [vmem:[%s11085_s1 + $0xec8] sm:$0xf]  ;;  %v7217_v21 = vld [vmem:[%s11085_s1 + $0xcb4] sm:$0xf0]  ;;  %v6533_v26 = vor.u32 %v7317_v11, %v6532_v10 }
 0x15c   :  { %3717 = vmatpush.bf16.msra.mxu2 %v5829_v9  ;;  %v7285_v9 = vld [vmem:[%s11085_s1 + $0xed4] sm:$0xf0]  ;;  %v6132_v17 = vld [vmem:[%s11085_s1 + $0xca8] sm:$0xf] }
 0x15d   :  { %3730 = vmatpush.bf16.msra.mxu3 %v5957_v15  ;;  %v6405_v15 = vor.u32 %v7285_v9, %v6404_v8  ;;  %v6260_v24 = vld [vmem:[%s11085_s1 + $0xda8] sm:$0xf]  ;;  %v7249_v27 = vld [vmem:[%s11085_s1 + $0xdb4] sm:$0xf0] }
 0x15e   :  { %3692 = vmatpush.bf16.msra.mxu0 %v5557_v32  ;;  %v6388_v32 = vld [vmem:[%s11085_s1 + $0xea8] sm:$0xf]  ;;  %v7281_v34 = vld [vmem:[%s11085_s1 + $0xeb4] sm:$0xf0]  ;;  %v6261_v43 = vor.u32 %v7249_v27, %v6260_v24 }
 0x15f   :  { %3705 = vmatpush.bf16.msra.mxu1 %v5685_v37  ;;  %v6516_v36 = vld [vmem:[%s11085_s1 + $0xfa8] sm:$0xf]  ;;  %v7313_v37 = vld [vmem:[%s11085_s1 + $0xfb4] sm:$0xf0]  ;;  %v6389_v16 = vor.u32 %v7281_v34, %v6388_v32 }
 0x160   :  { %3718 = vmatpush.bf16.msra.mxu2 %v5813_v39  ;;  %v6133_v39 = vor.u32 %v7217_v21, %v6132_v17  ;;  %v6116_v45 = vld [vmem:[%s11085_s1 + $0xc88] sm:$0xf]  ;;  %v7213_v46 = vld [vmem:[%s11085_s1 + $0xc94] sm:$0xf0]  ;;  %v6517_v48 = vor.u32 %v7313_v37, %v6516_v36 }
 0x161   :  { %3731 = vmatpush.bf16.msra.mxu3 %v5941_v47  ;;  %v6244_v47 = vld [vmem:[%s11085_s1 + $0xd88] sm:$0xf]  ;;  %v7245_v49 = vld [vmem:[%s11085_s1 + $0xd94] sm:$0xf0]  ;;  %v6117_v54 = vor.u32 %v7213_v46, %v6116_v45 }
 0x162   :  { %3693 = vmatpush.bf16.msra.mxu0 %v5541_v53  ;;  %v6372_v50 = vld [vmem:[%s11085_s1 + $0xe88] sm:$0xf]  ;;  %v7277_v51 = vld [vmem:[%s11085_s1 + $0xe94] sm:$0xf0]  ;;  %v3487_v62 = vpop.f32.mrf.mxu0  ;;  %v6245_v57 = vor.u32 %v7245_v49, %v6244_v47 }
 0x163   :  { %3706 = vmatpush.bf16.msra.mxu1 %v5669_v58  ;;  %v6500_v55 = vld [vmem:[%s11085_s1 + $0xf88] sm:$0xf]  ;;  %v7309_v52 = vld [vmem:[%s11085_s1 + $0xf94] sm:$0xf0]  ;;  %v3488_v53 = vadd.f32 %v3487_v62, %v9599_v6  ;;  %v3500_v56 = vpop.f32.mrf.mxu1  ;;  %v6373_v58 = vor.u32 %v7277_v51, %v6372_v50 }
 0x164   :  { %3719 = vmatpush.bf16.msra.mxu2 %v5797_v59  ;;  %v6100_v59 = vld [vmem:[%s11085_s1 + $0xc68] sm:$0xf]  ;;  %v7209_v60 = vld [vmem:[%s11085_s1 + $0xc74] sm:$0xf0]  ;;  %v6501_v6 = vor.u32 %v7309_v52, %v6500_v55 }
 0x165   :  { %3732 = vmatpush.bf16.msra.mxu3 %v5925_v63  ;;  %3694 = vmatmul.bf16.vlgmr.msra.gmra.mxu0 %v8070_v25  ;;  %v6228_v61 = vld [vmem:[%s11085_s1 + $0xd68] sm:$0xf]  ;;  %v3501_v63 = vadd.f32 %v3500_v56, %v3488_v53  ;;  %v7305_v3 = vld [vmem:[%s11085_s1 + $0xf74] sm:$0xf0]  ;;  %v6101_v4 = vor.u32 %v7209_v60, %v6100_v59 }
 0x166   :  { %3738 = vmatpush.bf16.msrb.mxu0 %v6165_v0  ;;  %3707 = vmatmul.bf16.vlgmr.msra.gmra.mxu1 %v8083_v30  ;;  %v7241_v0 = vld [vmem:[%s11085_s1 + $0xd74] sm:$0xf0]  ;;  %v6484_v2 = vld [vmem:[%s11085_s1 + $0xf68] sm:$0xf] }
 0x167   :  { %3751 = vmatpush.bf16.msrb.mxu1 %v6293_v13  ;;  %3720 = vmatmul.bf16.vlgmr.msra.gmra.mxu2 %v8081_v29  ;;  %v6356_v13 = vld [vmem:[%s11085_s1 + $0xe68] sm:$0xf]  ;;  %v7205_v9 = vld [vmem:[%s11085_s1 + $0xc54] sm:$0xf0]  ;;  %v6485_v11 = vor.u32 %v7305_v3, %v6484_v2  ;;  %v6871_v2 = vld [vmem:[%s11085_s1 + $0x1ec] sm:$0xf] }
 0x168   :  { %3764 = vmatpush.bf16.msrb.mxu2 %v6421_v1  ;;  %3733 = vmatmul.bf16.vlgmr.msra.gmra.mxu3 %v8091_v33  ;;  %v7273_v1 = vld [vmem:[%s11085_s1 + $0xe74] sm:$0xf0]  ;;  %v6084_v8 = vld [vmem:[%s11085_s1 + $0xc48] sm:$0xf] }
 0x169   :  { %3777 = vmatpush.bf16.msrb.mxu3 %v6549_v5  ;;  %v6229_v5 = vor.u32 %v7241_v0, %v6228_v61  ;;  %v6357_v7 = vor.u32 %v7273_v1, %v6356_v13  ;;  %v6212_v10 = vld [vmem:[%s11085_s1 + $0xd48] sm:$0xf]  ;;  %v7269_v17 = vld [vmem:[%s11085_s1 + $0xe54] sm:$0xf0]  ;;  %v6085_v34 = vor.u32 %v7205_v9, %v6084_v8  ;;  %v6839_v13 = vld [vmem:[%s11085_s1 + $0xec] sm:$0xf] }
 0x16a   :  { %3739 = vmatpush.bf16.msrb.mxu0 %v6149_v12  ;;  %v3513_v12 = vpop.f32.mrf.mxu2  ;;  %v7301_v27 = vld [vmem:[%s11085_s1 + $0xf54] sm:$0xf0]  ;;  %v3489_v32 = vpop.f32.mrf.mxu0  ;;  %v6196_v46 = vld [vmem:[%s11085_s1 + $0xd28] sm:$0xf]  ;;  %v4630_v1 = vld [vmem:[%s11085_s1 + $0xf8] sm:$0xf0] }
 0x16b   :  { %3752 = vmatpush.bf16.msrb.mxu1 %v6277_v14  ;;  %v7237_v14 = vld [vmem:[%s11085_s1 + $0xd54] sm:$0xf0]  ;;  %v3514_v21 = vadd.f32 %v3513_v12, %v3501_v63  ;;  %v3526_v24 = vpop.f32.mrf.mxu3  ;;  %v3502_v36 = vpop.f32.mrf.mxu1  ;;  %v6324_v49 = vld [vmem:[%s11085_s1 + $0xe28] sm:$0xf]  ;;  %v4886_v8 = vld [vmem:[%s11085_s1 + $0x2f8] sm:$0xf0] }
 0x16c   :  { %3765 = vmatpush.bf16.msrb.mxu2 %v6405_v15  ;;  %v6340_v15 = vld [vmem:[%s11085_s1 + $0xe48] sm:$0xf]  ;;  %v7201_v45 = vld [vmem:[%s11085_s1 + $0xc34] sm:$0xf0]  ;;  %v5014_v12 = vld [vmem:[%s11085_s1 + $0x3f8] sm:$0xf0] }
 0x16d   :  { %3778 = vmatpush.bf16.msrb.mxu3 %v6533_v26  ;;  %v6468_v26 = vld [vmem:[%s11085_s1 + $0xf48] sm:$0xf]  ;;  %v9798_v37 = vadd.f32 %v3526_v24, %v3514_v21  ;;  %v7265_v50 = vld [vmem:[%s11085_s1 + $0xe34] sm:$0xf0]  ;;  %v6835_v24 = vld [vmem:[%s11085_s1 + $0xcc] sm:$0xf] }
 0x16e   :  { %3740 = vmatpush.bf16.msrb.mxu0 %v6133_v39  ;;  %v6213_v39 = vor.u32 %v7237_v14, %v6212_v10  ;;  %v6469_v47 = vor.u32 %v7301_v27, %v6468_v26  ;;  %v6452_v51 = vld [vmem:[%s11085_s1 + $0xf28] sm:$0xf]  ;;  %v7297_v62 = vld [vmem:[%s11085_s1 + $0xf34] sm:$0xf0]  ;;  %v6325_v56 = vor.u32 %v7265_v50, %v6324_v49  ;;  %v4614_v26 = vld [vmem:[%s11085_s1 + $0xd8] sm:$0xf0] }
 0x16f   :  { %3753 = vmatpush.bf16.msrb.mxu1 %v6261_v43  ;;  %v6341_v43 = vor.u32 %v7269_v17, %v6340_v15  ;;  %v6052_v52 = vld [vmem:[%s11085_s1 + $0xc08] sm:$0xf]  ;;  %v7197_v53 = vld [vmem:[%s11085_s1 + $0xc14] sm:$0xf0]  ;;  %v6453_v60 = vor.u32 %v7297_v62, %v6452_v51  ;;  %v4633_v15 = vor.u32 %v6839_v13, %v4630_v1  ;;  %v6867_v27 = vld [vmem:[%s11085_s1 + $0x1cc] sm:$0xf] }
 0x170   :  { %3766 = vmatpush.bf16.msrb.mxu2 %v6389_v16  ;;  %v6068_v16 = vld [vmem:[%s11085_s1 + $0xc28] sm:$0xf]  ;;  %v7261_v61 = vld [vmem:[%s11085_s1 + $0xe14] sm:$0xf0]  ;;  %v6899_v36 = vld [vmem:[%s11085_s1 + $0x2cc] sm:$0xf] }
 0x171   :  { %3779 = vmatpush.bf16.msrb.mxu3 %v6517_v48  ;;  %v7233_v48 = vld [vmem:[%s11085_s1 + $0xd34] sm:$0xf0]  ;;  %v6069_v55 = vor.u32 %v7201_v45, %v6068_v16  ;;  %v6308_v59 = vld [vmem:[%s11085_s1 + $0xe08] sm:$0xf]  ;;  %v4998_v16 = vld [vmem:[%s11085_s1 + $0x3d8] sm:$0xf0]  ;;  %v4617_v45 = vor.u32 %v6835_v24, %v4614_v26 }
 0x172   :  { %3741 = vmatpush.bf16.msrb.mxu0 %v6117_v54  ;;  %v6197_v54 = vor.u32 %v7233_v48, %v6196_v46  ;;  %v7293_v63 = vld [vmem:[%s11085_s1 + $0xf14] sm:$0xf0]  ;;  %v3515_v0 = vpop.f32.mrf.mxu2  ;;  %v6309_v10 = vor.u32 %v7261_v61, %v6308_v59  ;;  %v6831_v48 = vld [vmem:[%s11085_s1 + $0xac] sm:$0xf]  ;;  %v4598_v49 = vld [vmem:[%s11085_s1 + $0xb8] sm:$0xf0] }
 0x173   :  { %3754 = vmatpush.bf16.msrb.mxu1 %v6245_v57  ;;  %v6180_v57 = vld [vmem:[%s11085_s1 + $0xd08] sm:$0xf]  ;;  %v3528_v3 = vpop.f32.mrf.mxu3  ;;  %v6863_v50 = vld [vmem:[%s11085_s1 + $0x1ac] sm:$0xf]  ;;  %v4726_v62 = vld [vmem:[%s11085_s1 + $0x1b8] sm:$0xf0] }
 0x174   :  { %3767 = vmatpush.bf16.msrb.mxu2 %v6373_v58  ;;  %v7229_v58 = vld [vmem:[%s11085_s1 + $0xd14] sm:$0xf0]  ;;  %v6827_v59 = vld [vmem:[%s11085_s1 + $0x8c] sm:$0xf]  ;;  %v4838_v13 = vld [vmem:[%s11085_s1 + $0x298] sm:$0xf0] }
 0x175   :  { %3780 = vmatpush.bf16.msrb.mxu3 %v6501_v6  ;;  %v6436_v6 = vld [vmem:[%s11085_s1 + $0xf08] sm:$0xf]  ;;  %v6181_v9 = vor.u32 %v7229_v58, %v6180_v57  ;;  %v4729_v57 = vor.u32 %v6863_v50, %v4726_v62  ;;  %v6859_v61 = vld [vmem:[%s11085_s1 + $0x18c] sm:$0xf]  ;;  %v4966_v3 = vld [vmem:[%s11085_s1 + $0x398] sm:$0xf0] }
 0x176   :  { %3742 = vmatpush.bf16.msrb.mxu0 %v6101_v4  ;;  %v6053_v4 = vor.u32 %v7197_v53, %v6052_v52  ;;  %v6437_v14 = vor.u32 %v7293_v63, %v6436_v6  ;;  %v4854_v52 = vld [vmem:[%s11085_s1 + $0x2b8] sm:$0xf0]  ;;  %v6927_v53 = vld [vmem:[%s11085_s1 + $0x3ac] sm:$0xf] }
 0x177   :  { %3755 = vmatpush.bf16.msrb.mxu1 %v6229_v5  ;;  %v4758_v5 = vld [vmem:[%s11085_s1 + $0x1f8] sm:$0xf0]  ;;  %v6891_v0 = vld [vmem:[%s11085_s1 + $0x28c] sm:$0xf] }
 0x178   :  { %3768 = vmatpush.bf16.msrb.mxu2 %v6357_v7  ;;  %v6903_v7 = vld [vmem:[%s11085_s1 + $0x2ec] sm:$0xf]  ;;  %v4761_v17 = vor.u32 %v6871_v2, %v4758_v5  ;;  %v4710_v63 = vld [vmem:[%s11085_s1 + $0x198] sm:$0xf0] }
 0x179   :  { %3781 = vmatpush.bf16.msrb.mxu3 %v6485_v11  ;;  %v6935_v11 = vld [vmem:[%s11085_s1 + $0x3ec] sm:$0xf]  ;;  %v4889_v21 = vor.u32 %v6903_v7, %v4886_v8  ;;  %v4713_v8 = vor.u32 %v6859_v61, %v4710_v63  ;;  %v4950_v26 = vld [vmem:[%s11085_s1 + $0x378] sm:$0xf0] }
 0x17a   :  { %3743 = vmatpush.bf16.msrb.mxu0 %v6085_v34  ;;  %v5017_v32 = vor.u32 %v6935_v11, %v5014_v12  ;;  %v4742_v34 = vld [vmem:[%s11085_s1 + $0x1d8] sm:$0xf0]  ;;  %v6923_v2 = vld [vmem:[%s11085_s1 + $0x38c] sm:$0xf] }
 0x17b   :  { %3756 = vmatpush.bf16.msrb.mxu1 %v6213_v39  ;;  %v4870_v39 = vld [vmem:[%s11085_s1 + $0x2d8] sm:$0xf0]  ;;  %v4745_v46 = vor.u32 %v6867_v27, %v4742_v34  ;;  %v6855_v12 = vld [vmem:[%s11085_s1 + $0x16c] sm:$0xf] }
 0x17c   :  { %3769 = vmatpush.bf16.msrb.mxu2 %v6341_v43  ;;  %v6931_v43 = vld [vmem:[%s11085_s1 + $0x3cc] sm:$0xf]  ;;  %v4566_v11 = vld [vmem:[%s11085_s1 + $0x78] sm:$0xf0] }
 0x17d   :  { %3782 = vmatpush.bf16.msrb.mxu3 %v6469_v47  ;;  %v4873_v47 = vor.u32 %v6899_v36, %v4870_v39  ;;  %v5001_v51 = vor.u32 %v6931_v43, %v4998_v16  ;;  %v6919_v24 = vld [vmem:[%s11085_s1 + $0x36c] sm:$0xf]  ;;  %v4550_v39 = vld [vmem:[%s11085_s1 + $0x58] sm:$0xf0] }
 0x17e   :  { %3744 = vmatpush.bf16.msrb.mxu0 %v6069_v55  ;;  %v6895_v55 = vld [vmem:[%s11085_s1 + $0x2ac] sm:$0xf]  ;;  %v4953_v16 = vor.u32 %v6919_v24, %v4950_v26  ;;  %v4934_v62 = vld [vmem:[%s11085_s1 + $0x358] sm:$0xf0] }
 0x17f   :  { %3757 = vmatpush.bf16.msrb.mxu1 %v6197_v54  ;;  %v4982_v54 = vld [vmem:[%s11085_s1 + $0x3b8] sm:$0xf0]  ;;  %v4857_v58 = vor.u32 %v6895_v55, %v4854_v52  ;;  %v6819_v36 = vld [vmem:[%s11085_s1 + $0x4c] sm:$0xf] }
 0x180   :  { %3770 = vmatpush.bf16.msrb.mxu2 %v6325_v56  ;;  %v4601_v56 = vor.u32 %v6831_v48, %v4598_v49  ;;  %v4985_v6 = vor.u32 %v6927_v53, %v4982_v54  ;;  %v6851_v43 = vld [vmem:[%s11085_s1 + $0x14c] sm:$0xf]  ;;  %v4806_v48 = vld [vmem:[%s11085_s1 + $0x258] sm:$0xf0]  ;;  %v4553_v52 = vor.u32 %v6819_v36, %v4550_v39 }
 0x181   :  { %3783 = vmatpush.bf16.msrb.mxu3 %v6453_v60  ;;  %v4582_v60 = vld [vmem:[%s11085_s1 + $0x98] sm:$0xf0]  ;;  %v6879_v63 = vld [vmem:[%s11085_s1 + $0x22c] sm:$0xf] }
 0x182   :  { %3745 = vmatpush.bf16.msrb.mxu0 %v6053_v4  ;;  %v3539_v1 = vpop.f32.mrf.mxu0  ;;  %v4585_v5 = vor.u32 %v6827_v59, %v4582_v60  ;;  %v4534_v59 = vld [vmem:[%s11085_s1 + $0x38] sm:$0xf0]  ;;  %v6847_v60 = vld [vmem:[%s11085_s1 + $0x12c] sm:$0xf] }
 0x183   :  { %3758 = vmatpush.bf16.msrb.mxu1 %v6181_v9  ;;  %v3540_v4 = vadd.f32 %v3539_v1, %v9798_v37  ;;  %v3552_v7 = vpop.f32.mrf.mxu1  ;;  %v4841_v9 = vor.u32 %v6891_v0, %v4838_v13  ;;  %v4969_v37 = vor.u32 %v6923_v2, %v4966_v3  ;;  %v4790_v0 = vld [vmem:[%s11085_s1 + $0x238] sm:$0xf0]  ;;  %v6911_v13 = vld [vmem:[%s11085_s1 + $0x32c] sm:$0xf] }
 0x184   :  { %3771 = vmatpush.bf16.msrb.mxu2 %v6309_v10  ;;  %v6823_v10 = vld [vmem:[%s11085_s1 + $0x6c] sm:$0xf]  ;;  %v4918_v1 = vld [vmem:[%s11085_s1 + $0x338] sm:$0xf0] }
 0x185   :  { %3784 = vmatpush.bf16.msrb.mxu3 %v6437_v14  ;;  %3746 = vmatmul.bf16.vlgmr.msrb.gmra.mxu0 %v8280_v23  ;;  %v3553_v14 = vadd.f32 %v3552_v7, %v3540_v4  ;;  %v4569_v27 = vor.u32 %v6823_v10, %v4566_v11  ;;  %v6811_v3 = vld [vmem:[%s11085_s1 + $0xc] sm:$0xf]  ;;  %v4518_v4 = vld [vmem:[%s11085_s1 + $0x18] sm:$0xf0]  ;;  %v4793_v7 = vor.u32 %v6879_v63, %v4790_v0 }
 0x186   :  { %3790 = vmatpush.bf16.msra.mxu0 %v4633_v15  ;;  %3759 = vmatmul.bf16.vlgmr.msrb.gmra.mxu1 %v8293_v31  ;;  %v4694_v15 = vld [vmem:[%s11085_s1 + $0x178] sm:$0xf0]  ;;  %v6875_v10 = vld [vmem:[%s11085_s1 + $0x20c] sm:$0xf]  ;;  %v4921_v11 = vor.u32 %v6911_v13, %v4918_v1 }
 0x187   :  { %3803 = vmatpush.bf16.msra.mxu1 %v4761_v17  ;;  %3772 = vmatmul.bf16.vlgmr.msrb.gmra.mxu2 %v8291_v28  ;;  %v6887_v17 = vld [vmem:[%s11085_s1 + $0x26c] sm:$0xf]  ;;  %v5398_v36 = vld [vmem:[%s11085_s1 + $0x6f8] sm:$0xf0] }
 0x188   :  { %3816 = vmatpush.bf16.msra.mxu2 %v4889_v21  ;;  %3785 = vmatmul.bf16.vlgmr.msrb.gmra.mxu3 %v8301_v35  ;;  %v4822_v21 = vld [vmem:[%s11085_s1 + $0x278] sm:$0xf0]  ;;  %v6999_v24 = vld [vmem:[%s11085_s1 + $0x5ec] sm:$0xf] }
 0x189   :  { %3829 = vmatpush.bf16.msra.mxu3 %v5017_v32  ;;  %v4697_v32 = vor.u32 %v6855_v12, %v4694_v15  ;;  %v4825_v34 = vor.u32 %v6887_v17, %v4822_v21  ;;  %v4774_v12 = vld [vmem:[%s11085_s1 + $0x218] sm:$0xf0]  ;;  %v6967_v17 = vld [vmem:[%s11085_s1 + $0x4ec] sm:$0xf] }
 0x18a   :  { %3791 = vmatpush.bf16.msra.mxu0 %v4617_v45  ;;  %v3565_v45 = vpop.f32.mrf.mxu2  ;;  %v3541_v55 = vpop.f32.mrf.mxu0  ;;  %v5142_v21 = vld [vmem:[%s11085_s1 + $0x4f8] sm:$0xf0]  ;;  %v6991_v0 = vld [vmem:[%s11085_s1 + $0x5ac] sm:$0xf] }
 0x18b   :  { %3804 = vmatpush.bf16.msra.mxu1 %v4745_v46  ;;  %v4678_v46 = vld [vmem:[%s11085_s1 + $0x158] sm:$0xf0]  ;;  %v3566_v49 = vadd.f32 %v3565_v45, %v3553_v14  ;;  %v3578_v50 = vpop.f32.mrf.mxu3  ;;  %v3554_v53 = vpop.f32.mrf.mxu1 }
 0x18c   :  { %3817 = vmatpush.bf16.msra.mxu2 %v4873_v47  ;;  %v6883_v47 = vld [vmem:[%s11085_s1 + $0x24c] sm:$0xf]  ;;  %v4902_v14 = vld [vmem:[%s11085_s1 + $0x318] sm:$0xf0] }
 0x18d   :  { %3830 = vmatpush.bf16.msra.mxu3 %v5001_v51  ;;  %v6915_v51 = vld [vmem:[%s11085_s1 + $0x34c] sm:$0xf]  ;;  %v9997_v54 = vadd.f32 %v3578_v50, %v3566_v49  ;;  %v5526_v45 = vld [vmem:[%s11085_s1 + $0x7f8] sm:$0xf0] }
 0x18e   :  { %3792 = vmatpush.bf16.msra.mxu0 %v4601_v56  ;;  %v4681_v56 = vor.u32 %v6851_v43, %v4678_v46  ;;  %v4937_v61 = vor.u32 %v6915_v51, %v4934_v62  ;;  %v4777_v43 = vor.u32 %v6875_v10, %v4774_v12  ;;  %v6963_v50 = vld [vmem:[%s11085_s1 + $0x4cc] sm:$0xf]  ;;  %v5126_v51 = vld [vmem:[%s11085_s1 + $0x4d8] sm:$0xf0] }
 0x18f   :  { %3805 = vmatpush.bf16.msra.mxu1 %v4729_v57  ;;  %v4809_v57 = vor.u32 %v6883_v47, %v4806_v48  ;;  %v5145_v47 = vor.u32 %v6967_v17, %v5142_v21  ;;  %v6995_v62 = vld [vmem:[%s11085_s1 + $0x5cc] sm:$0xf]  ;;  %v5110_v63 = vld [vmem:[%s11085_s1 + $0x4b8] sm:$0xf0] }
 0x190   :  { %3818 = vmatpush.bf16.msra.mxu2 %v4857_v58  ;;  %v6815_v58 = vld [vmem:[%s11085_s1 + $0x2c] sm:$0xf]  ;;  %v5238_v1 = vld [vmem:[%s11085_s1 + $0x5b8] sm:$0xf0] }
 0x191   :  { %3831 = vmatpush.bf16.msra.mxu3 %v4985_v6  ;;  %v4662_v6 = vld [vmem:[%s11085_s1 + $0x138] sm:$0xf0]  ;;  %v4537_v2 = vor.u32 %v6815_v58, %v4534_v59  ;;  %v7027_v53 = vld [vmem:[%s11085_s1 + $0x6cc] sm:$0xf]  ;;  %v5129_v59 = vor.u32 %v6963_v50, %v5126_v51 }
 0x192   :  { %3793 = vmatpush.bf16.msra.mxu0 %v4585_v5  ;;  %v4665_v5 = vor.u32 %v6847_v60, %v4662_v6  ;;  %v3567_v15 = vpop.f32.mrf.mxu2  ;;  %v5510_v58 = vld [vmem:[%s11085_s1 + $0x7d8] sm:$0xf0]  ;;  %v6959_v6 = vld [vmem:[%s11085_s1 + $0x4ac] sm:$0xf] }
 0x193   :  { %3806 = vmatpush.bf16.msra.mxu1 %v4713_v8  ;;  %v6843_v8 = vld [vmem:[%s11085_s1 + $0x10c] sm:$0xf]  ;;  %v3580_v26 = vpop.f32.mrf.mxu3  ;;  %v5094_v10 = vld [vmem:[%s11085_s1 + $0x498] sm:$0xf0] }
 0x194   :  { %3819 = vmatpush.bf16.msra.mxu2 %v4841_v9  ;;  %v4646_v9 = vld [vmem:[%s11085_s1 + $0x118] sm:$0xf0]  ;;  %v7051_v15 = vld [vmem:[%s11085_s1 + $0x78c] sm:$0xf] }
 0x195   :  { %3832 = vmatpush.bf16.msra.mxu3 %v4969_v37  ;;  %v6907_v37 = vld [vmem:[%s11085_s1 + $0x30c] sm:$0xf]  ;;  %v4649_v39 = vor.u32 %v6843_v8, %v4646_v9  ;;  %v5478_v17 = vld [vmem:[%s11085_s1 + $0x798] sm:$0xf0] }
 0x196   :  { %3794 = vmatpush.bf16.msra.mxu0 %v4569_v27  ;;  %v4521_v27 = vor.u32 %v6811_v3, %v4518_v4  ;;  %v4905_v46 = vor.u32 %v6907_v37, %v4902_v14  ;;  %v5366_v3 = vld [vmem:[%s11085_s1 + $0x6b8] sm:$0xf0]  ;;  %v7055_v4 = vld [vmem:[%s11085_s1 + $0x7ac] sm:$0xf] }
 0x197   :  { %3807 = vmatpush.bf16.msra.mxu1 %v4697_v32  ;;  %v5270_v32 = vld [vmem:[%s11085_s1 + $0x5f8] sm:$0xf0]  ;;  %v6955_v8 = vld [vmem:[%s11085_s1 + $0x48c] sm:$0xf] }
 0x198   :  { %3820 = vmatpush.bf16.msra.mxu2 %v4825_v34  ;;  %v7031_v34 = vld [vmem:[%s11085_s1 + $0x6ec] sm:$0xf]  ;;  %v5273_v48 = vor.u32 %v6999_v24, %v5270_v32  ;;  %v5350_v14 = vld [vmem:[%s11085_s1 + $0x698] sm:$0xf0]  ;;  %v5097_v21 = vor.u32 %v6955_v8, %v5094_v10 }
 0x199   :  { %3833 = vmatpush.bf16.msra.mxu3 %v4953_v16  ;;  %v7063_v16 = vld [vmem:[%s11085_s1 + $0x7ec] sm:$0xf]  ;;  %v5401_v49 = vor.u32 %v7031_v34, %v5398_v36  ;;  %v5078_v34 = vld [vmem:[%s11085_s1 + $0x478] sm:$0xf0] }
 0x19a   :  { %3795 = vmatpush.bf16.msra.mxu0 %v4553_v52  ;;  %v5529_v55 = vor.u32 %v7063_v16, %v5526_v45  ;;  %v5254_v52 = vld [vmem:[%s11085_s1 + $0x5d8] sm:$0xf0]  ;;  %v7019_v37 = vld [vmem:[%s11085_s1 + $0x68c] sm:$0xf]  ;;  %v5481_v16 = vor.u32 %v7051_v15, %v5478_v17 }
 0x19b   :  { %3808 = vmatpush.bf16.msra.mxu1 %v4681_v56  ;;  %v5382_v56 = vld [vmem:[%s11085_s1 + $0x6d8] sm:$0xf0]  ;;  %v5257_v60 = vor.u32 %v6995_v62, %v5254_v52  ;;  %v6951_v32 = vld [vmem:[%s11085_s1 + $0x46c] sm:$0xf] }
 0x19c   :  { %3821 = vmatpush.bf16.msra.mxu2 %v4809_v57  ;;  %v7059_v57 = vld [vmem:[%s11085_s1 + $0x7cc] sm:$0xf]  ;;  %v5206_v45 = vld [vmem:[%s11085_s1 + $0x578] sm:$0xf0]  ;;  %v5081_v51 = vor.u32 %v6951_v32, %v5078_v34 }
 0x19d   :  { %3834 = vmatpush.bf16.msra.mxu3 %v4937_v61  ;;  %v5385_v61 = vor.u32 %v7027_v53, %v5382_v56  ;;  %v5513_v13 = vor.u32 %v7059_v57, %v5510_v58  ;;  %v6983_v36 = vld [vmem:[%s11085_s1 + $0x56c] sm:$0xf]  ;;  %v5062_v53 = vld [vmem:[%s11085_s1 + $0x458] sm:$0xf0] }
 0x19e   :  { %3796 = vmatpush.bf16.msra.mxu0 %v4537_v2  ;;  %v7023_v2 = vld [vmem:[%s11085_s1 + $0x6ac] sm:$0xf]  ;;  %v5209_v62 = vor.u32 %v6983_v36, %v5206_v45  ;;  %v5046_v8 = vld [vmem:[%s11085_s1 + $0x438] sm:$0xf0] }
 0x19f   :  { %3809 = vmatpush.bf16.msra.mxu1 %v4665_v5  ;;  %v5494_v5 = vld [vmem:[%s11085_s1 + $0x7b8] sm:$0xf0]  ;;  %v5369_v9 = vor.u32 %v7023_v2, %v5366_v3  ;;  %v6947_v52 = vld [vmem:[%s11085_s1 + $0x44c] sm:$0xf] }
 0x1a0   :  { %3822 = vmatpush.bf16.msra.mxu2 %v4793_v7  ;;  %v5113_v7 = vor.u32 %v6959_v6, %v5110_v63  ;;  %v5497_v12 = vor.u32 %v7055_v4, %v5494_v5  ;;  %v6979_v56 = vld [vmem:[%s11085_s1 + $0x54c] sm:$0xf]  ;;  %v5030_v15 = vld [vmem:[%s11085_s1 + $0x418] sm:$0xf0] }
 0x1a1   :  { %3835 = vmatpush.bf16.msra.mxu3 %v4921_v11  ;;  %v5286_v36 = vld [vmem:[%s11085_s1 + $0x618] sm:$0xf0]  ;;  %v7095_v45 = vld [vmem:[%s11085_s1 + $0x8ec] sm:$0xf] }
 0x1a2   :  { %3797 = vmatpush.bf16.msra.mxu0 %v4521_v27  ;;  %v3591_v24 = vpop.f32.mrf.mxu0  ;;  %v5353_v27 = vor.u32 %v7019_v37, %v5350_v14  ;;  %v6939_v14 = vld [vmem:[%s11085_s1 + $0x40c] sm:$0xf] }
 0x1a3   :  { %3810 = vmatpush.bf16.msra.mxu1 %v4649_v39 }
 0x1a4   :  { %3823 = vmatpush.bf16.msra.mxu2 %v4777_v43  ;;  %v3604_v43 = vpop.f32.mrf.mxu1 }
 0x1a5   :  { %3836 = vmatpush.bf16.msra.mxu3 %v4905_v46  ;;  %3798 = vmatmul.bf16.vlgmr.msra.gmra.mxu0 %v7715_v19  ;;  %v6987_v19 = vld [vmem:[%s11085_s1 + $0x58c] sm:$0xf] }
 0x1a6   :  { %3842 = vmatpush.bf16.msrb.mxu0 %v5145_v47  ;;  %3811 = vmatmul.bf16.vlgmr.msra.gmra.mxu1 %v7719_v22  ;;  %v5222_v22 = vld [vmem:[%s11085_s1 + $0x598] sm:$0xf0]  ;;  %v7015_v46 = vld [vmem:[%s11085_s1 + $0x66c] sm:$0xf] }
 0x1a7   :  { %3855 = vmatpush.bf16.msrb.mxu1 %v5273_v48  ;;  %3824 = vmatmul.bf16.vlgmr.msra.gmra.mxu2 %v7713_v18  ;;  %v5241_v18 = vor.u32 %v6991_v0, %v5238_v1  ;;  %v5225_v26 = vor.u32 %v6987_v19, %v5222_v22  ;;  %v5334_v47 = vld [vmem:[%s11085_s1 + $0x678] sm:$0xf0]  ;;  %v7047_v48 = vld [vmem:[%s11085_s1 + $0x76c] sm:$0xf]  ;;  %v5065_v1 = vor.u32 %v6947_v52, %v5062_v53 }
 0x1a8   :  { %3868 = vmatpush.bf16.msrb.mxu2 %v5401_v49  ;;  %3837 = vmatmul.bf16.vlgmr.msra.gmra.mxu3 %v7717_v20  ;;  %v7387_v20 = vld [vmem:[%s11087_s2] sm:$0xf]  ;;  %v5462_v49 = vld [vmem:[%s11085_s1 + $0x778] sm:$0xf0]  ;;  %v7043_v0 = vld [vmem:[%s11085_s1 + $0x74c] sm:$0xf] }
 0x1a9   :  { %3881 = vmatpush.bf16.msrb.mxu3 %v5529_v55  ;;  %v544_v11 = vperm.slane %v7387_v20, 2  ;;  %v5337_v55 = vor.u32 %v7015_v46, %v5334_v47  ;;  %v5465_v58 = vor.u32 %v7047_v48, %v5462_v49  ;;  %v5174_v19 = vld [vmem:[%s11085_s1 + $0x538] sm:$0xf0]  ;;  %v7007_v20 = vld [vmem:[%s11085_s1 + $0x62c] sm:$0xf]  ;;  %v5033_v48 = vor.u32 %v6939_v14, %v5030_v15 }
 0x1aa   :  { %3843 = vmatpush.bf16.msrb.mxu0 %v5129_v59  ;;  %v3617_v57 = vpop.f32.mrf.mxu2  ;;  %v5190_v59 = vld [vmem:[%s11085_s1 + $0x558] sm:$0xf0]  ;;  %v3593_v3 = vpop.f32.mrf.mxu0  ;;  %v7127_v47 = vld [vmem:[%s11085_s1 + $0x9ec] sm:$0xf] }
 0x1ab   :  { %3856 = vmatpush.bf16.msrb.mxu1 %v5257_v60  ;;  %v3592_v39 = vadd.f32 %v3591_v24, %v544_v11  ;;  %v7011_v60 = vld [vmem:[%s11085_s1 + $0x64c] sm:$0xf]  ;;  %v3630_v63 = vpop.f32.mrf.mxu3  ;;  %v5193_v4 = vor.u32 %v6979_v56, %v5190_v59  ;;  %v5302_v11 = vld [vmem:[%s11085_s1 + $0x638] sm:$0xf0] }
 0x1ac   :  { %3869 = vmatpush.bf16.msrb.mxu2 %v5385_v61  ;;  %v5318_v61 = vld [vmem:[%s11085_s1 + $0x658] sm:$0xf0]  ;;  %v6971_v24 = vld [vmem:[%s11085_s1 + $0x50c] sm:$0xf] }
 0x1ad   :  { %3882 = vmatpush.bf16.msrb.mxu3 %v5513_v13  ;;  %v3605_v50 = vadd.f32 %v3604_v43, %v3592_v39  ;;  %v5446_v13 = vld [vmem:[%s11085_s1 + $0x758] sm:$0xf0]  ;;  %v5321_v5 = vor.u32 %v7011_v60, %v5318_v61  ;;  %v7035_v39 = vld [vmem:[%s11085_s1 + $0x70c] sm:$0xf] }
 0x1ae   :  { %3844 = vmatpush.bf16.msrb.mxu0 %v5113_v7  ;;  %v6943_v7 = vld [vmem:[%s11085_s1 + $0x42c] sm:$0xf]  ;;  %v5449_v10 = vor.u32 %v7043_v0, %v5446_v13  ;;  %v5430_v22 = vld [vmem:[%s11085_s1 + $0x738] sm:$0xf0] }
 0x1af   :  { %3857 = vmatpush.bf16.msrb.mxu1 %v5241_v18  ;;  %v3618_v6 = vadd.f32 %v3617_v57, %v3605_v50  ;;  %v6975_v18 = vld [vmem:[%s11085_s1 + $0x52c] sm:$0xf]  ;;  %v5049_v37 = vor.u32 %v6943_v7, %v5046_v8  ;;  %v5414_v43 = vld [vmem:[%s11085_s1 + $0x718] sm:$0xf0] }
 0x1b0   :  { %3870 = vmatpush.bf16.msrb.mxu2 %v5369_v9  ;;  %v3606_v9 = vpop.f32.mrf.mxu1  ;;  %v5177_v17 = vor.u32 %v6975_v18, %v5174_v19  ;;  %v5654_v46 = vld [vmem:[%s11085_s1 + $0x8f8] sm:$0xf0]  ;;  %v7159_v50 = vld [vmem:[%s11085_s1 + $0xaec] sm:$0xf]  ;;  %v5417_v56 = vor.u32 %v7035_v39, %v5414_v43 }
 0x1b1   :  { %3883 = vmatpush.bf16.msrb.mxu3 %v5497_v12  ;;  %v10198_v2 = vadd.f32 %v3630_v63, %v3618_v6  ;;  %v7039_v12 = vld [vmem:[%s11085_s1 + $0x72c] sm:$0xf]  ;;  %v5782_v49 = vld [vmem:[%s11085_s1 + $0x9f8] sm:$0xf0]  ;;  %v5657_v57 = vor.u32 %v7095_v45, %v5654_v46 }
 0x1b2   :  { %3845 = vmatpush.bf16.msrb.mxu0 %v5097_v21  ;;  %v5305_v21 = vor.u32 %v7007_v20, %v5302_v11  ;;  %v3619_v32 = vpop.f32.mrf.mxu2  ;;  %v5433_v34 = vor.u32 %v7039_v12, %v5430_v22  ;;  %v7191_v52 = vld [vmem:[%s11085_s1 + $0xbec] sm:$0xf]  ;;  %v6038_v53 = vld [vmem:[%s11085_s1 + $0xbf8] sm:$0xf0] }
 0x1b3   :  { %3858 = vmatpush.bf16.msrb.mxu1 %v5225_v26  ;;  %v5158_v26 = vld [vmem:[%s11085_s1 + $0x518] sm:$0xf0]  ;;  %v7091_v60 = vld [vmem:[%s11085_s1 + $0x8cc] sm:$0xf]  ;;  %v6041_v63 = vor.u32 %v7191_v52, %v6038_v53 }
 0x1b4   :  { %3871 = vmatpush.bf16.msrb.mxu2 %v5353_v27  ;;  %v7003_v27 = vld [vmem:[%s11085_s1 + $0x60c] sm:$0xf]  ;;  %v5638_v61 = vld [vmem:[%s11085_s1 + $0x8d8] sm:$0xf0] }
 0x1b5   :  { %3884 = vmatpush.bf16.msrb.mxu3 %v5481_v16  ;;  %v3632_v16 = vpop.f32.mrf.mxu3  ;;  %v7123_v6 = vld [vmem:[%s11085_s1 + $0x9cc] sm:$0xf]  ;;  %v5766_v0 = vld [vmem:[%s11085_s1 + $0x9d8] sm:$0xf0] }
 0x1b6   :  { %3846 = vmatpush.bf16.msrb.mxu0 %v5081_v51  ;;  %v5910_v51 = vld [vmem:[%s11085_s1 + $0xaf8] sm:$0xf0]  ;;  %v7155_v13 = vld [vmem:[%s11085_s1 + $0xacc] sm:$0xf]  ;;  %v5769_v7 = vor.u32 %v7123_v6, %v5766_v0 }
 0x1b7   :  { %3859 = vmatpush.bf16.msrb.mxu1 %v5209_v62  ;;  %v5161_v62 = vor.u32 %v6971_v24, %v5158_v26  ;;  %v5913_v59 = vor.u32 %v7159_v50, %v5910_v51  ;;  %v7187_v3 = vld [vmem:[%s11085_s1 + $0xbcc] sm:$0xf]  ;;  %v5622_v9 = vld [vmem:[%s11085_s1 + $0x8b8] sm:$0xf0] }
 0x1b8   :  { %3872 = vmatpush.bf16.msrb.mxu2 %v5337_v55  ;;  %v5289_v55 = vor.u32 %v7003_v27, %v5286_v36  ;;  %v7087_v18 = vld [vmem:[%s11085_s1 + $0x8ac] sm:$0xf]  ;;  %v5750_v20 = vld [vmem:[%s11085_s1 + $0x9b8] sm:$0xf0] }
 0x1b9   :  { %3885 = vmatpush.bf16.msrb.mxu3 %v5465_v58  ;;  %v5785_v58 = vor.u32 %v7127_v47, %v5782_v49  ;;  %v7151_v11 = vld [vmem:[%s11085_s1 + $0xaac] sm:$0xf]  ;;  %v5878_v12 = vld [vmem:[%s11085_s1 + $0xab8] sm:$0xf0] }
 0x1ba   :  { %3847 = vmatpush.bf16.msrb.mxu0 %v5065_v1  ;;  %v5894_v1 = vld [vmem:[%s11085_s1 + $0xad8] sm:$0xf0]  ;;  %v7183_v22 = vld [vmem:[%s11085_s1 + $0xbac] sm:$0xf]  ;;  %v5881_v15 = vor.u32 %v7151_v11, %v5878_v12 }
 0x1bb   :  { %3860 = vmatpush.bf16.msrb.mxu1 %v5193_v4  ;;  %v6022_v4 = vld [vmem:[%s11085_s1 + $0xbd8] sm:$0xf0]  ;;  %v5897_v8 = vor.u32 %v7155_v13, %v5894_v1  ;;  %v7147_v24 = vld [vmem:[%s11085_s1 + $0xa8c] sm:$0xf] }
 0x1bc   :  { %3873 = vmatpush.bf16.msrb.mxu2 %v5321_v5  ;;  %v5641_v5 = vor.u32 %v7091_v60, %v5638_v61  ;;  %v6025_v19 = vor.u32 %v7187_v3, %v6022_v4  ;;  %v5862_v26 = vld [vmem:[%s11085_s1 + $0xa98] sm:$0xf0]  ;;  %v7179_v27 = vld [vmem:[%s11085_s1 + $0xb8c] sm:$0xf] }
 0x1bd   :  { %3886 = vmatpush.bf16.msrb.mxu3 %v5449_v10  ;;  %v7119_v10 = vld [vmem:[%s11085_s1 + $0x9ac] sm:$0xf]  ;;  %v5990_v32 = vld [vmem:[%s11085_s1 + $0xb98] sm:$0xf0]  ;;  %v5865_v43 = vor.u32 %v7147_v24, %v5862_v26 }
 0x1be   :  { %3848 = vmatpush.bf16.msrb.mxu0 %v5049_v37  ;;  %v5625_v37 = vor.u32 %v7087_v18, %v5622_v9  ;;  %v5753_v14 = vor.u32 %v7119_v10, %v5750_v20  ;;  %v7079_v16 = vld [vmem:[%s11085_s1 + $0x86c] sm:$0xf]  ;;  %v5590_v45 = vld [vmem:[%s11085_s1 + $0x878] sm:$0xf0] }
 0x1bf   :  { %3861 = vmatpush.bf16.msrb.mxu1 %v5177_v17  ;;  %v7083_v17 = vld [vmem:[%s11085_s1 + $0x88c] sm:$0xf]  ;;  %v5718_v49 = vld [vmem:[%s11085_s1 + $0x978] sm:$0xf0]  ;;  %v5593_v52 = vor.u32 %v7079_v16, %v5590_v45 }
 0x1c0   :  { %3874 = vmatpush.bf16.msrb.mxu2 %v5305_v21  ;;  %v5606_v21 = vld [vmem:[%s11085_s1 + $0x898] sm:$0xf0]  ;;  %v7111_v46 = vld [vmem:[%s11085_s1 + $0x96c] sm:$0xf] }
 0x1c1   :  { %3887 = vmatpush.bf16.msrb.mxu3 %v5433_v34  ;;  %v5609_v34 = vor.u32 %v7083_v17, %v5606_v21  ;;  %v7143_v50 = vld [vmem:[%s11085_s1 + $0xa6c] sm:$0xf]  ;;  %v5846_v51 = vld [vmem:[%s11085_s1 + $0xa78] sm:$0xf0]  ;;  %v5721_v53 = vor.u32 %v7111_v46, %v5718_v49 }
 0x1c2   :  { %3849 = vmatpush.bf16.msrb.mxu0 %v5033_v48  ;;  %v10348_v36 = vpop.f32.mrf.mxu0  ;;  %v5993_v48 = vor.u32 %v7179_v27, %v5990_v32  ;;  %v5702_v6 = vld [vmem:[%s11085_s1 + $0x958] sm:$0xf0]  ;;  %v7171_v1 = vld [vmem:[%s11085_s1 + $0xb4c] sm:$0xf] }
 0x1c3   :  { %3862 = vmatpush.bf16.msrb.mxu1 %v5161_v62  ;;  %v10359_v47 = vpop.f32.mrf.mxu1  ;;  %v7175_v62 = vld [vmem:[%s11085_s1 + $0xb6c] sm:$0xf]  ;;  %v5830_v0 = vld [vmem:[%s11085_s1 + $0xa58] sm:$0xf0] }
 0x1c4   :  { %3875 = vmatpush.bf16.msrb.mxu2 %v5289_v55  ;;  %v5974_v55 = vld [vmem:[%s11085_s1 + $0xb78] sm:$0xf0]  ;;  %v7071_v18 = vld [vmem:[%s11085_s1 + $0x82c] sm:$0xf] }
 0x1c5   :  { %3888 = vmatpush.bf16.msrb.mxu3 %v5417_v56  ;;  %3850 = vmatmul.bf16.vlgmr.msrb.gmra.mxu0 %v7877_v41  ;;  %v7115_v41 = vld [vmem:[%s11085_s1 + $0x98c] sm:$0xf]  ;;  %v5849_v56 = vor.u32 %v7143_v50, %v5846_v51  ;;  %v5977_v61 = vor.u32 %v7175_v62, %v5974_v55  ;;  %v5958_v3 = vld [vmem:[%s11085_s1 + $0xb58] sm:$0xf0] }
 0x1c6   :  { %3894 = vmatpush.bf16.msra.mxu0 %v5657_v57  ;;  %3863 = vmatmul.bf16.vlgmr.msrb.gmra.mxu1 %v7881_v44  ;;  %v5734_v44 = vld [vmem:[%s11085_s1 + $0x998] sm:$0xf0]  ;;  %v7075_v57 = vld [vmem:[%s11085_s1 + $0x84c] sm:$0xf]  ;;  %v5961_v20 = vor.u32 %v7171_v1, %v5958_v3 }
 0x1c7   :  { %3907 = vmatpush.bf16.msra.mxu1 %v5785_v58  ;;  %3876 = vmatmul.bf16.vlgmr.msrb.gmra.mxu2 %v7869_v38  ;;  %v6006_v38 = vld [vmem:[%s11085_s1 + $0xbb8] sm:$0xf0]  ;;  %v5737_v39 = vor.u32 %v7115_v41, %v5734_v44  ;;  %v7103_v10 = vld [vmem:[%s11085_s1 + $0x92c] sm:$0xf] }
 0x1c8   :  { %3920 = vmatpush.bf16.msra.mxu2 %v5913_v59  ;;  %3889 = vmatmul.bf16.vlgmr.msrb.gmra.mxu3 %v7879_v42  ;;  %v6009_v42 = vor.u32 %v7183_v22, %v6006_v38  ;;  %v5574_v58 = vld [vmem:[%s11085_s1 + $0x858] sm:$0xf0]  ;;  %v7107_v59 = vld [vmem:[%s11085_s1 + $0x94c] sm:$0xf] }
 0x1c9   :  { %3933 = vmatpush.bf16.msra.mxu3 %v6041_v63  ;;  %v7139_v63 = vld [vmem:[%s11085_s1 + $0xa4c] sm:$0xf]  ;;  %v5577_v4 = vor.u32 %v7075_v57, %v5574_v58  ;;  %v5558_v9 = vld [vmem:[%s11085_s1 + $0x838] sm:$0xf0] }
 0x1ca   :  { %3895 = vmatpush.bf16.msra.mxu0 %v5641_v5  ;;  %v10385_v60 = vpop.f32.mrf.mxu2  ;;  %v3645_v5 = vpop.f32.mrf.mxu0  ;;  %v5686_v11 = vld [vmem:[%s11085_s1 + $0x938] sm:$0xf0]  ;;  %v7135_v12 = vld [vmem:[%s11085_s1 + $0xa2c] sm:$0xf] }
 0x1cb   :  { %3908 = vmatpush.bf16.msra.mxu1 %v5769_v7  ;;  %v10396_v13 = vpop.f32.mrf.mxu3  ;;  %v5705_v7 = vor.u32 %v7107_v59, %v5702_v6  ;;  %v5814_v22 = vld [vmem:[%s11085_s1 + $0xa38] sm:$0xf0]  ;;  %v7167_v38 = vld [vmem:[%s11085_s1 + $0xb2c] sm:$0xf]  ;;  %v5689_v21 = vor.u32 %v7103_v10, %v5686_v11 }
 0x1cc   :  { %3921 = vmatpush.bf16.msra.mxu2 %v5897_v8  ;;  %v5833_v8 = vor.u32 %v7139_v63, %v5830_v0  ;;  %v5542_v17 = vld [vmem:[%s11085_s1 + $0x818] sm:$0xf0]  ;;  %v5817_v41 = vor.u32 %v7135_v12, %v5814_v22  ;;  %v7131_v24 = vld [vmem:[%s11085_s1 + $0xa0c] sm:$0xf] }
 0x1cd   :  { %3934 = vmatpush.bf16.msra.mxu3 %v6025_v19  ;;  %v3658_v19 = vpop.f32.mrf.mxu1  ;;  %v5670_v44 = vld [vmem:[%s11085_s1 + $0x918] sm:$0xf0]  ;;  %v7223_v16 = vld [vmem:[%s11085_s1 + $0xcec] sm:$0xf] }
 0x1ce   :  { %3896 = vmatpush.bf16.msra.mxu0 %v5625_v37  ;;  %v5942_v37 = vld [vmem:[%s11085_s1 + $0xb38] sm:$0xf0]  ;;  %v7255_v46 = vld [vmem:[%s11085_s1 + $0xdec] sm:$0xf] }
 0x1cf   :  { %3909 = vmatpush.bf16.msra.mxu1 %v5753_v14  ;;  %v5561_v14 = vor.u32 %v7071_v18, %v5558_v9  ;;  %v5945_v27 = vor.u32 %v7167_v38, %v5942_v37  ;;  %v5798_v32 = vld [vmem:[%s11085_s1 + $0xa18] sm:$0xf0]  ;;  %v7287_v50 = vld [vmem:[%s11085_s1 + $0xeec] sm:$0xf] }
 0x1d0   :  { %3922 = vmatpush.bf16.msra.mxu2 %v5881_v15  ;;  %v7067_v15 = vld [vmem:[%s11085_s1 + $0x80c] sm:$0xf]  ;;  %v6166_v45 = vld [vmem:[%s11085_s1 + $0xcf8] sm:$0xf0]  ;;  %v5801_v55 = vor.u32 %v7131_v24, %v5798_v32 }
 0x1d1   :  { %3935 = vmatpush.bf16.msra.mxu3 %v6009_v42  ;;  %v7099_v42 = vld [vmem:[%s11085_s1 + $0x90c] sm:$0xf]  ;;  %v6294_v49 = vld [vmem:[%s11085_s1 + $0xdf8] sm:$0xf0]  ;;  %v6169_v57 = vor.u32 %v7223_v16, %v6166_v45 }
 0x1d2   :  { %3897 = vmatpush.bf16.msra.mxu0 %v5609_v34  ;;  %v3671_v26 = vpop.f32.mrf.mxu2  ;;  %v7163_v34 = vld [vmem:[%s11085_s1 + $0xb0c] sm:$0xf]  ;;  %v6422_v51 = vld [vmem:[%s11085_s1 + $0xef8] sm:$0xf0]  ;;  %v5673_v62 = vor.u32 %v7099_v42, %v5670_v44  ;;  %v6297_v58 = vor.u32 %v7255_v46, %v6294_v49 }
 0x1d3   :  { %3910 = vmatpush.bf16.msra.mxu1 %v5737_v39  ;;  %v5926_v39 = vld [vmem:[%s11085_s1 + $0xb18] sm:$0xf0]  ;;  %v6425_v59 = vor.u32 %v7287_v50, %v6422_v51  ;;  %v7251_v63 = vld [vmem:[%s11085_s1 + $0xdcc] sm:$0xf] }
 0x1d4   :  { %3923 = vmatpush.bf16.msra.mxu2 %v5865_v43  ;;  %v3684_v43 = vpop.f32.mrf.mxu3  ;;  %v6150_v6 = vld [vmem:[%s11085_s1 + $0xcd8] sm:$0xf0]  ;;  %v7283_v3 = vld [vmem:[%s11085_s1 + $0xecc] sm:$0xf] }
 0x1d5   :  { %3936 = vmatpush.bf16.msra.mxu3 %v5993_v48  ;;  %v5545_v48 = vor.u32 %v7067_v15, %v5542_v17  ;;  %v6278_v1 = vld [vmem:[%s11085_s1 + $0xdd8] sm:$0xf0]  ;;  %v7315_v5 = vld [vmem:[%s11085_s1 + $0xfcc] sm:$0xf] }
 0x1d6   :  { %3898 = vmatpush.bf16.msra.mxu0 %v5593_v52  ;;  %v7319_v52 = vld [vmem:[%s11085_s1 + $0xfec] sm:$0xf]  ;;  %v6281_v18 = vor.u32 %v7251_v63, %v6278_v1  ;;  %v6134_v19 = vld [vmem:[%s11085_s1 + $0xcb8] sm:$0xf0] }
 0x1d7   :  { %3911 = vmatpush.bf16.msra.mxu1 %v5721_v53  ;;  %v6550_v53 = vld [vmem:[%s11085_s1 + $0xff8] sm:$0xf0]  ;;  %v7215_v10 = vld [vmem:[%s11085_s1 + $0xcac] sm:$0xf] }
 0x1d8   :  { %3924 = vmatpush.bf16.msra.mxu2 %v5849_v56  ;;  %v5929_v56 = vor.u32 %v7163_v34, %v5926_v39  ;;  %v6553_v0 = vor.u32 %v7319_v52, %v6550_v53  ;;  %v6262_v12 = vld [vmem:[%s11085_s1 + $0xdb8] sm:$0xf0]  ;;  %v7279_v22 = vld [vmem:[%s11085_s1 + $0xeac] sm:$0xf] }
 0x1d9   :  { %3937 = vmatpush.bf16.msra.mxu3 %v5977_v61  ;;  %v7219_v61 = vld [vmem:[%s11085_s1 + $0xccc] sm:$0xf]  ;;  %v6390_v38 = vld [vmem:[%s11085_s1 + $0xeb8] sm:$0xf0] }
 0x1da   :  { %3899 = vmatpush.bf16.msra.mxu0 %v5577_v4  ;;  %v6406_v4 = vld [vmem:[%s11085_s1 + $0xed8] sm:$0xf0]  ;;  %v6393_v17 = vor.u32 %v7279_v22, %v6390_v38  ;;  %v7275_v42 = vld [vmem:[%s11085_s1 + $0xe8c] sm:$0xf] }
 0x1db   :  { %3912 = vmatpush.bf16.msra.mxu1 %v5705_v7  ;;  %v6534_v7 = vld [vmem:[%s11085_s1 + $0xfd8] sm:$0xf0]  ;;  %v6409_v9 = vor.u32 %v7283_v3, %v6406_v4  ;;  %v7307_v26 = vld [vmem:[%s11085_s1 + $0xf8c] sm:$0xf] }
 0x1dc   :  { %3925 = vmatpush.bf16.msra.mxu2 %v5833_v8  ;;  %v6153_v8 = vor.u32 %v7219_v61, %v6150_v6  ;;  %v6537_v11 = vor.u32 %v7315_v5, %v6534_v7  ;;  %v6518_v37 = vld [vmem:[%s11085_s1 + $0xfb8] sm:$0xf0]  ;;  %v7207_v16 = vld [vmem:[%s11085_s1 + $0xc6c] sm:$0xf] }
 0x1dd   :  { %3938 = vmatpush.bf16.msra.mxu3 %v5961_v20  ;;  %v7247_v20 = vld [vmem:[%s11085_s1 + $0xdac] sm:$0xf]  ;;  %v6374_v44 = vld [vmem:[%s11085_s1 + $0xe98] sm:$0xf0] }
 0x1de   :  { %3900 = vmatpush.bf16.msra.mxu0 %v5561_v14  ;;  %v6137_v14 = vor.u32 %v7215_v10, %v6134_v19  ;;  %v6265_v15 = vor.u32 %v7247_v20, %v6262_v12  ;;  %v6377_v43 = vor.u32 %v7275_v42, %v6374_v44  ;;  %v6102_v45 = vld [vmem:[%s11085_s1 + $0xc78] sm:$0xf0]  ;;  %v7239_v46 = vld [vmem:[%s11085_s1 + $0xd6c] sm:$0xf] }
 0x1df   :  { %3913 = vmatpush.bf16.msra.mxu1 %v5689_v21  ;;  %v7243_v21 = vld [vmem:[%s11085_s1 + $0xd8c] sm:$0xf]  ;;  %v6230_v49 = vld [vmem:[%s11085_s1 + $0xd78] sm:$0xf0]  ;;  %v6105_v52 = vor.u32 %v7207_v16, %v6102_v45  ;;  %v6676_v16 = vld [vmem:[%s11088_s3 + $0xf0] sm:$0xf] }
 0x1e0   :  { %3926 = vmatpush.bf16.msra.mxu2 %v5817_v41  ;;  %v6246_v41 = vld [vmem:[%s11085_s1 + $0xd98] sm:$0xf0]  ;;  %v7271_v50 = vld [vmem:[%s11085_s1 + $0xe6c] sm:$0xf]  ;;  %v6233_v53 = vor.u32 %v7239_v46, %v6230_v49  ;;  %v7353_v49 = vld [vmem:[%s11088_s3 + $0xf4] sm:$0xf0] }
 0x1e1   :  { %3939 = vmatpush.bf16.msra.mxu3 %v5945_v27  ;;  %v6502_v27 = vld [vmem:[%s11085_s1 + $0xf98] sm:$0xf0]  ;;  %v6249_v39 = vor.u32 %v7243_v21, %v6246_v41  ;;  %v7299_v4 = vld [vmem:[%s11085_s1 + $0xf4c] sm:$0xf] }
 0x1e2   :  { %3901 = vmatpush.bf16.msra.mxu0 %v5545_v48  ;;  %v10546_v24 = vpop.f32.mrf.mxu0  ;;  %v6505_v48 = vor.u32 %v7307_v26, %v6502_v27  ;;  %v6358_v51 = vld [vmem:[%s11085_s1 + $0xe78] sm:$0xf0]  ;;  %v7199_v20 = vld [vmem:[%s11085_s1 + $0xc2c] sm:$0xf] }
 0x1e3   :  { %3914 = vmatpush.bf16.msra.mxu1 %v5673_v62  ;;  %v10554_v34 = vpop.f32.mrf.mxu1  ;;  %v7303_v62 = vld [vmem:[%s11085_s1 + $0xf6c] sm:$0xf]  ;;  %v6214_v63 = vld [vmem:[%s11085_s1 + $0xd58] sm:$0xf0] }
 0x1e4   :  { %3927 = vmatpush.bf16.msra.mxu2 %v5801_v55  ;;  %v6486_v55 = vld [vmem:[%s11085_s1 + $0xf78] sm:$0xf0]  ;;  %v7231_v12 = vld [vmem:[%s11085_s1 + $0xd2c] sm:$0xf] }
 0x1e5   :  { %3940 = vmatpush.bf16.msra.mxu3 %v5929_v56  ;;  %3902 = vmatmul.bf16.vlgmr.msra.gmra.mxu0 %v8070_v25  ;;  %v7311_v25 = vld [vmem:[%s11085_s1 + $0xfac] sm:$0xf]  ;;  %v6361_v56 = vor.u32 %v7271_v50, %v6358_v51  ;;  %v6489_v61 = vor.u32 %v7303_v62, %v6486_v55  ;;  %v6342_v1 = vld [vmem:[%s11085_s1 + $0xe58] sm:$0xf0]  ;;  %v6740_v50 = vld [vmem:[%s11088_s3 + $0x170] sm:$0xf] }
 0x1e6   :  { %3946 = vmatpush.bf16.msrb.mxu0 %v6169_v57  ;;  %3915 = vmatmul.bf16.vlgmr.msra.gmra.mxu1 %v8083_v30  ;;  %v6118_v30 = vld [vmem:[%s11085_s1 + $0xc98] sm:$0xf0]  ;;  %v7203_v57 = vld [vmem:[%s11085_s1 + $0xc4c] sm:$0xf]  ;;  %v7369_v51 = vld [vmem:[%s11088_s3 + $0x174] sm:$0xf0] }
 0x1e7   :  { %3959 = vmatpush.bf16.msrb.mxu1 %v6297_v58  ;;  %3928 = vmatmul.bf16.vlgmr.msra.gmra.mxu2 %v8081_v29  ;;  %v7211_v29 = vld [vmem:[%s11085_s1 + $0xc8c] sm:$0xf]  ;;  %v6086_v58 = vld [vmem:[%s11085_s1 + $0xc58] sm:$0xf0] }
 0x1e8   :  { %3972 = vmatpush.bf16.msrb.mxu2 %v6425_v59  ;;  %3941 = vmatmul.bf16.vlgmr.msra.gmra.mxu3 %v8091_v33  ;;  %v6521_v33 = vor.u32 %v7311_v25, %v6518_v37  ;;  %v6121_v32 = vor.u32 %v7211_v29, %v6118_v30  ;;  %v7235_v59 = vld [vmem:[%s11085_s1 + $0xd4c] sm:$0xf]  ;;  %v6470_v5 = vld [vmem:[%s11085_s1 + $0xf58] sm:$0xf0] }
 0x1e9   :  { %3985 = vmatpush.bf16.msrb.mxu3 %v6553_v0  ;;  %v7267_v0 = vld [vmem:[%s11085_s1 + $0xe4c] sm:$0xf]  ;;  %v6217_v10 = vor.u32 %v7235_v59, %v6214_v63  ;;  %v6326_v38 = vld [vmem:[%s11085_s1 + $0xe38] sm:$0xf0]  ;;  %v6668_v59 = vld [vmem:[%s11088_s3 + $0xe0] sm:$0xf] }
 0x1ea   :  { %3947 = vmatpush.bf16.msrb.mxu0 %v6153_v8  ;;  %v10589_v6 = vpop.f32.mrf.mxu2  ;;  %v3697_v7 = vpop.f32.mrf.mxu0  ;;  %v3644_v8 = vadd.f32 %v10348_v36, %v10198_v2  ;;  %v6345_v19 = vor.u32 %v7267_v0, %v6342_v1  ;;  %v6473_v2 = vor.u32 %v7299_v4, %v6470_v5  ;;  %v6198_v36 = vld [vmem:[%s11085_s1 + $0xd38] sm:$0xf0]  ;;  %v7263_v22 = vld [vmem:[%s11085_s1 + $0xe2c] sm:$0xf]  ;;  %v7351_v63 = vld [vmem:[%s11088_s3 + $0xe4] sm:$0xf0] }
 0x1eb   :  { %3960 = vmatpush.bf16.msrb.mxu1 %v6281_v18  ;;  %v10600_v3 = vpop.f32.mrf.mxu3  ;;  %v6089_v18 = vor.u32 %v7203_v57, %v6086_v58  ;;  %v7295_v25 = vld [vmem:[%s11085_s1 + $0xf2c] sm:$0xf]  ;;  %v6454_v37 = vld [vmem:[%s11085_s1 + $0xf38] sm:$0xf0]  ;;  %v6201_v30 = vor.u32 %v7231_v12, %v6198_v36  ;;  %v6329_v21 = vor.u32 %v7263_v22, %v6326_v38  ;;  %v6604_v57 = vld [vmem:[%s11088_s3 + $0x60] sm:$0xf]  ;;  %v6669_v5 = vor.u32 %v7351_v63, %v6668_v59 }
 0x1ec   :  { %3973 = vmatpush.bf16.msrb.mxu2 %v6409_v9  ;;  %v3710_v9 = vpop.f32.mrf.mxu1  ;;  %v6054_v29 = vld [vmem:[%s11085_s1 + $0xc18] sm:$0xf0]  ;;  %v7259_v41 = vld [vmem:[%s11085_s1 + $0xe0c] sm:$0xf]  ;;  %v6457_v42 = vor.u32 %v7295_v25, %v6454_v37  ;;  %v7335_v58 = vld [vmem:[%s11088_s3 + $0x64] sm:$0xf0] }
 0x1ed   :  { %3986 = vmatpush.bf16.msrb.mxu3 %v6537_v11  ;;  %v6070_v11 = vld [vmem:[%s11085_s1 + $0xc38] sm:$0xf0]  ;;  %v7291_v26 = vld [vmem:[%s11085_s1 + $0xf0c] sm:$0xf]  ;;  %v6732_v0 = vld [vmem:[%s11088_s3 + $0x160] sm:$0xf] }
 0x1ee   :  { %3948 = vmatpush.bf16.msrb.mxu0 %v6137_v14  ;;  %v3657_v14 = vadd.f32 %v10359_v47, %v3644_v8  ;;  %v6182_v47 = vld [vmem:[%s11085_s1 + $0xd18] sm:$0xf0]  ;;  %v7367_v1 = vld [vmem:[%s11088_s3 + $0x164] sm:$0xf0]  ;;  %v6596_v8 = vld [vmem:[%s11088_s3 + $0x50] sm:$0xf] }
 0x1ef   :  { %3961 = vmatpush.bf16.msrb.mxu1 %v6265_v15  ;;  %v6073_v15 = vor.u32 %v7199_v20, %v6070_v11  ;;  %v6310_v44 = vld [vmem:[%s11085_s1 + $0xe18] sm:$0xf0]  ;;  %v6733_v7 = vor.u32 %v7367_v1, %v6732_v0  ;;  %v6660_v9 = vld [vmem:[%s11088_s3 + $0xd0] sm:$0xf]  ;;  %v6588_v12 = vld [vmem:[%s11088_s3 + $0x40] sm:$0xf] }
 0x1f0   :  { %3974 = vmatpush.bf16.msrb.mxu2 %v6393_v17  ;;  %v7195_v17 = vld [vmem:[%s11085_s1 + $0xc0c] sm:$0xf]  ;;  %v6438_v27 = vld [vmem:[%s11085_s1 + $0xf18] sm:$0xf0]  ;;  %v3670_v46 = vadd.f32 %v10385_v60, %v3657_v14  ;;  %v6313_v55 = vor.u32 %v7259_v41, %v6310_v44  ;;  %v6716_v36 = vld [vmem:[%s11088_s3 + $0x140] sm:$0xf] }
 0x1f1   :  { %3987 = vmatpush.bf16.msrb.mxu3 %v6521_v33  ;;  %v7227_v33 = vld [vmem:[%s11085_s1 + $0xd0c] sm:$0xf]  ;;  %v6441_v60 = vor.u32 %v7291_v26, %v6438_v27  ;;  %v7363_v22 = vld [vmem:[%s11088_s3 + $0x144] sm:$0xf0]  ;;  %v7357_v59 = vld [vmem:[%s11088_s3 + $0x114] sm:$0xf0] }
 0x1f2   :  { %3949 = vmatpush.bf16.msrb.mxu0 %v6121_v32  ;;  %v3723_v32 = vpop.f32.mrf.mxu2  ;;  %v6185_v62 = vor.u32 %v7227_v33, %v6182_v47  ;;  %v6708_v33 = vld [vmem:[%s11088_s3 + $0x130] sm:$0xf]  ;;  %v7361_v47 = vld [vmem:[%s11088_s3 + $0x134] sm:$0xf0]  ;;  %v7327_v27 = vld [vmem:[%s11088_s3 + $0x24] sm:$0xf0] }
 0x1f3   :  { %3962 = vmatpush.bf16.msrb.mxu1 %v6249_v39  ;;  %v6612_v39 = vld [vmem:[%s11088_s3 + $0x70] sm:$0xf]  ;;  %v3736_v45 = vpop.f32.mrf.mxu3  ;;  %v6709_v26 = vor.u32 %v7361_v47, %v6708_v33  ;;  %v6636_v32 = vld [vmem:[%s11088_s3 + $0xa0] sm:$0xf]  ;;  %v7332_v47 = vld [vmem:[%s11088_s3 + $0x54] sm:$0xf] }
 0x1f4   :  { %3975 = vmatpush.bf16.msrb.mxu2 %v6377_v43  ;;  %v7337_v43 = vld [vmem:[%s11088_s3 + $0x74] sm:$0xf0]  ;;  %v7359_v45 = vld [vmem:[%s11088_s3 + $0x124] sm:$0xf0]  ;;  %v6556_v63 = vld [vmem:[%s11088_s3] sm:$0xf] }
 0x1f5   :  { %3988 = vmatpush.bf16.msrb.mxu3 %v6505_v48  ;;  %v6057_v48 = vor.u32 %v7195_v17, %v6054_v29  ;;  %v7329_v17 = vld [vmem:[%s11088_s3 + $0x34] sm:$0xf0]  ;;  %v6644_v29 = vld [vmem:[%s11088_s3 + $0xb0] sm:$0xf] }
 0x1f6   :  { %3950 = vmatpush.bf16.msrb.mxu0 %v6105_v52  ;;  %v6613_v52 = vor.u32 %v7337_v43, %v6612_v39  ;;  %v7343_v43 = vld [vmem:[%s11088_s3 + $0xa4] sm:$0xf0] }
 0x1f7   :  { %3963 = vmatpush.bf16.msrb.mxu1 %v6233_v53  ;;  %v6677_v53 = vor.u32 %v7353_v49, %v6676_v16  ;;  %v6700_v16 = vld [vmem:[%s11088_s3 + $0x120] sm:$0xf] }
 0x1f8   :  { %3976 = vmatpush.bf16.msrb.mxu2 %v6361_v56  ;;  %v6741_v56 = vor.u32 %v7369_v51, %v6740_v50 }
 0x1f9   :  { %3989 = vmatpush.bf16.msrb.mxu3 %v6489_v61  ;;  %v3683_v61 = vadd.f32 %v10396_v13, %v3670_v46  ;;  %v6605_v13 = vor.u32 %v7335_v58, %v6604_v57  ;;  %v7341_v57 = vld [vmem:[%s11088_s3 + $0x94] sm:$0xf0]  ;;  %v6692_v58 = vld [vmem:[%s11088_s3 + $0x110] sm:$0xf] }
 0x1fa   :  { %3951 = vmatpush.bf16.msrb.mxu0 %v6089_v18  ;;  %v7333_v18 = vld [vmem:[%s11088_s3 + $0x54] sm:$0xf0]  ;;  %v6693_v1 = vor.u32 %v7357_v59, %v6692_v58  ;;  %v7344_v58 = vld [vmem:[%s11088_s3 + $0xb4] sm:$0xf]  ;;  %v6646_v59 = vld [vmem:[%s11088_s3 + $0xb8] sm:$0xf0] }
 0x1fb   :  { %3964 = vmatpush.bf16.msrb.mxu1 %v6217_v10  ;;  %v3696_v4 = vadd.f32 %v10546_v24, %v3683_v61  ;;  %v7349_v24 = vld [vmem:[%s11088_s3 + $0xd4] sm:$0xf0]  ;;  %v6724_v10 = vld [vmem:[%s11088_s3 + $0x150] sm:$0xf] }
 0x1fc   :  { %3977 = vmatpush.bf16.msrb.mxu2 %v6345_v19  ;;  %v7365_v19 = vld [vmem:[%s11088_s3 + $0x154] sm:$0xf0]  ;;  %v6661_v20 = vor.u32 %v7349_v24, %v6660_v9  ;;  %v7336_v9 = vld [vmem:[%s11088_s3 + $0x74] sm:$0xf] }
 0x1fd   :  { %3990 = vmatpush.bf16.msrb.mxu3 %v6473_v2  ;;  %v6725_v11 = vor.u32 %v7365_v19, %v6724_v10  ;;  %v7331_v2 = vld [vmem:[%s11088_s3 + $0x44] sm:$0xf0]  ;;  %v6614_v10 = vld [vmem:[%s11088_s3 + $0x78] sm:$0xf0]  ;;  %v7352_v19 = vld [vmem:[%s11088_s3 + $0xf4] sm:$0xf] }
 0x1fe   :  { %3952 = vmatpush.bf16.msrb.mxu0 %v6073_v15  ;;  %v6589_v25 = vor.u32 %v7331_v2, %v6588_v12  ;;  %v6580_v15 = vld [vmem:[%s11088_s3 + $0x30] sm:$0xf]  ;;  %v6742_v12 = vld [vmem:[%s11088_s3 + $0x178] sm:$0xf0]  ;;  %v3998_v2 = vmax.f32 %v9199_v40, 0.0 }
 0x1ff   :  { %3965 = vmatpush.bf16.msrb.mxu1 %v6201_v30  ;;  %v7350_v40 = vld [vmem:[%s11088_s3 + $0xe4] sm:$0xf] }
 0x200   :  { %3978 = vmatpush.bf16.msrb.mxu2 %v6329_v21  ;;  %v7345_v21 = vld [vmem:[%s11088_s3 + $0xb4] sm:$0xf0] }
 0x201   :  { %3991 = vmatpush.bf16.msrb.mxu3 %v6457_v42  ;;  %v6581_v42 = vor.u32 %v7329_v17, %v6580_v15  ;;  %v6645_v44 = vor.u32 %v7345_v21, %v6644_v29  ;;  %v6734_v15 = vld [vmem:[%s11088_s3 + $0x168] sm:$0xf0]  ;;  %v10851_v17 = vpack.c.bf16 %v3998_v2, %v3998_v2  ;;  %v7324_v2 = vld [vmem:[%s11088_s3 + $0x14] sm:$0xf] }
 0x202   :  { %3953 = vmatpush.bf16.msrb.mxu0 %v6057_v48  ;;  %v3747_v38 = vpop.f32.mrf.mxu0 }
 0x203   :  { %3966 = vmatpush.bf16.msrb.mxu1 %v6185_v62  ;;  %v3760_v37 = vpop.f32.mrf.mxu1  ;;  %v6637_v62 = vor.u32 %v7343_v43, %v6636_v32  ;;  %v7330_v43 = vld [vmem:[%s11088_s3 + $0x44] sm:$0xf] }
 0x204   :  { %3979 = vmatpush.bf16.msrb.mxu2 %v6313_v55  ;;  %v6701_v55 = vor.u32 %v7359_v45, %v6700_v16  ;;  %v6590_v16 = vld [vmem:[%s11088_s3 + $0x48] sm:$0xf0] }
 0x205   :  { %3992 = vmatpush.bf16.msrb.mxu3 %v6441_v60  ;;  %3954 = vmatmul.bf16.vlgmr.msrb.gmra.mxu0 %v8280_v23  ;;  %v3709_v23 = vadd.f32 %v10554_v34, %v3696_v4  ;;  %v7347_v34 = vld [vmem:[%s11088_s3 + $0xc4] sm:$0xf0]  ;;  %v6564_v60 = vld [vmem:[%s11088_s3 + $0x10] sm:$0xf] }
 0x206   :  { %4396 = vmatpush.bf16.msra.mxu0 %v6613_v52  ;;  %3967 = vmatmul.bf16.vlgmr.msrb.gmra.mxu1 %v8293_v31  ;;  %v6597_v31 = vor.u32 %v7333_v18, %v6596_v8  ;;  %v7325_v52 = vld [vmem:[%s11088_s3 + $0x14] sm:$0xf0]  ;;  %v7323_v4 = vld [vmem:[%s11088_s3 + $0x4] sm:$0xf0]  ;;  %v6684_v8 = vld [vmem:[%s11088_s3 + $0x100] sm:$0xf] }
 0x207   :  { %4409 = vmatpush.bf16.msra.mxu1 %v6677_v53  ;;  %3980 = vmatmul.bf16.vlgmr.msrb.gmra.mxu2 %v8291_v28  ;;  %v6652_v28 = vld [vmem:[%s11088_s3 + $0xc0] sm:$0xf]  ;;  %v6628_v53 = vld [vmem:[%s11088_s3 + $0x90] sm:$0xf]  ;;  %v6565_v61 = vor.u32 %v7325_v52, %v6564_v60  ;;  %v7355_v18 = vld [vmem:[%s11088_s3 + $0x104] sm:$0xf0] }
 0x208   :  { %4422 = vmatpush.bf16.msra.mxu2 %v6741_v56  ;;  %3993 = vmatmul.bf16.vlgmr.msrb.gmra.mxu3 %v8301_v35  ;;  %v3722_v35 = vadd.f32 %v10589_v6, %v3709_v23  ;;  %v6653_v14 = vor.u32 %v7347_v34, %v6652_v28  ;;  %v6717_v6 = vor.u32 %v7363_v22, %v6716_v36  ;;  %v6678_v23 = vld [vmem:[%s11088_s3 + $0xf8] sm:$0xf0]  ;;  %v3999_v28 = vmax.f32 %v9997_v54, 0.0  ;;  %v6670_v54 = vld [vmem:[%s11088_s3 + $0xe8] sm:$0xf0] }
 0x209   :  { %v6629_v0 = vor.u32 %v7341_v57, %v6628_v53  ;;  %v6685_v34 = vor.u32 %v7355_v18, %v6684_v8  ;;  %v6617_v22 = vor.u32 %v7336_v9, %v6614_v10  ;;  %v6673_v33 = vor.u32 %v7350_v40, %v6670_v54  ;;  %v7328_v52 = vld [vmem:[%s11088_s3 + $0x34] sm:$0xf]  ;;  %v6582_v57 = vld [vmem:[%s11088_s3 + $0x38] sm:$0xf0]  ;;  %v6574_v18 = vld [vmem:[%s11088_s3 + $0x28] sm:$0xf0] }
 0x20a   :  { %4397 = vmatpush.bf16.msra.mxu0 %v6605_v13  ;;  %v3735_v30 = vadd.f32 %v10600_v3, %v3722_v35  ;;  %v6572_v3 = vld [vmem:[%s11088_s3 + $0x20] sm:$0xf]  ;;  %v3773_v39 = vpop.f32.mrf.mxu2  ;;  %v3749_v48 = vpop.f32.mrf.mxu0  ;;  %v10853_v29 = vpack.c.bf16 %v3999_v28, %v3999_v28  ;;  %v7342_v9 = vld [vmem:[%s11088_s3 + $0xa4] sm:$0xf] }
 0x20b   :  { %4410 = vmatpush.bf16.msra.mxu1 %v6669_v5  ;;  %v3786_v46 = vpop.f32.mrf.mxu3  ;;  %v6573_v50 = vor.u32 %v7327_v27, %v6572_v3  ;;  %v3762_v51 = vpop.f32.mrf.mxu1  ;;  %v6620_v13 = vld [vmem:[%s11088_s3 + $0x80] sm:$0xf]  ;;  %v7339_v5 = vld [vmem:[%s11088_s3 + $0x84] sm:$0xf0]  ;;  %v7364_v3 = vld [vmem:[%s11088_s3 + $0x154] sm:$0xf] }
 0x20c   :  { %4423 = vmatpush.bf16.msra.mxu2 %v6733_v7  ;;  %v3748_v41 = vadd.f32 %v3747_v38, %v3735_v30  ;;  %v6621_v35 = vor.u32 %v7339_v5, %v6620_v13  ;;  %v6681_v38 = vor.u32 %v7352_v19, %v6678_v23  ;;  %v6726_v27 = vld [vmem:[%s11088_s3 + $0x158] sm:$0xf0]  ;;  %v6654_v48 = vld [vmem:[%s11088_s3 + $0xc8] sm:$0xf0]  ;;  %v7362_v51 = vld [vmem:[%s11088_s3 + $0x144] sm:$0xf]  ;;  %v6585_v13 = vor.u32 %v7328_v52, %v6582_v57 }
 0x20d   :  { %v6729_v45 = vor.u32 %v7364_v3, %v6726_v27  ;;  %v6649_v5 = vor.u32 %v7344_v58, %v6646_v59  ;;  %v7358_v19 = vld [vmem:[%s11088_s3 + $0x124] sm:$0xf]  ;;  %v6702_v23 = vld [vmem:[%s11088_s3 + $0x128] sm:$0xf0]  ;;  %v6772_v57 = vld [vmem:[%s11088_s3 + $0x1b0] sm:$0xf] }
 0x20e   :  { %4398 = vmatpush.bf16.msra.mxu0 %v6597_v31  ;;  %v3761_v49 = vadd.f32 %v3760_v37, %v3748_v41  ;;  %v7377_v58 = vld [vmem:[%s11088_s3 + $0x1b4] sm:$0xf0] }
 0x20f   :  { %4411 = vmatpush.bf16.msra.mxu1 %v6661_v20  ;;  %v6557_v20 = vor.u32 %v7323_v4, %v6556_v63  ;;  %v6773_v59 = vor.u32 %v7377_v58, %v6772_v57 }
 0x210   :  { %4424 = vmatpush.bf16.msra.mxu2 %v6725_v11  ;;  %v3774_v56 = vadd.f32 %v3773_v39, %v3761_v49  ;;  %v7368_v11 = vld [vmem:[%s11088_s3 + $0x174] sm:$0xf]  ;;  %v7388_v49 = vld [vmem:[%s11087_s2] sm:$0xf] }
 0x211   :  { %v6745_v37 = vor.u32 %v7368_v11, %v6742_v12 }
 0x212   :  { %4399 = vmatpush.bf16.msra.mxu0 %v6589_v25  ;;  %v3787_v7 = vadd.f32 %v3786_v46, %v3774_v56  ;;  %v3775_v24 = vpop.f32.mrf.mxu2  ;;  %v7334_v25 = vld [vmem:[%s11088_s3 + $0x64] sm:$0xf] }
 0x213   :  { %4412 = vmatpush.bf16.msra.mxu1 %v6653_v14  ;;  %v3788_v31 = vpop.f32.mrf.mxu3  ;;  %v6606_v14 = vld [vmem:[%s11088_s3 + $0x68] sm:$0xf0]  ;;  %v7346_v46 = vld [vmem:[%s11088_s3 + $0xc4] sm:$0xf] }
 0x214   :  { %4425 = vmatpush.bf16.msra.mxu2 %v6717_v6  ;;  %v4000_v36 = vmax.f32 %v3787_v7, 0.0  ;;  %v7366_v6 = vld [vmem:[%s11088_s3 + $0x164] sm:$0xf]  ;;  %v6609_v21 = vor.u32 %v7334_v25, %v6606_v14  ;;  %v6657_v60 = vor.u32 %v7346_v46, %v6654_v48  ;;  %v6638_v24 = vld [vmem:[%s11088_s3 + $0xa8] sm:$0xf0] }
 0x215   :  { %v6737_v41 = vor.u32 %v7366_v6, %v6734_v15  ;;  %v7326_v7 = vld [vmem:[%s11088_s3 + $0x24] sm:$0xf]  ;;  %v6641_v12 = vor.u32 %v7342_v9, %v6638_v24  ;;  %v6694_v14 = vld [vmem:[%s11088_s3 + $0x118] sm:$0xf0]  ;;  %v6796_v46 = vld [vmem:[%s11088_s3 + $0x1e0] sm:$0xf] }
 0x216   :  { %4400 = vmatpush.bf16.msra.mxu0 %v6581_v42  ;;  %v10855_v30 = vpack.c.bf16 %v4000_v36, %v4000_v36  ;;  %v6598_v42 = vld [vmem:[%s11088_s3 + $0x58] sm:$0xf0]  ;;  %v6577_v11 = vor.u32 %v7326_v7, %v6574_v18  ;;  %v7322_v6 = vld [vmem:[%s11088_s3 + $0x4] sm:$0xf]  ;;  %v7371_v18 = vld [vmem:[%s11088_s3 + $0x184] sm:$0xf0] }
 0x217   :  { %4413 = vmatpush.bf16.msra.mxu1 %v6645_v44  ;;  %v7348_v44 = vld [vmem:[%s11088_s3 + $0xd4] sm:$0xf]  ;;  %v6601_v32 = vor.u32 %v7332_v47, %v6598_v42  ;;  %v6566_v36 = vld [vmem:[%s11088_s3 + $0x18] sm:$0xf0]  ;;  %v6622_v47 = vld [vmem:[%s11088_s3 + $0x88] sm:$0xf0] }
 0x218   :  { %4426 = vmatpush.bf16.msra.mxu2 %v6709_v26  ;;  %v6662_v26 = vld [vmem:[%s11088_s3 + $0xd8] sm:$0xf0]  ;;  %v6569_v40 = vor.u32 %v7324_v2, %v6566_v36  ;;  %v7354_v42 = vld [vmem:[%s11088_s3 + $0x104] sm:$0xf]  ;;  %v7384_v24 = vld [vmem:[%s11088_s3 + $0x1f4] sm:$0xf] }
 0x219   :  { %v6665_v39 = vor.u32 %v7348_v44, %v6662_v26  ;;  %v6686_v44 = vld [vmem:[%s11088_s3 + $0x108] sm:$0xf0]  ;;  %v7380_v2 = vld [vmem:[%s11088_s3 + $0x1d4] sm:$0xf] }
 0x21a   :  { %4401 = vmatpush.bf16.msra.mxu0 %v6573_v50  ;;  %v545_v50 = vperm.slane %v7388_v49, 3  ;;  %v6788_v49 = vld [vmem:[%s11088_s3 + $0x1d0] sm:$0xf] }
 0x21b   :  { %4414 = vmatpush.bf16.msra.mxu1 %v6637_v62  ;;  %v6718_v62 = vld [vmem:[%s11088_s3 + $0x148] sm:$0xf0] }
 0x21c   :  { %4427 = vmatpush.bf16.msra.mxu2 %v6701_v55  ;;  %v6593_v55 = vor.u32 %v7330_v43, %v6590_v16  ;;  %v6721_v56 = vor.u32 %v7362_v51, %v6718_v62  ;;  %v7385_v43 = vld [vmem:[%s11088_s3 + $0x1f4] sm:$0xf0] }
 0x21e   :  { %4402 = vmatpush.bf16.msra.mxu0 %v6565_v61 }
 0x21f   :  { %4415 = vmatpush.bf16.msra.mxu1 %v6629_v0  ;;  %v7360_v0 = vld [vmem:[%s11088_s3 + $0x134] sm:$0xf] }
 0x220   :  { %4428 = vmatpush.bf16.msra.mxu2 %v6693_v1  ;;  %v6710_v1 = vld [vmem:[%s11088_s3 + $0x138] sm:$0xf0] }
 0x221   :  { %v6713_v8 = vor.u32 %v7360_v0, %v6710_v1  ;;  %v7375_v0 = vld [vmem:[%s11088_s3 + $0x1a4] sm:$0xf0] }
 0x222   :  { %4403 = vmatpush.bf16.msra.mxu0 %v6557_v20  ;;  %v3799_v53 = vpop.f32.mrf.mxu0 }
 0x223   :  { %4416 = vmatpush.bf16.msra.mxu1 %v6621_v35  ;;  %v3800_v61 = vadd.f32 %v3799_v53, %v545_v50  ;;  %v3812_v63 = vpop.f32.mrf.mxu1  ;;  %v7381_v50 = vld [vmem:[%s11088_s3 + $0x1d4] sm:$0xf0] }
 0x224   :  { %4429 = vmatpush.bf16.msra.mxu2 %v6685_v34  ;;  %v6705_v34 = vor.u32 %v7358_v19, %v6702_v23  ;;  %v6789_v62 = vor.u32 %v7381_v50, %v6788_v49 }
 0x225   :  { %4404 = vmatmul.bf16.vlgmr.msra.gmra.mxu0 %v10851_v17  ;;  %v3813_v4 = vadd.f32 %v3812_v63, %v3800_v61  ;;  %v6764_v63 = vld [vmem:[%s11088_s3 + $0x1a0] sm:$0xf] }
 0x226   :  { %4448 = vmatpush.bf16.msrb.mxu0 %v6617_v22  ;;  %4417 = vmatmul.bf16.vlgmr.msra.gmra.mxu1 %v10853_v29  ;;  %v7340_v22 = vld [vmem:[%s11088_s3 + $0x94] sm:$0xf] }
 0x227   :  { %4461 = vmatpush.bf16.msrb.mxu1 %v6681_v38  ;;  %4430 = vmatmul.bf16.vlgmr.msra.gmra.mxu2 %v10855_v30  ;;  %v6630_v38 = vld [vmem:[%s11088_s3 + $0x98] sm:$0xf0] }
 0x228   :  { %4474 = vmatpush.bf16.msrb.mxu2 %v6745_v37  ;;  %v7356_v37 = vld [vmem:[%s11088_s3 + $0x114] sm:$0xf]  ;;  %v6633_v54 = vor.u32 %v7340_v22, %v6630_v38 }
 0x229   :  { %v6697_v15 = vor.u32 %v7356_v37, %v6694_v14  ;;  %v7378_v14 = vld [vmem:[%s11088_s3 + $0x1c4] sm:$0xf] }
 0x22a   :  { %4449 = vmatpush.bf16.msrb.mxu0 %v6609_v21  ;;  %v3825_v10 = vpop.f32.mrf.mxu2  ;;  %v3801_v35 = vpop.f32.mrf.mxu0  ;;  %v6558_v21 = vld [vmem:[%s11088_s3 + $0x8] sm:$0xf0] }
 0x22b   :  { %4462 = vmatpush.bf16.msrb.mxu1 %v6673_v33  ;;  %v3826_v31 = vadd.f32 %v3825_v10, %v3813_v4  ;;  %v3838_v20 = vpop.f32.mrf.mxu3  ;;  %v3814_v25 = vpop.f32.mrf.mxu1  ;;  %v7338_v33 = vld [vmem:[%s11088_s3 + $0x84] sm:$0xf]  ;;  %v6561_v3 = vor.u32 %v7322_v6, %v6558_v21  ;;  %v6765_v4 = vor.u32 %v7375_v0, %v6764_v63  ;;  %v6806_v10 = vld [vmem:[%s11088_s3 + $0x1f8] sm:$0xf0]  ;;  %v4070_v63 = vld [vmem:[%s11089_s4] sm:$0x3] }
 0x22c   :  { %4475 = vmatpush.bf16.msrb.mxu2 %v6737_v41  ;;  %v6625_v27 = vor.u32 %v7338_v33, %v6622_v47  ;;  %v6809_v19 = vor.u32 %v7384_v24, %v6806_v10  ;;  %v6790_v35 = vld [vmem:[%s11088_s3 + $0x1d8] sm:$0xf0]  ;;  %v7374_v47 = vld [vmem:[%s11088_s3 + $0x1a4] sm:$0xf]  ;;  %v4072_v0 = vperm.slane %v4070_v63, 0  ;;  %v4073_v10 = vperm.slane %v4070_v63, 1 }
 0x22d   :  { %v10938_v28 = vadd.f32 %v3838_v20, %v3826_v31  ;;  %v7382_v20 = vld [vmem:[%s11088_s3 + $0x1e4] sm:$0xf]  ;;  %v6793_v36 = vor.u32 %v7380_v2, %v6790_v35 }
 0x22e   :  { %4450 = vmatpush.bf16.msrb.mxu0 %v6601_v32  ;;  %v6689_v32 = vor.u32 %v7354_v42, %v6686_v44 }
 0x22f   :  { %4463 = vmatpush.bf16.msrb.mxu1 %v6665_v39  ;;  %v6804_v39 = vld [vmem:[%s11088_s3 + $0x1f0] sm:$0xf] }
 0x230   :  { %4476 = vmatpush.bf16.msrb.mxu2 %v6729_v45  ;;  %v6805_v16 = vor.u32 %v7385_v43, %v6804_v39 }
 0x232   :  { %4451 = vmatpush.bf16.msrb.mxu0 %v6593_v55  ;;  %v3827_v41 = vpop.f32.mrf.mxu2  ;;  %4435 = vmatpush.bf16.msra.mxu3 %v6805_v16  ;;  %v6780_v55 = vld [vmem:[%s11088_s3 + $0x1c0] sm:$0xf]  ;;  %v7370_v16 = vld [vmem:[%s11088_s3 + $0x184] sm:$0xf] }
 0x233   :  { %4464 = vmatpush.bf16.msrb.mxu1 %v6657_v60  ;;  %v3840_v26 = vpop.f32.mrf.mxu3  ;;  %v7379_v60 = vld [vmem:[%s11088_s3 + $0x1c4] sm:$0xf0]  ;;  %v6766_v41 = vld [vmem:[%s11088_s3 + $0x1a8] sm:$0xf0] }
 0x234   :  { %4477 = vmatpush.bf16.msrb.mxu2 %v6721_v56  ;;  %v6781_v53 = vor.u32 %v7379_v60, %v6780_v55  ;;  %v6769_v26 = vor.u32 %v7374_v47, %v6766_v41 }
 0x236   :  { %4452 = vmatpush.bf16.msrb.mxu0 %v6585_v13  ;;  %v6756_v13 = vld [vmem:[%s11088_s3 + $0x190] sm:$0xf] }
 0x237   :  { %4465 = vmatpush.bf16.msrb.mxu1 %v6649_v5  ;;  %v7373_v5 = vld [vmem:[%s11088_s3 + $0x194] sm:$0xf0] }
 0x238   :  { %4478 = vmatpush.bf16.msrb.mxu2 %v6713_v8  ;;  %v6757_v7 = vor.u32 %v7373_v5, %v6756_v13  ;;  %v6748_v8 = vld [vmem:[%s11088_s3 + $0x180] sm:$0xf] }
 0x239   :  { %v6749_v9 = vor.u32 %v7371_v18, %v6748_v8 }
 0x23a   :  { %4453 = vmatpush.bf16.msrb.mxu0 %v6577_v11  ;;  %v6798_v11 = vld [vmem:[%s11088_s3 + $0x1e8] sm:$0xf0] }
 0x23b   :  { %4466 = vmatpush.bf16.msrb.mxu1 %v6641_v12  ;;  %v6801_v12 = vor.u32 %v7382_v20, %v6798_v11 }
 0x23c   :  { %4479 = vmatpush.bf16.msrb.mxu2 %v6705_v34 }
 0x23e   :  { %4454 = vmatpush.bf16.msrb.mxu0 %v6569_v40  ;;  %v6782_v40 = vld [vmem:[%s11088_s3 + $0x1c8] sm:$0xf0] }
 0x23f   :  { %4467 = vmatpush.bf16.msrb.mxu1 %v6633_v54  ;;  %v6785_v6 = vor.u32 %v7378_v14, %v6782_v40 }
 0x240   :  { %4480 = vmatpush.bf16.msrb.mxu2 %v6697_v15  ;;  %v6774_v15 = vld [vmem:[%s11088_s3 + $0x1b8] sm:$0xf0] }
 0x242   :  { %4455 = vmatpush.bf16.msrb.mxu0 %v6561_v3  ;;  %v3851_v45 = vpop.f32.mrf.mxu0  ;;  %v7372_v3 = vld [vmem:[%s11088_s3 + $0x194] sm:$0xf] }
 0x243   :  { %4468 = vmatpush.bf16.msrb.mxu1 %v6625_v27  ;;  %v3852_v34 = vadd.f32 %v3851_v45, %v10938_v28  ;;  %v7376_v28 = vld [vmem:[%s11088_s3 + $0x1b4] sm:$0xf]  ;;  %v6758_v27 = vld [vmem:[%s11088_s3 + $0x198] sm:$0xf0]  ;;  %v6750_v45 = vld [vmem:[%s11088_s3 + $0x188] sm:$0xf0] }
 0x244   :  { %4481 = vmatpush.bf16.msrb.mxu2 %v6689_v32  ;;  %v6777_v33 = vor.u32 %v7376_v28, %v6774_v15  ;;  %v6761_v43 = vor.u32 %v7372_v3, %v6758_v27 }
 0x245   :  { %4456 = vmatmul.bf16.vlgmr.msrb.gmra.mxu0 %v10851_v17  ;;  %v7383_v17 = vld [vmem:[%s11088_s3 + $0x1e4] sm:$0xf0] }
 0x246   :  { %4469 = vmatmul.bf16.vlgmr.msrb.gmra.mxu1 %v10853_v29  ;;  %v3864_v29 = vpop.f32.mrf.mxu1 }
 0x247   :  { %4482 = vmatmul.bf16.vlgmr.msrb.gmra.mxu2 %v10855_v30  ;;  %v6797_v30 = vor.u32 %v7383_v17, %v6796_v46  ;;  %v3865_v54 = vadd.f32 %v3864_v29, %v3852_v34  ;;  %v6753_v17 = vor.u32 %v7370_v16, %v6750_v45 }
 0x249   :  { %4436 = vmatpush.bf16.msra.mxu3 %v6797_v30 }
 0x24a   :  { %v3877_v48 = vpop.f32.mrf.mxu2  ;;  %v3853_v52 = vpop.f32.mrf.mxu0 }
 0x24b   :  { %v10994_v51 = vpop.f32.mrf.mxu3  ;;  %v3878_v21 = vadd.f32 %v3877_v48, %v3865_v54 }
 0x24d   :  { %4437 = vmatpush.bf16.msra.mxu3 %v6789_v62  ;;  %v3891_v32 = vadd.f32 %v10994_v51, %v3878_v21 }
 0x24e   :  { %v3866_v56 = vpop.f32.mrf.mxu1 }
 0x251   :  { %4438 = vmatpush.bf16.msra.mxu3 %v6781_v53 }
 0x252   :  { %v3879_v61 = vpop.f32.mrf.mxu2 }
 0x253   :  { %v3892_v1 = vpop.f32.mrf.mxu3 }
 0x255   :  { %4439 = vmatpush.bf16.msra.mxu3 %v6773_v59 }
 0x259   :  { %4440 = vmatpush.bf16.msra.mxu3 %v6765_v4 }
 0x25d   :  { %4441 = vmatpush.bf16.msra.mxu3 %v6757_v7 }
 0x261   :  { %4442 = vmatpush.bf16.msra.mxu3 %v6749_v9 }
 0x262   :  { %v3903_v23 = vpop.f32.mrf.mxu0 }
 0x263   :  { %v3916_v31 = vpop.f32.mrf.mxu1  ;;  %v3904_v39 = vadd.f32 %v3903_v23, %v3891_v32 }
 0x265   :  { %4487 = vmatpush.bf16.msrb.mxu3 %v6809_v19  ;;  %v3917_v46 = vadd.f32 %v3916_v31, %v3904_v39 }
 0x269   :  { %4488 = vmatpush.bf16.msrb.mxu3 %v6801_v12 }
 0x26a   :  { %v3929_v22 = vpop.f32.mrf.mxu2  ;;  %v3905_v25 = vpop.f32.mrf.mxu0 }
 0x26b   :  { %v3942_v38 = vpop.f32.mrf.mxu3  ;;  %v3918_v37 = vpop.f32.mrf.mxu1  ;;  %v3930_v29 = vadd.f32 %v3929_v22, %v3917_v46 }
 0x26d   :  { %4489 = vmatpush.bf16.msrb.mxu3 %v6793_v36  ;;  %v3943_v30 = vadd.f32 %v3942_v38, %v3930_v29 }
 0x271   :  { %4490 = vmatpush.bf16.msrb.mxu3 %v6785_v6 }
 0x272   :  { %v3931_v42 = vpop.f32.mrf.mxu2 }
 0x273   :  { %v3944_v44 = vpop.f32.mrf.mxu3 }
 0x275   :  { %4491 = vmatpush.bf16.msrb.mxu3 %v6777_v33 }
 0x279   :  { %4492 = vmatpush.bf16.msrb.mxu3 %v6769_v26 }
 0x27d   :  { %4493 = vmatpush.bf16.msrb.mxu3 %v6761_v43 }
 0x281   :  { %4494 = vmatpush.bf16.msrb.mxu3 %v6753_v17 }
 0x282   :  { %v3955_v48 = vpop.f32.mrf.mxu0 }
 0x283   :  { %v3968_v49 = vpop.f32.mrf.mxu1  ;;  %v3956_v50 = vadd.f32 %v3955_v48, %v3943_v30 }
 0x285   :  { %v3969_v51 = vadd.f32 %v3968_v49, %v3956_v50 }
 0x28a   :  { %v3981_v62 = vpop.f32.mrf.mxu2  ;;  %v3957_v52 = vpop.f32.mrf.mxu0 }
 0x28b   :  { %v3994_v55 = vpop.f32.mrf.mxu3  ;;  %v3982_v60 = vadd.f32 %v3981_v62, %v3969_v51  ;;  %v3970_v53 = vpop.f32.mrf.mxu1 }
 0x28d   :  { %v3995_v56 = vadd.f32 %v3994_v55, %v3982_v60 }
 0x28f   :  { %v4001_v57 = vmax.f32 %v3995_v56, 0.0 }
 0x291   :  { %v4005_v58 = vpack.c.bf16 %v4001_v57, %v4001_v57 }
 0x292   :  { %v3983_v59 = vpop.f32.mrf.mxu2 }
 0x293   :  { %v3996_v61 = vpop.f32.mrf.mxu3  ;;  %4443 = vmatmul.bf16.vlgmr.msra.gmra.mxu3 %v4005_v58 }
 0x2a2   :  { %v4405_v1 = vpop.f32.mrf.mxu0 }
 0x2a3   :  { %v4406_v4 = vadd.f32 %v4405_v1, %v4072_v0  ;;  %v4418_v13 = vpop.f32.mrf.mxu1  ;;  %4495 = vmatmul.bf16.vlgmr.msrb.gmra.mxu3 %v4005_v58 }
 0x2a5   :  { %v4419_v5 = vadd.f32 %v4418_v13, %v4406_v4 }
 0x2aa   :  { %v4431_v7 = vpop.f32.mrf.mxu2  ;;  %v4407_v18 = vpop.f32.mrf.mxu0 }
 0x2ab   :  { %v4432_v8 = vadd.f32 %v4431_v7, %v4419_v5  ;;  %v4420_v9 = vpop.f32.mrf.mxu1 }
 0x2b2   :  { %v4433_v24 = vpop.f32.mrf.mxu2 }
 0x2c2   :  { %v4457_v19 = vpop.f32.mrf.mxu0 }
 0x2c3   :  { %v4470_v23 = vpop.f32.mrf.mxu1  ;;  %v4458_v31 = vadd.f32 %v4457_v19, %v4073_v10 }
 0x2c5   :  { %v4471_v20 = vadd.f32 %v4470_v23, %v4458_v31 }
 0x2ca   :  { %v4483_v11 = vpop.f32.mrf.mxu2  ;;  %v4459_v2 = vpop.f32.mrf.mxu0 }
 0x2cb   :  { %v4484_v12 = vadd.f32 %v4483_v11, %v4471_v20  ;;  %v4472_v35 = vpop.f32.mrf.mxu1 }
 0x2d2   :  { %v4485_v34 = vpop.f32.mrf.mxu2 }
 0x316   :  { %v4444_v36 = vpop.f32.mrf.mxu3 }
 0x317   :  { %v4445_v22 = vadd.f32 %v4444_v36, %v4432_v8 }
 0x319   :  { %4500 = vst [vmem:[%s11090_s5] sm:$0xff] %v4445_v22 }
 0x31e   :  { %v4446_v38 = vpop.f32.mrf.mxu3 }
 0x326   :  { %v4496_v25 = vpop.f32.mrf.mxu3 }
 0x327   :  { %v4497_v37 = vadd.f32 %v4496_v25, %v4484_v12 }
 0x329   :  { %4501 = vst [vmem:[%s11090_s5 + $0x8] sm:$0xff] %v4497_v37 }
 0x32e   :  { %v4498_v14 = vpop.f32.mrf.mxu3 }

</bundles_post_ra>
